<compile_context>
chip_gen: v5e
topology: v5e:2x2
jax: 0.10.0
libtpu: 0.0.40
codegen_flags: <defaults>
</compile_context>

<pallas_src>
import functools
import math

import numpy as np
import jax
import jax.numpy as jnp
from jax.experimental import pallas as pl
from jax.experimental.pallas import tpu as pltpu

P = 128  # unified pad size: rows = padded H*W (<=128), cols = padded channels


# ----------------------------------------------------------------------------
# Fused decoder kernel: all layers in one invocation, activations in VMEM.
# ----------------------------------------------------------------------------
def _decoder_kernel(a0_ref, g_ref, w_ref, bst_ref, wout_ref, o_ref, *, n_conv):
    a = a0_ref[...]                                   # (P, P) bf16 activation
    for l in range(n_conv):
        # Upsample-nearest + all nine 3x3 tap shifts (with conv zero padding)
        # in one 0/1-selection matmul: rows [k*P, (k+1)*P) hold tap k.
        sh = jnp.dot(g_ref[l], a, preferred_element_type=jnp.float32)
        sh = sh.astype(jnp.bfloat16)                  # exact: selection of bf16

        acc = jnp.zeros((P, P), jnp.float32)
        for k in range(9):                            # 9 accumulating matmuls
            acc = acc + jnp.dot(sh[k * P:(k + 1) * P, :],
                                w_ref[l * 9 + k],
                                preferred_element_type=jnp.float32)

        aff = bst_ref[l]                              # (8, P): bias/scale/shift
        acc = jnp.maximum(acc + aff[0:1, :], 0.0)     # conv bias + ReLU
        acc = acc * aff[1:2, :] + aff[2:3, :]         # BatchNorm (eval) affine
        a = acc.astype(jnp.bfloat16)

    # Final 1x1 conv to the 2 output channels (no ReLU / BN).
    out = jnp.dot(a, wout_ref[...], preferred_element_type=jnp.float32)
    o_ref[...] = out + bst_ref[n_conv][0:1, :]


def decoder_forward_pallas(x_nchw, g_stack, w_stack, bst_stack, w_out_mat,
                           *, in_size, out_size, n_conv):
    """Fused DipConvDecoder forward. Returns (1, 2, Hout, Wout) float32."""
    H0, W0 = in_size
    C0 = x_nchw.shape[1]
    a0 = jnp.transpose(x_nchw, (0, 2, 3, 1)).reshape(H0 * W0, C0)
    a0p = jnp.zeros((P, P), jnp.bfloat16).at[:H0 * W0, :C0].set(
        a0.astype(jnp.bfloat16))

    out = pl.pallas_call(
        functools.partial(_decoder_kernel, n_conv=n_conv),
        out_shape=jax.ShapeDtypeStruct((P, P), jnp.float32),
        grid=(1,),
        in_specs=[
            pl.BlockSpec((P, P), lambda i: (0, 0)),                    # a0
            pl.BlockSpec((n_conv, 9 * P, P), lambda i: (0, 0, 0)),     # G stack
            pl.BlockSpec((n_conv * 9, P, P), lambda i: (0, 0, 0)),     # W stack
            pl.BlockSpec((n_conv + 1, 8, P), lambda i: (0, 0, 0)),     # b/s/t
            pl.BlockSpec((P, P), lambda i: (0, 0)),                    # W 1x1
        ],
        out_specs=pl.BlockSpec((P, P), lambda i: (0, 0)),
        compiler_params=pltpu.CompilerParams(
            dimension_semantics=("arbitrary",)),
    )(a0p, g_stack, w_stack, bst_stack, w_out_mat)

    Ho, Wo = out_size
    img = out[:Ho * Wo, :2].reshape(Ho, Wo, 2)
    return jnp.transpose(img, (2, 0, 1))[None]        # (1, 2, Ho, Wo)


# ----------------------------------------------------------------------------
# One-time parameter packing (padding, bf16 cast, selection matrices).
# ----------------------------------------------------------------------------
def build_selection_matrices(geoms):
    """geoms: list of (Hin, Win, Hout, Wout).  Returns (L, 9*P, P) f32 0/1.

    G[l, k*P + (y*Wout + x), ry[y+dy-1]*Win + cx[x+dx-1]] = 1 encodes
    'nearest upsample then shift by 3x3 tap k=(dy,dx) with zero padding'.
    """
    mats = []
    for (hin, win, hout, wout) in geoms:
        assert hin * win <= P and hout * wout <= P
        ry = [(y * hin) // hout for y in range(hout)]
        cx = [(x * win) // wout for x in range(wout)]
        g = np.zeros((9 * P, P), np.float32)
        for dy in range(3):
            for dx in range(3):
                k = dy * 3 + dx
                for y in range(hout):
                    yy = y + dy - 1
                    if not (0 <= yy < hout):
                        continue
                    for x in range(wout):
                        xx = x + dx - 1
                        if not (0 <= xx < wout):
                            continue
                        g[k * P + y * wout + x, ry[yy] * win + cx[xx]] = 1.0
        mats.append(g)
    return np.stack(mats, axis=0)


def prepack_params(params, sizes, in_size):
    """Pack weights/bias/BN into lane-dense, bf16 MXU-ready stacks (once)."""
    conv_layers = list(params["hidden"]) + [params["last"]]
    n_conv = len(conv_layers)

    w_stack = jnp.zeros((n_conv * 9, P, P), jnp.float32)
    bst = jnp.zeros((n_conv + 1, 8, P), jnp.float32)
    for l, (w, b, g, beta) in enumerate(conv_layers):
        cout, cin = int(w.shape[0]), int(w.shape[1])
        # torch (Cout, Cin, kh, kw) -> (kh, kw, Cin, Cout) -> (9, Cin, Cout)
        wk = jnp.transpose(w, (2, 3, 1, 0)).reshape(9, cin, cout)
        w_stack = w_stack.at[l * 9:(l + 1) * 9, :cin, :cout].set(wk)
        bst = bst.at[l, 0, :cout].set(b)      # bias   (padded lanes stay 0)
        bst = bst.at[l, 1, :cout].set(g)      # BN scale
        bst = bst.at[l, 2, :cout].set(beta)   # BN shift

    w_out, b_out = params["out"]
    n_out, cin = int(w_out.shape[0]), int(w_out.shape[1])
    wout = jnp.zeros((P, P), jnp.float32).at[:cin, :n_out].set(
        w_out.reshape(n_out, cin).T)
    bst = bst.at[n_conv, 0, :n_out].set(b_out)

    geoms = []
    hw = in_size
    for s in sizes:                            # hidden blocks: upsample + conv
        geoms.append((hw[0], hw[1], s[0], s[1]))
        hw = s
    geoms.append((hw[0], hw[1], hw[0], hw[1]))  # last conv3x3: no upsample
    g_np = build_selection_matrices(geoms)      # 0/1 -> exact in bf16

    return (jnp.asarray(g_np, jnp.bfloat16),
            w_stack.astype(jnp.bfloat16),
            bst,
            wout.astype(jnp.bfloat16),
            n_conv)


# ----------------------------------------------------------------------------
# SCAMPI data consistency (FFT) + full inference
# ----------------------------------------------------------------------------
def apply_data_consistency(img2ch, coilmap, k0, mask):
    # TODO(synk): FFT has no Pallas equivalent; data-consistency stays in JAX.
    img = img2ch[:, 0] + 1j * img2ch[:, 1]            # (1, H, W) complex
    coil_imgs = coilmap * img[:, None]                # (1, nc, H, W)
    k = jnp.fft.fft2(coil_imgs, norm="ortho")
    k_dc = jnp.where(mask.astype(bool)[None, None], k0, k)
    img_dc = jnp.sum(jnp.conj(coilmap) * jnp.fft.ifft2(k_dc, norm="ortho"),
                     axis=1)
    return jnp.stack([img_dc.real, img_dc.imag], axis=1)   # (1, 2, H, W)


def cartesian_scampi_inference(x, g_stack, w_stack, bst_stack, w_out_mat,
                               coilmap, k0, mask, *, in_size, out_size, n_conv):
    img2 = decoder_forward_pallas(x, g_stack, w_stack, bst_stack, w_out_mat,
                                  in_size=in_size, out_size=out_size,
                                  n_conv=n_conv)
    return apply_data_consistency(img2, coilmap, k0, mask)


# ----------------------------------------------------------------------------
# Pure-JAX f32 reference of the decoder (for a correctness sanity check)
# ----------------------------------------------------------------------------
def reference_decoder(x_nchw, params, sizes):
    x = jnp.transpose(x_nchw, (0, 2, 3, 1)).astype(jnp.float32)

    def block(x, w, b, g, beta):
        y = jax.lax.conv_general_dilated(
            x, jnp.transpose(w, (2, 3, 1, 0)), (1, 1), "SAME",
            dimension_numbers=("NHWC", "HWIO", "NHWC"))
        y = jnp.maximum(y + b, 0.0)
        return y * g + beta

    for i, (w, b, g, beta) in enumerate(params["hidden"]):
        _, H, W, _ = x.shape
        oh, ow = sizes[i]
        ri = (jnp.arange(oh) * H // oh).astype(jnp.int32)
        ci = (jnp.arange(ow) * W // ow).astype(jnp.int32)
        x = x[:, ri][:, :, ci]
        x = block(x, w, b, g, beta)
    w, b, g, beta = params["last"]
    x = block(x, w, b, g, beta)
    w, b = params["out"]
    y = jnp.einsum("nhwc,oc->nhwo", x, w.reshape(w.shape[0], w.shape[1])) + b
    return jnp.transpose(y, (0, 3, 1, 2))


# ----------------------------------------------------------------------------
# Deterministic parameter / data construction
# ----------------------------------------------------------------------------
def make_params(key, input_dim, num_layers, num_channels, n_out):
    bn_eps = 1e-5
    bn_scale_val = 1.0 / math.sqrt(1.0 + bn_eps)      # BN eval, default stats
    params = {"hidden": [], "last": None, "out": None}
    cin = input_dim
    keys = jax.random.split(key, num_layers + 1)
    for i in range(num_layers - 1):
        fan_in = cin * 9
        w = jax.random.normal(keys[i], (num_channels, cin, 3, 3),
                              jnp.float32) * math.sqrt(2.0 / fan_in)
        params["hidden"].append((w, jnp.zeros((num_channels,), jnp.float32),
                                 jnp.full((num_channels,), bn_scale_val,
                                          jnp.float32),
                                 jnp.zeros((num_channels,), jnp.float32)))
        cin = num_channels
    fan_in = cin * 9
    w = jax.random.normal(keys[num_layers - 1], (num_channels, cin, 3, 3),
                          jnp.float32) * math.sqrt(2.0 / fan_in)
    params["last"] = (w, jnp.zeros((num_channels,), jnp.float32),
                      jnp.full((num_channels,), bn_scale_val, jnp.float32),
                      jnp.zeros((num_channels,), jnp.float32))
    w_out = jax.random.normal(keys[num_layers], (n_out, num_channels, 1, 1),
                              jnp.float32) * math.sqrt(2.0 / num_channels)
    params["out"] = (w_out, jnp.zeros((n_out,), jnp.float32))
    return params


def make_sizes(in_size, out_size, num_steps):
    sh = (out_size[0] / in_size[0]) ** (1.0 / num_steps)
    sw = (out_size[1] / in_size[1]) ** (1.0 / num_steps)
    sizes = [(int(round(in_size[0] * sh ** (i + 1))),
              int(round(in_size[1] * sw ** (i + 1)))) for i in range(num_steps)]
    sizes[-1] = out_size
    return sizes


if __name__ == "__main__":
    # Small, deterministic configuration consistent with the module:
    #   self.x = torch.rand((1, 16, 8, 4));  out_size = (H, W) of the k-space
    input_dim, in_size = 16, (8, 4)
    num_layers, num_channels, n_out = 4, 32, 2     # scaled-down "knee" config
    out_size = (16, 8)
    n_coils = 4

    root = jax.random.PRNGKey(0)
    k_x, k_par, k_cm, k_k0 = jax.random.split(root, 4)

    # DIP input (NCHW, as in torch.rand((1, input_dim, *input_shape)))
    x = jax.random.uniform(k_x, (1, input_dim, *in_size), dtype=jnp.float32)

    params = make_params(k_par, input_dim, num_layers, num_channels, n_out)
    sizes = make_sizes(in_size, out_size, num_layers - 1)
    g_stack, w_stack, bst_stack, wout_mat, n_conv = prepack_params(
        params, sizes, in_size)

    # Deterministic coil maps (normalized) and undersampled k-space + mask.
    cm_re, cm_im = jax.random.normal(k_cm, (2, 1, n_coils, *out_size),
                                     jnp.float32)
    coilmap = cm_re + 1j * cm_im
    coilmap = coilmap / jnp.sqrt(
        jnp.sum(jnp.abs(coilmap) ** 2, axis=1, keepdims=True) + 1e-8)

    mask = (jnp.arange(out_size[1]) % 2 == 0).astype(jnp.float32)
    mask = jnp.broadcast_to(mask[None, :], out_size)           # even columns

    k0_re, k0_im = jax.random.normal(k_k0, (2, 1, n_coils, *out_size),
                                     jnp.float32)
    k0 = (k0_re + 1j * k0_im) * mask[None, None]

    fwd = jax.jit(functools.partial(cartesian_scampi_inference,
                                    in_size=in_size, out_size=out_size,
                                    n_conv=n_conv))
    res = fwd(x, g_stack, w_stack, bst_stack, wout_mat, coilmap, k0, mask)
    jax.block_until_ready(res)

    # Sanity check: fused bf16 Pallas decoder vs. pure-JAX f32 reference.
    dec_fn = jax.jit(functools.partial(decoder_forward_pallas,
                                       in_size=in_size, out_size=out_size,
                                       n_conv=n_conv))
    dec = dec_fn(x, g_stack, w_stack, bst_stack, wout_mat)
    ref = reference_decoder(x, params, sizes)
    rel_err = float(jnp.max(jnp.abs(dec - ref)) /
                    (jnp.max(jnp.abs(ref)) + 1e-6))
    assert rel_err < 0.15, rel_err

    assert res.shape == (1, 2, *out_size), res.shape
    assert bool(jnp.all(jnp.isfinite(res)))
    print("KERNEL_OK")
</pallas_src>

<mosaic_0001>
module attributes {stable_mosaic.version = 11 : i64} {
  func.func @_decoder_kernel(%arg0: i32, %arg1: memref<128x128xbf16, #tpu.memory_space<vmem>>, %arg2: memref<4x1152x128xbf16, #tpu.memory_space<vmem>>, %arg3: memref<36x128x128xbf16, #tpu.memory_space<vmem>>, %arg4: memref<5x8x128xf32, #tpu.memory_space<vmem>>, %arg5: memref<128x128xbf16, #tpu.memory_space<vmem>>, %arg6: memref<128x128xf32, #tpu.memory_space<vmem>>) attributes {dimension_semantics = [#tpu.dimension_semantics<arbitrary>], iteration_bounds = array<i64: 1>, scalar_prefetch = 0 : i64, scratch_operands = 0 : i64, tpu.core_type = #tpu.core_type<tc>, window_params = [{pipeline_mode = #tpu.pipeline_mode<synchronous>, transform_indices = @transform_0, window_bounds = array<i64: 128, 128>}, {pipeline_mode = #tpu.pipeline_mode<synchronous>, transform_indices = @transform_1, window_bounds = array<i64: 4, 1152, 128>}, {pipeline_mode = #tpu.pipeline_mode<synchronous>, transform_indices = @transform_2, window_bounds = array<i64: 36, 128, 128>}, {pipeline_mode = #tpu.pipeline_mode<synchronous>, transform_indices = @transform_3, window_bounds = array<i64: 5, 8, 128>}, {pipeline_mode = #tpu.pipeline_mode<synchronous>, transform_indices = @transform_4, window_bounds = array<i64: 128, 128>}, {pipeline_mode = #tpu.pipeline_mode<synchronous>, transform_indices = @transform_5, window_bounds = array<i64: 128, 128>}]} {
    %c0 = arith.constant 0 : index
    %c0_0 = arith.constant 0 : index
    %0 = vector.load %arg1[%c0, %c0_0] : memref<128x128xbf16, #tpu.memory_space<vmem>>, vector<128x128xbf16>
    %c0_1 = arith.constant 0 : index
    %c0_2 = arith.constant 0 : index
    %c0_3 = arith.constant 0 : index
    %1 = vector.load %arg2[%c0_1, %c0_2, %c0_3] : memref<4x1152x128xbf16, #tpu.memory_space<vmem>>, vector<1x1152x128xbf16>
    %2 = vector.shape_cast %1 : vector<1x1152x128xbf16> to vector<1152x128xbf16>
    %cst = arith.constant dense<0.000000e+00> : vector<1152x128xf32>
    %3 = tpu.matmul %2, %0, %cst {dimension_numbers = #tpu.dot_dimension_numbers<[1], [0], [0], [1], [0, 0, 1, 1], [], []>} : vector<1152x128xbf16>, vector<128x128xbf16>, vector<1152x128xf32> -> vector<1152x128xf32>
    %4 = arith.truncf %3 : vector<1152x128xf32> to vector<1152x128xbf16>
    %cst_4 = arith.constant 0.000000e+00 : f32
    %5 = vector.broadcast %cst_4 : f32 to vector<128x128xf32>
    %6 = vector.extract_strided_slice %4 {offsets = [0, 0], sizes = [128, 128], strides = [1, 1]} : vector<1152x128xbf16> to vector<128x128xbf16>
    %c0_5 = arith.constant 0 : index
    %c0_6 = arith.constant 0 : index
    %c0_7 = arith.constant 0 : index
    %7 = vector.load %arg3[%c0_5, %c0_6, %c0_7] : memref<36x128x128xbf16, #tpu.memory_space<vmem>>, vector<1x128x128xbf16>
    %8 = vector.shape_cast %7 : vector<1x128x128xbf16> to vector<128x128xbf16>
    %cst_8 = arith.constant dense<0.000000e+00> : vector<128x128xf32>
    %9 = tpu.matmul %6, %8, %cst_8 {dimension_numbers = #tpu.dot_dimension_numbers<[1], [0], [0], [1], [0, 0, 1, 1], [], []>} : vector<128x128xbf16>, vector<128x128xbf16>, vector<128x128xf32> -> vector<128x128xf32>
    %10 = arith.addf %5, %9 : vector<128x128xf32>
    %11 = vector.extract_strided_slice %4 {offsets = [128, 0], sizes = [128, 128], strides = [1, 1]} : vector<1152x128xbf16> to vector<128x128xbf16>
    %c1 = arith.constant 1 : index
    %c0_9 = arith.constant 0 : index
    %c0_10 = arith.constant 0 : index
    %12 = vector.load %arg3[%c1, %c0_9, %c0_10] : memref<36x128x128xbf16, #tpu.memory_space<vmem>>, vector<1x128x128xbf16>
    %13 = vector.shape_cast %12 : vector<1x128x128xbf16> to vector<128x128xbf16>
    %cst_11 = arith.constant dense<0.000000e+00> : vector<128x128xf32>
    %14 = tpu.matmul %11, %13, %cst_11 {dimension_numbers = #tpu.dot_dimension_numbers<[1], [0], [0], [1], [0, 0, 1, 1], [], []>} : vector<128x128xbf16>, vector<128x128xbf16>, vector<128x128xf32> -> vector<128x128xf32>
    %15 = arith.addf %10, %14 : vector<128x128xf32>
    %16 = vector.extract_strided_slice %4 {offsets = [256, 0], sizes = [128, 128], strides = [1, 1]} : vector<1152x128xbf16> to vector<128x128xbf16>
    %c2 = arith.constant 2 : index
    %c0_12 = arith.constant 0 : index
    %c0_13 = arith.constant 0 : index
    %17 = vector.load %arg3[%c2, %c0_12, %c0_13] : memref<36x128x128xbf16, #tpu.memory_space<vmem>>, vector<1x128x128xbf16>
    %18 = vector.shape_cast %17 : vector<1x128x128xbf16> to vector<128x128xbf16>
    %cst_14 = arith.constant dense<0.000000e+00> : vector<128x128xf32>
    %19 = tpu.matmul %16, %18, %cst_14 {dimension_numbers = #tpu.dot_dimension_numbers<[1], [0], [0], [1], [0, 0, 1, 1], [], []>} : vector<128x128xbf16>, vector<128x128xbf16>, vector<128x128xf32> -> vector<128x128xf32>
    %20 = arith.addf %15, %19 : vector<128x128xf32>
    %21 = vector.extract_strided_slice %4 {offsets = [384, 0], sizes = [128, 128], strides = [1, 1]} : vector<1152x128xbf16> to vector<128x128xbf16>
    %c3 = arith.constant 3 : index
    %c0_15 = arith.constant 0 : index
    %c0_16 = arith.constant 0 : index
    %22 = vector.load %arg3[%c3, %c0_15, %c0_16] : memref<36x128x128xbf16, #tpu.memory_space<vmem>>, vector<1x128x128xbf16>
    %23 = vector.shape_cast %22 : vector<1x128x128xbf16> to vector<128x128xbf16>
    %cst_17 = arith.constant dense<0.000000e+00> : vector<128x128xf32>
    %24 = tpu.matmul %21, %23, %cst_17 {dimension_numbers = #tpu.dot_dimension_numbers<[1], [0], [0], [1], [0, 0, 1, 1], [], []>} : vector<128x128xbf16>, vector<128x128xbf16>, vector<128x128xf32> -> vector<128x128xf32>
    %25 = arith.addf %20, %24 : vector<128x128xf32>
    %26 = vector.extract_strided_slice %4 {offsets = [512, 0], sizes = [128, 128], strides = [1, 1]} : vector<1152x128xbf16> to vector<128x128xbf16>
    %c4 = arith.constant 4 : index
    %c0_18 = arith.constant 0 : index
    %c0_19 = arith.constant 0 : index
    %27 = vector.load %arg3[%c4, %c0_18, %c0_19] : memref<36x128x128xbf16, #tpu.memory_space<vmem>>, vector<1x128x128xbf16>
    %28 = vector.shape_cast %27 : vector<1x128x128xbf16> to vector<128x128xbf16>
    %cst_20 = arith.constant dense<0.000000e+00> : vector<128x128xf32>
    %29 = tpu.matmul %26, %28, %cst_20 {dimension_numbers = #tpu.dot_dimension_numbers<[1], [0], [0], [1], [0, 0, 1, 1], [], []>} : vector<128x128xbf16>, vector<128x128xbf16>, vector<128x128xf32> -> vector<128x128xf32>
    %30 = arith.addf %25, %29 : vector<128x128xf32>
    %31 = vector.extract_strided_slice %4 {offsets = [640, 0], sizes = [128, 128], strides = [1, 1]} : vector<1152x128xbf16> to vector<128x128xbf16>
    %c5 = arith.constant 5 : index
    %c0_21 = arith.constant 0 : index
    %c0_22 = arith.constant 0 : index
    %32 = vector.load %arg3[%c5, %c0_21, %c0_22] : memref<36x128x128xbf16, #tpu.memory_space<vmem>>, vector<1x128x128xbf16>
    %33 = vector.shape_cast %32 : vector<1x128x128xbf16> to vector<128x128xbf16>
    %cst_23 = arith.constant dense<0.000000e+00> : vector<128x128xf32>
    %34 = tpu.matmul %31, %33, %cst_23 {dimension_numbers = #tpu.dot_dimension_numbers<[1], [0], [0], [1], [0, 0, 1, 1], [], []>} : vector<128x128xbf16>, vector<128x128xbf16>, vector<128x128xf32> -> vector<128x128xf32>
    %35 = arith.addf %30, %34 : vector<128x128xf32>
    %36 = vector.extract_strided_slice %4 {offsets = [768, 0], sizes = [128, 128], strides = [1, 1]} : vector<1152x128xbf16> to vector<128x128xbf16>
    %c6 = arith.constant 6 : index
    %c0_24 = arith.constant 0 : index
    %c0_25 = arith.constant 0 : index
    %37 = vector.load %arg3[%c6, %c0_24, %c0_25] : memref<36x128x128xbf16, #tpu.memory_space<vmem>>, vector<1x128x128xbf16>
    %38 = vector.shape_cast %37 : vector<1x128x128xbf16> to vector<128x128xbf16>
    %cst_26 = arith.constant dense<0.000000e+00> : vector<128x128xf32>
    %39 = tpu.matmul %36, %38, %cst_26 {dimension_numbers = #tpu.dot_dimension_numbers<[1], [0], [0], [1], [0, 0, 1, 1], [], []>} : vector<128x128xbf16>, vector<128x128xbf16>, vector<128x128xf32> -> vector<128x128xf32>
    %40 = arith.addf %35, %39 : vector<128x128xf32>
    %41 = vector.extract_strided_slice %4 {offsets = [896, 0], sizes = [128, 128], strides = [1, 1]} : vector<1152x128xbf16> to vector<128x128xbf16>
    %c7 = arith.constant 7 : index
    %c0_27 = arith.constant 0 : index
    %c0_28 = arith.constant 0 : index
    %42 = vector.load %arg3[%c7, %c0_27, %c0_28] : memref<36x128x128xbf16, #tpu.memory_space<vmem>>, vector<1x128x128xbf16>
    %43 = vector.shape_cast %42 : vector<1x128x128xbf16> to vector<128x128xbf16>
    %cst_29 = arith.constant dense<0.000000e+00> : vector<128x128xf32>
    %44 = tpu.matmul %41, %43, %cst_29 {dimension_numbers = #tpu.dot_dimension_numbers<[1], [0], [0], [1], [0, 0, 1, 1], [], []>} : vector<128x128xbf16>, vector<128x128xbf16>, vector<128x128xf32> -> vector<128x128xf32>
    %45 = arith.addf %40, %44 : vector<128x128xf32>
    %46 = vector.extract_strided_slice %4 {offsets = [1024, 0], sizes = [128, 128], strides = [1, 1]} : vector<1152x128xbf16> to vector<128x128xbf16>
    %c8 = arith.constant 8 : index
    %c0_30 = arith.constant 0 : index
    %c0_31 = arith.constant 0 : index
    %47 = vector.load %arg3[%c8, %c0_30, %c0_31] : memref<36x128x128xbf16, #tpu.memory_space<vmem>>, vector<1x128x128xbf16>
    %48 = vector.shape_cast %47 : vector<1x128x128xbf16> to vector<128x128xbf16>
    %cst_32 = arith.constant dense<0.000000e+00> : vector<128x128xf32>
    %49 = tpu.matmul %46, %48, %cst_32 {dimension_numbers = #tpu.dot_dimension_numbers<[1], [0], [0], [1], [0, 0, 1, 1], [], []>} : vector<128x128xbf16>, vector<128x128xbf16>, vector<128x128xf32> -> vector<128x128xf32>
    %50 = arith.addf %45, %49 : vector<128x128xf32>
    %c0_33 = arith.constant 0 : index
    %c0_34 = arith.constant 0 : index
    %c0_35 = arith.constant 0 : index
    %51 = vector.load %arg4[%c0_33, %c0_34, %c0_35] : memref<5x8x128xf32, #tpu.memory_space<vmem>>, vector<1x8x128xf32>
    %52 = vector.shape_cast %51 : vector<1x8x128xf32> to vector<8x128xf32>
    %53 = vector.extract_strided_slice %52 {offsets = [0, 0], sizes = [1, 128], strides = [1, 1]} : vector<8x128xf32> to vector<1x128xf32>
    %54 = vector.broadcast %53 : vector<1x128xf32> to vector<128x128xf32>
    %55 = arith.addf %50, %54 : vector<128x128xf32>
    %cst_36 = arith.constant 0.000000e+00 : f32
    %56 = vector.broadcast %cst_36 : f32 to vector<128x128xf32>
    %57 = arith.maximumf %55, %56 : vector<128x128xf32>
    %58 = vector.extract_strided_slice %52 {offsets = [1, 0], sizes = [1, 128], strides = [1, 1]} : vector<8x128xf32> to vector<1x128xf32>
    %59 = vector.broadcast %58 : vector<1x128xf32> to vector<128x128xf32>
    %60 = arith.mulf %57, %59 : vector<128x128xf32>
    %61 = vector.extract_strided_slice %52 {offsets = [2, 0], sizes = [1, 128], strides = [1, 1]} : vector<8x128xf32> to vector<1x128xf32>
    %62 = vector.broadcast %61 : vector<1x128xf32> to vector<128x128xf32>
    %63 = arith.addf %60, %62 : vector<128x128xf32>
    %64 = arith.truncf %63 : vector<128x128xf32> to vector<128x128xbf16>
    %c1_37 = arith.constant 1 : index
    %c0_38 = arith.constant 0 : index
    %c0_39 = arith.constant 0 : index
    %65 = vector.load %arg2[%c1_37, %c0_38, %c0_39] : memref<4x1152x128xbf16, #tpu.memory_space<vmem>>, vector<1x1152x128xbf16>
    %66 = vector.shape_cast %65 : vector<1x1152x128xbf16> to vector<1152x128xbf16>
    %cst_40 = arith.constant dense<0.000000e+00> : vector<1152x128xf32>
    %67 = tpu.matmul %66, %64, %cst_40 {dimension_numbers = #tpu.dot_dimension_numbers<[1], [0], [0], [1], [0, 0, 1, 1], [], []>} : vector<1152x128xbf16>, vector<128x128xbf16>, vector<1152x128xf32> -> vector<1152x128xf32>
    %68 = arith.truncf %67 : vector<1152x128xf32> to vector<1152x128xbf16>
    %cst_41 = arith.constant 0.000000e+00 : f32
    %69 = vector.broadcast %cst_41 : f32 to vector<128x128xf32>
    %70 = vector.extract_strided_slice %68 {offsets = [0, 0], sizes = [128, 128], strides = [1, 1]} : vector<1152x128xbf16> to vector<128x128xbf16>
    %c9 = arith.constant 9 : index
    %c0_42 = arith.constant 0 : index
    %c0_43 = arith.constant 0 : index
    %71 = vector.load %arg3[%c9, %c0_42, %c0_43] : memref<36x128x128xbf16, #tpu.memory_space<vmem>>, vector<1x128x128xbf16>
    %72 = vector.shape_cast %71 : vector<1x128x128xbf16> to vector<128x128xbf16>
    %cst_44 = arith.constant dense<0.000000e+00> : vector<128x128xf32>
    %73 = tpu.matmul %70, %72, %cst_44 {dimension_numbers = #tpu.dot_dimension_numbers<[1], [0], [0], [1], [0, 0, 1, 1], [], []>} : vector<128x128xbf16>, vector<128x128xbf16>, vector<128x128xf32> -> vector<128x128xf32>
    %74 = arith.addf %69, %73 : vector<128x128xf32>
    %75 = vector.extract_strided_slice %68 {offsets = [128, 0], sizes = [128, 128], strides = [1, 1]} : vector<1152x128xbf16> to vector<128x128xbf16>
    %c10 = arith.constant 10 : index
    %c0_45 = arith.constant 0 : index
    %c0_46 = arith.constant 0 : index
    %76 = vector.load %arg3[%c10, %c0_45, %c0_46] : memref<36x128x128xbf16, #tpu.memory_space<vmem>>, vector<1x128x128xbf16>
    %77 = vector.shape_cast %76 : vector<1x128x128xbf16> to vector<128x128xbf16>
    %cst_47 = arith.constant dense<0.000000e+00> : vector<128x128xf32>
    %78 = tpu.matmul %75, %77, %cst_47 {dimension_numbers = #tpu.dot_dimension_numbers<[1], [0], [0], [1], [0, 0, 1, 1], [], []>} : vector<128x128xbf16>, vector<128x128xbf16>, vector<128x128xf32> -> vector<128x128xf32>
    %79 = arith.addf %74, %78 : vector<128x128xf32>
    %80 = vector.extract_strided_slice %68 {offsets = [256, 0], sizes = [128, 128], strides = [1, 1]} : vector<1152x128xbf16> to vector<128x128xbf16>
    %c11 = arith.constant 11 : index
    %c0_48 = arith.constant 0 : index
    %c0_49 = arith.constant 0 : index
    %81 = vector.load %arg3[%c11, %c0_48, %c0_49] : memref<36x128x128xbf16, #tpu.memory_space<vmem>>, vector<1x128x128xbf16>
    %82 = vector.shape_cast %81 : vector<1x128x128xbf16> to vector<128x128xbf16>
    %cst_50 = arith.constant dense<0.000000e+00> : vector<128x128xf32>
    %83 = tpu.matmul %80, %82, %cst_50 {dimension_numbers = #tpu.dot_dimension_numbers<[1], [0], [0], [1], [0, 0, 1, 1], [], []>} : vector<128x128xbf16>, vector<128x128xbf16>, vector<128x128xf32> -> vector<128x128xf32>
    %84 = arith.addf %79, %83 : vector<128x128xf32>
    %85 = vector.extract_strided_slice %68 {offsets = [384, 0], sizes = [128, 128], strides = [1, 1]} : vector<1152x128xbf16> to vector<128x128xbf16>
    %c12 = arith.constant 12 : index
    %c0_51 = arith.constant 0 : index
    %c0_52 = arith.constant 0 : index
    %86 = vector.load %arg3[%c12, %c0_51, %c0_52] : memref<36x128x128xbf16, #tpu.memory_space<vmem>>, vector<1x128x128xbf16>
    %87 = vector.shape_cast %86 : vector<1x128x128xbf16> to vector<128x128xbf16>
    %cst_53 = arith.constant dense<0.000000e+00> : vector<128x128xf32>
    %88 = tpu.matmul %85, %87, %cst_53 {dimension_numbers = #tpu.dot_dimension_numbers<[1], [0], [0], [1], [0, 0, 1, 1], [], []>} : vector<128x128xbf16>, vector<128x128xbf16>, vector<128x128xf32> -> vector<128x128xf32>
    %89 = arith.addf %84, %88 : vector<128x128xf32>
    %90 = vector.extract_strided_slice %68 {offsets = [512, 0], sizes = [128, 128], strides = [1, 1]} : vector<1152x128xbf16> to vector<128x128xbf16>
    %c13 = arith.constant 13 : index
    %c0_54 = arith.constant 0 : index
    %c0_55 = arith.constant 0 : index
    %91 = vector.load %arg3[%c13, %c0_54, %c0_55] : memref<36x128x128xbf16, #tpu.memory_space<vmem>>, vector<1x128x128xbf16>
    %92 = vector.shape_cast %91 : vector<1x128x128xbf16> to vector<128x128xbf16>
    %cst_56 = arith.constant dense<0.000000e+00> : vector<128x128xf32>
    %93 = tpu.matmul %90, %92, %cst_56 {dimension_numbers = #tpu.dot_dimension_numbers<[1], [0], [0], [1], [0, 0, 1, 1], [], []>} : vector<128x128xbf16>, vector<128x128xbf16>, vector<128x128xf32> -> vector<128x128xf32>
    %94 = arith.addf %89, %93 : vector<128x128xf32>
    %95 = vector.extract_strided_slice %68 {offsets = [640, 0], sizes = [128, 128], strides = [1, 1]} : vector<1152x128xbf16> to vector<128x128xbf16>
    %c14 = arith.constant 14 : index
    %c0_57 = arith.constant 0 : index
    %c0_58 = arith.constant 0 : index
    %96 = vector.load %arg3[%c14, %c0_57, %c0_58] : memref<36x128x128xbf16, #tpu.memory_space<vmem>>, vector<1x128x128xbf16>
    %97 = vector.shape_cast %96 : vector<1x128x128xbf16> to vector<128x128xbf16>
    %cst_59 = arith.constant dense<0.000000e+00> : vector<128x128xf32>
    %98 = tpu.matmul %95, %97, %cst_59 {dimension_numbers = #tpu.dot_dimension_numbers<[1], [0], [0], [1], [0, 0, 1, 1], [], []>} : vector<128x128xbf16>, vector<128x128xbf16>, vector<128x128xf32> -> vector<128x128xf32>
    %99 = arith.addf %94, %98 : vector<128x128xf32>
    %100 = vector.extract_strided_slice %68 {offsets = [768, 0], sizes = [128, 128], strides = [1, 1]} : vector<1152x128xbf16> to vector<128x128xbf16>
    %c15 = arith.constant 15 : index
    %c0_60 = arith.constant 0 : index
    %c0_61 = arith.constant 0 : index
    %101 = vector.load %arg3[%c15, %c0_60, %c0_61] : memref<36x128x128xbf16, #tpu.memory_space<vmem>>, vector<1x128x128xbf16>
    %102 = vector.shape_cast %101 : vector<1x128x128xbf16> to vector<128x128xbf16>
    %cst_62 = arith.constant dense<0.000000e+00> : vector<128x128xf32>
    %103 = tpu.matmul %100, %102, %cst_62 {dimension_numbers = #tpu.dot_dimension_numbers<[1], [0], [0], [1], [0, 0, 1, 1], [], []>} : vector<128x128xbf16>, vector<128x128xbf16>, vector<128x128xf32> -> vector<128x128xf32>
    %104 = arith.addf %99, %103 : vector<128x128xf32>
    %105 = vector.extract_strided_slice %68 {offsets = [896, 0], sizes = [128, 128], strides = [1, 1]} : vector<1152x128xbf16> to vector<128x128xbf16>
    %c16 = arith.constant 16 : index
    %c0_63 = arith.constant 0 : index
    %c0_64 = arith.constant 0 : index
    %106 = vector.load %arg3[%c16, %c0_63, %c0_64] : memref<36x128x128xbf16, #tpu.memory_space<vmem>>, vector<1x128x128xbf16>
    %107 = vector.shape_cast %106 : vector<1x128x128xbf16> to vector<128x128xbf16>
    %cst_65 = arith.constant dense<0.000000e+00> : vector<128x128xf32>
    %108 = tpu.matmul %105, %107, %cst_65 {dimension_numbers = #tpu.dot_dimension_numbers<[1], [0], [0], [1], [0, 0, 1, 1], [], []>} : vector<128x128xbf16>, vector<128x128xbf16>, vector<128x128xf32> -> vector<128x128xf32>
    %109 = arith.addf %104, %108 : vector<128x128xf32>
    %110 = vector.extract_strided_slice %68 {offsets = [1024, 0], sizes = [128, 128], strides = [1, 1]} : vector<1152x128xbf16> to vector<128x128xbf16>
    %c17 = arith.constant 17 : index
    %c0_66 = arith.constant 0 : index
    %c0_67 = arith.constant 0 : index
    %111 = vector.load %arg3[%c17, %c0_66, %c0_67] : memref<36x128x128xbf16, #tpu.memory_space<vmem>>, vector<1x128x128xbf16>
    %112 = vector.shape_cast %111 : vector<1x128x128xbf16> to vector<128x128xbf16>
    %cst_68 = arith.constant dense<0.000000e+00> : vector<128x128xf32>
    %113 = tpu.matmul %110, %112, %cst_68 {dimension_numbers = #tpu.dot_dimension_numbers<[1], [0], [0], [1], [0, 0, 1, 1], [], []>} : vector<128x128xbf16>, vector<128x128xbf16>, vector<128x128xf32> -> vector<128x128xf32>
    %114 = arith.addf %109, %113 : vector<128x128xf32>
    %c1_69 = arith.constant 1 : index
    %c0_70 = arith.constant 0 : index
    %c0_71 = arith.constant 0 : index
    %115 = vector.load %arg4[%c1_69, %c0_70, %c0_71] : memref<5x8x128xf32, #tpu.memory_space<vmem>>, vector<1x8x128xf32>
    %116 = vector.shape_cast %115 : vector<1x8x128xf32> to vector<8x128xf32>
    %117 = vector.extract_strided_slice %116 {offsets = [0, 0], sizes = [1, 128], strides = [1, 1]} : vector<8x128xf32> to vector<1x128xf32>
    %118 = vector.broadcast %117 : vector<1x128xf32> to vector<128x128xf32>
    %119 = arith.addf %114, %118 : vector<128x128xf32>
    %cst_72 = arith.constant 0.000000e+00 : f32
    %120 = vector.broadcast %cst_72 : f32 to vector<128x128xf32>
    %121 = arith.maximumf %119, %120 : vector<128x128xf32>
    %122 = vector.extract_strided_slice %116 {offsets = [1, 0], sizes = [1, 128], strides = [1, 1]} : vector<8x128xf32> to vector<1x128xf32>
    %123 = vector.broadcast %122 : vector<1x128xf32> to vector<128x128xf32>
    %124 = arith.mulf %121, %123 : vector<128x128xf32>
    %125 = vector.extract_strided_slice %116 {offsets = [2, 0], sizes = [1, 128], strides = [1, 1]} : vector<8x128xf32> to vector<1x128xf32>
    %126 = vector.broadcast %125 : vector<1x128xf32> to vector<128x128xf32>
    %127 = arith.addf %124, %126 : vector<128x128xf32>
    %128 = arith.truncf %127 : vector<128x128xf32> to vector<128x128xbf16>
    %c2_73 = arith.constant 2 : index
    %c0_74 = arith.constant 0 : index
    %c0_75 = arith.constant 0 : index
    %129 = vector.load %arg2[%c2_73, %c0_74, %c0_75] : memref<4x1152x128xbf16, #tpu.memory_space<vmem>>, vector<1x1152x128xbf16>
    %130 = vector.shape_cast %129 : vector<1x1152x128xbf16> to vector<1152x128xbf16>
    %cst_76 = arith.constant dense<0.000000e+00> : vector<1152x128xf32>
    %131 = tpu.matmul %130, %128, %cst_76 {dimension_numbers = #tpu.dot_dimension_numbers<[1], [0], [0], [1], [0, 0, 1, 1], [], []>} : vector<1152x128xbf16>, vector<128x128xbf16>, vector<1152x128xf32> -> vector<1152x128xf32>
    %132 = arith.truncf %131 : vector<1152x128xf32> to vector<1152x128xbf16>
    %cst_77 = arith.constant 0.000000e+00 : f32
    %133 = vector.broadcast %cst_77 : f32 to vector<128x128xf32>
    %134 = vector.extract_strided_slice %132 {offsets = [0, 0], sizes = [128, 128], strides = [1, 1]} : vector<1152x128xbf16> to vector<128x128xbf16>
    %c18 = arith.constant 18 : index
    %c0_78 = arith.constant 0 : index
    %c0_79 = arith.constant 0 : index
    %135 = vector.load %arg3[%c18, %c0_78, %c0_79] : memref<36x128x128xbf16, #tpu.memory_space<vmem>>, vector<1x128x128xbf16>
    %136 = vector.shape_cast %135 : vector<1x128x128xbf16> to vector<128x128xbf16>
    %cst_80 = arith.constant dense<0.000000e+00> : vector<128x128xf32>
    %137 = tpu.matmul %134, %136, %cst_80 {dimension_numbers = #tpu.dot_dimension_numbers<[1], [0], [0], [1], [0, 0, 1, 1], [], []>} : vector<128x128xbf16>, vector<128x128xbf16>, vector<128x128xf32> -> vector<128x128xf32>
    %138 = arith.addf %133, %137 : vector<128x128xf32>
    %139 = vector.extract_strided_slice %132 {offsets = [128, 0], sizes = [128, 128], strides = [1, 1]} : vector<1152x128xbf16> to vector<128x128xbf16>
    %c19 = arith.constant 19 : index
    %c0_81 = arith.constant 0 : index
    %c0_82 = arith.constant 0 : index
    %140 = vector.load %arg3[%c19, %c0_81, %c0_82] : memref<36x128x128xbf16, #tpu.memory_space<vmem>>, vector<1x128x128xbf16>
    %141 = vector.shape_cast %140 : vector<1x128x128xbf16> to vector<128x128xbf16>
    %cst_83 = arith.constant dense<0.000000e+00> : vector<128x128xf32>
    %142 = tpu.matmul %139, %141, %cst_83 {dimension_numbers = #tpu.dot_dimension_numbers<[1], [0], [0], [1], [0, 0, 1, 1], [], []>} : vector<128x128xbf16>, vector<128x128xbf16>, vector<128x128xf32> -> vector<128x128xf32>
    %143 = arith.addf %138, %142 : vector<128x128xf32>
    %144 = vector.extract_strided_slice %132 {offsets = [256, 0], sizes = [128, 128], strides = [1, 1]} : vector<1152x128xbf16> to vector<128x128xbf16>
    %c20 = arith.constant 20 : index
    %c0_84 = arith.constant 0 : index
    %c0_85 = arith.constant 0 : index
    %145 = vector.load %arg3[%c20, %c0_84, %c0_85] : memref<36x128x128xbf16, #tpu.memory_space<vmem>>, vector<1x128x128xbf16>
    %146 = vector.shape_cast %145 : vector<1x128x128xbf16> to vector<128x128xbf16>
    %cst_86 = arith.constant dense<0.000000e+00> : vector<128x128xf32>
    %147 = tpu.matmul %144, %146, %cst_86 {dimension_numbers = #tpu.dot_dimension_numbers<[1], [0], [0], [1], [0, 0, 1, 1], [], []>} : vector<128x128xbf16>, vector<128x128xbf16>, vector<128x128xf32> -> vector<128x128xf32>
    %148 = arith.addf %143, %147 : vector<128x128xf32>
    %149 = vector.extract_strided_slice %132 {offsets = [384, 0], sizes = [128, 128], strides = [1, 1]} : vector<1152x128xbf16> to vector<128x128xbf16>
    %c21 = arith.constant 21 : index
    %c0_87 = arith.constant 0 : index
    %c0_88 = arith.constant 0 : index
    %150 = vector.load %arg3[%c21, %c0_87, %c0_88] : memref<36x128x128xbf16, #tpu.memory_space<vmem>>, vector<1x128x128xbf16>
    %151 = vector.shape_cast %150 : vector<1x128x128xbf16> to vector<128x128xbf16>
    %cst_89 = arith.constant dense<0.000000e+00> : vector<128x128xf32>
    %152 = tpu.matmul %149, %151, %cst_89 {dimension_numbers = #tpu.dot_dimension_numbers<[1], [0], [0], [1], [0, 0, 1, 1], [], []>} : vector<128x128xbf16>, vector<128x128xbf16>, vector<128x128xf32> -> vector<128x128xf32>
    %153 = arith.addf %148, %152 : vector<128x128xf32>
    %154 = vector.extract_strided_slice %132 {offsets = [512, 0], sizes = [128, 128], strides = [1, 1]} : vector<1152x128xbf16> to vector<128x128xbf16>
    %c22 = arith.constant 22 : index
    %c0_90 = arith.constant 0 : index
    %c0_91 = arith.constant 0 : index
    %155 = vector.load %arg3[%c22, %c0_90, %c0_91] : memref<36x128x128xbf16, #tpu.memory_space<vmem>>, vector<1x128x128xbf16>
    %156 = vector.shape_cast %155 : vector<1x128x128xbf16> to vector<128x128xbf16>
    %cst_92 = arith.constant dense<0.000000e+00> : vector<128x128xf32>
    %157 = tpu.matmul %154, %156, %cst_92 {dimension_numbers = #tpu.dot_dimension_numbers<[1], [0], [0], [1], [0, 0, 1, 1], [], []>} : vector<128x128xbf16>, vector<128x128xbf16>, vector<128x128xf32> -> vector<128x128xf32>
    %158 = arith.addf %153, %157 : vector<128x128xf32>
    %159 = vector.extract_strided_slice %132 {offsets = [640, 0], sizes = [128, 128], strides = [1, 1]} : vector<1152x128xbf16> to vector<128x128xbf16>
    %c23 = arith.constant 23 : index
    %c0_93 = arith.constant 0 : index
    %c0_94 = arith.constant 0 : index
    %160 = vector.load %arg3[%c23, %c0_93, %c0_94] : memref<36x128x128xbf16, #tpu.memory_space<vmem>>, vector<1x128x128xbf16>
    %161 = vector.shape_cast %160 : vector<1x128x128xbf16> to vector<128x128xbf16>
    %cst_95 = arith.constant dense<0.000000e+00> : vector<128x128xf32>
    %162 = tpu.matmul %159, %161, %cst_95 {dimension_numbers = #tpu.dot_dimension_numbers<[1], [0], [0], [1], [0, 0, 1, 1], [], []>} : vector<128x128xbf16>, vector<128x128xbf16>, vector<128x128xf32> -> vector<128x128xf32>
    %163 = arith.addf %158, %162 : vector<128x128xf32>
    %164 = vector.extract_strided_slice %132 {offsets = [768, 0], sizes = [128, 128], strides = [1, 1]} : vector<1152x128xbf16> to vector<128x128xbf16>
    %c24 = arith.constant 24 : index
    %c0_96 = arith.constant 0 : index
    %c0_97 = arith.constant 0 : index
    %165 = vector.load %arg3[%c24, %c0_96, %c0_97] : memref<36x128x128xbf16, #tpu.memory_space<vmem>>, vector<1x128x128xbf16>
    %166 = vector.shape_cast %165 : vector<1x128x128xbf16> to vector<128x128xbf16>
    %cst_98 = arith.constant dense<0.000000e+00> : vector<128x128xf32>
    %167 = tpu.matmul %164, %166, %cst_98 {dimension_numbers = #tpu.dot_dimension_numbers<[1], [0], [0], [1], [0, 0, 1, 1], [], []>} : vector<128x128xbf16>, vector<128x128xbf16>, vector<128x128xf32> -> vector<128x128xf32>
    %168 = arith.addf %163, %167 : vector<128x128xf32>
    %169 = vector.extract_strided_slice %132 {offsets = [896, 0], sizes = [128, 128], strides = [1, 1]} : vector<1152x128xbf16> to vector<128x128xbf16>
    %c25 = arith.constant 25 : index
    %c0_99 = arith.constant 0 : index
    %c0_100 = arith.constant 0 : index
    %170 = vector.load %arg3[%c25, %c0_99, %c0_100] : memref<36x128x128xbf16, #tpu.memory_space<vmem>>, vector<1x128x128xbf16>
    %171 = vector.shape_cast %170 : vector<1x128x128xbf16> to vector<128x128xbf16>
    %cst_101 = arith.constant dense<0.000000e+00> : vector<128x128xf32>
    %172 = tpu.matmul %169, %171, %cst_101 {dimension_numbers = #tpu.dot_dimension_numbers<[1], [0], [0], [1], [0, 0, 1, 1], [], []>} : vector<128x128xbf16>, vector<128x128xbf16>, vector<128x128xf32> -> vector<128x128xf32>
    %173 = arith.addf %168, %172 : vector<128x128xf32>
    %174 = vector.extract_strided_slice %132 {offsets = [1024, 0], sizes = [128, 128], strides = [1, 1]} : vector<1152x128xbf16> to vector<128x128xbf16>
    %c26 = arith.constant 26 : index
    %c0_102 = arith.constant 0 : index
    %c0_103 = arith.constant 0 : index
    %175 = vector.load %arg3[%c26, %c0_102, %c0_103] : memref<36x128x128xbf16, #tpu.memory_space<vmem>>, vector<1x128x128xbf16>
    %176 = vector.shape_cast %175 : vector<1x128x128xbf16> to vector<128x128xbf16>
    %cst_104 = arith.constant dense<0.000000e+00> : vector<128x128xf32>
    %177 = tpu.matmul %174, %176, %cst_104 {dimension_numbers = #tpu.dot_dimension_numbers<[1], [0], [0], [1], [0, 0, 1, 1], [], []>} : vector<128x128xbf16>, vector<128x128xbf16>, vector<128x128xf32> -> vector<128x128xf32>
    %178 = arith.addf %173, %177 : vector<128x128xf32>
    %c2_105 = arith.constant 2 : index
    %c0_106 = arith.constant 0 : index
    %c0_107 = arith.constant 0 : index
    %179 = vector.load %arg4[%c2_105, %c0_106, %c0_107] : memref<5x8x128xf32, #tpu.memory_space<vmem>>, vector<1x8x128xf32>
    %180 = vector.shape_cast %179 : vector<1x8x128xf32> to vector<8x128xf32>
    %181 = vector.extract_strided_slice %180 {offsets = [0, 0], sizes = [1, 128], strides = [1, 1]} : vector<8x128xf32> to vector<1x128xf32>
    %182 = vector.broadcast %181 : vector<1x128xf32> to vector<128x128xf32>
    %183 = arith.addf %178, %182 : vector<128x128xf32>
    %cst_108 = arith.constant 0.000000e+00 : f32
    %184 = vector.broadcast %cst_108 : f32 to vector<128x128xf32>
    %185 = arith.maximumf %183, %184 : vector<128x128xf32>
    %186 = vector.extract_strided_slice %180 {offsets = [1, 0], sizes = [1, 128], strides = [1, 1]} : vector<8x128xf32> to vector<1x128xf32>
    %187 = vector.broadcast %186 : vector<1x128xf32> to vector<128x128xf32>
    %188 = arith.mulf %185, %187 : vector<128x128xf32>
    %189 = vector.extract_strided_slice %180 {offsets = [2, 0], sizes = [1, 128], strides = [1, 1]} : vector<8x128xf32> to vector<1x128xf32>
    %190 = vector.broadcast %189 : vector<1x128xf32> to vector<128x128xf32>
    %191 = arith.addf %188, %190 : vector<128x128xf32>
    %192 = arith.truncf %191 : vector<128x128xf32> to vector<128x128xbf16>
    %c3_109 = arith.constant 3 : index
    %c0_110 = arith.constant 0 : index
    %c0_111 = arith.constant 0 : index
    %193 = vector.load %arg2[%c3_109, %c0_110, %c0_111] : memref<4x1152x128xbf16, #tpu.memory_space<vmem>>, vector<1x1152x128xbf16>
    %194 = vector.shape_cast %193 : vector<1x1152x128xbf16> to vector<1152x128xbf16>
    %cst_112 = arith.constant dense<0.000000e+00> : vector<1152x128xf32>
    %195 = tpu.matmul %194, %192, %cst_112 {dimension_numbers = #tpu.dot_dimension_numbers<[1], [0], [0], [1], [0, 0, 1, 1], [], []>} : vector<1152x128xbf16>, vector<128x128xbf16>, vector<1152x128xf32> -> vector<1152x128xf32>
    %196 = arith.truncf %195 : vector<1152x128xf32> to vector<1152x128xbf16>
    %cst_113 = arith.constant 0.000000e+00 : f32
    %197 = vector.broadcast %cst_113 : f32 to vector<128x128xf32>
    %198 = vector.extract_strided_slice %196 {offsets = [0, 0], sizes = [128, 128], strides = [1, 1]} : vector<1152x128xbf16> to vector<128x128xbf16>
    %c27 = arith.constant 27 : index
    %c0_114 = arith.constant 0 : index
    %c0_115 = arith.constant 0 : index
    %199 = vector.load %arg3[%c27, %c0_114, %c0_115] : memref<36x128x128xbf16, #tpu.memory_space<vmem>>, vector<1x128x128xbf16>
    %200 = vector.shape_cast %199 : vector<1x128x128xbf16> to vector<128x128xbf16>
    %cst_116 = arith.constant dense<0.000000e+00> : vector<128x128xf32>
    %201 = tpu.matmul %198, %200, %cst_116 {dimension_numbers = #tpu.dot_dimension_numbers<[1], [0], [0], [1], [0, 0, 1, 1], [], []>} : vector<128x128xbf16>, vector<128x128xbf16>, vector<128x128xf32> -> vector<128x128xf32>
    %202 = arith.addf %197, %201 : vector<128x128xf32>
    %203 = vector.extract_strided_slice %196 {offsets = [128, 0], sizes = [128, 128], strides = [1, 1]} : vector<1152x128xbf16> to vector<128x128xbf16>
    %c28 = arith.constant 28 : index
    %c0_117 = arith.constant 0 : index
    %c0_118 = arith.constant 0 : index
    %204 = vector.load %arg3[%c28, %c0_117, %c0_118] : memref<36x128x128xbf16, #tpu.memory_space<vmem>>, vector<1x128x128xbf16>
    %205 = vector.shape_cast %204 : vector<1x128x128xbf16> to vector<128x128xbf16>
    %cst_119 = arith.constant dense<0.000000e+00> : vector<128x128xf32>
    %206 = tpu.matmul %203, %205, %cst_119 {dimension_numbers = #tpu.dot_dimension_numbers<[1], [0], [0], [1], [0, 0, 1, 1], [], []>} : vector<128x128xbf16>, vector<128x128xbf16>, vector<128x128xf32> -> vector<128x128xf32>
    %207 = arith.addf %202, %206 : vector<128x128xf32>
    %208 = vector.extract_strided_slice %196 {offsets = [256, 0], sizes = [128, 128], strides = [1, 1]} : vector<1152x128xbf16> to vector<128x128xbf16>
    %c29 = arith.constant 29 : index
    %c0_120 = arith.constant 0 : index
    %c0_121 = arith.constant 0 : index
    %209 = vector.load %arg3[%c29, %c0_120, %c0_121] : memref<36x128x128xbf16, #tpu.memory_space<vmem>>, vector<1x128x128xbf16>
    %210 = vector.shape_cast %209 : vector<1x128x128xbf16> to vector<128x128xbf16>
    %cst_122 = arith.constant dense<0.000000e+00> : vector<128x128xf32>
    %211 = tpu.matmul %208, %210, %cst_122 {dimension_numbers = #tpu.dot_dimension_numbers<[1], [0], [0], [1], [0, 0, 1, 1], [], []>} : vector<128x128xbf16>, vector<128x128xbf16>, vector<128x128xf32> -> vector<128x128xf32>
    %212 = arith.addf %207, %211 : vector<128x128xf32>
    %213 = vector.extract_strided_slice %196 {offsets = [384, 0], sizes = [128, 128], strides = [1, 1]} : vector<1152x128xbf16> to vector<128x128xbf16>
    %c30 = arith.constant 30 : index
    %c0_123 = arith.constant 0 : index
    %c0_124 = arith.constant 0 : index
    %214 = vector.load %arg3[%c30, %c0_123, %c0_124] : memref<36x128x128xbf16, #tpu.memory_space<vmem>>, vector<1x128x128xbf16>
    %215 = vector.shape_cast %214 : vector<1x128x128xbf16> to vector<128x128xbf16>
    %cst_125 = arith.constant dense<0.000000e+00> : vector<128x128xf32>
    %216 = tpu.matmul %213, %215, %cst_125 {dimension_numbers = #tpu.dot_dimension_numbers<[1], [0], [0], [1], [0, 0, 1, 1], [], []>} : vector<128x128xbf16>, vector<128x128xbf16>, vector<128x128xf32> -> vector<128x128xf32>
    %217 = arith.addf %212, %216 : vector<128x128xf32>
    %218 = vector.extract_strided_slice %196 {offsets = [512, 0], sizes = [128, 128], strides = [1, 1]} : vector<1152x128xbf16> to vector<128x128xbf16>
    %c31 = arith.constant 31 : index
    %c0_126 = arith.constant 0 : index
    %c0_127 = arith.constant 0 : index
    %219 = vector.load %arg3[%c31, %c0_126, %c0_127] : memref<36x128x128xbf16, #tpu.memory_space<vmem>>, vector<1x128x128xbf16>
    %220 = vector.shape_cast %219 : vector<1x128x128xbf16> to vector<128x128xbf16>
    %cst_128 = arith.constant dense<0.000000e+00> : vector<128x128xf32>
    %221 = tpu.matmul %218, %220, %cst_128 {dimension_numbers = #tpu.dot_dimension_numbers<[1], [0], [0], [1], [0, 0, 1, 1], [], []>} : vector<128x128xbf16>, vector<128x128xbf16>, vector<128x128xf32> -> vector<128x128xf32>
    %222 = arith.addf %217, %221 : vector<128x128xf32>
    %223 = vector.extract_strided_slice %196 {offsets = [640, 0], sizes = [128, 128], strides = [1, 1]} : vector<1152x128xbf16> to vector<128x128xbf16>
    %c32 = arith.constant 32 : index
    %c0_129 = arith.constant 0 : index
    %c0_130 = arith.constant 0 : index
    %224 = vector.load %arg3[%c32, %c0_129, %c0_130] : memref<36x128x128xbf16, #tpu.memory_space<vmem>>, vector<1x128x128xbf16>
    %225 = vector.shape_cast %224 : vector<1x128x128xbf16> to vector<128x128xbf16>
    %cst_131 = arith.constant dense<0.000000e+00> : vector<128x128xf32>
    %226 = tpu.matmul %223, %225, %cst_131 {dimension_numbers = #tpu.dot_dimension_numbers<[1], [0], [0], [1], [0, 0, 1, 1], [], []>} : vector<128x128xbf16>, vector<128x128xbf16>, vector<128x128xf32> -> vector<128x128xf32>
    %227 = arith.addf %222, %226 : vector<128x128xf32>
    %228 = vector.extract_strided_slice %196 {offsets = [768, 0], sizes = [128, 128], strides = [1, 1]} : vector<1152x128xbf16> to vector<128x128xbf16>
    %c33 = arith.constant 33 : index
    %c0_132 = arith.constant 0 : index
    %c0_133 = arith.constant 0 : index
    %229 = vector.load %arg3[%c33, %c0_132, %c0_133] : memref<36x128x128xbf16, #tpu.memory_space<vmem>>, vector<1x128x128xbf16>
    %230 = vector.shape_cast %229 : vector<1x128x128xbf16> to vector<128x128xbf16>
    %cst_134 = arith.constant dense<0.000000e+00> : vector<128x128xf32>
    %231 = tpu.matmul %228, %230, %cst_134 {dimension_numbers = #tpu.dot_dimension_numbers<[1], [0], [0], [1], [0, 0, 1, 1], [], []>} : vector<128x128xbf16>, vector<128x128xbf16>, vector<128x128xf32> -> vector<128x128xf32>
    %232 = arith.addf %227, %231 : vector<128x128xf32>
    %233 = vector.extract_strided_slice %196 {offsets = [896, 0], sizes = [128, 128], strides = [1, 1]} : vector<1152x128xbf16> to vector<128x128xbf16>
    %c34 = arith.constant 34 : index
    %c0_135 = arith.constant 0 : index
    %c0_136 = arith.constant 0 : index
    %234 = vector.load %arg3[%c34, %c0_135, %c0_136] : memref<36x128x128xbf16, #tpu.memory_space<vmem>>, vector<1x128x128xbf16>
    %235 = vector.shape_cast %234 : vector<1x128x128xbf16> to vector<128x128xbf16>
    %cst_137 = arith.constant dense<0.000000e+00> : vector<128x128xf32>
    %236 = tpu.matmul %233, %235, %cst_137 {dimension_numbers = #tpu.dot_dimension_numbers<[1], [0], [0], [1], [0, 0, 1, 1], [], []>} : vector<128x128xbf16>, vector<128x128xbf16>, vector<128x128xf32> -> vector<128x128xf32>
    %237 = arith.addf %232, %236 : vector<128x128xf32>
    %238 = vector.extract_strided_slice %196 {offsets = [1024, 0], sizes = [128, 128], strides = [1, 1]} : vector<1152x128xbf16> to vector<128x128xbf16>
    %c35 = arith.constant 35 : index
    %c0_138 = arith.constant 0 : index
    %c0_139 = arith.constant 0 : index
    %239 = vector.load %arg3[%c35, %c0_138, %c0_139] : memref<36x128x128xbf16, #tpu.memory_space<vmem>>, vector<1x128x128xbf16>
    %240 = vector.shape_cast %239 : vector<1x128x128xbf16> to vector<128x128xbf16>
    %cst_140 = arith.constant dense<0.000000e+00> : vector<128x128xf32>
    %241 = tpu.matmul %238, %240, %cst_140 {dimension_numbers = #tpu.dot_dimension_numbers<[1], [0], [0], [1], [0, 0, 1, 1], [], []>} : vector<128x128xbf16>, vector<128x128xbf16>, vector<128x128xf32> -> vector<128x128xf32>
    %242 = arith.addf %237, %241 : vector<128x128xf32>
    %c3_141 = arith.constant 3 : index
    %c0_142 = arith.constant 0 : index
    %c0_143 = arith.constant 0 : index
    %243 = vector.load %arg4[%c3_141, %c0_142, %c0_143] : memref<5x8x128xf32, #tpu.memory_space<vmem>>, vector<1x8x128xf32>
    %244 = vector.shape_cast %243 : vector<1x8x128xf32> to vector<8x128xf32>
    %245 = vector.extract_strided_slice %244 {offsets = [0, 0], sizes = [1, 128], strides = [1, 1]} : vector<8x128xf32> to vector<1x128xf32>
    %246 = vector.broadcast %245 : vector<1x128xf32> to vector<128x128xf32>
    %247 = arith.addf %242, %246 : vector<128x128xf32>
    %cst_144 = arith.constant 0.000000e+00 : f32
    %248 = vector.broadcast %cst_144 : f32 to vector<128x128xf32>
    %249 = arith.maximumf %247, %248 : vector<128x128xf32>
    %250 = vector.extract_strided_slice %244 {offsets = [1, 0], sizes = [1, 128], strides = [1, 1]} : vector<8x128xf32> to vector<1x128xf32>
    %251 = vector.broadcast %250 : vector<1x128xf32> to vector<128x128xf32>
    %252 = arith.mulf %249, %251 : vector<128x128xf32>
    %253 = vector.extract_strided_slice %244 {offsets = [2, 0], sizes = [1, 128], strides = [1, 1]} : vector<8x128xf32> to vector<1x128xf32>
    %254 = vector.broadcast %253 : vector<1x128xf32> to vector<128x128xf32>
    %255 = arith.addf %252, %254 : vector<128x128xf32>
    %256 = arith.truncf %255 : vector<128x128xf32> to vector<128x128xbf16>
    %c0_145 = arith.constant 0 : index
    %c0_146 = arith.constant 0 : index
    %257 = vector.load %arg5[%c0_145, %c0_146] : memref<128x128xbf16, #tpu.memory_space<vmem>>, vector<128x128xbf16>
    %cst_147 = arith.constant dense<0.000000e+00> : vector<128x128xf32>
    %258 = tpu.matmul %256, %257, %cst_147 {dimension_numbers = #tpu.dot_dimension_numbers<[1], [0], [0], [1], [0, 0, 1, 1], [], []>} : vector<128x128xbf16>, vector<128x128xbf16>, vector<128x128xf32> -> vector<128x128xf32>
    %c4_148 = arith.constant 4 : index
    %c0_149 = arith.constant 0 : index
    %c0_150 = arith.constant 0 : index
    %259 = vector.load %arg4[%c4_148, %c0_149, %c0_150] : memref<5x8x128xf32, #tpu.memory_space<vmem>>, vector<1x8x128xf32>
    %260 = vector.shape_cast %259 : vector<1x8x128xf32> to vector<8x128xf32>
    %261 = vector.extract_strided_slice %260 {offsets = [0, 0], sizes = [1, 128], strides = [1, 1]} : vector<8x128xf32> to vector<1x128xf32>
    %262 = vector.broadcast %261 : vector<1x128xf32> to vector<128x128xf32>
    %263 = arith.addf %258, %262 : vector<128x128xf32>
    %c0_151 = arith.constant 0 : index
    %c0_152 = arith.constant 0 : index
    %264 = vector.load %arg6[%c0_151, %c0_152] : memref<128x128xf32, #tpu.memory_space<vmem>>, vector<128x128xf32>
    tpu.vector_store %arg6[%c0_151, %c0_152], %263 {strides = array<i32>} : memref<128x128xf32, #tpu.memory_space<vmem>>, vector<128x128xf32>,
    return
  }
  func.func @transform_0(%arg0: i32) -> (i32, i32) {
    %c0_i32 = arith.constant 0 : i32
    %c0_i32_0 = arith.constant 0 : i32
    %c0_i32_1 = arith.constant 0 : i32
    return %c0_i32, %c0_i32_0 : i32, i32
  }
  func.func @transform_1(%arg0: i32) -> (i32, i32, i32) {
    %c0_i32 = arith.constant 0 : i32
    %c0_i32_0 = arith.constant 0 : i32
    %c0_i32_1 = arith.constant 0 : i32
    %c0_i32_2 = arith.constant 0 : i32
    return %c0_i32, %c0_i32_0, %c0_i32_1 : i32, i32, i32
  }
  func.func @transform_2(%arg0: i32) -> (i32, i32, i32) {
    %c0_i32 = arith.constant 0 : i32
    %c0_i32_0 = arith.constant 0 : i32
    %c0_i32_1 = arith.constant 0 : i32
    %c0_i32_2 = arith.constant 0 : i32
    return %c0_i32, %c0_i32_0, %c0_i32_1 : i32, i32, i32
  }
  func.func @transform_3(%arg0: i32) -> (i32, i32, i32) {
    %c0_i32 = arith.constant 0 : i32
    %c0_i32_0 = arith.constant 0 : i32
    %c0_i32_1 = arith.constant 0 : i32
    %c0_i32_2 = arith.constant 0 : i32
    return %c0_i32, %c0_i32_0, %c0_i32_1 : i32, i32, i32
  }
  func.func @transform_4(%arg0: i32) -> (i32, i32) {
    %c0_i32 = arith.constant 0 : i32
    %c0_i32_0 = arith.constant 0 : i32
    %c0_i32_1 = arith.constant 0 : i32
    return %c0_i32, %c0_i32_0 : i32, i32
  }
  func.func @transform_5(%arg0: i32) -> (i32, i32) {
    %c0_i32 = arith.constant 0 : i32
    %c0_i32_0 = arith.constant 0 : i32
    %c0_i32_1 = arith.constant 0 : i32
    return %c0_i32, %c0_i32_0 : i32, i32
  }
}

</mosaic_0001>

<bundles_post_ra>
// kernel: custom-call
= control target key start
LH: loop header
LB: loop body
LE: loop exit
PB: predicated region body
PF: predicated region fallthrough
CT: control target
= control target key end

     0   :  { %2 = vsyncpa [#allocation0], 0  ;;  %s55_s0 = inlined_call_operand.hbm [shape: c64[1,4,16,8], index: 0, kind: input, shape index: {}]   ;;  %s56_s1 = inlined_call_operand.vmem [shape: f32[1,4,16,8], index: 1, kind: output, shape index: {}]  }
   0x1   :  { %s4_s8 = sshll.u32 %s55_s0, 4  ;;  %s6_s11 = sshll.u32 %s56_s1, 4  ;;  %s5_s8 = int_to_ptr.hbm [resolvable:$true] %s4_s8  ;;  %s7_s11 = int_to_ptr.vmem [resolvable:$true] %s6_s11 }
   0x2   :  { %9 = dma.hbm_to_vmem [thread:$0]  %s5_s8, 512, %s7_s11, [#allocation0] }
   0x3   :  { %37 = dma.done.wait [#allocation0], 512  }
   0x4   :  { %38 = vsyncadd [#allocation0], 4294966784 }
   0x5   :  { %12 = vsyncpa [#allocation0], 1 }

// kernel: custom-call.1
= control target key start
LH: loop header
LB: loop body
LE: loop exit
PB: predicated region body
PF: predicated region fallthrough
CT: control target
= control target key end

     0   :  { %s56_s0 = inlined_call_operand.hbm [shape: c64[1,4,16,8], index: 0, kind: input, shape index: {}]   ;;  %s57_s1 = inlined_call_operand.vmem [shape: f32[1,4,16,8], index: 1, kind: output, shape index: {}]  }
   0x1   :  { %s2_s8 = scalar_lea.hbm %s56_s0, 32 }
   0x2   :  { %3 = vsyncpa [#allocation0], 0  ;;  %s5_s9 = sshll.u32 %s2_s8, 4  ;;  %s7_s12 = sshll.u32 %s57_s1, 4  ;;  %s6_s9 = int_to_ptr.hbm [resolvable:$true] %s5_s9  ;;  %s8_s12 = int_to_ptr.vmem [resolvable:$true] %s7_s12 }
   0x3   :  { %10 = dma.hbm_to_vmem [thread:$0]  %s6_s9, 512, %s8_s12, [#allocation0] }
   0x4   :  { %38 = dma.done.wait [#allocation0], 512  }
   0x5   :  { %39 = vsyncadd [#allocation0], 4294966784 }
   0x6   :  { %13 = vsyncpa [#allocation0], 1 }

// kernel: cartesian_scampi_inference.1
= control target key start
LH: loop header
LB: loop body
LE: loop exit
PB: predicated region body
PF: predicated region fallthrough
CT: control target
= control target key end

     0   :  { %10 = vsyncpa [#allocation3], 0  ;;  %s16521_s0 = inlined_call_operand.vmem [shape: bf16[128,128], index: 0, kind: input, shape index: {}]   ;;  %s16522_s1 = inlined_call_operand.hbm [shape: bf16[4,1152,128], index: 1, kind: input, shape index: {}]   ;;  %s16523_s2 = inlined_call_operand.hbm [shape: bf16[36,128,128], index: 2, kind: input, shape index: {}]   ;;  %s16524_s3 = inlined_call_operand.hbm [shape: f32[5,8,128], index: 3, kind: input, shape index: {}]   ;;  %s16525_s4 = inlined_call_operand.hbm [shape: bf16[128,128], index: 4, kind: input, shape index: {}]   ;;  %s16526_s5 = inlined_call_operand.vmem [shape: f32[128,128], index: 5, kind: output, shape index: {}]  }
   0x1   :  { %11 = vsyncpa [#allocation5], 0 }
   0x2   :  { %12 = vsyncpa [#allocation8], 0  ;;  %s32_s20 = sshll.u32 %s16523_s2, 4  ;;  %s14325_s21 = smov [#allocation4]   ;;  %s33_s20 = int_to_ptr.hbm [resolvable:$true] %s32_s20 }
   0x3   :  { %s34_s22 = sshll.u32 %s14325_s21, 4  ;;  %s19_s25 = sshll.u32 %s16522_s1, 4  ;;  %s35_s22 = int_to_ptr.vmem [resolvable:$true] %s34_s22  ;;  %s20_s25 = int_to_ptr.hbm [resolvable:$true] %s19_s25 }
   0x4   :  { %s14326_s26 = smov 64   ;;  %s14327_s27 = smov 4  }
   0x5   :  { %40 = dma.hbm_to_vmem [thread:$0]  %s33_s20, 36864, %s35_s22, [#allocation5], %s14326_s26, %s14326_s26, %s14327_s27  }
   0x6   :  { %s14328_s28 = smov [#allocation2]   ;;  %s45_s7 = sshll.u32 %s16524_s3, 4  ;;  %s46_s7 = int_to_ptr.hbm [resolvable:$true] %s45_s7 }
   0x7   :  { %s21_s29 = sshll.u32 %s14328_s28, 4  ;;  %s14329_s2 = smov [#allocation6]   ;;  %s22_s29 = int_to_ptr.vmem [resolvable:$true] %s21_s29 }
   0x8   :  { %27 = dma.hbm_to_vmem [thread:$0]  %s20_s25, 36864, %s22_s29, [#allocation3], %s14326_s26, %s14326_s26, %s14327_s27  }
   0x9   :  { %s47_s8 = sshll.u32 %s14329_s2, 4  ;;  %s58_s1 = sshll.u32 %s16525_s4, 4  ;;  %s48_s8 = int_to_ptr.vmem [resolvable:$true] %s47_s8  ;;  %s59_s1 = int_to_ptr.hbm [resolvable:$true] %s58_s1 }
   0xa   :  { %s14330_s11 = smov 128   ;;  %s14331_s12 = smov 8  }
   0xb   :  { %53 = dma.hbm_to_vmem [thread:$0]  %s46_s7, 640, %s48_s8, [#allocation5], %s14330_s11, %s14330_s11, %s14331_s12  }
   0xc   :  { %s14332_s13 = smov [#allocation7]  }
   0xd   :  { %s60_s14 = sshll.u32 %s14332_s13, 4  ;;  %s61_s14 = int_to_ptr.vmem [resolvable:$true] %s60_s14 }
   0xe   :  { %66 = dma.hbm_to_vmem [thread:$0]  %s59_s1, 1024, %s61_s14, [#allocation8], %s14326_s26, %s14326_s26, %s14327_s27  }
   0xf   :  { %14319 = dma.done.wait [#allocation3], 36864  }
  0x10   :  { %14320 = vsyncadd [#allocation3], 4294930432 }
  0x11   :  { %14321 = dma.done.wait [#allocation5], 37504  }
  0x12   :  { %14322 = vsyncadd [#allocation5], 4294929792 }
  0x13   :  { %14323 = dma.done.wait [#allocation8], 1024  }
  0x14   :  { %14324 = vsyncadd [#allocation8], 4294966272  ;;  %v13606_v0 = vld [vmem:[%s16521_s0 + $0x38] sm:$0xff]  ;;  %v13605_v1 = vld [vmem:[%s16521_s0 + $0x30] sm:$0xff] }
  0x15   :  { %723 = vmatpush.bf16.msra.mxu0 %v13606_v0  ;;  %v13604_v2 = vld [vmem:[%s16521_s0 + $0x28] sm:$0xff]  ;;  %v13603_v3 = vld [vmem:[%s16521_s0 + $0x20] sm:$0xff]  ;;  %v13602_v4 = vld [vmem:[%s16521_s0 + $0x18] sm:$0xff] }
  0x16   :  { %v13601_v5 = vld [vmem:[%s16521_s0 + $0x10] sm:$0xff]  ;;  %v13600_v6 = vld [vmem:[%s16521_s0 + $0x8] sm:$0xff]  ;;  %v13599_v7 = vld [vmem:[%s16521_s0] sm:$0xff] }
  0x17   :  { %v13607_v8 = vld [vmem:[#allocation2] sm:$0xff]  ;;  %v13608_v9 = vld [vmem:[#allocation2 + $0x8] sm:$0xff]  ;;  %v13609_v10 = vld [vmem:[#allocation2 + $0x10] sm:$0xff] }
  0x18   :  { %v13610_v11 = vld [vmem:[#allocation2 + $0x18] sm:$0xff]  ;;  %v13611_v12 = vld [vmem:[#allocation2 + $0x20] sm:$0xff]  ;;  %v13612_v14 = vld [vmem:[#allocation2 + $0x28] sm:$0xff] }
  0x19   :  { %724 = vmatpush.bf16.msra.mxu0 %v13605_v1  ;;  %v13686_v13 = vld [vmem:[#allocation4 + $0x38] sm:$0xff]  ;;  %v13685_v15 = vld [vmem:[#allocation4 + $0x30] sm:$0xff]  ;;  %v13684_v16 = vld [vmem:[#allocation4 + $0x28] sm:$0xff] }
  0x1a   :  { %1510 = vmatpush.bf16.msra.mxu2 %v13686_v13  ;;  %v13683_v17 = vld [vmem:[#allocation4 + $0x20] sm:$0xff]  ;;  %v13682_v18 = vld [vmem:[#allocation4 + $0x18] sm:$0xff]  ;;  %v13613_v19 = vld [vmem:[#allocation2 + $0x30] sm:$0xff] }
  0x1b   :  { %v13681_v20 = vld [vmem:[#allocation4 + $0x10] sm:$0xff]  ;;  %v13680_v21 = vld [vmem:[#allocation4 + $0x8] sm:$0xff]  ;;  %v13679_v22 = vld [vmem:[#allocation4] sm:$0xff] }
  0x1c   :  { %v13614_v23 = vld [vmem:[#allocation2 + $0x38] sm:$0xff]  ;;  %v13615_v24 = vld [vmem:[#allocation2 + $0x40] sm:$0xff]  ;;  %v13616_v32 = vld [vmem:[#allocation2 + $0x48] sm:$0xff] }
  0x1d   :  { %725 = vmatpush.bf16.msra.mxu0 %v13604_v2  ;;  %v13617_v40 = vld [vmem:[#allocation2 + $0x50] sm:$0xff]  ;;  %v13618_v48 = vld [vmem:[#allocation2 + $0x58] sm:$0xff]  ;;  %v13619_v56 = vld [vmem:[#allocation2 + $0x60] sm:$0xff] }
  0x1e   :  { %1511 = vmatpush.bf16.msra.mxu2 %v13685_v15  ;;  %v13702_v58 = vld [vmem:[#allocation4 + $0xb8] sm:$0xff]  ;;  %v13620_v2 = vld [vmem:[#allocation2 + $0x68] sm:$0xff] }
  0x1f   :  { %14191 = vmatpush.bf16.msra.mxu3 %v13702_v58  ;;  %v13694_v1 = vld [vmem:[#allocation4 + $0x78] sm:$0xff] }
  0x20   :  { %1365 = vmatpush.bf16.msra.mxu1 %v13694_v1  ;;  %v13690_v13 = vld [vmem:[#allocation4 + $0x58] sm:$0xff]  ;;  %v13627_v1 = vld [vmem:[#allocation2 + $0xa0] sm:$0xff] }
  0x21   :  { %726 = vmatpush.bf16.msra.mxu0 %v13603_v3 }
  0x22   :  { %1512 = vmatpush.bf16.msra.mxu2 %v13684_v16  ;;  %v13689_v16 = vld [vmem:[#allocation4 + $0x50] sm:$0xff] }
  0x25   :  { %727 = vmatpush.bf16.msra.mxu0 %v13602_v4  ;;  %v13693_v4 = vld [vmem:[#allocation4 + $0x70] sm:$0xff] }
  0x26   :  { %1513 = vmatpush.bf16.msra.mxu2 %v13683_v17  ;;  %1366 = vmatpush.bf16.msra.mxu1 %v13693_v4  ;;  %v13688_v17 = vld [vmem:[#allocation4 + $0x48] sm:$0xff] }
  0x29   :  { %728 = vmatpush.bf16.msra.mxu0 %v13601_v5  ;;  %v13692_v5 = vld [vmem:[#allocation4 + $0x68] sm:$0xff] }
  0x2a   :  { %1514 = vmatpush.bf16.msra.mxu2 %v13682_v18  ;;  %1367 = vmatpush.bf16.msra.mxu1 %v13692_v5 }
  0x2d   :  { %729 = vmatpush.bf16.msra.mxu0 %v13600_v6 }
  0x2e   :  { %1515 = vmatpush.bf16.msra.mxu2 %v13681_v20 }
  0x31   :  { %730 = vmatpush.bf16.msra.mxu0 %v13599_v7 }
  0x32   :  { %1516 = vmatpush.bf16.msra.mxu2 %v13680_v21  ;;  %v13687_v21 = vld [vmem:[#allocation4 + $0x40] sm:$0xff] }
  0x34   :  { %731 = vmatmul.bf16.vlgmr.msra.gmra.mxu0 %v13607_v8 }
  0x35   :  { %1672 = vmatpush.bf16.msrb.mxu0 %v13702_v58 }
  0x36   :  { %1517 = vmatpush.bf16.msra.mxu2 %v13679_v22 }
  0x44   :  { %736 = vmatmul.bf16.gmra.mxu0 %v13608_v9  ;;  %v13691_v9 = vld [vmem:[#allocation4 + $0x60] sm:$0xff] }
  0x45   :  { %1368 = vmatpush.bf16.msra.mxu1 %v13691_v9  ;;  %v13628_v9 = vld [vmem:[#allocation2 + $0xa8] sm:$0xff] }
  0x49   :  { %1369 = vmatpush.bf16.msra.mxu1 %v13690_v13 }
  0x4d   :  { %1370 = vmatpush.bf16.msra.mxu1 %v13689_v16 }
  0x51   :  { %1371 = vmatpush.bf16.msra.mxu1 %v13688_v17 }
  0x54   :  { %741 = vmatmul.bf16.gmra.mxu0 %v13609_v10 }
  0x55   :  { %1372 = vmatpush.bf16.msra.mxu1 %v13687_v21 }
  0x64   :  { %746 = vmatmul.bf16.gmra.mxu0 %v13610_v11 }
  0x74   :  { %751 = vmatmul.bf16.gmra.mxu0 %v13611_v12 }
  0x84   :  { %756 = vmatmul.bf16.gmra.mxu0 %v13612_v14  ;;  %v13621_v14 = vld [vmem:[#allocation2 + $0x70] sm:$0xff] }
  0x94   :  { %761 = vmatmul.bf16.gmra.mxu0 %v13613_v19 }
  0xa4   :  { %766 = vmatmul.bf16.gmra.mxu0 %v13614_v23 }
  0xb1   :  { %v732_v25 = vpop.f32.mrf.mxu0 }
  0xb2   :  { %v1092_v26 = vpack.c.bf16 %v732_v25, %v732_v25  ;;  %v13622_v25 = vld [vmem:[#allocation2 + $0x78] sm:$0xff] }
  0xb4   :  { %771 = vmatmul.bf16.gmra.mxu0 %v13615_v24  ;;  %v1430_v29 = vunpack.c.l.b16 %v1092_v26 }
  0xb9   :  { %v734_v27 = vpop.f32.mrf.mxu0 }
  0xba   :  { %v1093_v28 = vpack.c.bf16 %v734_v27, %v734_v27 }
  0xbc   :  { %v1431_v30 = vunpack.c.l.b16 %v1093_v28 }
  0xbe   :  { %v1446_v31 = vpack.c.b16 %v1431_v30, %v1430_v29 }
  0xc0   :  { %1518 = vmatmul.bf16.vlgmr.msra.gmra.mxu2 %v1446_v31 }
  0xc1   :  { %v737_v33 = vpop.f32.mrf.mxu0 }
  0xc2   :  { %v1094_v34 = vpack.c.bf16 %v737_v33, %v737_v33  ;;  %v13623_v33 = vld [vmem:[#allocation2 + $0x80] sm:$0xff] }
  0xc4   :  { %776 = vmatmul.bf16.gmra.mxu0 %v13616_v32  ;;  %v1432_v37 = vunpack.c.l.b16 %v1094_v34 }
  0xc9   :  { %v739_v35 = vpop.f32.mrf.mxu0 }
  0xca   :  { %v1095_v36 = vpack.c.bf16 %v739_v35, %v739_v35 }
  0xcc   :  { %v1433_v38 = vunpack.c.l.b16 %v1095_v36 }
  0xce   :  { %v1447_v39 = vpack.c.b16 %v1433_v38, %v1432_v37 }
  0xd0   :  { %1523 = vmatmul.bf16.gmra.mxu2 %v1447_v39 }
  0xd1   :  { %v742_v41 = vpop.f32.mrf.mxu0 }
  0xd2   :  { %v1096_v42 = vpack.c.bf16 %v742_v41, %v742_v41  ;;  %v13624_v41 = vld [vmem:[#allocation2 + $0x88] sm:$0xff] }
  0xd4   :  { %781 = vmatmul.bf16.gmra.mxu0 %v13617_v40  ;;  %v1434_v45 = vunpack.c.l.b16 %v1096_v42 }
  0xd9   :  { %v744_v43 = vpop.f32.mrf.mxu0 }
  0xda   :  { %v1097_v44 = vpack.c.bf16 %v744_v43, %v744_v43 }
  0xdc   :  { %v1435_v46 = vunpack.c.l.b16 %v1097_v44 }
  0xde   :  { %v1448_v47 = vpack.c.b16 %v1435_v46, %v1434_v45 }
  0xe0   :  { %1528 = vmatmul.bf16.gmra.mxu2 %v1448_v47 }
  0xe1   :  { %v747_v49 = vpop.f32.mrf.mxu0 }
  0xe2   :  { %v1098_v50 = vpack.c.bf16 %v747_v49, %v747_v49  ;;  %v13625_v49 = vld [vmem:[#allocation2 + $0x90] sm:$0xff] }
  0xe4   :  { %786 = vmatmul.bf16.gmra.mxu0 %v13618_v48  ;;  %v1436_v53 = vunpack.c.l.b16 %v1098_v50 }
  0xe9   :  { %v749_v51 = vpop.f32.mrf.mxu0 }
  0xea   :  { %v1099_v52 = vpack.c.bf16 %v749_v51, %v749_v51 }
  0xec   :  { %v1437_v54 = vunpack.c.l.b16 %v1099_v52 }
  0xee   :  { %v1449_v55 = vpack.c.b16 %v1437_v54, %v1436_v53 }
  0xf0   :  { %1533 = vmatmul.bf16.gmra.mxu2 %v1449_v55 }
  0xf1   :  { %v752_v57 = vpop.f32.mrf.mxu0 }
  0xf2   :  { %v1100_v59 = vpack.c.bf16 %v752_v57, %v752_v57  ;;  %v13626_v57 = vld [vmem:[#allocation2 + $0x98] sm:$0xff] }
  0xf4   :  { %791 = vmatmul.bf16.gmra.mxu0 %v13619_v56  ;;  %v1438_v62 = vunpack.c.l.b16 %v1100_v59 }
  0xf9   :  { %v754_v60 = vpop.f32.mrf.mxu0 }
  0xfa   :  { %v1101_v61 = vpack.c.bf16 %v754_v60, %v754_v60 }
  0xfc   :  { %v1439_v63 = vunpack.c.l.b16 %v1101_v61 }
  0xfe   :  { %v1450_v0 = vpack.c.b16 %v1439_v63, %v1438_v62 }
 0x100   :  { %1538 = vmatmul.bf16.gmra.mxu2 %v1450_v0 }
 0x101   :  { %v757_v3 = vpop.f32.mrf.mxu0 }
 0x102   :  { %v1102_v6 = vpack.c.bf16 %v757_v3, %v757_v3 }
 0x104   :  { %796 = vmatmul.bf16.gmra.mxu0 %v13620_v2  ;;  %v1440_v10 = vunpack.c.l.b16 %v1102_v6 }
 0x109   :  { %v759_v7 = vpop.f32.mrf.mxu0 }
 0x10a   :  { %v1103_v8 = vpack.c.bf16 %v759_v7, %v759_v7 }
 0x10c   :  { %v1441_v11 = vunpack.c.l.b16 %v1103_v8 }
 0x10e   :  { %v1451_v12 = vpack.c.b16 %v1441_v11, %v1440_v10  ;;  %v13701_v11 = vld [vmem:[#allocation4 + $0xb0] sm:$0xff] }
 0x10f   :  { %1673 = vmatpush.bf16.msrb.mxu0 %v13701_v11  ;;  %14192 = vmatpush.bf16.msra.mxu3 %v13701_v11 }
 0x110   :  { %1543 = vmatmul.bf16.gmra.mxu2 %v1451_v12 }
 0x111   :  { %v762_v15 = vpop.f32.mrf.mxu0 }
 0x112   :  { %v1104_v18 = vpack.c.bf16 %v762_v15, %v762_v15 }
 0x114   :  { %801 = vmatmul.bf16.gmra.mxu0 %v13621_v14  ;;  %v1442_v22 = vunpack.c.l.b16 %v1104_v18  ;;  %v13629_v18 = vld [vmem:[#allocation2 + $0xb0] sm:$0xff] }
 0x119   :  { %v764_v19 = vpop.f32.mrf.mxu0 }
 0x11a   :  { %v1105_v20 = vpack.c.bf16 %v764_v19, %v764_v19 }
 0x11c   :  { %v1443_v23 = vunpack.c.l.b16 %v1105_v20 }
 0x11e   :  { %v1452_v24 = vpack.c.b16 %v1443_v23, %v1442_v22 }
 0x120   :  { %1548 = vmatmul.bf16.gmra.mxu2 %v1452_v24 }
 0x121   :  { %v767_v26 = vpop.f32.mrf.mxu0 }
 0x122   :  { %v1106_v27 = vpack.c.bf16 %v767_v26, %v767_v26  ;;  %v13630_v26 = vld [vmem:[#allocation2 + $0xb8] sm:$0xff] }
 0x124   :  { %806 = vmatmul.bf16.gmra.mxu0 %v13622_v25  ;;  %v1444_v30 = vunpack.c.l.b16 %v1106_v27 }
 0x129   :  { %v769_v28 = vpop.f32.mrf.mxu0 }
 0x12a   :  { %v1107_v29 = vpack.c.bf16 %v769_v28, %v769_v28  ;;  %v13700_v28 = vld [vmem:[#allocation4 + $0xa8] sm:$0xff] }
 0x12b   :  { %14193 = vmatpush.bf16.msra.mxu3 %v13700_v28  ;;  %1674 = vmatpush.bf16.msrb.mxu0 %v13700_v28  ;;  %v13706_v28 = vld [vmem:[#allocation4 + $0xd8] sm:$0xff] }
 0x12c   :  { %v1445_v31 = vunpack.c.l.b16 %v1107_v29 }
 0x12e   :  { %v1453_v32 = vpack.c.b16 %v1445_v31, %v1444_v30 }
 0x130   :  { %1553 = vmatmul.bf16.gmra.mxu2 %v1453_v32  ;;  %v13699_v32 = vld [vmem:[#allocation4 + $0xa0] sm:$0xff] }
 0x131   :  { %v772_v34 = vpop.f32.mrf.mxu0  ;;  %14194 = vmatpush.bf16.msra.mxu3 %v13699_v32  ;;  %1675 = vmatpush.bf16.msrb.mxu0 %v13699_v32  ;;  %v13704_v32 = vld [vmem:[#allocation4 + $0xc8] sm:$0xff] }
 0x132   :  { %v1108_v35 = vpack.c.bf16 %v772_v34, %v772_v34 }
 0x134   :  { %811 = vmatmul.bf16.gmra.mxu0 %v13623_v33  ;;  %v1285_v38 = vunpack.c.l.b16 %v1108_v35 }
 0x139   :  { %v774_v36 = vpop.f32.mrf.mxu0 }
 0x13a   :  { %v1109_v37 = vpack.c.bf16 %v774_v36, %v774_v36  ;;  %v13698_v36 = vld [vmem:[#allocation4 + $0x98] sm:$0xff] }
 0x13b   :  { %14195 = vmatpush.bf16.msra.mxu3 %v13698_v36  ;;  %1676 = vmatpush.bf16.msrb.mxu0 %v13698_v36  ;;  %v13703_v36 = vld [vmem:[#allocation4 + $0xc0] sm:$0xff] }
 0x13c   :  { %v1286_v39 = vunpack.c.l.b16 %v1109_v37  ;;  %v13631_v37 = vld [vmem:[#allocation2 + $0xc0] sm:$0xff] }
 0x13e   :  { %v1301_v40 = vpack.c.b16 %v1286_v39, %v1285_v38  ;;  %v13697_v39 = vld [vmem:[#allocation4 + $0x90] sm:$0xff] }
 0x13f   :  { %14196 = vmatpush.bf16.msra.mxu3 %v13697_v39  ;;  %1677 = vmatpush.bf16.msrb.mxu0 %v13697_v39 }
 0x140   :  { %1373 = vmatmul.bf16.vlgmr.msra.gmra.mxu1 %v1301_v40  ;;  %v13696_v40 = vld [vmem:[#allocation4 + $0x88] sm:$0xff] }
 0x141   :  { %v777_v42 = vpop.f32.mrf.mxu0 }
 0x142   :  { %v1110_v43 = vpack.c.bf16 %v777_v42, %v777_v42 }
 0x143   :  { %14197 = vmatpush.bf16.msra.mxu3 %v13696_v40  ;;  %1678 = vmatpush.bf16.msrb.mxu0 %v13696_v40 }
 0x144   :  { %816 = vmatmul.bf16.gmra.mxu0 %v13624_v41  ;;  %v1287_v46 = vunpack.c.l.b16 %v1110_v43 }
 0x149   :  { %v779_v44 = vpop.f32.mrf.mxu0 }
 0x14a   :  { %v1111_v45 = vpack.c.bf16 %v779_v44, %v779_v44  ;;  %v13695_v44 = vld [vmem:[#allocation4 + $0x80] sm:$0xff] }
 0x14b   :  { %14198 = vmatpush.bf16.msra.mxu3 %v13695_v44  ;;  %1679 = vmatpush.bf16.msrb.mxu0 %v13695_v44 }
 0x14c   :  { %v1288_v47 = vunpack.c.l.b16 %v1111_v45 }
 0x14e   :  { %v1302_v48 = vpack.c.b16 %v1288_v47, %v1287_v46 }
 0x150   :  { %1378 = vmatmul.bf16.gmra.mxu1 %v1302_v48  ;;  %v13632_v48 = vld [vmem:[#allocation2 + $0xc8] sm:$0xff] }
 0x151   :  { %v782_v50 = vpop.f32.mrf.mxu0 }
 0x152   :  { %v1112_v51 = vpack.c.bf16 %v782_v50, %v782_v50 }
 0x154   :  { %821 = vmatmul.bf16.gmra.mxu0 %v13625_v49  ;;  %v1289_v54 = vunpack.c.l.b16 %v1112_v51 }
 0x159   :  { %v784_v52 = vpop.f32.mrf.mxu0 }
 0x15a   :  { %v1113_v53 = vpack.c.bf16 %v784_v52, %v784_v52 }
 0x15c   :  { %v1290_v55 = vunpack.c.l.b16 %v1113_v53 }
 0x15e   :  { %v1303_v56 = vpack.c.b16 %v1290_v55, %v1289_v54 }
 0x160   :  { %1383 = vmatmul.bf16.gmra.mxu1 %v1303_v56  ;;  %v13633_v56 = vld [vmem:[#allocation2 + $0xd0] sm:$0xff] }
 0x161   :  { %v787_v58 = vpop.f32.mrf.mxu0 }
 0x162   :  { %v1114_v59 = vpack.c.bf16 %v787_v58, %v787_v58 }
 0x164   :  { %826 = vmatmul.bf16.gmra.mxu0 %v13626_v57  ;;  %v1291_v62 = vunpack.c.l.b16 %v1114_v59 }
 0x169   :  { %v789_v60 = vpop.f32.mrf.mxu0 }
 0x16a   :  { %v1115_v61 = vpack.c.bf16 %v789_v60, %v789_v60 }
 0x16c   :  { %v1292_v63 = vunpack.c.l.b16 %v1115_v61 }
 0x16e   :  { %v1304_v0 = vpack.c.b16 %v1292_v63, %v1291_v62 }
 0x170   :  { %1388 = vmatmul.bf16.gmra.mxu1 %v1304_v0  ;;  %v13634_v0 = vld [vmem:[#allocation2 + $0xd8] sm:$0xff] }
 0x171   :  { %v792_v2 = vpop.f32.mrf.mxu0 }
 0x172   :  { %v1116_v3 = vpack.c.bf16 %v792_v2, %v792_v2 }
 0x174   :  { %831 = vmatmul.bf16.gmra.mxu0 %v13627_v1  ;;  %v1293_v6 = vunpack.c.l.b16 %v1116_v3 }
 0x179   :  { %v794_v4 = vpop.f32.mrf.mxu0 }
 0x17a   :  { %v1117_v5 = vpack.c.bf16 %v794_v4, %v794_v4 }
 0x17c   :  { %v1294_v7 = vunpack.c.l.b16 %v1117_v5 }
 0x17e   :  { %v1305_v8 = vpack.c.b16 %v1294_v7, %v1293_v6 }
 0x180   :  { %1393 = vmatmul.bf16.gmra.mxu1 %v1305_v8  ;;  %v13635_v8 = vld [vmem:[#allocation2 + $0xe0] sm:$0xff] }
 0x181   :  { %v797_v10 = vpop.f32.mrf.mxu0 }
 0x182   :  { %v1118_v12 = vpack.c.bf16 %v797_v10, %v797_v10 }
 0x184   :  { %836 = vmatmul.bf16.gmra.mxu0 %v13628_v9  ;;  %v1295_v15 = vunpack.c.l.b16 %v1118_v12 }
 0x189   :  { %v799_v13 = vpop.f32.mrf.mxu0 }
 0x18a   :  { %v1119_v14 = vpack.c.bf16 %v799_v13, %v799_v13 }
 0x18c   :  { %v1296_v16 = vunpack.c.l.b16 %v1119_v14 }
 0x18e   :  { %v1306_v17 = vpack.c.b16 %v1296_v16, %v1295_v15  ;;  %v13710_v16 = vld [vmem:[#allocation4 + $0xf8] sm:$0xff] }
 0x18f   :  { %1850 = vmatpush.bf16.msrb.mxu1 %v13710_v16  ;;  %v13641_v16 = vld [vmem:[#allocation2 + $0x110] sm:$0xff] }
 0x190   :  { %1398 = vmatmul.bf16.gmra.mxu1 %v1306_v17  ;;  %v13636_v17 = vld [vmem:[#allocation2 + $0xe8] sm:$0xff] }
 0x191   :  { %v802_v19 = vpop.f32.mrf.mxu0 }
 0x192   :  { %v1120_v20 = vpack.c.bf16 %v802_v19, %v802_v19  ;;  %v13709_v19 = vld [vmem:[#allocation4 + $0xf0] sm:$0xff] }
 0x193   :  { %1851 = vmatpush.bf16.msrb.mxu1 %v13709_v19 }
 0x194   :  { %841 = vmatmul.bf16.gmra.mxu0 %v13629_v18  ;;  %v1297_v23 = vunpack.c.l.b16 %v1120_v20  ;;  %v13708_v20 = vld [vmem:[#allocation4 + $0xe8] sm:$0xff] }
 0x197   :  { %1852 = vmatpush.bf16.msrb.mxu1 %v13708_v20 }
 0x199   :  { %v804_v21 = vpop.f32.mrf.mxu0 }
 0x19a   :  { %v1121_v22 = vpack.c.bf16 %v804_v21, %v804_v21 }
 0x19c   :  { %v1298_v24 = vunpack.c.l.b16 %v1121_v22 }
 0x19e   :  { %v1307_v25 = vpack.c.b16 %v1298_v24, %v1297_v23  ;;  %v13707_v24 = vld [vmem:[#allocation4 + $0xe0] sm:$0xff] }
 0x19f   :  { %1853 = vmatpush.bf16.msrb.mxu1 %v13707_v24 }
 0x1a0   :  { %1403 = vmatmul.bf16.gmra.mxu1 %v1307_v25 }
 0x1a1   :  { %v807_v27 = vpop.f32.mrf.mxu0 }
 0x1a2   :  { %v1122_v29 = vpack.c.bf16 %v807_v27, %v807_v27 }
 0x1a3   :  { %1854 = vmatpush.bf16.msrb.mxu1 %v13706_v28 }
 0x1a4   :  { %846 = vmatmul.bf16.gmra.mxu0 %v13630_v26  ;;  %v1299_v33 = vunpack.c.l.b16 %v1122_v29  ;;  %v13637_v29 = vld [vmem:[#allocation2 + $0xf0] sm:$0xff] }
 0x1a9   :  { %v809_v30 = vpop.f32.mrf.mxu0 }
 0x1aa   :  { %v1123_v31 = vpack.c.bf16 %v809_v30, %v809_v30 }
 0x1ac   :  { %v1300_v34 = vunpack.c.l.b16 %v1123_v31  ;;  %v13705_v31 = vld [vmem:[#allocation4 + $0xd0] sm:$0xff] }
 0x1ad   :  { %1855 = vmatpush.bf16.msrb.mxu1 %v13705_v31 }
 0x1ae   :  { %v1308_v35 = vpack.c.b16 %v1300_v34, %v1299_v33 }
 0x1b0   :  { %1408 = vmatmul.bf16.gmra.mxu1 %v1308_v35 }
 0x1b1   :  { %v812_v38 = vpop.f32.mrf.mxu0  ;;  %1856 = vmatpush.bf16.msrb.mxu1 %v13704_v32 }
 0x1b2   :  { %v1124_v41 = vpack.c.bf16 %v812_v38, %v812_v38 }
 0x1b4   :  { %851 = vmatmul.bf16.gmra.mxu0 %v13631_v37  ;;  %v14399_v45 = vunpack.c.l.b16 %v1124_v41  ;;  %v13638_v41 = vld [vmem:[#allocation2 + $0xf8] sm:$0xff] }
 0x1b5   :  { %1857 = vmatpush.bf16.msrb.mxu1 %v13703_v36 }
 0x1b9   :  { %v814_v42 = vpop.f32.mrf.mxu0 }
 0x1ba   :  { %v1125_v43 = vpack.c.bf16 %v814_v42, %v814_v42 }
 0x1bc   :  { %v14401_v46 = vunpack.c.l.b16 %v1125_v43  ;;  %v14413_v43 = vpop.f32.mrf.mxu2 }
 0x1bd   :  { %v14411_v40 = vpop.f32.mrf.mxu1 }
 0x1c1   :  { %v817_v49 = vpop.f32.mrf.mxu0 }
 0x1c2   :  { %v1126_v50 = vpack.c.bf16 %v817_v49, %v817_v49 }
 0x1c4   :  { %856 = vmatmul.bf16.gmra.mxu0 %v13632_v48  ;;  %v14405_v53 = vunpack.c.l.b16 %v1126_v50 }
 0x1c5   :  { %v14415_v48 = vpop.f32.mrf.mxu1 }
 0x1c9   :  { %v819_v51 = vpop.f32.mrf.mxu0 }
 0x1ca   :  { %v1127_v52 = vpack.c.bf16 %v819_v51, %v819_v51 }
 0x1cc   :  { %v14407_v54 = vunpack.c.l.b16 %v1127_v52 }
 0x1d1   :  { %v822_v57 = vpop.f32.mrf.mxu0 }
 0x1d2   :  { %v1128_v58 = vpack.c.bf16 %v822_v57, %v822_v57  ;;  %v14417_v57 = vpop.f32.mrf.mxu2 }
 0x1d4   :  { %861 = vmatmul.bf16.gmra.mxu0 %v13633_v56  ;;  %v1596_v61 = vunpack.c.l.b16 %v1128_v58  ;;  %v13639_v58 = vld [vmem:[#allocation2 + $0x100] sm:$0xff] }
 0x1d9   :  { %v824_v59 = vpop.f32.mrf.mxu0 }
 0x1da   :  { %v1129_v60 = vpack.c.bf16 %v824_v59, %v824_v59 }
 0x1dc   :  { %v1597_v62 = vunpack.c.l.b16 %v1129_v60  ;;  %v14419_v60 = vpop.f32.mrf.mxu1 }
 0x1de   :  { %v1610_v63 = vpack.c.b16 %v1597_v62, %v1596_v61  ;;  %v14421_v62 = vpop.f32.mrf.mxu2 }
 0x1e0   :  { %1690 = vmatmul.bf16.vlgmr.msra.gmra.mxu3 %v1610_v63 }
 0x1e1   :  { %v827_v1 = vpop.f32.mrf.mxu0 }
 0x1e2   :  { %v1130_v2 = vpack.c.bf16 %v827_v1, %v827_v1 }
 0x1e4   :  { %866 = vmatmul.bf16.gmra.mxu0 %v13634_v0  ;;  %v1598_v5 = vunpack.c.l.b16 %v1130_v2 }
 0x1e9   :  { %v829_v3 = vpop.f32.mrf.mxu0 }
 0x1ea   :  { %v1131_v4 = vpack.c.bf16 %v829_v3, %v829_v3  ;;  %v14423_v3 = vpop.f32.mrf.mxu1 }
 0x1ec   :  { %v1599_v6 = vunpack.c.l.b16 %v1131_v4 }
 0x1ee   :  { %v1611_v7 = vpack.c.b16 %v1599_v6, %v1598_v5  ;;  %v13640_v5 = vld [vmem:[#allocation2 + $0x108] sm:$0xff] }
 0x1f0   :  { %1695 = vmatmul.bf16.gmra.mxu3 %v1611_v7  ;;  %v14425_v7 = vpop.f32.mrf.mxu2 }
 0x1f1   :  { %v832_v9 = vpop.f32.mrf.mxu0 }
 0x1f2   :  { %v1132_v10 = vpack.c.bf16 %v832_v9, %v832_v9 }
 0x1f4   :  { %871 = vmatmul.bf16.gmra.mxu0 %v13635_v8  ;;  %v1600_v13 = vunpack.c.l.b16 %v1132_v10  ;;  %v1384_v8 = vpop.f32.mrf.mxu1 }
 0x1f9   :  { %v834_v11 = vpop.f32.mrf.mxu0 }
 0x1fa   :  { %v1133_v12 = vpack.c.bf16 %v834_v11, %v834_v11 }
 0x1fc   :  { %v1601_v14 = vunpack.c.l.b16 %v1133_v12 }
 0x1fe   :  { %v1612_v15 = vpack.c.b16 %v1601_v14, %v1600_v13  ;;  %v1529_v14 = vpop.f32.mrf.mxu2 }
 0x200   :  { %1700 = vmatmul.bf16.gmra.mxu3 %v1612_v15 }
 0x201   :  { %v837_v18 = vpop.f32.mrf.mxu0 }
 0x202   :  { %v1134_v21 = vpack.c.bf16 %v837_v18, %v837_v18 }
 0x204   :  { %876 = vmatmul.bf16.gmra.mxu0 %v13636_v17  ;;  %v1602_v25 = vunpack.c.l.b16 %v1134_v21  ;;  %v14427_v17 = vpop.f32.mrf.mxu1 }
 0x206   :  { %v14429_v19 = vpop.f32.mrf.mxu2 }
 0x209   :  { %v839_v22 = vpop.f32.mrf.mxu0 }
 0x20a   :  { %v1135_v23 = vpack.c.bf16 %v839_v22, %v839_v22 }
 0x20c   :  { %v1603_v26 = vunpack.c.l.b16 %v1135_v23  ;;  %v1389_v23 = vpop.f32.mrf.mxu1 }
 0x20e   :  { %v1613_v27 = vpack.c.b16 %v1603_v26, %v1602_v25  ;;  %v1534_v28 = vpop.f32.mrf.mxu2 }
 0x210   :  { %1705 = vmatmul.bf16.gmra.mxu3 %v1613_v27  ;;  %v13642_v27 = vld [vmem:[#allocation2 + $0x118] sm:$0xff] }
 0x211   :  { %v842_v30 = vpop.f32.mrf.mxu0 }
 0x212   :  { %v1136_v33 = vpack.c.bf16 %v842_v30, %v842_v30  ;;  %v1530_v30 = vadd.f32 %v1529_v14, %v1384_v8  ;;  %v13718_v8 = vld [vmem:[#allocation4 + $0x138] sm:$0xff]  ;;  %v13717_v14 = vld [vmem:[#allocation4 + $0x130] sm:$0xff] }
 0x213   :  { %2028 = vmatpush.bf16.msrb.mxu2 %v13718_v8 }
 0x214   :  { %881 = vmatmul.bf16.gmra.mxu0 %v13637_v29  ;;  %v1604_v37 = vunpack.c.l.b16 %v1136_v33  ;;  %v14433_v33 = vpop.f32.mrf.mxu1 }
 0x217   :  { %2029 = vmatpush.bf16.msrb.mxu2 %v13717_v14 }
 0x219   :  { %v844_v34 = vpop.f32.mrf.mxu0 }
 0x21a   :  { %v1137_v35 = vpack.c.bf16 %v844_v34, %v844_v34 }
 0x21c   :  { %v1605_v38 = vunpack.c.l.b16 %v1137_v35 }
 0x21e   :  { %v1614_v39 = vpack.c.b16 %v1605_v38, %v1604_v37  ;;  %v14435_v37 = vpop.f32.mrf.mxu2 }
 0x220   :  { %1710 = vmatmul.bf16.gmra.mxu3 %v1614_v39 }
 0x221   :  { %v847_v42 = vpop.f32.mrf.mxu0 }
 0x222   :  { %v1138_v44 = vpack.c.bf16 %v847_v42, %v847_v42 }
 0x224   :  { %886 = vmatmul.bf16.gmra.mxu0 %v13638_v41  ;;  %v1606_v51 = vunpack.c.l.b16 %v1138_v44  ;;  %v1394_v44 = vpop.f32.mrf.mxu1 }
 0x229   :  { %v849_v49 = vpop.f32.mrf.mxu0 }
 0x22a   :  { %v1139_v50 = vpack.c.bf16 %v849_v49, %v849_v49  ;;  %v13643_v49 = vld [vmem:[#allocation2 + $0x120] sm:$0xff] }
 0x22c   :  { %v1607_v52 = vunpack.c.l.b16 %v1139_v50 }
 0x22e   :  { %v1615_v56 = vpack.c.b16 %v1607_v52, %v1606_v51  ;;  %v1535_v51 = vadd.f32 %v1534_v28, %v1389_v23 }
 0x230   :  { %1715 = vmatmul.bf16.gmra.mxu3 %v1615_v56 }
 0x231   :  { %v852_v59 = vpop.f32.mrf.mxu0 }
 0x232   :  { %v1140_v61 = vpack.c.bf16 %v852_v59, %v852_v59 }
 0x234   :  { %891 = vmatmul.bf16.gmra.mxu0 %v13639_v58  ;;  %v1770_v1 = vunpack.c.l.b16 %v1140_v61  ;;  %v1539_v58 = vpop.f32.mrf.mxu2  ;;  %v14441_v61 = vpop.f32.mrf.mxu1 }
 0x239   :  { %v854_v63 = vpop.f32.mrf.mxu0 }
 0x23a   :  { %v1141_v0 = vpack.c.bf16 %v854_v63, %v854_v63 }
 0x23c   :  { %v1771_v2 = vunpack.c.l.b16 %v1141_v0 }
 0x23e   :  { %v1786_v4 = vpack.c.b16 %v1771_v2, %v1770_v1 }
 0x240   :  { %1858 = vmatmul.bf16.vlgmr.msrb.gmra.mxu1 %v1786_v4 }
 0x241   :  { %v857_v6 = vpop.f32.mrf.mxu0 }
 0x242   :  { %v1142_v9 = vpack.c.bf16 %v857_v6, %v857_v6  ;;  %v14445_v6 = vpop.f32.mrf.mxu2 }
 0x244   :  { %896 = vmatmul.bf16.gmra.mxu0 %v13640_v5  ;;  %v1772_v12 = vunpack.c.l.b16 %v1142_v9  ;;  %v13644_v9 = vld [vmem:[#allocation2 + $0x128] sm:$0xff] }
 0x249   :  { %v859_v10 = vpop.f32.mrf.mxu0 }
 0x24a   :  { %v1143_v11 = vpack.c.bf16 %v859_v10, %v859_v10 }
 0x24c   :  { %v1773_v13 = vunpack.c.l.b16 %v1143_v11  ;;  %v1540_v11 = vadd.f32 %v1539_v58, %v1394_v44  ;;  %v13712_v44 = vld [vmem:[#allocation4 + $0x108] sm:$0xff]  ;;  %v13711_v58 = vld [vmem:[#allocation4 + $0x100] sm:$0xff] }
 0x24e   :  { %v1787_v15 = vpack.c.b16 %v1773_v13, %v1772_v12  ;;  %v1399_v12 = vpop.f32.mrf.mxu1 }
 0x250   :  { %1863 = vmatmul.bf16.gmra.mxu1 %v1787_v15 }
 0x251   :  { %v862_v18 = vpop.f32.mrf.mxu0 }
 0x252   :  { %v1144_v20 = vpack.c.bf16 %v862_v18, %v862_v18 }
 0x254   :  { %901 = vmatmul.bf16.gmra.mxu0 %v13641_v16  ;;  %v1774_v24 = vunpack.c.l.b16 %v1144_v20  ;;  %v13716_v16 = vld [vmem:[#allocation4 + $0x128] sm:$0xff]  ;;  %v1544_v20 = vpop.f32.mrf.mxu2 }
 0x255   :  { %2030 = vmatpush.bf16.msrb.mxu2 %v13716_v16 }
 0x259   :  { %v864_v21 = vpop.f32.mrf.mxu0 }
 0x25a   :  { %v1145_v22 = vpack.c.bf16 %v864_v21, %v864_v21 }
 0x25c   :  { %v1775_v25 = vunpack.c.l.b16 %v1145_v22 }
 0x25e   :  { %v1788_v26 = vpack.c.b16 %v1775_v25, %v1774_v24  ;;  %v13715_v24 = vld [vmem:[#allocation4 + $0x120] sm:$0xff] }
 0x25f   :  { %2031 = vmatpush.bf16.msrb.mxu2 %v13715_v24 }
 0x260   :  { %1868 = vmatmul.bf16.gmra.mxu1 %v1788_v26 }
 0x261   :  { %v867_v29 = vpop.f32.mrf.mxu0 }
 0x262   :  { %v1146_v34 = vpack.c.bf16 %v867_v29, %v867_v29  ;;  %v13714_v29 = vld [vmem:[#allocation4 + $0x118] sm:$0xff] }
 0x263   :  { %v1691_v31 = vpop.f32.mrf.mxu3  ;;  %2032 = vmatpush.bf16.msrb.mxu2 %v13714_v29 }
 0x264   :  { %v14431_v32 = vadd.f32 %v1691_v31, %v1530_v30  ;;  %906 = vmatmul.bf16.gmra.mxu0 %v13642_v27  ;;  %v1776_v39 = vunpack.c.l.b16 %v1146_v34  ;;  %v14451_v27 = vpop.f32.mrf.mxu1  ;;  %v13645_v30 = vld [vmem:[#allocation2 + $0x130] sm:$0xff]  ;;  %v1545_v34 = vadd.f32 %v1544_v20, %v1399_v12 }
 0x269   :  { %v869_v35 = vpop.f32.mrf.mxu0 }
 0x26a   :  { %v1147_v36 = vpack.c.bf16 %v869_v35, %v869_v35  ;;  %v14453_v35 = vpop.f32.mrf.mxu2 }
 0x26b   :  { %v14437_v38 = vpop.f32.mrf.mxu3 }
 0x26c   :  { %16540 = vst [vmem:[#allocation12_spill] sm:$0xff] %v14437_v38  ;;  %v1777_v41 = vunpack.c.l.b16 %v1147_v36 }
 0x26e   :  { %v1789_v42 = vpack.c.b16 %v1777_v41, %v1776_v39  ;;  %v13713_v39 = vld [vmem:[#allocation4 + $0x110] sm:$0xff] }
 0x26f   :  { %2033 = vmatpush.bf16.msrb.mxu2 %v13713_v39 }
 0x270   :  { %1873 = vmatmul.bf16.gmra.mxu1 %v1789_v42  ;;  %v1404_v42 = vpop.f32.mrf.mxu1 }
 0x271   :  { %v872_v50 = vpop.f32.mrf.mxu0 }
 0x272   :  { %v1148_v59 = vpack.c.bf16 %v872_v50, %v872_v50 }
 0x273   :  { %v1696_v52 = vpop.f32.mrf.mxu3  ;;  %2034 = vmatpush.bf16.msrb.mxu2 %v13712_v44 }
 0x274   :  { %v14439_v56 = vadd.f32 %v1696_v52, %v1535_v51  ;;  %911 = vmatmul.bf16.gmra.mxu0 %v13643_v49  ;;  %v1778_v2 = vunpack.c.l.b16 %v1148_v59 }
 0x277   :  { %2035 = vmatpush.bf16.msrb.mxu2 %v13711_v58  ;;  %v13648_v58 = vld [vmem:[#allocation2 + $0x148] sm:$0xff] }
 0x279   :  { %v874_v63 = vpop.f32.mrf.mxu0 }
 0x27a   :  { %v1149_v0 = vpack.c.bf16 %v874_v63, %v874_v63 }
 0x27b   :  { %v14443_v1 = vpop.f32.mrf.mxu3 }
 0x27c   :  { %16541 = vst [vmem:[#allocation13_spill] sm:$0xff] %v14443_v1  ;;  %v1779_v4 = vunpack.c.l.b16 %v1149_v0  ;;  %v1549_v0 = vpop.f32.mrf.mxu2 }
 0x27e   :  { %v1790_v5 = vpack.c.b16 %v1779_v4, %v1778_v2  ;;  %v13646_v4 = vld [vmem:[#allocation2 + $0x138] sm:$0xff] }
 0x280   :  { %1878 = vmatmul.bf16.gmra.mxu1 %v1790_v5  ;;  %v14459_v5 = vpop.f32.mrf.mxu1 }
 0x281   :  { %v877_v10 = vpop.f32.mrf.mxu0 }
 0x282   :  { %v1150_v18 = vpack.c.bf16 %v877_v10, %v877_v10 }
 0x283   :  { %v1701_v13 = vpop.f32.mrf.mxu3 }
 0x284   :  { %v14447_v15 = vadd.f32 %v1701_v13, %v1540_v11  ;;  %916 = vmatmul.bf16.gmra.mxu0 %v13644_v9  ;;  %v1780_v25 = vunpack.c.l.b16 %v1150_v18  ;;  %v1550_v9 = vadd.f32 %v1549_v0, %v1404_v42  ;;  %v14463_v12 = vpop.f32.mrf.mxu2 }
 0x288   :  { %v1409_v18 = vpop.f32.mrf.mxu1 }
 0x289   :  { %v879_v21 = vpop.f32.mrf.mxu0 }
 0x28a   :  { %v1151_v22 = vpack.c.bf16 %v879_v21, %v879_v21 }
 0x28b   :  { %v14449_v23 = vpop.f32.mrf.mxu3 }
 0x28c   :  { %v1781_v26 = vunpack.c.l.b16 %v1151_v22 }
 0x28e   :  { %v1791_v28 = vpack.c.b16 %v1781_v26, %v1780_v25  ;;  %v13647_v25 = vld [vmem:[#allocation2 + $0x140] sm:$0xff]  ;;  %v1554_v26 = vpop.f32.mrf.mxu2 }
 0x28f   :  { %v1555_v29 = vadd.f32 %v1554_v26, %v1409_v18 }
 0x290   :  { %1883 = vmatmul.bf16.gmra.mxu1 %v1791_v28 }
 0x291   :  { %v882_v31 = vpop.f32.mrf.mxu0 }
 0x292   :  { %v1152_v49 = vpack.c.bf16 %v882_v31, %v882_v31 }
 0x293   :  { %v1706_v36 = vpop.f32.mrf.mxu3 }
 0x294   :  { %v14455_v41 = vadd.f32 %v1706_v36, %v1545_v34  ;;  %921 = vmatmul.bf16.gmra.mxu0 %v13645_v30  ;;  %v1782_v59 = vunpack.c.l.b16 %v1152_v49  ;;  %v14469_v34 = vpop.f32.mrf.mxu1 }
 0x299   :  { %v884_v50 = vpop.f32.mrf.mxu0 }
 0x29a   :  { %v1153_v51 = vpack.c.bf16 %v884_v50, %v884_v50 }
 0x29b   :  { %v14457_v52 = vpop.f32.mrf.mxu3 }
 0x29c   :  { %v1783_v63 = vunpack.c.l.b16 %v1153_v51 }
 0x29e   :  { %v1792_v2 = vpack.c.b16 %v1783_v63, %v1782_v59 }
 0x2a0   :  { %1888 = vmatmul.bf16.gmra.mxu1 %v1792_v2 }
 0x2a1   :  { %v887_v8 = vpop.f32.mrf.mxu0 }
 0x2a2   :  { %v1154_v13 = vpack.c.bf16 %v887_v8, %v887_v8 }
 0x2a3   :  { %v1711_v10 = vpop.f32.mrf.mxu3 }
 0x2a4   :  { %v14461_v11 = vadd.f32 %v1711_v10, %v1550_v9  ;;  %926 = vmatmul.bf16.gmra.mxu0 %v13646_v4  ;;  %v1784_v21 = vunpack.c.l.b16 %v1154_v13 }
 0x2a9   :  { %v889_v14 = vpop.f32.mrf.mxu0 }
 0x2aa   :  { %v1155_v16 = vpack.c.bf16 %v889_v14, %v889_v14  ;;  %v13649_v14 = vld [vmem:[#allocation2 + $0x150] sm:$0xff] }
 0x2ab   :  { %v14465_v20 = vpop.f32.mrf.mxu3 }
 0x2ac   :  { %v1785_v22 = vunpack.c.l.b16 %v1155_v16 }
 0x2ae   :  { %v1793_v24 = vpack.c.b16 %v1785_v22, %v1784_v21 }
 0x2b0   :  { %1893 = vmatmul.bf16.gmra.mxu1 %v1793_v24 }
 0x2b1   :  { %v892_v28 = vpop.f32.mrf.mxu0 }
 0x2b2   :  { %v1156_v36 = vpack.c.bf16 %v892_v28, %v892_v28 }
 0x2b3   :  { %v1716_v30 = vpop.f32.mrf.mxu3 }
 0x2b4   :  { %v14467_v31 = vadd.f32 %v1716_v30, %v1555_v29  ;;  %931 = vmatmul.bf16.gmra.mxu0 %v13647_v25  ;;  %v1948_v44 = vunpack.c.l.b16 %v1156_v36  ;;  %v13650_v36 = vld [vmem:[#allocation2 + $0x158] sm:$0xff] }
 0x2b9   :  { %v894_v39 = vpop.f32.mrf.mxu0 }
 0x2ba   :  { %v1157_v42 = vpack.c.bf16 %v894_v39, %v894_v39 }
 0x2bc   :  { %v1949_v49 = vunpack.c.l.b16 %v1157_v42 }
 0x2bd   :  { %v14471_v50 = vpop.f32.mrf.mxu1 }
 0x2be   :  { %v1964_v51 = vpack.c.b16 %v1949_v49, %v1948_v44 }
 0x2c0   :  { %2036 = vmatmul.bf16.vlgmr.msrb.gmra.mxu2 %v1964_v51 }
 0x2c1   :  { %v897_v59 = vpop.f32.mrf.mxu0 }
 0x2c2   :  { %v1158_v0 = vpack.c.bf16 %v897_v59, %v897_v59 }
 0x2c4   :  { %936 = vmatmul.bf16.gmra.mxu0 %v13648_v58  ;;  %v1950_v8 = vunpack.c.l.b16 %v1158_v0 }
 0x2c5   :  { %v14473_v63 = vpop.f32.mrf.mxu1 }
 0x2c6   :  { %16542 = vst [vmem:[#allocation14_spill] sm:$0xff] %v14473_v63 }
 0x2c9   :  { %v899_v2 = vpop.f32.mrf.mxu0 }
 0x2ca   :  { %v1159_v4 = vpack.c.bf16 %v899_v2, %v899_v2 }
 0x2cc   :  { %v1951_v9 = vunpack.c.l.b16 %v1159_v4 }
 0x2cd   :  { %v14475_v10 = vpop.f32.mrf.mxu1 }
 0x2ce   :  { %v1965_v13 = vpack.c.b16 %v1951_v9, %v1950_v8 }
 0x2d0   :  { %2041 = vmatmul.bf16.gmra.mxu2 %v1965_v13 }
 0x2d1   :  { %v902_v16 = vpop.f32.mrf.mxu0 }
 0x2d2   :  { %v1160_v21 = vpack.c.bf16 %v902_v16, %v902_v16 }
 0x2d4   :  { %941 = vmatmul.bf16.gmra.mxu0 %v13649_v14  ;;  %v1952_v25 = vunpack.c.l.b16 %v1160_v21 }
 0x2d5   :  { %v14477_v18 = vpop.f32.mrf.mxu1 }
 0x2d6   :  { %16543 = vst [vmem:[#allocation15_spill] sm:$0xff] %v14477_v18 }
 0x2d9   :  { %v904_v22 = vpop.f32.mrf.mxu0 }
 0x2da   :  { %v1161_v24 = vpack.c.bf16 %v904_v22, %v904_v22 }
 0x2dc   :  { %v1953_v26 = vunpack.c.l.b16 %v1161_v24 }
 0x2dd   :  { %v1869_v28 = vpop.f32.mrf.mxu1 }
 0x2de   :  { %v14480_v29 = vadd.f32 %v1869_v28, %v14431_v32  ;;  %v1966_v30 = vpack.c.b16 %v1953_v26, %v1952_v25  ;;  %v13651_v32 = vld [vmem:[#allocation2 + $0x160] sm:$0xff]  ;;  %v13726_v28 = vld [vmem:[#allocation4 + $0x178] sm:$0xff] }
 0x2df   :  { %2206 = vmatpush.bf16.msrb.mxu3 %v13726_v28 }
 0x2e0   :  { %2046 = vmatmul.bf16.gmra.mxu2 %v1966_v30 }
 0x2e1   :  { %v907_v39 = vpop.f32.mrf.mxu0 }
 0x2e2   :  { %v1162_v44 = vpack.c.bf16 %v907_v39, %v907_v39 }
 0x2e4   :  { %946 = vmatmul.bf16.gmra.mxu0 %v13650_v36  ;;  %v1954_v58 = vunpack.c.l.b16 %v1162_v44  ;;  %v13725_v36 = vld [vmem:[#allocation4 + $0x170] sm:$0xff]  ;;  %v13724_v44 = vld [vmem:[#allocation4 + $0x168] sm:$0xff] }
 0x2e5   :  { %v14482_v42 = vpop.f32.mrf.mxu1  ;;  %2207 = vmatpush.bf16.msrb.mxu3 %v13725_v36 }
 0x2e6   :  { %16544 = vst [vmem:[#allocation16_spill] sm:$0xff] %v14482_v42 }
 0x2e9   :  { %v909_v49 = vpop.f32.mrf.mxu0  ;;  %2208 = vmatpush.bf16.msrb.mxu3 %v13724_v44 }
 0x2ea   :  { %v1163_v51 = vpack.c.bf16 %v909_v49, %v909_v49 }
 0x2ec   :  { %v1955_v59 = vunpack.c.l.b16 %v1163_v51 }
 0x2ed   :  { %v1874_v0 = vpop.f32.mrf.mxu1 }
 0x2ee   :  { %v14485_v2 = vadd.f32 %v1874_v0, %v14439_v56  ;;  %v1967_v4 = vpack.c.b16 %v1955_v59, %v1954_v58  ;;  %v13652_v56 = vld [vmem:[#allocation2 + $0x168] sm:$0xff]  ;;  %v13723_v59 = vld [vmem:[#allocation4 + $0x160] sm:$0xff] }
 0x2ef   :  { %2209 = vmatpush.bf16.msrb.mxu3 %v13723_v59 }
 0x2f0   :  { %2051 = vmatmul.bf16.gmra.mxu2 %v1967_v4 }
 0x2f1   :  { %v912_v8 = vpop.f32.mrf.mxu0 }
 0x2f2   :  { %v1164_v13 = vpack.c.bf16 %v912_v8, %v912_v8 }
 0x2f4   :  { %951 = vmatmul.bf16.gmra.mxu0 %v13651_v32  ;;  %v1956_v21 = vunpack.c.l.b16 %v1164_v13  ;;  %v13722_v13 = vld [vmem:[#allocation4 + $0x158] sm:$0xff] }
 0x2f5   :  { %v14487_v9 = vpop.f32.mrf.mxu1  ;;  %2210 = vmatpush.bf16.msrb.mxu3 %v13722_v13 }
 0x2f6   :  { %16545 = vst [vmem:[#allocation17_spill] sm:$0xff] %v14487_v9 }
 0x2f9   :  { %v914_v14 = vpop.f32.mrf.mxu0 }
 0x2fa   :  { %v1165_v16 = vpack.c.bf16 %v914_v14, %v914_v14  ;;  %v13653_v14 = vld [vmem:[#allocation2 + $0x170] sm:$0xff] }
 0x2fc   :  { %v1957_v22 = vunpack.c.l.b16 %v1165_v16 }
 0x2fd   :  { %v1879_v24 = vpop.f32.mrf.mxu1 }
 0x2fe   :  { %v14490_v25 = vadd.f32 %v1879_v24, %v14447_v15  ;;  %v1968_v26 = vpack.c.b16 %v1957_v22, %v1956_v21  ;;  %v13721_v21 = vld [vmem:[#allocation4 + $0x150] sm:$0xff]  ;;  %v13720_v24 = vld [vmem:[#allocation4 + $0x148] sm:$0xff] }
 0x2ff   :  { %2211 = vmatpush.bf16.msrb.mxu3 %v13721_v21 }
 0x300   :  { %2056 = vmatmul.bf16.gmra.mxu2 %v1968_v26 }
 0x301   :  { %v917_v30 = vpop.f32.mrf.mxu0 }
 0x302   :  { %v1166_v49 = vpack.c.bf16 %v917_v30, %v917_v30  ;;  %v13719_v30 = vld [vmem:[#allocation4 + $0x140] sm:$0xff] }
 0x303   :  { %2212 = vmatpush.bf16.msrb.mxu3 %v13720_v24 }
 0x304   :  { %956 = vmatmul.bf16.gmra.mxu0 %v13652_v56  ;;  %v1958_v0 = vunpack.c.l.b16 %v1166_v49 }
 0x305   :  { %v14492_v39 = vpop.f32.mrf.mxu1 }
 0x306   :  { %16546 = vst [vmem:[#allocation18_spill] sm:$0xff] %v14492_v39 }
 0x307   :  { %2213 = vmatpush.bf16.msrb.mxu3 %v13719_v30 }
 0x309   :  { %v919_v51 = vpop.f32.mrf.mxu0 }
 0x30a   :  { %v1167_v58 = vpack.c.bf16 %v919_v51, %v919_v51 }
 0x30c   :  { %v1959_v15 = vunpack.c.l.b16 %v1167_v58  ;;  %v13654_v58 = vld [vmem:[#allocation2 + $0x178] sm:$0xff] }
 0x30d   :  { %v1884_v4 = vpop.f32.mrf.mxu1 }
 0x30e   :  { %v14495_v32 = vadd.f32 %v1884_v4, %v14455_v41  ;;  %v1969_v8 = vpack.c.b16 %v1959_v15, %v1958_v0 }
 0x310   :  { %2061 = vmatmul.bf16.gmra.mxu2 %v1969_v8 }
 0x311   :  { %v922_v16 = vpop.f32.mrf.mxu0 }
 0x312   :  { %v1168_v26 = vpack.c.bf16 %v922_v16, %v922_v16 }
 0x314   :  { %961 = vmatmul.bf16.gmra.mxu0 %v13653_v14  ;;  %v1960_v36 = vunpack.c.l.b16 %v1168_v26 }
 0x315   :  { %v14497_v22 = vpop.f32.mrf.mxu1 }
 0x319   :  { %v924_v28 = vpop.f32.mrf.mxu0 }
 0x31a   :  { %v1169_v56 = vpack.c.bf16 %v924_v28, %v924_v28 }
 0x31c   :  { %v1961_v41 = vunpack.c.l.b16 %v1169_v56 }
 0x31d   :  { %v1889_v44 = vpop.f32.mrf.mxu1 }
 0x31e   :  { %v14500_v49 = vadd.f32 %v1889_v44, %v14461_v11  ;;  %v1970_v51 = vpack.c.b16 %v1961_v41, %v1960_v36  ;;  %v13655_v11 = vld [vmem:[#allocation2 + $0x180] sm:$0xff]  ;;  %v14507_v36 = vpop.f32.mrf.mxu2 }
 0x320   :  { %2066 = vmatmul.bf16.gmra.mxu2 %v1970_v51 }
 0x321   :  { %v927_v59 = vpop.f32.mrf.mxu0 }
 0x322   :  { %v1170_v15 = vpack.c.bf16 %v927_v59, %v927_v59 }
 0x324   :  { %966 = vmatmul.bf16.gmra.mxu0 %v13654_v58  ;;  %v1962_v13 = vunpack.c.l.b16 %v1170_v15  ;;  %v13656_v58 = vld [vmem:[#allocation2 + $0x188] sm:$0xff] }
 0x325   :  { %v14502_v0 = vpop.f32.mrf.mxu1 }
 0x329   :  { %v929_v4 = vpop.f32.mrf.mxu0 }
 0x32a   :  { %v1171_v8 = vpack.c.bf16 %v929_v4, %v929_v4 }
 0x32c   :  { %v1963_v14 = vunpack.c.l.b16 %v1171_v8 }
 0x32d   :  { %v1894_v16 = vpop.f32.mrf.mxu1 }
 0x32e   :  { %v14505_v21 = vadd.f32 %v1894_v16, %v14467_v31  ;;  %v1971_v24 = vpack.c.b16 %v1963_v14, %v1962_v13 }
 0x330   :  { %2071 = vmatmul.bf16.gmra.mxu2 %v1971_v24 }
 0x331   :  { %v932_v26 = vpop.f32.mrf.mxu0 }
 0x332   :  { %v1172_v28 = vpack.c.bf16 %v932_v26, %v932_v26 }
 0x334   :  { %971 = vmatmul.bf16.gmra.mxu0 %v13655_v11  ;;  %v2126_v41 = vunpack.c.l.b16 %v1172_v28  ;;  %v13657_v11 = vld [vmem:[#allocation2 + $0x190] sm:$0xff] }
 0x339   :  { %v934_v56 = vpop.f32.mrf.mxu0 }
 0x33a   :  { %v1173_v30 = vpack.c.bf16 %v934_v56, %v934_v56 }
 0x33c   :  { %v2127_v44 = vunpack.c.l.b16 %v1173_v30 }
 0x33e   :  { %v2142_v51 = vpack.c.b16 %v2127_v44, %v2126_v41 }
 0x340   :  { %2214 = vmatmul.bf16.vlgmr.msrb.gmra.mxu3 %v2142_v51 }
 0x341   :  { %v937_v59 = vpop.f32.mrf.mxu0 }
 0x342   :  { %v1174_v31 = vpack.c.bf16 %v937_v59, %v937_v59 }
 0x343   :  { %v14509_v15 = vpop.f32.mrf.mxu2 }
 0x344   :  { %976 = vmatmul.bf16.gmra.mxu0 %v13656_v58  ;;  %v2128_v14 = vunpack.c.l.b16 %v1174_v31 }
 0x349   :  { %v939_v4 = vpop.f32.mrf.mxu0 }
 0x34a   :  { %v1175_v8 = vpack.c.bf16 %v939_v4, %v939_v4  ;;  %v13658_v4 = vld [vmem:[#allocation2 + $0x198] sm:$0xff] }
 0x34b   :  { %v14511_v13 = vpop.f32.mrf.mxu2 }
 0x34c   :  { %16547 = vst [vmem:[#allocation19_spill] sm:$0xff] %v14511_v13  ;;  %v2129_v16 = vunpack.c.l.b16 %v1175_v8 }
 0x34e   :  { %v2143_v24 = vpack.c.b16 %v2129_v16, %v2128_v14 }
 0x350   :  { %2219 = vmatmul.bf16.gmra.mxu3 %v2143_v24 }
 0x351   :  { %v942_v26 = vpop.f32.mrf.mxu0 }
 0x352   :  { %v1176_v56 = vpack.c.bf16 %v942_v26, %v942_v26 }
 0x353   :  { %v14513_v28 = vpop.f32.mrf.mxu2 }
 0x354   :  { %981 = vmatmul.bf16.gmra.mxu0 %v13657_v11  ;;  %v2130_v51 = vunpack.c.l.b16 %v1176_v56  ;;  %v13659_v56 = vld [vmem:[#allocation2 + $0x1a0] sm:$0xff] }
 0x359   :  { %v944_v30 = vpop.f32.mrf.mxu0 }
 0x35a   :  { %v1177_v41 = vpack.c.bf16 %v944_v30, %v944_v30 }
 0x35b   :  { %v14515_v44 = vpop.f32.mrf.mxu2 }
 0x35c   :  { %16548 = vst [vmem:[#allocation20_spill] sm:$0xff] %v14515_v44  ;;  %v2131_v58 = vunpack.c.l.b16 %v1177_v41 }
 0x35e   :  { %v2144_v59 = vpack.c.b16 %v2131_v58, %v2130_v51 }
 0x360   :  { %2224 = vmatmul.bf16.gmra.mxu3 %v2144_v59 }
 0x361   :  { %v947_v55 = vpop.f32.mrf.mxu0 }
 0x362   :  { %v1178_v14 = vpack.c.bf16 %v947_v55, %v947_v55 }
 0x363   :  { %v2047_v31 = vpop.f32.mrf.mxu2 }
 0x364   :  { %v14518_v8 = vadd.f32 %v2047_v31, %v14480_v29  ;;  %986 = vmatmul.bf16.gmra.mxu0 %v13658_v4  ;;  %v2132_v26 = vunpack.c.l.b16 %v1178_v14  ;;  %v13660_v14 = vld [vmem:[#allocation2 + $0x1a8] sm:$0xff] }
 0x369   :  { %v949_v16 = vpop.f32.mrf.mxu0 }
 0x36a   :  { %v1179_v24 = vpack.c.bf16 %v949_v16, %v949_v16 }
 0x36b   :  { %v14520_v11 = vpop.f32.mrf.mxu2 }
 0x36c   :  { %16549 = vst [vmem:[#allocation21_spill] sm:$0xff] %v14520_v11  ;;  %v2133_v30 = vunpack.c.l.b16 %v1179_v24  ;;  %v13734_v11 = vld [vmem:[#allocation4 + $0x1b8] sm:$0xff] }
 0x36d   :  { %2384 = vmatpush.bf16.msra.mxu1 %v13734_v11  ;;  %v13730_v11 = vld [vmem:[#allocation4 + $0x198] sm:$0xff] }
 0x36e   :  { %v2145_v47 = vpack.c.b16 %v2133_v30, %v2132_v26  ;;  %v13733_v26 = vld [vmem:[#allocation4 + $0x1b0] sm:$0xff] }
 0x370   :  { %2229 = vmatmul.bf16.gmra.mxu3 %v2145_v47 }
 0x371   :  { %v952_v41 = vpop.f32.mrf.mxu0  ;;  %2385 = vmatpush.bf16.msra.mxu1 %v13733_v26 }
 0x372   :  { %v1180_v59 = vpack.c.bf16 %v952_v41, %v952_v41 }
 0x373   :  { %v2052_v51 = vpop.f32.mrf.mxu2 }
 0x374   :  { %v14523_v58 = vadd.f32 %v2052_v51, %v14485_v2  ;;  %991 = vmatmul.bf16.gmra.mxu0 %v13659_v56  ;;  %v2134_v55 = vunpack.c.l.b16 %v1180_v59  ;;  %v13732_v2 = vld [vmem:[#allocation4 + $0x1a8] sm:$0xff] }
 0x375   :  { %2386 = vmatpush.bf16.msra.mxu1 %v13732_v2 }
 0x379   :  { %v954_v29 = vpop.f32.mrf.mxu0 }
 0x37a   :  { %v1181_v31 = vpack.c.bf16 %v954_v29, %v954_v29  ;;  %v13731_v29 = vld [vmem:[#allocation4 + $0x1a0] sm:$0xff] }
 0x37b   :  { %v14525_v4 = vpop.f32.mrf.mxu2  ;;  %2387 = vmatpush.bf16.msra.mxu1 %v13731_v29 }
 0x37c   :  { %16550 = vst [vmem:[#allocation22_spill] sm:$0xff] %v14525_v4  ;;  %v2135_v16 = vunpack.c.l.b16 %v1181_v31 }
 0x37e   :  { %v2146_v13 = vpack.c.b16 %v2135_v16, %v2134_v55  ;;  %v13661_v16 = vld [vmem:[#allocation2 + $0x1b0] sm:$0xff] }
 0x37f   :  { %2388 = vmatpush.bf16.msra.mxu1 %v13730_v11 }
 0x380   :  { %2234 = vmatmul.bf16.gmra.mxu3 %v2146_v13 }
 0x381   :  { %v957_v24 = vpop.f32.mrf.mxu0 }
 0x382   :  { %v1182_v56 = vpack.c.bf16 %v957_v24, %v957_v24  ;;  %v13728_v24 = vld [vmem:[#allocation4 + $0x188] sm:$0xff] }
 0x383   :  { %v2057_v47 = vpop.f32.mrf.mxu2 }
 0x384   :  { %v14528_v30 = vadd.f32 %v2057_v47, %v14490_v25  ;;  %996 = vmatmul.bf16.gmra.mxu0 %v13660_v14  ;;  %v2136_v31 = vunpack.c.l.b16 %v1182_v56  ;;  %v13729_v14 = vld [vmem:[#allocation4 + $0x190] sm:$0xff] }
 0x385   :  { %2389 = vmatpush.bf16.msra.mxu1 %v13729_v14 }
 0x389   :  { %v959_v41 = vpop.f32.mrf.mxu0  ;;  %2390 = vmatpush.bf16.msra.mxu1 %v13728_v24 }
 0x38a   :  { %v1183_v51 = vpack.c.bf16 %v959_v41, %v959_v41 }
 0x38b   :  { %v14530_v59 = vpop.f32.mrf.mxu2 }
 0x38c   :  { %16551 = vst [vmem:[#allocation23_spill] sm:$0xff] %v14530_v59  ;;  %v2137_v13 = vunpack.c.l.b16 %v1183_v51  ;;  %v13727_v51 = vld [vmem:[#allocation4 + $0x180] sm:$0xff] }
 0x38d   :  { %2391 = vmatpush.bf16.msra.mxu1 %v13727_v51 }
 0x38e   :  { %v2147_v55 = vpack.c.b16 %v2137_v13, %v2136_v31 }
 0x390   :  { %2239 = vmatmul.bf16.gmra.mxu3 %v2147_v55  ;;  %v13662_v55 = vld [vmem:[#allocation2 + $0x1b8] sm:$0xff] }
 0x391   :  { %v962_v44 = vpop.f32.mrf.mxu0 }
 0x392   :  { %v1184_v26 = vpack.c.bf16 %v962_v44, %v962_v44 }
 0x393   :  { %v2062_v25 = vpop.f32.mrf.mxu2 }
 0x394   :  { %v14533_v47 = vadd.f32 %v2062_v25, %v14495_v32  ;;  %1001 = vmatmul.bf16.gmra.mxu0 %v13661_v16  ;;  %v2138_v29 = vunpack.c.l.b16 %v1184_v26  ;;  %v13663_v26 = vld [vmem:[#allocation2 + $0x1c0] sm:$0xff] }
 0x399   :  { %v964_v2 = vpop.f32.mrf.mxu0 }
 0x39a   :  { %v1185_v56 = vpack.c.bf16 %v964_v2, %v964_v2 }
 0x39b   :  { %v14535_v41 = vpop.f32.mrf.mxu2 }
 0x39c   :  { %v2139_v31 = vunpack.c.l.b16 %v1185_v56 }
 0x39e   :  { %v2148_v13 = vpack.c.b16 %v2139_v31, %v2138_v29 }
 0x3a0   :  { %2244 = vmatmul.bf16.gmra.mxu3 %v2148_v13  ;;  %v14545_v13 = vpop.f32.mrf.mxu3 }
 0x3a1   :  { %v967_v11 = vpop.f32.mrf.mxu0 }
 0x3a2   :  { %v1186_v16 = vpack.c.bf16 %v967_v11, %v967_v11 }
 0x3a3   :  { %v2067_v63 = vpop.f32.mrf.mxu2 }
 0x3a4   :  { %v14538_v32 = vadd.f32 %v2067_v63, %v14500_v49  ;;  %1006 = vmatmul.bf16.gmra.mxu0 %v13662_v55  ;;  %v2140_v24 = vunpack.c.l.b16 %v1186_v16  ;;  %v13664_v16 = vld [vmem:[#allocation2 + $0x1c8] sm:$0xff] }
 0x3a9   :  { %v969_v44 = vpop.f32.mrf.mxu0 }
 0x3aa   :  { %v1187_v25 = vpack.c.bf16 %v969_v44, %v969_v44 }
 0x3ab   :  { %v14540_v14 = vpop.f32.mrf.mxu2 }
 0x3ac   :  { %v2141_v2 = vunpack.c.l.b16 %v1187_v25 }
 0x3ae   :  { %v2149_v4 = vpack.c.b16 %v2141_v2, %v2140_v24 }
 0x3b0   :  { %2249 = vmatmul.bf16.gmra.mxu3 %v2149_v4 }
 0x3b1   :  { %v972_v56 = vpop.f32.mrf.mxu0 }
 0x3b2   :  { %v1188_v31 = vpack.c.bf16 %v972_v56, %v972_v56 }
 0x3b3   :  { %v2072_v51 = vpop.f32.mrf.mxu2 }
 0x3b4   :  { %v14543_v29 = vadd.f32 %v2072_v51, %v14505_v21  ;;  %1011 = vmatmul.bf16.gmra.mxu0 %v13663_v26  ;;  %v2304_v55 = vunpack.c.l.b16 %v1188_v31 }
 0x3b9   :  { %v974_v63 = vpop.f32.mrf.mxu0 }
 0x3ba   :  { %v1189_v49 = vpack.c.bf16 %v974_v63, %v974_v63  ;;  %v13665_v63 = vld [vmem:[#allocation2 + $0x1d0] sm:$0xff] }
 0x3bc   :  { %v2305_v11 = vunpack.c.l.b16 %v1189_v49 }
 0x3be   :  { %v2320_v44 = vpack.c.b16 %v2305_v11, %v2304_v55 }
 0x3c0   :  { %2392 = vmatmul.bf16.vlgmr.msra.gmra.mxu1 %v2320_v44 }
 0x3c1   :  { %v977_v25 = vpop.f32.mrf.mxu0 }
 0x3c2   :  { %v1190_v4 = vpack.c.bf16 %v977_v25, %v977_v25 }
 0x3c3   :  { %v14547_v24 = vpop.f32.mrf.mxu3 }
 0x3c4   :  { %1016 = vmatmul.bf16.gmra.mxu0 %v13664_v16  ;;  %v2306_v26 = vunpack.c.l.b16 %v1190_v4 }
 0x3c9   :  { %v979_v2 = vpop.f32.mrf.mxu0 }
 0x3ca   :  { %v1191_v42 = vpack.c.bf16 %v979_v2, %v979_v2  ;;  %v13666_v2 = vld [vmem:[#allocation2 + $0x1d8] sm:$0xff] }
 0x3cb   :  { %v14549_v21 = vpop.f32.mrf.mxu3 }
 0x3cc   :  { %16552 = vst [vmem:[#allocation24_spill] sm:$0xff] %v14549_v21  ;;  %v2307_v56 = vunpack.c.l.b16 %v1191_v42 }
 0x3ce   :  { %v2321_v51 = vpack.c.b16 %v2307_v56, %v2306_v26 }
 0x3d0   :  { %2397 = vmatmul.bf16.gmra.mxu1 %v2321_v51 }
 0x3d1   :  { %v982_v18 = vpop.f32.mrf.mxu0 }
 0x3d2   :  { %v1192_v49 = vpack.c.bf16 %v982_v18, %v982_v18 }
 0x3d3   :  { %v14551_v31 = vpop.f32.mrf.mxu3 }
 0x3d4   :  { %1021 = vmatmul.bf16.gmra.mxu0 %v13665_v63  ;;  %v2308_v16 = vunpack.c.l.b16 %v1192_v49  ;;  %v13667_v49 = vld [vmem:[#allocation2 + $0x1e0] sm:$0xff] }
 0x3d9   :  { %v984_v55 = vpop.f32.mrf.mxu0 }
 0x3da   :  { %v1193_v11 = vpack.c.bf16 %v984_v55, %v984_v55 }
 0x3db   :  { %v14553_v44 = vpop.f32.mrf.mxu3 }
 0x3dc   :  { %16553 = vst [vmem:[#allocation25_spill] sm:$0xff] %v14553_v44  ;;  %v2309_v25 = vunpack.c.l.b16 %v1193_v11 }
 0x3de   :  { %v2322_v59 = vpack.c.b16 %v2309_v25, %v2308_v16 }
 0x3e0   :  { %2402 = vmatmul.bf16.gmra.mxu1 %v2322_v59 }
 0x3e1   :  { %v987_v21 = vpop.f32.mrf.mxu0 }
 0x3e2   :  { %v1194_v26 = vpack.c.bf16 %v987_v21, %v987_v21 }
 0x3e3   :  { %v2225_v4 = vpop.f32.mrf.mxu3 }
 0x3e4   :  { %v14556_v42 = vadd.f32 %v2225_v4, %v14518_v8  ;;  %1026 = vmatmul.bf16.gmra.mxu0 %v13666_v2  ;;  %v2310_v18 = vunpack.c.l.b16 %v1194_v26  ;;  %v13668_v26 = vld [vmem:[#allocation2 + $0x1e8] sm:$0xff] }
 0x3e9   :  { %v989_v56 = vpop.f32.mrf.mxu0 }
 0x3ea   :  { %v1195_v51 = vpack.c.bf16 %v989_v56, %v989_v56 }
 0x3eb   :  { %v14558_v63 = vpop.f32.mrf.mxu3 }
 0x3ec   :  { %16554 = vst [vmem:[#allocation26_spill] sm:$0xff] %v14558_v63  ;;  %v2311_v55 = vunpack.c.l.b16 %v1195_v51  ;;  %v13742_v63 = vld [vmem:[#allocation4 + $0x1f8] sm:$0xff] }
 0x3ed   :  { %2562 = vmatpush.bf16.msra.mxu2 %v13742_v63  ;;  %v13738_v63 = vld [vmem:[#allocation4 + $0x1d8] sm:$0xff] }
 0x3ee   :  { %v2323_v9 = vpack.c.b16 %v2311_v55, %v2310_v18  ;;  %v13741_v18 = vld [vmem:[#allocation4 + $0x1f0] sm:$0xff] }
 0x3f0   :  { %2407 = vmatmul.bf16.gmra.mxu1 %v2323_v9 }
 0x3f1   :  { %v992_v11 = vpop.f32.mrf.mxu0  ;;  %2563 = vmatpush.bf16.msra.mxu2 %v13741_v18 }
 0x3f2   :  { %v1196_v25 = vpack.c.bf16 %v992_v11, %v992_v11 }
 0x3f3   :  { %v2230_v16 = vpop.f32.mrf.mxu3 }
 0x3f4   :  { %v14561_v59 = vadd.f32 %v2230_v16, %v14523_v58  ;;  %1031 = vmatmul.bf16.gmra.mxu0 %v13667_v49  ;;  %v2312_v21 = vunpack.c.l.b16 %v1196_v25  ;;  %v13740_v58 = vld [vmem:[#allocation4 + $0x1e8] sm:$0xff] }
 0x3f5   :  { %2564 = vmatpush.bf16.msra.mxu2 %v13740_v58 }
 0x3f9   :  { %v994_v8 = vpop.f32.mrf.mxu0 }
 0x3fa   :  { %v1197_v4 = vpack.c.bf16 %v994_v8, %v994_v8  ;;  %v13739_v8 = vld [vmem:[#allocation4 + $0x1e0] sm:$0xff] }
 0x3fb   :  { %v14563_v2 = vpop.f32.mrf.mxu3  ;;  %2565 = vmatpush.bf16.msra.mxu2 %v13739_v8 }
 0x3fc   :  { %16555 = vst [vmem:[#allocation27_spill] sm:$0xff] %v14563_v2  ;;  %v2313_v56 = vunpack.c.l.b16 %v1197_v4 }
 0x3fe   :  { %v2324_v44 = vpack.c.b16 %v2313_v56, %v2312_v21  ;;  %v13669_v56 = vld [vmem:[#allocation2 + $0x1f0] sm:$0xff] }
 0x3ff   :  { %2566 = vmatpush.bf16.msra.mxu2 %v13738_v63 }
 0x400   :  { %2412 = vmatmul.bf16.gmra.mxu1 %v2324_v44 }
 0x401   :  { %v997_v51 = vpop.f32.mrf.mxu0 }
 0x402   :  { %v1198_v49 = vpack.c.bf16 %v997_v51, %v997_v51  ;;  %v13736_v51 = vld [vmem:[#allocation4 + $0x1c8] sm:$0xff] }
 0x403   :  { %v2235_v9 = vpop.f32.mrf.mxu3 }
 0x404   :  { %v14566_v55 = vadd.f32 %v2235_v9, %v14528_v30  ;;  %1036 = vmatmul.bf16.gmra.mxu0 %v13668_v26  ;;  %v2314_v4 = vunpack.c.l.b16 %v1198_v49  ;;  %v13737_v26 = vld [vmem:[#allocation4 + $0x1d0] sm:$0xff] }
 0x405   :  { %2567 = vmatpush.bf16.msra.mxu2 %v13737_v26 }
 0x409   :  { %v999_v11 = vpop.f32.mrf.mxu0  ;;  %2568 = vmatpush.bf16.msra.mxu2 %v13736_v51 }
 0x40a   :  { %v1199_v16 = vpack.c.bf16 %v999_v11, %v999_v11 }
 0x40b   :  { %v14568_v25 = vpop.f32.mrf.mxu3 }
 0x40c   :  { %16556 = vst [vmem:[#allocation28_spill] sm:$0xff] %v14568_v25  ;;  %v2315_v44 = vunpack.c.l.b16 %v1199_v16  ;;  %v13735_v16 = vld [vmem:[#allocation4 + $0x1c0] sm:$0xff] }
 0x40d   :  { %2569 = vmatpush.bf16.msra.mxu2 %v13735_v16 }
 0x40e   :  { %v2325_v21 = vpack.c.b16 %v2315_v44, %v2314_v4 }
 0x410   :  { %2417 = vmatmul.bf16.gmra.mxu1 %v2325_v21  ;;  %v13670_v21 = vld [vmem:[#allocation2 + $0x1f8] sm:$0xff] }
 0x411   :  { %v1002_v2 = vpop.f32.mrf.mxu0 }
 0x412   :  { %v1200_v18 = vpack.c.bf16 %v1002_v2, %v1002_v2 }
 0x413   :  { %v2240_v30 = vpop.f32.mrf.mxu3 }
 0x414   :  { %v14571_v9 = vadd.f32 %v2240_v30, %v14533_v47  ;;  %1041 = vmatmul.bf16.gmra.mxu0 %v13669_v56  ;;  %v2316_v8 = vunpack.c.l.b16 %v1200_v18  ;;  %v13671_v18 = vld [vmem:[#allocation2 + $0x200] sm:$0xff] }
 0x416   :  { %16557 = vst [vmem:[#allocation29_spill] sm:$0xff] %v14571_v9 }
 0x419   :  { %v1004_v58 = vpop.f32.mrf.mxu0 }
 0x41a   :  { %v1201_v49 = vpack.c.bf16 %v1004_v58, %v1004_v58 }
 0x41b   :  { %v14573_v11 = vpop.f32.mrf.mxu3 }
 0x41c   :  { %16558 = vst [vmem:[#allocation30_spill] sm:$0xff] %v14573_v11  ;;  %v2317_v4 = vunpack.c.l.b16 %v1201_v49 }
 0x41e   :  { %v2326_v44 = vpack.c.b16 %v2317_v4, %v2316_v8  ;;  %v14583_v4 = vpop.f32.mrf.mxu1 }
 0x420   :  { %2422 = vmatmul.bf16.gmra.mxu1 %v2326_v44 }
 0x421   :  { %v1007_v63 = vpop.f32.mrf.mxu0 }
 0x422   :  { %v1202_v56 = vpack.c.bf16 %v1007_v63, %v1007_v63 }
 0x423   :  { %v2245_v25 = vpop.f32.mrf.mxu3 }
 0x424   :  { %v14576_v47 = vadd.f32 %v2245_v25, %v14538_v32  ;;  %1046 = vmatmul.bf16.gmra.mxu0 %v13670_v21  ;;  %v2318_v51 = vunpack.c.l.b16 %v1202_v56 }
 0x426   :  { %16559 = vst [vmem:[#allocation31_spill] sm:$0xff] %v14576_v47 }
 0x429   :  { %v1009_v2 = vpop.f32.mrf.mxu0 }
 0x42a   :  { %v1203_v30 = vpack.c.bf16 %v1009_v2, %v1009_v2 }
 0x42b   :  { %v14578_v26 = vpop.f32.mrf.mxu3 }
 0x42c   :  { %v2319_v58 = vunpack.c.l.b16 %v1203_v30  ;;  %v13672_v30 = vld [vmem:[#allocation2 + $0x208] sm:$0xff] }
 0x42e   :  { %v2327_v9 = vpack.c.b16 %v2319_v58, %v2318_v51 }
 0x430   :  { %2427 = vmatmul.bf16.gmra.mxu1 %v2327_v9 }
 0x431   :  { %v1012_v49 = vpop.f32.mrf.mxu0 }
 0x432   :  { %v1204_v32 = vpack.c.bf16 %v1012_v49, %v1012_v49 }
 0x433   :  { %v2250_v16 = vpop.f32.mrf.mxu3 }
 0x434   :  { %v14581_v8 = vadd.f32 %v2250_v16, %v14543_v29  ;;  %1051 = vmatmul.bf16.gmra.mxu0 %v13671_v18  ;;  %v2482_v21 = vunpack.c.l.b16 %v1204_v32  ;;  %v13673_v32 = vld [vmem:[#allocation2 + $0x210] sm:$0xff] }
 0x439   :  { %v1014_v25 = vpop.f32.mrf.mxu0 }
 0x43a   :  { %v1205_v44 = vpack.c.bf16 %v1014_v25, %v1014_v25 }
 0x43c   :  { %v2483_v63 = vunpack.c.l.b16 %v1205_v44 }
 0x43d   :  { %v14585_v2 = vpop.f32.mrf.mxu1 }
 0x43e   :  { %v2498_v56 = vpack.c.b16 %v2483_v63, %v2482_v21 }
 0x440   :  { %2570 = vmatmul.bf16.vlgmr.msra.gmra.mxu2 %v2498_v56 }
 0x441   :  { %v1017_v9 = vpop.f32.mrf.mxu0 }
 0x442   :  { %v1206_v58 = vpack.c.bf16 %v1017_v9, %v1017_v9 }
 0x444   :  { %1056 = vmatmul.bf16.gmra.mxu0 %v13672_v30  ;;  %v2484_v18 = vunpack.c.l.b16 %v1206_v58 }
 0x445   :  { %v14587_v51 = vpop.f32.mrf.mxu1 }
 0x446   :  { %16560 = vst [vmem:[#allocation32_spill] sm:$0xff] %v14587_v51 }
 0x449   :  { %v1019_v29 = vpop.f32.mrf.mxu0 }
 0x44a   :  { %v1207_v16 = vpack.c.bf16 %v1019_v29, %v1019_v29  ;;  %v13674_v29 = vld [vmem:[#allocation2 + $0x218] sm:$0xff] }
 0x44c   :  { %v2485_v38 = vunpack.c.l.b16 %v1207_v16 }
 0x44d   :  { %v14589_v47 = vpop.f32.mrf.mxu1 }
 0x44e   :  { %v2499_v49 = vpack.c.b16 %v2485_v38, %v2484_v18 }
 0x450   :  { %2575 = vmatmul.bf16.gmra.mxu2 %v2499_v49 }
 0x451   :  { %v1022_v25 = vpop.f32.mrf.mxu0 }
 0x452   :  { %v1208_v21 = vpack.c.bf16 %v1022_v25, %v1022_v25 }
 0x454   :  { %1061 = vmatmul.bf16.gmra.mxu0 %v13673_v32  ;;  %v2486_v30 = vunpack.c.l.b16 %v1208_v21 }
 0x455   :  { %v14591_v44 = vpop.f32.mrf.mxu1 }
 0x456   :  { %16561 = vst [vmem:[#allocation33_spill] sm:$0xff] %v14591_v44 }
 0x459   :  { %v1024_v63 = vpop.f32.mrf.mxu0 }
 0x45a   :  { %v1209_v56 = vpack.c.bf16 %v1024_v63, %v1024_v63 }
 0x45c   :  { %v2487_v11 = vunpack.c.l.b16 %v1209_v56 }
 0x45d   :  { %v2403_v51 = vpop.f32.mrf.mxu1 }
 0x45e   :  { %v14594_v9 = vadd.f32 %v2403_v51, %v14556_v42  ;;  %v2500_v58 = vpack.c.b16 %v2487_v11, %v2486_v30  ;;  %v13675_v42 = vld [vmem:[#allocation2 + $0x220] sm:$0xff] }
 0x460   :  { %2580 = vmatmul.bf16.gmra.mxu2 %v2500_v58 }
 0x461   :  { %v1027_v16 = vpop.f32.mrf.mxu0 }
 0x462   :  { %v1210_v18 = vpack.c.bf16 %v1027_v16, %v1027_v16 }
 0x464   :  { %1066 = vmatmul.bf16.gmra.mxu0 %v13674_v29  ;;  %v2488_v44 = vunpack.c.l.b16 %v1210_v18 }
 0x465   :  { %v14596_v38 = vpop.f32.mrf.mxu1 }
 0x466   :  { %16562 = vst [vmem:[#allocation34_spill] sm:$0xff] %v14596_v38 }
 0x469   :  { %v1029_v49 = vpop.f32.mrf.mxu0 }
 0x46a   :  { %v1211_v32 = vpack.c.bf16 %v1029_v49, %v1029_v49 }
 0x46c   :  { %v2489_v25 = vunpack.c.l.b16 %v1211_v32  ;;  %v13750_v32 = vld [vmem:[#allocation4 + $0x238] sm:$0xff] }
 0x46d   :  { %v2408_v39 = vpop.f32.mrf.mxu1  ;;  %2740 = vmatpush.bf16.msra.mxu3 %v13750_v32  ;;  %v13744_v32 = vld [vmem:[#allocation4 + $0x208] sm:$0xff] }
 0x46e   :  { %v14599_v21 = vadd.f32 %v2408_v39, %v14561_v59  ;;  %v2501_v63 = vpack.c.b16 %v2489_v25, %v2488_v44  ;;  %v13676_v39 = vld [vmem:[#allocation2 + $0x228] sm:$0xff]  ;;  %v13749_v44 = vld [vmem:[#allocation4 + $0x230] sm:$0xff] }
 0x46f   :  { %v13748_v25 = vld [vmem:[#allocation4 + $0x228] sm:$0xff] }
 0x470   :  { %2585 = vmatmul.bf16.gmra.mxu2 %v2501_v63 }
 0x471   :  { %v1032_v51 = vpop.f32.mrf.mxu0  ;;  %2741 = vmatpush.bf16.msra.mxu3 %v13749_v44 }
 0x472   :  { %v1212_v56 = vpack.c.bf16 %v1032_v51, %v1032_v51 }
 0x474   :  { %1071 = vmatmul.bf16.gmra.mxu0 %v13675_v42  ;;  %v2490_v29 = vunpack.c.l.b16 %v1212_v56  ;;  %v13747_v56 = vld [vmem:[#allocation4 + $0x220] sm:$0xff] }
 0x475   :  { %v14601_v11 = vpop.f32.mrf.mxu1  ;;  %2742 = vmatpush.bf16.msra.mxu3 %v13748_v25  ;;  %v13743_v25 = vld [vmem:[#allocation4 + $0x200] sm:$0xff] }
 0x476   :  { %16563 = vst [vmem:[#allocation35_spill] sm:$0xff] %v14601_v11 }
 0x479   :  { %v1034_v30 = vpop.f32.mrf.mxu0  ;;  %2743 = vmatpush.bf16.msra.mxu3 %v13747_v56 }
 0x47a   :  { %v1213_v58 = vpack.c.bf16 %v1034_v30, %v1034_v30 }
 0x47c   :  { %v2491_v16 = vunpack.c.l.b16 %v1213_v58 }
 0x47d   :  { %v2413_v38 = vpop.f32.mrf.mxu1 }
 0x47e   :  { %v14604_v18 = vadd.f32 %v2413_v38, %v14566_v55  ;;  %v2502_v49 = vpack.c.b16 %v2491_v16, %v2490_v29  ;;  %v13746_v38 = vld [vmem:[#allocation4 + $0x218] sm:$0xff]  ;;  %v13677_v29 = vld [vmem:[#allocation2 + $0x230] sm:$0xff] }
 0x47f   :  { %2744 = vmatpush.bf16.msra.mxu3 %v13746_v38 }
 0x480   :  { %2590 = vmatmul.bf16.gmra.mxu2 %v2502_v49  ;;  %v13745_v49 = vld [vmem:[#allocation4 + $0x210] sm:$0xff] }
 0x481   :  { %v1037_v59 = vpop.f32.mrf.mxu0 }
 0x482   :  { %v1214_v63 = vpack.c.bf16 %v1037_v59, %v1037_v59 }
 0x483   :  { %2745 = vmatpush.bf16.msra.mxu3 %v13745_v49 }
 0x484   :  { %1076 = vmatmul.bf16.gmra.mxu0 %v13676_v39  ;;  %v2492_v30 = vunpack.c.l.b16 %v1214_v63 }
 0x487   :  { %2746 = vmatpush.bf16.msra.mxu3 %v13744_v32  ;;  %v16564_v32 = vpack.c.b16 %v14401_v46, %v14399_v45 }
 0x489   :  { %v1039_v42 = vpop.f32.mrf.mxu0 }
 0x48a   :  { %v1215_v51 = vpack.c.bf16 %v1039_v42, %v1039_v42 }
 0x48b   :  { %2747 = vmatpush.bf16.msra.mxu3 %v13743_v25 }
 0x48c   :  { %v2493_v58 = vunpack.c.l.b16 %v1215_v51  ;;  %v13678_v51 = vld [vmem:[#allocation2 + $0x238] sm:$0xff] }
 0x48e   :  { %v2503_v55 = vpack.c.b16 %v2493_v58, %v2492_v30 }
 0x490   :  { %2595 = vmatmul.bf16.gmra.mxu2 %v2503_v55 }
 0x491   :  { %v1042_v16 = vpop.f32.mrf.mxu0 }
 0x492   :  { %v1216_v39 = vpack.c.bf16 %v1042_v16, %v1042_v16 }
 0x494   :  { %1081 = vmatmul.bf16.gmra.mxu0 %v13677_v29  ;;  %v2494_v42 = vunpack.c.l.b16 %v1216_v39 }
 0x499   :  { %v1044_v44 = vpop.f32.mrf.mxu0 }
 0x49a   :  { %v1217_v59 = vpack.c.bf16 %v1044_v44, %v1044_v44 }
 0x49c   :  { %v2495_v11 = vunpack.c.l.b16 %v1217_v59 }
 0x49e   :  { %v2504_v63 = vpack.c.b16 %v2495_v11, %v2494_v42  ;;  %v14609_v11 = vpop.f32.mrf.mxu2 }
 0x49f   :  { %16565 = vst [vmem:[#allocation36_spill] sm:$0xff] %v14609_v11 }
 0x4a0   :  { %2600 = vmatmul.bf16.gmra.mxu2 %v2504_v63 }
 0x4a1   :  { %v1047_v56 = vpop.f32.mrf.mxu0 }
 0x4a2   :  { %v1218_v30 = vpack.c.bf16 %v1047_v56, %v1047_v56 }
 0x4a4   :  { %1086 = vmatmul.bf16.gmra.mxu0 %v13678_v51  ;;  %v2496_v38 = vunpack.c.l.b16 %v1218_v30  ;;  %v16566_v30 = vpack.c.b16 %v14407_v54, %v14405_v53 }
 0x4a9   :  { %v1049_v58 = vpop.f32.mrf.mxu0 }
 0x4aa   :  { %v1219_v55 = vpack.c.bf16 %v1049_v58, %v1049_v58 }
 0x4ac   :  { %v2497_v29 = vunpack.c.l.b16 %v1219_v55 }
 0x4ae   :  { %v2505_v49 = vpack.c.b16 %v2497_v29, %v2496_v38 }
 0x4b0   :  { %2605 = vmatmul.bf16.gmra.mxu2 %v2505_v49 }
 0x4b1   :  { %v1052_v16 = vpop.f32.mrf.mxu0 }
 0x4b2   :  { %v1220_v39 = vpack.c.bf16 %v1052_v16, %v1052_v16 }
 0x4b4   :  { %1680 = vmatmul.bf16.vlgmr.msrb.gmra.mxu0 %v16564_v32  ;;  %v2660_v25 = vunpack.c.l.b16 %v1220_v39 }
 0x4b9   :  { %v1054_v44 = vpop.f32.mrf.mxu0 }
 0x4ba   :  { %v1221_v59 = vpack.c.bf16 %v1054_v44, %v1054_v44 }
 0x4bc   :  { %v2661_v42 = vunpack.c.l.b16 %v1221_v59 }
 0x4be   :  { %v2676_v63 = vpack.c.b16 %v2661_v42, %v2660_v25 }
 0x4c0   :  { %2748 = vmatmul.bf16.vlgmr.msra.gmra.mxu3 %v2676_v63 }
 0x4c1   :  { %v1057_v51 = vpop.f32.mrf.mxu0 }
 0x4c2   :  { %v1222_v58 = vpack.c.bf16 %v1057_v51, %v1057_v51 }
 0x4c3   :  { %v14611_v56 = vpop.f32.mrf.mxu2 }
 0x4c4   :  { %1685 = vmatmul.bf16.gmra.mxu0 %v16566_v30  ;;  %v2662_v38 = vunpack.c.l.b16 %v1222_v58 }
 0x4c9   :  { %v1059_v55 = vpop.f32.mrf.mxu0 }
 0x4ca   :  { %v1223_v45 = vpack.c.bf16 %v1059_v55, %v1059_v55 }
 0x4cb   :  { %v14616_v46 = vpop.f32.mrf.mxu2 }
 0x4cc   :  { %16567 = vst [vmem:[#allocation37_spill] sm:$0xff] %v14616_v46  ;;  %v2663_v29 = vunpack.c.l.b16 %v1223_v45 }
 0x4ce   :  { %v2677_v49 = vpack.c.b16 %v2663_v29, %v2662_v38 }
 0x4d0   :  { %2753 = vmatmul.bf16.gmra.mxu3 %v2677_v49 }
 0x4d1   :  { %v1062_v16 = vpop.f32.mrf.mxu0 }
 0x4d2   :  { %v1224_v39 = vpack.c.bf16 %v1062_v16, %v1062_v16 }
 0x4d3   :  { %v14618_v32 = vpop.f32.mrf.mxu2 }
 0x4d4   :  { %v2664_v42 = vunpack.c.l.b16 %v1224_v39 }
 0x4d9   :  { %v1064_v44 = vpop.f32.mrf.mxu0 }
 0x4da   :  { %v1225_v59 = vpack.c.bf16 %v1064_v44, %v1064_v44 }
 0x4db   :  { %v14620_v25 = vpop.f32.mrf.mxu2 }
 0x4dc   :  { %16568 = vst [vmem:[#allocation38_spill] sm:$0xff] %v14620_v25  ;;  %v2665_v53 = vunpack.c.l.b16 %v1225_v59 }
 0x4de   :  { %v2678_v54 = vpack.c.b16 %v2665_v53, %v2664_v42 }
 0x4e0   :  { %2758 = vmatmul.bf16.gmra.mxu3 %v2678_v54 }
 0x4e1   :  { %v1067_v63 = vpop.f32.mrf.mxu0 }
 0x4e2   :  { %v1226_v58 = vpack.c.bf16 %v1067_v63, %v1067_v63 }
 0x4e3   :  { %v2581_v51 = vpop.f32.mrf.mxu2 }
 0x4e4   :  { %v14623_v30 = vadd.f32 %v2581_v51, %v14594_v9  ;;  %v2666_v29 = vunpack.c.l.b16 %v1226_v58 }
 0x4e9   :  { %v1069_v55 = vpop.f32.mrf.mxu0 }
 0x4ea   :  { %v1227_v45 = vpack.c.bf16 %v1069_v55, %v1069_v55 }
 0x4eb   :  { %v14625_v38 = vpop.f32.mrf.mxu2 }
 0x4ec   :  { %16569 = vst [vmem:[#allocation39_spill] sm:$0xff] %v14625_v38  ;;  %v2667_v49 = vunpack.c.l.b16 %v1227_v45 }
 0x4ee   :  { %v2679_v16 = vpack.c.b16 %v2667_v49, %v2666_v29 }
 0x4f0   :  { %2763 = vmatmul.bf16.gmra.mxu3 %v2679_v16 }
 0x4f1   :  { %v1072_v44 = vpop.f32.mrf.mxu0 }
 0x4f2   :  { %v1228_v59 = vpack.c.bf16 %v1072_v44, %v1072_v44 }
 0x4f3   :  { %v2586_v46 = vpop.f32.mrf.mxu2 }
 0x4f4   :  { %v14628_v39 = vadd.f32 %v2586_v46, %v14599_v21  ;;  %v2668_v9 = vunpack.c.l.b16 %v1228_v59 }
 0x4f9   :  { %v1074_v42 = vpop.f32.mrf.mxu0 }
 0x4fa   :  { %v1229_v53 = vpack.c.bf16 %v1074_v42, %v1074_v42 }
 0x4fb   :  { %v14630_v54 = vpop.f32.mrf.mxu2 }
 0x4fc   :  { %16570 = vst [vmem:[#allocation40_spill] sm:$0xff] %v14630_v54  ;;  %v2669_v63 = vunpack.c.l.b16 %v1229_v53 }
 0x4fe   :  { %v2680_v51 = vpack.c.b16 %v2669_v63, %v2668_v9 }
 0x500   :  { %2768 = vmatmul.bf16.gmra.mxu3 %v2680_v51 }
 0x501   :  { %v1077_v55 = vpop.f32.mrf.mxu0 }
 0x502   :  { %v1230_v45 = vpack.c.bf16 %v1077_v55, %v1077_v55 }
 0x503   :  { %v2591_v25 = vpop.f32.mrf.mxu2 }
 0x504   :  { %v2619_v58 = vadd.f32 %v2591_v25, %v14604_v18  ;;  %v2670_v16 = vunpack.c.l.b16 %v1230_v45  ;;  %v1520_v45 = vadd.f32 %v14413_v43, %v14411_v40 }
 0x509   :  { %v1079_v29 = vpop.f32.mrf.mxu0 }
 0x50a   :  { %v1231_v49 = vpack.c.bf16 %v1079_v29, %v1079_v29 }
 0x50c   :  { %v2671_v38 = vunpack.c.l.b16 %v1231_v49 }
 0x50e   :  { %v2681_v21 = vpack.c.b16 %v2671_v38, %v2670_v16 }
 0x510   :  { %2773 = vmatmul.bf16.gmra.mxu3 %v2681_v21  ;;  %v14640_v21 = vpop.f32.mrf.mxu3 }
 0x511   :  { %v1082_v46 = vpop.f32.mrf.mxu0 }
 0x512   :  { %v1232_v44 = vpack.c.bf16 %v1082_v46, %v1082_v46 }
 0x514   :  { %v2672_v54 = vunpack.c.l.b16 %v1232_v44 }
 0x519   :  { %v1084_v42 = vpop.f32.mrf.mxu0 }
 0x51a   :  { %v1233_v11 = vpack.c.bf16 %v1084_v42, %v1084_v42 }
 0x51c   :  { %v2673_v59 = vunpack.c.l.b16 %v1233_v11 }
 0x51e   :  { %v2682_v53 = vpack.c.b16 %v2673_v59, %v2672_v54 }
 0x520   :  { %2778 = vmatmul.bf16.gmra.mxu3 %v2682_v53 }
 0x521   :  { %v1087_v9 = vpop.f32.mrf.mxu0 }
 0x522   :  { %v1234_v63 = vpack.c.bf16 %v1087_v9, %v1087_v9 }
 0x524   :  { %v2674_v18 = vunpack.c.l.b16 %v1234_v63 }
 0x529   :  { %v1089_v51 = vpop.f32.mrf.mxu0 }
 0x52a   :  { %v1235_v1 = vpack.c.bf16 %v1089_v51, %v1089_v51 }
 0x52c   :  { %v2675_v25 = vunpack.c.l.b16 %v1235_v1  ;;  %v1525_v1 = vadd.f32 %v14421_v62, %v14419_v60 }
 0x52e   :  { %v2683_v55 = vpack.c.b16 %v2675_v25, %v2674_v18  ;;  %v14667_v18 = vpop.f32.mrf.mxu1 }
 0x530   :  { %2783 = vmatmul.bf16.gmra.mxu3 %v2683_v55 }
 0x531   :  { %v1681_v38 = vpop.f32.mrf.mxu0 }
 0x532   :  { %v1721_v29 = vadd.f32 %v1681_v38, %v1520_v45 }
 0x534   :  { %v1899_v49 = vadd.f32 %v14471_v50, %v1721_v29 }
 0x536   :  { %v2077_v16 = vadd.f32 %v14509_v15, %v1899_v49  ;;  %v2418_v25 = vpop.f32.mrf.mxu1 }
 0x538   :  { %v2255_v54 = vadd.f32 %v14547_v24, %v2077_v16 }
 0x539   :  { %v14637_v11 = vpop.f32.mrf.mxu0 }
 0x53a   :  { %v2433_v46 = vadd.f32 %v14585_v2, %v2255_v54 }
 0x53c   :  { %v2611_v43 = vadd.f32 %v14611_v56, %v2433_v46 }
 0x53e   :  { %v2420_v29 = vpop.f32.mrf.mxu1 }
 0x541   :  { %v1686_v44 = vpop.f32.mrf.mxu0 }
 0x542   :  { %v1723_v40 = vadd.f32 %v1686_v44, %v1525_v1 }
 0x543   :  { %v2749_v42 = vpop.f32.mrf.mxu3 }
 0x544   :  { %v1901_v50 = vadd.f32 %v14475_v10, %v1723_v40  ;;  %v14647_v59 = vadd.f32 %v2749_v42, %v2611_v43  ;;  %v1552_v43 = vadd.f32 %v14463_v12, %v14459_v5  ;;  %v1542_v5 = vadd.f32 %v14445_v6, %v14441_v61 }
 0x546   :  { %v2079_v15 = vadd.f32 %v14513_v28, %v1901_v50  ;;  %v1730_v61 = vadd.f32 %v14449_v23, %v1542_v5 }
 0x548   :  { %v2257_v24 = vadd.f32 %v14551_v31, %v2079_v15  ;;  %v1547_v15 = vadd.f32 %v14453_v35, %v14451_v27 }
 0x54a   :  { %v2435_v2 = vadd.f32 %v14589_v47, %v2257_v24  ;;  %v14669_v47 = vpop.f32.mrf.mxu2 }
 0x54b   :  { %v14651_v53 = vpop.f32.mrf.mxu3 }
 0x54c   :  { %v2613_v9 = vadd.f32 %v14618_v32, %v2435_v2  ;;  %v1557_v2 = vadd.f32 %v14507_v36, %v14469_v34  ;;  %v1688_v34 = vpop.f32.mrf.mxu0  ;;  %v1537_v36 = vadd.f32 %v14435_v37, %v14433_v33  ;;  %v16574_v37 = vld [vmem:[#allocation30_spill] sm:$0xff] }
 0x54e   :  { %v1736_v12 = vadd.f32 %v14545_v13, %v1557_v2  ;;  %v16571_v13 = vld [vmem:[#allocation13_spill] sm:$0xff] }
 0x550   :  { %v1914_v6 = vadd.f32 %v14583_v4, %v1736_v12 }
 0x552   :  { %v14675_v38 = vpop.f32.mrf.mxu2 }
 0x553   :  { %v2754_v60 = vpop.f32.mrf.mxu3 }
 0x554   :  { %v14655_v62 = vadd.f32 %v2754_v60, %v2613_v9  ;;  %v1732_v60 = vadd.f32 %v14457_v52, %v1547_v15  ;;  %v1527_v52 = vadd.f32 %v14425_v7, %v14423_v3  ;;  %v2805_v7 = vld [vmem:[#allocation6] sm:$0xff] }
 0x555   :  { %v14717_v12 = vperm.slane %v2805_v7, 0 }
 0x556   :  { %v1910_v27 = vadd.f32 %v14497_v22, %v1732_v60 }
 0x55a   :  { %v2598_v49 = vpop.f32.mrf.mxu2 }
 0x55b   :  { %v14657_v63 = vpop.f32.mrf.mxu3 }
 0x562   :  { %v2601_v54 = vpop.f32.mrf.mxu2 }
 0x563   :  { %v2759_v56 = vpop.f32.mrf.mxu3 }
 0x564   :  { %v14660_v10 = vadd.f32 %v2759_v56, %v14623_v30 }
 0x56a   :  { %v2603_v44 = vpop.f32.mrf.mxu2 }
 0x56b   :  { %v14662_v51 = vpop.f32.mrf.mxu3 }
 0x572   :  { %v2606_v9 = vpop.f32.mrf.mxu2 }
 0x573   :  { %v2764_v28 = vpop.f32.mrf.mxu3 }
 0x574   :  { %v14665_v31 = vadd.f32 %v2764_v28, %v14628_v39  ;;  %v2423_v39 = vpop.f32.mrf.mxu1 }
 0x57b   :  { %v14671_v32 = vpop.f32.mrf.mxu3 }
 0x57c   :  { %v2425_v1 = vpop.f32.mrf.mxu1 }
 0x583   :  { %v2769_v55 = vpop.f32.mrf.mxu3 }
 0x584   :  { %v14673_v45 = vadd.f32 %v2769_v55, %v2619_v58  ;;  %v1734_v58 = vadd.f32 %v14465_v20, %v1552_v43  ;;  %v2428_v42 = vpop.f32.mrf.mxu1  ;;  %v1522_v20 = vadd.f32 %v14417_v57, %v14415_v48  ;;  %v1532_v48 = vadd.f32 %v14429_v19, %v14427_v17  ;;  %v16573_v55 = vld [vmem:[#allocation36_spill] sm:$0xff] }
 0x585   :  { %v2088_v57 = vadd.f32 %v14535_v41, %v1910_v27  ;;  %v2092_v3 = vadd.f32 %v16573_v55, %v1914_v6  ;;  %v1724_v43 = vadd.f32 %v1688_v34, %v1527_v52  ;;  %v16576_v17 = vld [vmem:[#allocation12_spill] sm:$0xff]  ;;  %v16577_v41 = vld [vmem:[#allocation17_spill] sm:$0xff]  ;;  %v2608_v52 = vpop.f32.mrf.mxu2 }
 0x586   :  { %v1912_v24 = vadd.f32 %v14502_v0, %v1734_v58  ;;  %v2447_v0 = vadd.f32 %v2428_v42, %v14581_v8  ;;  %v16572_v8 = vld [vmem:[#allocation18_spill] sm:$0xff]  ;;  %v16575_v58 = vld [vmem:[#allocation31_spill] sm:$0xff]  ;;  %v1726_v19 = vadd.f32 %v16576_v17, %v1532_v48  ;;  %v16580_v34 = vld [vmem:[#allocation29_spill] sm:$0xff] }
 0x587   :  { %v1908_v28 = vadd.f32 %v16572_v8, %v1730_v61  ;;  %v2266_v23 = vadd.f32 %v16574_v37, %v2088_v57  ;;  %v2445_v4 = vadd.f32 %v2423_v39, %v16575_v58  ;;  %v2443_v39 = vadd.f32 %v2418_v25, %v16580_v34  ;;  %v16586_v55 = vld [vmem:[#allocation20_spill] sm:$0xff] }
 0x588   :  { %v2090_v56 = vadd.f32 %v14540_v14, %v1912_v24  ;;  %v2625_v14 = vadd.f32 %v2606_v9, %v2447_v0  ;;  %v16578_v24 = vld [vmem:[#allocation23_spill] sm:$0xff]  ;;  %v2270_v9 = vadd.f32 %v14640_v21, %v2092_v3 }
 0x589   :  { %v2086_v2 = vadd.f32 %v16578_v24, %v1908_v28  ;;  %v2623_v5 = vadd.f32 %v2601_v54, %v2445_v4  ;;  %v16583_v54 = vld [vmem:[#allocation22_spill] sm:$0xff] }
 0x58a   :  { %v2268_v35 = vadd.f32 %v14578_v26, %v2090_v56  ;;  %v1728_v26 = vadd.f32 %v16571_v13, %v1537_v36  ;;  %v2444_v56 = vadd.f32 %v2420_v29, %v2266_v23  ;;  %v16581_v36 = vld [vmem:[#allocation15_spill] sm:$0xff]  ;;  %v2621_v13 = vadd.f32 %v14675_v38, %v2443_v39  ;;  %v16587_v38 = vld [vmem:[#allocation21_spill] sm:$0xff] }
 0x58b   :  { %v14677_v30 = vpop.f32.mrf.mxu3  ;;  %v1902_v61 = vadd.f32 %v16581_v36, %v1724_v43 }
 0x58c   :  { %v2446_v22 = vadd.f32 %v2425_v1, %v2268_v35  ;;  %v1906_v1 = vadd.f32 %v16577_v41, %v1728_v26  ;;  %v2430_v60 = vpop.f32.mrf.mxu1  ;;  %v16579_v35 = vld [vmem:[#allocation28_spill] sm:$0xff]  ;;  %v2622_v48 = vadd.f32 %v2598_v49, %v2444_v56  ;;  %v16585_v49 = vld [vmem:[#allocation14_spill] sm:$0xff] }
 0x58d   :  { %v2264_v0 = vadd.f32 %v16579_v35, %v2086_v2  ;;  %v2448_v6 = vadd.f32 %v2430_v60, %v2270_v9  ;;  %v2080_v3 = vadd.f32 %v16586_v55, %v1902_v61  ;;  %v16589_v41 = vld [vmem:[#allocation26_spill] sm:$0xff]  ;;  %v16591_v2 = vld [vmem:[#allocation19_spill] sm:$0xff]  ;;  %v16592_v60 = vld [vmem:[#allocation25_spill] sm:$0xff] }
 0x58e   :  { %v2624_v42 = vadd.f32 %v2603_v44, %v2446_v22  ;;  %v1722_v44 = vadd.f32 %v14637_v11, %v1522_v20  ;;  %v16582_v22 = vld [vmem:[#allocation16_spill] sm:$0xff]  ;;  %v16584_v20 = vld [vmem:[#allocation27_spill] sm:$0xff] }
 0x58f   :  { %v1904_v29 = vadd.f32 %v16582_v22, %v1726_v19  ;;  %v2626_v26 = vadd.f32 %v2608_v52, %v2448_v6  ;;  %v2258_v56 = vadd.f32 %v16592_v60, %v2080_v3  ;;  %v2813_v3 = vadd.f32 %v14717_v12, %v14665_v31 }
 0x590   :  { %v2811_v31 = vadd.f32 %v14717_v12, %v14660_v10  ;;  %v2809_v10 = vadd.f32 %v14717_v12, %v14655_v62 }
 0x591   :  { %v2082_v58 = vadd.f32 %v16587_v38, %v1904_v29  ;;  %v16596_v29 = vld [vmem:[#allocation33_spill] sm:$0xff] }
 0x593   :  { %v14679_v16 = vpop.f32.mrf.mxu3 }
 0x59b   :  { %v2776_v46 = vpop.f32.mrf.mxu3 }
 0x59c   :  { %v2800_v25 = vadd.f32 %v2776_v46, %v2622_v48  ;;  %v16588_v46 = vld [vmem:[#allocation35_spill] sm:$0xff] }
 0x59d   :  { %v16594_v48 = vld [vmem:[#allocation39_spill] sm:$0xff] }
 0x5a3   :  { %v2779_v40 = vpop.f32.mrf.mxu3 }
 0x5a4   :  { %v2801_v57 = vadd.f32 %v2779_v40, %v2623_v5  ;;  %v1900_v40 = vadd.f32 %v16585_v49, %v1722_v44  ;;  %v14750_v44 = vperm.slane %v2805_v7, 2  ;;  %v16597_v49 = vld [vmem:[#allocation32_spill] sm:$0xff] }
 0x5a6   :  { %v2819_v37 = vadd.f32 %v14717_v12, %v2801_v57  ;;  %v2078_v9 = vadd.f32 %v16591_v2, %v1900_v40 }
 0x5ab   :  { %v2781_v50 = vpop.f32.mrf.mxu3 }
 0x5ac   :  { %v2802_v27 = vadd.f32 %v2781_v50, %v2624_v42  ;;  %v2442_v50 = vadd.f32 %v14667_v18, %v2264_v0  ;;  %v14737_v42 = vperm.slane %v2805_v7, 1 }
 0x5ae   :  { %v2820_v11 = vadd.f32 %v14717_v12, %v2802_v27  ;;  %v2620_v28 = vadd.f32 %v14669_v47, %v2442_v50  ;;  %v2818_v47 = vadd.f32 %v14717_v12, %v2800_v25  ;;  %v2835_v27 = vmax.f32 %v2819_v37, 0.0 }
 0x5b0   :  { %v2836_v17 = vmax.f32 %v2820_v11, 0.0  ;;  %v2834_v36 = vmax.f32 %v2818_v47, 0.0  ;;  %v2829_v47 = vmax.f32 %v2813_v3, 0.0  ;;  %v13817_v3 = vld [vmem:[#allocation2 + $0x450] sm:$0xff] }
 0x5b2   :  { %v2853_v61 = vmul.f32 %v14737_v42, %v2836_v17  ;;  %v2846_v60 = vmul.f32 %v14737_v42, %v2829_v47  ;;  %v13760_v47 = vld [vmem:[#allocation2 + $0x288] sm:$0xff] }
 0x5b3   :  { %v2784_v33 = vpop.f32.mrf.mxu3 }
 0x5b4   :  { %v2803_v15 = vadd.f32 %v2784_v33, %v2625_v14  ;;  %v2084_v14 = vadd.f32 %v16583_v54, %v1906_v1  ;;  %v2799_v33 = vadd.f32 %v14679_v16, %v2621_v13  ;;  %v2260_v1 = vadd.f32 %v16589_v41, %v2082_v58  ;;  %v16590_v16 = vld [vmem:[#allocation40_spill] sm:$0xff] }
 0x5b5   :  { %v2436_v54 = vadd.f32 %v16596_v29, %v2258_v56 }
 0x5b6   :  { %v2821_v21 = vadd.f32 %v14717_v12, %v2803_v15  ;;  %v2262_v8 = vadd.f32 %v16584_v20, %v2084_v14  ;;  %v2798_v15 = vadd.f32 %v14677_v30, %v2620_v28  ;;  %v2817_v5 = vadd.f32 %v14717_v12, %v2799_v33  ;;  %v16593_v30 = vld [vmem:[#allocation34_spill] sm:$0xff] }
 0x5b7   :  { %v2438_v34 = vadd.f32 %v16593_v30, %v2260_v1  ;;  %v2815_v14 = vadd.f32 %v14717_v12, %v14673_v45  ;;  %v2851_v20 = vmul.f32 %v14737_v42, %v2834_v36  ;;  %v2870_v28 = vadd.f32 %v14750_v44, %v2853_v61  ;;  %v16598_v45 = vld [vmem:[#allocation38_spill] sm:$0xff] }
 0x5b8   :  { %v2837_v18 = vmax.f32 %v2821_v21, 0.0  ;;  %v2440_v4 = vadd.f32 %v16588_v46, %v2262_v8  ;;  %v2816_v52 = vadd.f32 %v14717_v12, %v2798_v15  ;;  %v16595_v21 = vld [vmem:[#allocation24_spill] sm:$0xff]  ;;  %v2833_v50 = vmax.f32 %v2817_v5, 0.0 }
 0x5b9   :  { %v2616_v57 = vadd.f32 %v16594_v48, %v2438_v34  ;;  %v2256_v22 = vadd.f32 %v16595_v21, %v2078_v9  ;;  %v2614_v55 = vadd.f32 %v16598_v45, %v2436_v54  ;;  %v2868_v46 = vadd.f32 %v14750_v44, %v2851_v20  ;;  %v13813_v20 = vld [vmem:[#allocation2 + $0x430] sm:$0xff]  ;;  %v13816_v45 = vld [vmem:[#allocation2 + $0x448] sm:$0xff] }
 0x5ba   :  { %v2618_v24 = vadd.f32 %v16590_v16, %v2440_v4  ;;  %v2854_v35 = vmul.f32 %v14737_v42, %v2837_v18  ;;  %v2832_v11 = vmax.f32 %v2816_v52, 0.0  ;;  %v2850_v33 = vmul.f32 %v14737_v42, %v2833_v50  ;;  %v16599_v4 = vld [vmem:[#allocation37_spill] sm:$0xff] }
 0x5bb   :  { %v2786_v43 = vpop.f32.mrf.mxu3  ;;  %v2434_v40 = vadd.f32 %v16597_v49, %v2256_v22  ;;  %v2792_v37 = vadd.f32 %v14657_v63, %v2614_v55  ;;  %v2827_v9 = vmax.f32 %v2811_v31, 0.0  ;;  %v2807_v30 = vadd.f32 %v14717_v12, %v14647_v59  ;;  %v13815_v49 = vld [vmem:[#allocation2 + $0x440] sm:$0xff]  ;;  %v13757_v55 = vld [vmem:[#allocation2 + $0x270] sm:$0xff] }
 0x5bc   :  { %v2804_v23 = vadd.f32 %v2786_v43, %v2626_v26  ;;  %v2796_v39 = vadd.f32 %v14671_v32, %v2618_v24  ;;  %v2852_v32 = vmul.f32 %v14737_v42, %v2835_v27  ;;  %v2871_v7 = vadd.f32 %v14750_v44, %v2854_v35  ;;  %v13827_v31 = vld [vmem:[#allocation4 + $0x260] sm:$0xff] }
 0x5bd   :  { %v2794_v26 = vadd.f32 %v14662_v51, %v2616_v57  ;;  %v2831_v43 = vmax.f32 %v2815_v14, 0.0  ;;  %v2849_v38 = vmul.f32 %v14737_v42, %v2832_v11  ;;  %v2612_v15 = vadd.f32 %v16599_v4, %v2434_v40  ;;  %v13753_v11 = vld [vmem:[#allocation2 + $0x250] sm:$0xff]  ;;  %v13756_v40 = vld [vmem:[#allocation2 + $0x268] sm:$0xff] }
 0x5be   :  { %v2822_v19 = vadd.f32 %v14717_v12, %v2804_v23  ;;  %v2814_v25 = vadd.f32 %v14717_v12, %v2796_v39  ;;  %v2869_v51 = vadd.f32 %v14750_v44, %v2852_v32  ;;  %v2867_v63 = vadd.f32 %v14750_v44, %v2850_v33  ;;  %v13818_v33 = vld [vmem:[#allocation2 + $0x458] sm:$0xff]  ;;  %v13828_v4 = vld [vmem:[#allocation4 + $0x268] sm:$0xff] }
 0x5bf   :  { %v2812_v18 = vadd.f32 %v14717_v12, %v2794_v26  ;;  %v2848_v17 = vmul.f32 %v14737_v42, %v2831_v43  ;;  %v2810_v41 = vadd.f32 %v14717_v12, %v2792_v37  ;;  %v2866_v2 = vadd.f32 %v14750_v44, %v2849_v38  ;;  %v13811_v26 = vld [vmem:[#allocation2 + $0x420] sm:$0xff]  ;;  %v13758_v43 = vld [vmem:[#allocation2 + $0x278] sm:$0xff] }
 0x5c0   :  { %v2838_v0 = vmax.f32 %v2822_v19, 0.0  ;;  %v2830_v23 = vmax.f32 %v2814_v25, 0.0  ;;  %v2879_v58 = vpack.c.bf16 %v2870_v28, %v2869_v51  ;;  %v2790_v19 = vadd.f32 %v14651_v53, %v2612_v15  ;;  %v13752_v25 = vld [vmem:[#allocation2 + $0x248] sm:$0xff]  ;;  %v13814_v28 = vld [vmem:[#allocation2 + $0x438] sm:$0xff]  ;;  %v13759_v51 = vld [vmem:[#allocation2 + $0x280] sm:$0xff] }
 0x5c1   :  { %v2828_v1 = vmax.f32 %v2812_v18, 0.0  ;;  %v2878_v24 = vpack.c.bf16 %v2868_v46, %v2867_v63  ;;  %v2865_v56 = vadd.f32 %v14750_v44, %v2848_v17  ;;  %v2826_v5 = vmax.f32 %v2810_v41, 0.0  ;;  %v13819_v37 = vld [vmem:[#allocation2 + $0x460] sm:$0xff]  ;;  %v13820_v17 = vld [vmem:[#allocation2 + $0x468] sm:$0xff] }
 0x5c2   :  { %v2855_v6 = vmul.f32 %v14737_v42, %v2838_v0  ;;  %v2847_v16 = vmul.f32 %v14737_v42, %v2830_v23  ;;  %v2808_v53 = vadd.f32 %v14717_v12, %v2790_v19  ;;  %v2825_v34 = vmax.f32 %v2809_v10, 0.0  ;;  %v13830_v23 = vld [vmem:[#allocation4 + $0x278] sm:$0xff]  ;;  %v13823_v10 = vld [vmem:[#allocation4 + $0x240] sm:$0xff] }
 0x5c3   :  { %v2845_v27 = vmul.f32 %v14737_v42, %v2828_v1  ;;  %v2877_v35 = vpack.c.bf16 %v2866_v2, %v2865_v56  ;;  %v2844_v62 = vmul.f32 %v14737_v42, %v2827_v9  ;;  %v2863_v39 = vadd.f32 %v14750_v44, %v2846_v60  ;;  %v13826_v19 = vld [vmem:[#allocation4 + $0x258] sm:$0xff]  ;;  %v13825_v1 = vld [vmem:[#allocation4 + $0x250] sm:$0xff] }
 0x5c4   :  { %v2872_v13 = vadd.f32 %v14750_v44, %v2855_v6  ;;  %v2864_v0 = vadd.f32 %v14750_v44, %v2847_v16  ;;  %v2824_v52 = vmax.f32 %v2808_v53, 0.0  ;;  %v2843_v36 = vmul.f32 %v14737_v42, %v2826_v5  ;;  %v13761_v9 = vld [vmem:[#allocation2 + $0x290] sm:$0xff] }
 0x5c5   :  { %v2862_v6 = vadd.f32 %v14750_v44, %v2845_v27  ;;  %v2823_v48 = vmax.f32 %v2807_v30, 0.0  ;;  %v2842_v57 = vmul.f32 %v14737_v42, %v2825_v34  ;;  %v2861_v59 = vadd.f32 %v14750_v44, %v2844_v62  ;;  %v13821_v60 = vld [vmem:[#allocation2 + $0x470] sm:$0xff] }
 0x5c6   :  { %v2880_v8 = vpack.c.bf16 %v2872_v13, %v2871_v7  ;;  %v2876_v61 = vpack.c.bf16 %v2864_v0, %v2863_v39  ;;  %v2841_v12 = vmul.f32 %v14737_v42, %v2824_v52  ;;  %v2860_v22 = vadd.f32 %v14750_v44, %v2843_v36  ;;  %v13751_v13 = vld [vmem:[#allocation2 + $0x240] sm:$0xff]  ;;  %v13822_v0 = vld [vmem:[#allocation2 + $0x478] sm:$0xff] }
 0x5c7   :  { %v2875_v21 = vpack.c.bf16 %v2862_v6, %v2861_v59  ;;  %v2840_v29 = vmul.f32 %v14737_v42, %v2823_v48  ;;  %v2859_v54 = vadd.f32 %v14750_v44, %v2842_v57  ;;  %v13812_v42 = vld [vmem:[#allocation2 + $0x428] sm:$0xff]  ;;  %v13763_v48 = vld [vmem:[#allocation2 + $0x2a0] sm:$0xff] }
 0x5c8   :  { %3458 = vmatpush.bf16.msrb.mxu1 %v2880_v8  ;;  %14199 = vmatpush.bf16.msrb.mxu3 %v2880_v8  ;;  %v2858_v50 = vadd.f32 %v14750_v44, %v2841_v12  ;;  %v13754_v8 = vld [vmem:[#allocation2 + $0x258] sm:$0xff] }
 0x5c9   :  { %v2874_v14 = vpack.c.bf16 %v2860_v22, %v2859_v54  ;;  %v2857_v32 = vadd.f32 %v14750_v44, %v2840_v29  ;;  %v13755_v44 = vld [vmem:[#allocation2 + $0x260] sm:$0xff] }
 0x5cb   :  { %v2873_v7 = vpack.c.bf16 %v2858_v50, %v2857_v32  ;;  %v13838_v32 = vld [vmem:[#allocation4 + $0x2b8] sm:$0xff] }
 0x5cc   :  { %3459 = vmatpush.bf16.msrb.mxu1 %v2879_v58  ;;  %14200 = vmatpush.bf16.msrb.mxu3 %v2879_v58  ;;  %v13829_v58 = vld [vmem:[#allocation4 + $0x270] sm:$0xff] }
 0x5cd   :  { %4101 = vmatpush.bf16.msrb.mxu2 %v13838_v32 }
 0x5d0   :  { %3460 = vmatpush.bf16.msrb.mxu1 %v2878_v24  ;;  %14201 = vmatpush.bf16.msrb.mxu3 %v2878_v24  ;;  %v13824_v24 = vld [vmem:[#allocation4 + $0x248] sm:$0xff] }
 0x5d4   :  { %3461 = vmatpush.bf16.msrb.mxu1 %v2877_v35  ;;  %14202 = vmatpush.bf16.msrb.mxu3 %v2877_v35  ;;  %v13762_v35 = vld [vmem:[#allocation2 + $0x298] sm:$0xff] }
 0x5d8   :  { %3462 = vmatpush.bf16.msrb.mxu1 %v2876_v61  ;;  %14203 = vmatpush.bf16.msrb.mxu3 %v2876_v61 }
 0x5dc   :  { %3463 = vmatpush.bf16.msrb.mxu1 %v2875_v21  ;;  %14204 = vmatpush.bf16.msrb.mxu3 %v2875_v21 }
 0x5e0   :  { %3464 = vmatpush.bf16.msrb.mxu1 %v2874_v14  ;;  %14205 = vmatpush.bf16.msrb.mxu3 %v2874_v14 }
 0x5e4   :  { %3465 = vmatpush.bf16.msrb.mxu1 %v2873_v7  ;;  %14206 = vmatpush.bf16.msrb.mxu3 %v2873_v7 }
 0x5e7   :  { %3466 = vmatmul.bf16.vlgmr.msrb.gmra.mxu1 %v13751_v13  ;;  %3766 = vmatmul.bf16.vlgmr.msrb.gmra.mxu3 %v13811_v26 }
 0x5e8   :  { %4246 = vmatpush.bf16.msra.mxu3 %v13830_v23  ;;  %v13833_v23 = vld [vmem:[#allocation4 + $0x290] sm:$0xff] }
 0x5ec   :  { %4247 = vmatpush.bf16.msra.mxu3 %v13829_v58  ;;  %v13832_v58 = vld [vmem:[#allocation4 + $0x288] sm:$0xff] }
 0x5f0   :  { %4248 = vmatpush.bf16.msra.mxu3 %v13828_v4 }
 0x5f4   :  { %4249 = vmatpush.bf16.msra.mxu3 %v13827_v31  ;;  %v13831_v31 = vld [vmem:[#allocation4 + $0x280] sm:$0xff] }
 0x5f7   :  { %3471 = vmatmul.bf16.gmra.mxu1 %v13752_v25  ;;  %3771 = vmatmul.bf16.gmra.mxu3 %v13812_v42  ;;  %v13764_v25 = vld [vmem:[#allocation2 + $0x2a8] sm:$0xff] }
 0x5f8   :  { %4250 = vmatpush.bf16.msra.mxu3 %v13826_v19  ;;  %v13766_v19 = vld [vmem:[#allocation2 + $0x2b8] sm:$0xff] }
 0x5fc   :  { %4251 = vmatpush.bf16.msra.mxu3 %v13825_v1 }
 0x600   :  { %4252 = vmatpush.bf16.msra.mxu3 %v13824_v24 }
 0x604   :  { %4253 = vmatpush.bf16.msra.mxu3 %v13823_v10 }
 0x607   :  { %3476 = vmatmul.bf16.gmra.mxu1 %v13753_v11  ;;  %3776 = vmatmul.bf16.gmra.mxu3 %v13813_v20 }
 0x617   :  { %3481 = vmatmul.bf16.gmra.mxu1 %v13754_v8  ;;  %3781 = vmatmul.bf16.gmra.mxu3 %v13814_v28  ;;  %v13837_v8 = vld [vmem:[#allocation4 + $0x2b0] sm:$0xff] }
 0x618   :  { %4102 = vmatpush.bf16.msrb.mxu2 %v13837_v8 }
 0x627   :  { %3486 = vmatmul.bf16.gmra.mxu1 %v13755_v44  ;;  %3786 = vmatmul.bf16.gmra.mxu3 %v13815_v49  ;;  %v13836_v44 = vld [vmem:[#allocation4 + $0x2a8] sm:$0xff] }
 0x628   :  { %4103 = vmatpush.bf16.msrb.mxu2 %v13836_v44 }
 0x637   :  { %3491 = vmatmul.bf16.gmra.mxu1 %v13756_v40  ;;  %3791 = vmatmul.bf16.gmra.mxu3 %v13816_v45  ;;  %v13835_v45 = vld [vmem:[#allocation4 + $0x2a0] sm:$0xff] }
 0x638   :  { %4104 = vmatpush.bf16.msrb.mxu2 %v13835_v45 }
 0x647   :  { %3496 = vmatmul.bf16.gmra.mxu1 %v13757_v55  ;;  %3796 = vmatmul.bf16.gmra.mxu3 %v13817_v3 }
 0x657   :  { %3501 = vmatmul.bf16.gmra.mxu1 %v13758_v43  ;;  %3801 = vmatmul.bf16.gmra.mxu3 %v13818_v33  ;;  %v13834_v43 = vld [vmem:[#allocation4 + $0x298] sm:$0xff] }
 0x658   :  { %4105 = vmatpush.bf16.msrb.mxu2 %v13834_v43 }
 0x65c   :  { %4106 = vmatpush.bf16.msrb.mxu2 %v13833_v23 }
 0x660   :  { %4107 = vmatpush.bf16.msrb.mxu2 %v13832_v58 }
 0x664   :  { %v3467_v18 = vpop.f32.mrf.mxu1  ;;  %4108 = vmatpush.bf16.msrb.mxu2 %v13831_v31 }
 0x665   :  { %v3827_v52 = vpack.c.bf16 %v3467_v18, %v3467_v18 }
 0x667   :  { %3506 = vmatmul.bf16.gmra.mxu1 %v13759_v51  ;;  %3806 = vmatmul.bf16.gmra.mxu3 %v13819_v37  ;;  %v4166_v6 = vunpack.c.l.b16 %v3827_v52  ;;  %v13765_v51 = vld [vmem:[#allocation2 + $0x2b0] sm:$0xff] }
 0x66a   :  { %v14807_v38 = vpop.f32.mrf.mxu3 }
 0x66c   :  { %v3469_v46 = vpop.f32.mrf.mxu1 }
 0x66d   :  { %v3828_v39 = vpack.c.bf16 %v3469_v46, %v3469_v46 }
 0x66f   :  { %v4167_v36 = vunpack.c.l.b16 %v3828_v39 }
 0x671   :  { %v4182_v59 = vpack.c.b16 %v4167_v36, %v4166_v6 }
 0x672   :  { %v14809_v15 = vpop.f32.mrf.mxu3 }
 0x674   :  { %v3472_v63 = vpop.f32.mrf.mxu1 }
 0x675   :  { %v3829_v29 = vpack.c.bf16 %v3472_v63, %v3472_v63 }
 0x677   :  { %3511 = vmatmul.bf16.gmra.mxu1 %v13760_v47  ;;  %3811 = vmatmul.bf16.gmra.mxu3 %v13820_v17  ;;  %v4168_v7 = vunpack.c.l.b16 %v3829_v29  ;;  %v13768_v29 = vld [vmem:[#allocation2 + $0x2c8] sm:$0xff] }
 0x67a   :  { %v14811_v41 = vpop.f32.mrf.mxu3 }
 0x67c   :  { %v3474_v16 = vpop.f32.mrf.mxu1 }
 0x67d   :  { %v3830_v22 = vpack.c.bf16 %v3474_v16, %v3474_v16 }
 0x67f   :  { %v4169_v14 = vunpack.c.l.b16 %v3830_v22 }
 0x681   :  { %v4183_v20 = vpack.c.b16 %v4169_v14, %v4168_v7 }
 0x682   :  { %v14813_v2 = vpop.f32.mrf.mxu3 }
 0x684   :  { %v3477_v56 = vpop.f32.mrf.mxu1 }
 0x685   :  { %v3831_v55 = vpack.c.bf16 %v3477_v56, %v3477_v56 }
 0x687   :  { %3516 = vmatmul.bf16.gmra.mxu1 %v13761_v9  ;;  %3816 = vmatmul.bf16.gmra.mxu3 %v13821_v60  ;;  %v4170_v33 = vunpack.c.l.b16 %v3831_v55  ;;  %v13769_v55 = vld [vmem:[#allocation2 + $0x2d0] sm:$0xff] }
 0x68a   :  { %v14815_v53 = vpop.f32.mrf.mxu3 }
 0x68c   :  { %v3479_v5 = vpop.f32.mrf.mxu1 }
 0x68d   :  { %v3832_v40 = vpack.c.bf16 %v3479_v5, %v3479_v5  ;;  %v13767_v5 = vld [vmem:[#allocation2 + $0x2c0] sm:$0xff] }
 0x68f   :  { %v4171_v3 = vunpack.c.l.b16 %v3832_v40 }
 0x691   :  { %v4184_v18 = vpack.c.b16 %v4171_v3, %v4170_v33 }
 0x692   :  { %v14817_v27 = vpop.f32.mrf.mxu3 }
 0x694   :  { %v3482_v30 = vpop.f32.mrf.mxu1 }
 0x695   :  { %v3833_v47 = vpack.c.bf16 %v3482_v30, %v3482_v30 }
 0x697   :  { %3521 = vmatmul.bf16.gmra.mxu1 %v13762_v35  ;;  %3821 = vmatmul.bf16.gmra.mxu3 %v13822_v0  ;;  %v4172_v63 = vunpack.c.l.b16 %v3833_v47 }
 0x69a   :  { %v14819_v34 = vpop.f32.mrf.mxu3 }
 0x69c   :  { %v3484_v62 = vpop.f32.mrf.mxu1 }
 0x69d   :  { %v3834_v4 = vpack.c.bf16 %v3484_v62, %v3484_v62 }
 0x69f   :  { %v4173_v17 = vunpack.c.l.b16 %v3834_v4 }
 0x6a1   :  { %v4185_v16 = vpack.c.b16 %v4173_v17, %v4172_v63  ;;  %v13770_v63 = vld [vmem:[#allocation2 + $0x2d8] sm:$0xff] }
 0x6a2   :  { %v14821_v61 = vpop.f32.mrf.mxu3 }
 0x6a4   :  { %v3487_v57 = vpop.f32.mrf.mxu1 }
 0x6a5   :  { %v3835_v9 = vpack.c.bf16 %v3487_v57, %v3487_v57 }
 0x6a7   :  { %3526 = vmatmul.bf16.gmra.mxu1 %v13763_v48  ;;  %4254 = vmatmul.bf16.vlgmr.msra.gmra.mxu3 %v4182_v59  ;;  %v4174_v56 = vunpack.c.l.b16 %v3835_v9 }
 0x6aa   :  { %v3787_v12 = vpop.f32.mrf.mxu3 }
 0x6ab   :  { %v3955_v54 = vpack.c.bf16 %v3787_v12, %v3787_v12 }
 0x6ac   :  { %v3489_v21 = vpop.f32.mrf.mxu1 }
 0x6ad   :  { %v14823_v13 = vunpack.c.l.b16 %v3955_v54  ;;  %v3836_v10 = vpack.c.bf16 %v3489_v21, %v3489_v21 }
 0x6af   :  { %v4175_v60 = vunpack.c.l.b16 %v3836_v10 }
 0x6b1   :  { %v4186_v62 = vpack.c.b16 %v4175_v60, %v4174_v56 }
 0x6b2   :  { %v3789_v50 = vpop.f32.mrf.mxu3 }
 0x6b3   :  { %v3956_v26 = vpack.c.bf16 %v3789_v50, %v3789_v50 }
 0x6b4   :  { %v3492_v42 = vpop.f32.mrf.mxu1 }
 0x6b5   :  { %v14825_v11 = vunpack.c.l.b16 %v3956_v26  ;;  %v3837_v6 = vpack.c.bf16 %v3492_v42, %v3492_v42 }
 0x6b7   :  { %3531 = vmatmul.bf16.gmra.mxu1 %v13764_v25  ;;  %4259 = vmatmul.bf16.gmra.mxu3 %v4183_v20  ;;  %v4176_v22 = vunpack.c.l.b16 %v3837_v6 }
 0x6ba   :  { %v14829_v0 = vpop.f32.mrf.mxu3 }
 0x6bc   :  { %v3494_v49 = vpop.f32.mrf.mxu1 }
 0x6bd   :  { %v3838_v52 = vpack.c.bf16 %v3494_v49, %v3494_v49 }
 0x6bf   :  { %v4177_v21 = vunpack.c.l.b16 %v3838_v52 }
 0x6c1   :  { %v4187_v14 = vpack.c.b16 %v4177_v21, %v4176_v22  ;;  %v13772_v21 = vld [vmem:[#allocation2 + $0x2e8] sm:$0xff]  ;;  %v13845_v22 = vld [vmem:[#allocation4 + $0x2f0] sm:$0xff] }
 0x6c2   :  { %v14831_v48 = vpop.f32.mrf.mxu3 }
 0x6c4   :  { %v3497_v37 = vpop.f32.mrf.mxu1 }
 0x6c5   :  { %v3839_v42 = vpack.c.bf16 %v3497_v37, %v3497_v37 }
 0x6c7   :  { %3536 = vmatmul.bf16.gmra.mxu1 %v13765_v51  ;;  %4264 = vmatmul.bf16.gmra.mxu3 %v4184_v18  ;;  %v4178_v40 = vunpack.c.l.b16 %v3839_v42 }
 0x6ca   :  { %v14833_v50 = vpop.f32.mrf.mxu3 }
 0x6cc   :  { %v3499_v46 = vpop.f32.mrf.mxu1 }
 0x6cd   :  { %v3840_v26 = vpack.c.bf16 %v3499_v46, %v3499_v46 }
 0x6cf   :  { %v4179_v44 = vunpack.c.l.b16 %v3840_v26 }
 0x6d1   :  { %v4188_v43 = vpack.c.b16 %v4179_v44, %v4178_v40  ;;  %v13840_v40 = vld [vmem:[#allocation4 + $0x2c8] sm:$0xff] }
 0x6d2   :  { %v14835_v45 = vpop.f32.mrf.mxu3 }
 0x6d4   :  { %v3502_v1 = vpop.f32.mrf.mxu1 }
 0x6d5   :  { %v3841_v37 = vpack.c.bf16 %v3502_v1, %v3502_v1  ;;  %v13771_v1 = vld [vmem:[#allocation2 + $0x2e0] sm:$0xff] }
 0x6d7   :  { %3541 = vmatmul.bf16.gmra.mxu1 %v13766_v19  ;;  %4269 = vmatmul.bf16.gmra.mxu3 %v4185_v16  ;;  %v4180_v17 = vunpack.c.l.b16 %v3841_v37  ;;  %v13774_v37 = vld [vmem:[#allocation2 + $0x2f8] sm:$0xff] }
 0x6da   :  { %v14837_v18 = vpop.f32.mrf.mxu3 }
 0x6dc   :  { %v3504_v24 = vpop.f32.mrf.mxu1 }
 0x6dd   :  { %v3842_v23 = vpack.c.bf16 %v3504_v24, %v3504_v24 }
 0x6df   :  { %v4181_v31 = vunpack.c.l.b16 %v3842_v23 }
 0x6e1   :  { %v4189_v16 = vpack.c.b16 %v4181_v31, %v4180_v17 }
 0x6e2   :  { %v14839_v10 = vpop.f32.mrf.mxu3 }
 0x6e4   :  { %v3507_v35 = vpop.f32.mrf.mxu1 }
 0x6e5   :  { %v3843_v30 = vpack.c.bf16 %v3507_v35, %v3507_v35 }
 0x6e7   :  { %3546 = vmatmul.bf16.gmra.mxu1 %v13767_v5  ;;  %4274 = vmatmul.bf16.gmra.mxu3 %v4186_v62  ;;  %v4021_v59 = vunpack.c.l.b16 %v3843_v30 }
 0x6ec   :  { %v3509_v39 = vpop.f32.mrf.mxu1 }
 0x6ed   :  { %v3844_v36 = vpack.c.bf16 %v3509_v39, %v3509_v39 }
 0x6ef   :  { %v4022_v12 = vunpack.c.l.b16 %v3844_v36 }
 0x6f1   :  { %v4037_v57 = vpack.c.b16 %v4022_v12, %v4021_v59  ;;  %v13846_v12 = vld [vmem:[#allocation4 + $0x2f8] sm:$0xff] }
 0x6f2   :  { %4408 = vmatpush.bf16.msra.mxu2 %v13846_v12 }
 0x6f3   :  { %4109 = vmatmul.bf16.vlgmr.msrb.gmra.mxu2 %v4037_v57 }
 0x6f4   :  { %v3512_v54 = vpop.f32.mrf.mxu1 }
 0x6f5   :  { %v3845_v32 = vpack.c.bf16 %v3512_v54, %v3512_v54 }
 0x6f6   :  { %4409 = vmatpush.bf16.msra.mxu2 %v13845_v22  ;;  %v13777_v22 = vld [vmem:[#allocation2 + $0x310] sm:$0xff] }
 0x6f7   :  { %3551 = vmatmul.bf16.gmra.mxu1 %v13768_v29  ;;  %4279 = vmatmul.bf16.gmra.mxu3 %v4187_v14  ;;  %v4023_v20 = vunpack.c.l.b16 %v3845_v32  ;;  %v13844_v29 = vld [vmem:[#allocation4 + $0x2e8] sm:$0xff] }
 0x6fa   :  { %4410 = vmatpush.bf16.msra.mxu2 %v13844_v29 }
 0x6fc   :  { %v3514_v7 = vpop.f32.mrf.mxu1 }
 0x6fd   :  { %v3846_v25 = vpack.c.bf16 %v3514_v7, %v3514_v7  ;;  %v13843_v7 = vld [vmem:[#allocation4 + $0x2e0] sm:$0xff] }
 0x6fe   :  { %4411 = vmatpush.bf16.msra.mxu2 %v13843_v7 }
 0x6ff   :  { %v4024_v8 = vunpack.c.l.b16 %v3846_v25 }
 0x701   :  { %v4038_v49 = vpack.c.b16 %v4024_v8, %v4023_v20  ;;  %v13842_v20 = vld [vmem:[#allocation4 + $0x2d8] sm:$0xff]  ;;  %v13773_v8 = vld [vmem:[#allocation2 + $0x2f0] sm:$0xff] }
 0x702   :  { %4412 = vmatpush.bf16.msra.mxu2 %v13842_v20 }
 0x703   :  { %4114 = vmatmul.bf16.gmra.mxu2 %v4038_v49  ;;  %v13841_v49 = vld [vmem:[#allocation4 + $0x2d0] sm:$0xff] }
 0x704   :  { %v3517_v3 = vpop.f32.mrf.mxu1 }
 0x705   :  { %v3847_v33 = vpack.c.bf16 %v3517_v3, %v3517_v3 }
 0x706   :  { %4413 = vmatpush.bf16.msra.mxu2 %v13841_v49  ;;  %v13778_v49 = vld [vmem:[#allocation2 + $0x318] sm:$0xff] }
 0x707   :  { %3556 = vmatmul.bf16.gmra.mxu1 %v13769_v55  ;;  %4284 = vmatmul.bf16.gmra.mxu3 %v4188_v43  ;;  %v4025_v46 = vunpack.c.l.b16 %v3847_v33  ;;  %v13839_v33 = vld [vmem:[#allocation4 + $0x2c0] sm:$0xff] }
 0x70a   :  { %4414 = vmatpush.bf16.msra.mxu2 %v13840_v40 }
 0x70c   :  { %v3519_v51 = vpop.f32.mrf.mxu1 }
 0x70d   :  { %v3848_v58 = vpack.c.bf16 %v3519_v51, %v3519_v51 }
 0x70e   :  { %4415 = vmatpush.bf16.msra.mxu2 %v13839_v33 }
 0x70f   :  { %v4026_v4 = vunpack.c.l.b16 %v3848_v58 }
 0x711   :  { %v4039_v47 = vpack.c.b16 %v4026_v4, %v4025_v46 }
 0x713   :  { %4119 = vmatmul.bf16.gmra.mxu2 %v4039_v47 }
 0x714   :  { %v3522_v19 = vpop.f32.mrf.mxu1 }
 0x715   :  { %v3849_v9 = vpack.c.bf16 %v3522_v19, %v3522_v19 }
 0x717   :  { %3561 = vmatmul.bf16.gmra.mxu1 %v13770_v63  ;;  %4289 = vmatmul.bf16.gmra.mxu3 %v4189_v16  ;;  %v4027_v5 = vunpack.c.l.b16 %v3849_v9  ;;  %v13775_v16 = vld [vmem:[#allocation2 + $0x300] sm:$0xff] }
 0x71c   :  { %v3524_v60 = vpop.f32.mrf.mxu1 }
 0x71d   :  { %v3850_v56 = vpack.c.bf16 %v3524_v60, %v3524_v60 }
 0x71f   :  { %v4028_v24 = vunpack.c.l.b16 %v3850_v56 }
 0x721   :  { %v4040_v35 = vpack.c.b16 %v4028_v24, %v4027_v5 }
 0x723   :  { %4124 = vmatmul.bf16.gmra.mxu2 %v4040_v35 }
 0x724   :  { %v3527_v62 = vpop.f32.mrf.mxu1 }
 0x725   :  { %v3851_v30 = vpack.c.bf16 %v3527_v62, %v3527_v62  ;;  %v13776_v62 = vld [vmem:[#allocation2 + $0x308] sm:$0xff] }
 0x727   :  { %3566 = vmatmul.bf16.gmra.mxu1 %v13771_v1  ;;  %v4029_v36 = vunpack.c.l.b16 %v3851_v30 }
 0x72c   :  { %v3529_v39 = vpop.f32.mrf.mxu1 }
 0x72d   :  { %v3852_v52 = vpack.c.bf16 %v3529_v39, %v3529_v39 }
 0x72f   :  { %v4030_v6 = vunpack.c.l.b16 %v3852_v52 }
 0x731   :  { %v4041_v59 = vpack.c.b16 %v4030_v6, %v4029_v36 }
 0x733   :  { %4129 = vmatmul.bf16.gmra.mxu2 %v4041_v59 }
 0x734   :  { %v3532_v57 = vpop.f32.mrf.mxu1 }
 0x735   :  { %v3853_v54 = vpack.c.bf16 %v3532_v57, %v3532_v57 }
 0x737   :  { %3571 = vmatmul.bf16.gmra.mxu1 %v13772_v21  ;;  %v4031_v26 = vunpack.c.l.b16 %v3853_v54 }
 0x73c   :  { %v3534_v14 = vpop.f32.mrf.mxu1 }
 0x73d   :  { %v3854_v32 = vpack.c.bf16 %v3534_v14, %v3534_v14  ;;  %v14847_v14 = vpop.f32.mrf.mxu3 }
 0x73f   :  { %v4032_v25 = vunpack.c.l.b16 %v3854_v32 }
 0x741   :  { %v4042_v42 = vpack.c.b16 %v4032_v25, %v4031_v26 }
 0x743   :  { %4134 = vmatmul.bf16.gmra.mxu2 %v4042_v42 }
 0x744   :  { %v3537_v44 = vpop.f32.mrf.mxu1 }
 0x745   :  { %v3855_v55 = vpack.c.bf16 %v3537_v44, %v3537_v44  ;;  %v14851_v44 = vpop.f32.mrf.mxu3 }
 0x747   :  { %3576 = vmatmul.bf16.gmra.mxu1 %v13773_v8  ;;  %v4033_v51 = vunpack.c.l.b16 %v3855_v55 }
 0x74c   :  { %v3539_v3 = vpop.f32.mrf.mxu1 }
 0x74d   :  { %v3856_v43 = vpack.c.bf16 %v3539_v3, %v3539_v3 }
 0x74f   :  { %v4034_v23 = vunpack.c.l.b16 %v3856_v43  ;;  %v14855_v43 = vpop.f32.mrf.mxu3 }
 0x751   :  { %v4043_v58 = vpack.c.b16 %v4034_v23, %v4033_v51 }
 0x753   :  { %4139 = vmatmul.bf16.gmra.mxu2 %v4043_v58 }
 0x754   :  { %v3542_v46 = vpop.f32.mrf.mxu1 }
 0x755   :  { %v3857_v4 = vpack.c.bf16 %v3542_v46, %v3542_v46 }
 0x757   :  { %3581 = vmatmul.bf16.gmra.mxu1 %v13774_v37  ;;  %v4035_v17 = vunpack.c.l.b16 %v3857_v4  ;;  %v13779_v4 = vld [vmem:[#allocation2 + $0x320] sm:$0xff] }
 0x75c   :  { %v3544_v31 = vpop.f32.mrf.mxu1 }
 0x75d   :  { %v3858_v47 = vpack.c.bf16 %v3544_v31, %v3544_v31 }
 0x75f   :  { %v4036_v63 = vunpack.c.l.b16 %v3858_v47  ;;  %v14859_v47 = vpop.f32.mrf.mxu3 }
 0x761   :  { %v4044_v19 = vpack.c.b16 %v4036_v63, %v4035_v17 }
 0x763   :  { %4144 = vmatmul.bf16.gmra.mxu2 %v4044_v19 }
 0x764   :  { %v3547_v9 = vpop.f32.mrf.mxu1 }
 0x765   :  { %v3859_v60 = vpack.c.bf16 %v3547_v9, %v3547_v9 }
 0x767   :  { %3586 = vmatmul.bf16.gmra.mxu1 %v13775_v16  ;;  %v4328_v24 = vunpack.c.l.b16 %v3859_v60 }
 0x76c   :  { %v3549_v56 = vpop.f32.mrf.mxu1 }
 0x76d   :  { %v3860_v5 = vpack.c.bf16 %v3549_v56, %v3549_v56 }
 0x76f   :  { %v4329_v35 = vunpack.c.l.b16 %v3860_v5  ;;  %v14865_v5 = vpop.f32.mrf.mxu3 }
 0x770   :  { %16600 = vst [vmem:[#allocation13_spill] sm:$0xff] %v14865_v5  ;;  %v13894_v5 = vld [vmem:[#allocation4 + $0x478] sm:$0xff] }
 0x771   :  { %v4344_v1 = vpack.c.b16 %v4329_v35, %v4328_v24  ;;  %v13854_v35 = vld [vmem:[#allocation4 + $0x338] sm:$0xff] }
 0x772   :  { %4586 = vmatpush.bf16.msrb.mxu3 %v13854_v35 }
 0x773   :  { %4416 = vmatmul.bf16.vlgmr.msra.gmra.mxu2 %v4344_v1  ;;  %v13780_v1 = vld [vmem:[#allocation2 + $0x328] sm:$0xff] }
 0x774   :  { %v3552_v30 = vpop.f32.mrf.mxu1 }
 0x775   :  { %v3861_v52 = vpack.c.bf16 %v3552_v30, %v3552_v30 }
 0x776   :  { %v14841_v39 = vpop.f32.mrf.mxu2 }
 0x777   :  { %3591 = vmatmul.bf16.gmra.mxu1 %v13776_v62  ;;  %v4330_v12 = vunpack.c.l.b16 %v3861_v52  ;;  %v13853_v52 = vld [vmem:[#allocation4 + $0x330] sm:$0xff] }
 0x778   :  { %4587 = vmatpush.bf16.msrb.mxu3 %v13853_v52 }
 0x77c   :  { %v3554_v36 = vpop.f32.mrf.mxu1 }
 0x77d   :  { %v3862_v6 = vpack.c.bf16 %v3554_v36, %v3554_v36  ;;  %v14869_v36 = vpop.f32.mrf.mxu3 }
 0x77e   :  { %v14843_v59 = vpop.f32.mrf.mxu2  ;;  %16601 = vst [vmem:[#allocation18_spill] sm:$0xff] %v14869_v36 }
 0x77f   :  { %v4331_v21 = vunpack.c.l.b16 %v3862_v6  ;;  %v13852_v6 = vld [vmem:[#allocation4 + $0x328] sm:$0xff] }
 0x780   :  { %4588 = vmatpush.bf16.msrb.mxu3 %v13852_v6 }
 0x781   :  { %v4345_v57 = vpack.c.b16 %v4331_v21, %v4330_v12 }
 0x783   :  { %4421 = vmatmul.bf16.gmra.mxu2 %v4345_v57 }
 0x784   :  { %v3557_v29 = vpop.f32.mrf.mxu1 }
 0x785   :  { %v3863_v32 = vpack.c.bf16 %v3557_v29, %v3557_v29  ;;  %v13851_v29 = vld [vmem:[#allocation4 + $0x320] sm:$0xff] }
 0x786   :  { %v14845_v54 = vpop.f32.mrf.mxu2  ;;  %4589 = vmatpush.bf16.msrb.mxu3 %v13851_v29 }
 0x787   :  { %3596 = vmatmul.bf16.gmra.mxu1 %v13777_v22  ;;  %v4332_v42 = vunpack.c.l.b16 %v3863_v32 }
 0x78c   :  { %v3559_v7 = vpop.f32.mrf.mxu1 }
 0x78d   :  { %v3864_v26 = vpack.c.bf16 %v3559_v7, %v3559_v7 }
 0x78e   :  { %v14849_v25 = vpop.f32.mrf.mxu2 }
 0x78f   :  { %v4333_v20 = vunpack.c.l.b16 %v3864_v26 }
 0x791   :  { %v4346_v8 = vpack.c.b16 %v4333_v20, %v4332_v42  ;;  %v13850_v42 = vld [vmem:[#allocation4 + $0x318] sm:$0xff]  ;;  %v13781_v20 = vld [vmem:[#allocation2 + $0x330] sm:$0xff] }
 0x792   :  { %4590 = vmatpush.bf16.msrb.mxu3 %v13850_v42 }
 0x793   :  { %4426 = vmatmul.bf16.gmra.mxu2 %v4346_v8  ;;  %v14873_v8 = vpop.f32.mrf.mxu3 }
 0x794   :  { %v3562_v40 = vpop.f32.mrf.mxu1  ;;  %16603 = vst [vmem:[#allocation30_spill] sm:$0xff] %v14873_v8  ;;  %v13878_v8 = vld [vmem:[#allocation4 + $0x3f8] sm:$0xff] }
 0x795   :  { %v3865_v3 = vpack.c.bf16 %v3562_v40, %v3562_v40 }
 0x796   :  { %v14853_v55 = vpop.f32.mrf.mxu2 }
 0x797   :  { %3601 = vmatmul.bf16.gmra.mxu1 %v13778_v49  ;;  %v4334_v58 = vunpack.c.l.b16 %v3865_v3  ;;  %v13849_v3 = vld [vmem:[#allocation4 + $0x310] sm:$0xff] }
 0x798   :  { %4591 = vmatpush.bf16.msrb.mxu3 %v13849_v3 }
 0x79c   :  { %v3564_v33 = vpop.f32.mrf.mxu1 }
 0x79d   :  { %v3866_v51 = vpack.c.bf16 %v3564_v33, %v3564_v33  ;;  %v13848_v33 = vld [vmem:[#allocation4 + $0x308] sm:$0xff] }
 0x79e   :  { %v14857_v23 = vpop.f32.mrf.mxu2  ;;  %4592 = vmatpush.bf16.msrb.mxu3 %v13848_v33 }
 0x79f   :  { %v4335_v37 = vunpack.c.l.b16 %v3866_v51 }
 0x7a1   :  { %v4347_v46 = vpack.c.b16 %v4335_v37, %v4334_v58 }
 0x7a3   :  { %4431 = vmatmul.bf16.gmra.mxu2 %v4347_v46  ;;  %v14877_v46 = vpop.f32.mrf.mxu3 }
 0x7a4   :  { %v3567_v31 = vpop.f32.mrf.mxu1  ;;  %16604 = vst [vmem:[#allocation31_spill] sm:$0xff] %v14877_v46 }
 0x7a5   :  { %v3867_v63 = vpack.c.bf16 %v3567_v31, %v3567_v31  ;;  %v13847_v31 = vld [vmem:[#allocation4 + $0x300] sm:$0xff] }
 0x7a6   :  { %v14861_v17 = vpop.f32.mrf.mxu2  ;;  %4593 = vmatpush.bf16.msrb.mxu3 %v13847_v31  ;;  %v13784_v31 = vld [vmem:[#allocation2 + $0x348] sm:$0xff] }
 0x7a7   :  { %3606 = vmatmul.bf16.gmra.mxu1 %v13779_v4  ;;  %v4336_v60 = vunpack.c.l.b16 %v3867_v63 }
 0x7ab   :  { %v4255_v35 = vpop.f32.mrf.mxu3 }
 0x7ac   :  { %v3569_v19 = vpop.f32.mrf.mxu1 }
 0x7ad   :  { %v3868_v16 = vpack.c.bf16 %v3569_v19, %v3569_v19 }
 0x7ae   :  { %v14863_v9 = vpop.f32.mrf.mxu2 }
 0x7af   :  { %v4337_v56 = vunpack.c.l.b16 %v3868_v16 }
 0x7b1   :  { %v4348_v24 = vpack.c.b16 %v4337_v56, %v4336_v60  ;;  %v13782_v60 = vld [vmem:[#allocation2 + $0x338] sm:$0xff] }
 0x7b3   :  { %4436 = vmatmul.bf16.gmra.mxu2 %v4348_v24  ;;  %v14885_v29 = vpop.f32.mrf.mxu3 }
 0x7b4   :  { %v3572_v62 = vpop.f32.mrf.mxu1 }
 0x7b5   :  { %v3869_v12 = vpack.c.bf16 %v3572_v62, %v3572_v62 }
 0x7b6   :  { %v14867_v30 = vpop.f32.mrf.mxu2 }
 0x7b7   :  { %3611 = vmatmul.bf16.gmra.mxu1 %v13780_v1  ;;  %v4338_v32 = vunpack.c.l.b16 %v3869_v12 }
 0x7bc   :  { %v3574_v21 = vpop.f32.mrf.mxu1 }
 0x7bd   :  { %v3870_v57 = vpack.c.bf16 %v3574_v21, %v3574_v21 }
 0x7be   :  { %v14871_v22 = vpop.f32.mrf.mxu2 }
 0x7bf   :  { %16602 = vst [vmem:[#allocation36_spill] sm:$0xff] %v14871_v22  ;;  %v4339_v7 = vunpack.c.l.b16 %v3870_v57 }
 0x7c1   :  { %v4349_v26 = vpack.c.b16 %v4339_v7, %v4338_v32  ;;  %v13783_v32 = vld [vmem:[#allocation2 + $0x340] sm:$0xff] }
 0x7c3   :  { %4441 = vmatmul.bf16.gmra.mxu2 %v4349_v26 }
 0x7c4   :  { %v3577_v49 = vpop.f32.mrf.mxu1 }
 0x7c5   :  { %v3871_v51 = vpack.c.bf16 %v3577_v49, %v3577_v49 }
 0x7c6   :  { %v14875_v40 = vpop.f32.mrf.mxu2 }
 0x7c7   :  { %3616 = vmatmul.bf16.gmra.mxu1 %v13781_v20  ;;  %v4340_v63 = vunpack.c.l.b16 %v3871_v51  ;;  %v4260_v20 = vpop.f32.mrf.mxu3 }
 0x7cc   :  { %v3579_v58 = vpop.f32.mrf.mxu1 }
 0x7cd   :  { %v3872_v37 = vpack.c.bf16 %v3579_v58, %v3579_v58 }
 0x7ce   :  { %v14879_v4 = vpop.f32.mrf.mxu2 }
 0x7cf   :  { %16605 = vst [vmem:[#allocation12_spill] sm:$0xff] %v14879_v4  ;;  %v4341_v19 = vunpack.c.l.b16 %v3872_v37 }
 0x7d1   :  { %v4350_v16 = vpack.c.b16 %v4341_v19, %v4340_v63  ;;  %v4256_v19 = vadd.f32 %v4255_v35, %v14841_v39  ;;  %v4261_v39 = vadd.f32 %v4260_v20, %v14845_v54  ;;  %v3948_v54 = vpack.c.bf16 %v14809_v15, %v14809_v15  ;;  %v13786_v20 = vld [vmem:[#allocation2 + $0x358] sm:$0xff] }
 0x7d3   :  { %4446 = vmatmul.bf16.gmra.mxu2 %v4350_v16  ;;  %v14892_v16 = vpop.f32.mrf.mxu3 }
 0x7d4   :  { %v3582_v56 = vpop.f32.mrf.mxu1 }
 0x7d5   :  { %v3873_v1 = vpack.c.bf16 %v3582_v56, %v3582_v56 }
 0x7d6   :  { %v14881_v24 = vpop.f32.mrf.mxu2 }
 0x7d7   :  { %3621 = vmatmul.bf16.gmra.mxu1 %v13782_v60  ;;  %v4342_v12 = vunpack.c.l.b16 %v3873_v1 }
 0x7dc   :  { %v3584_v62 = vpop.f32.mrf.mxu1 }
 0x7dd   :  { %v3874_v52 = vpack.c.bf16 %v3584_v62, %v3584_v62 }
 0x7de   :  { %v14883_v6 = vpop.f32.mrf.mxu2 }
 0x7df   :  { %16606 = vst [vmem:[#allocation17_spill] sm:$0xff] %v14883_v6  ;;  %v4343_v21 = vunpack.c.l.b16 %v3874_v52  ;;  %v13870_v6 = vld [vmem:[#allocation4 + $0x3b8] sm:$0xff] }
 0x7e0   :  { %4942 = vmatpush.bf16.msra.mxu3 %v13870_v6  ;;  %v13866_v6 = vld [vmem:[#allocation4 + $0x398] sm:$0xff] }
 0x7e1   :  { %v4351_v57 = vpack.c.b16 %v4343_v21, %v4342_v12 }
 0x7e3   :  { %4451 = vmatmul.bf16.gmra.mxu2 %v4351_v57 }
 0x7e4   :  { %v3587_v7 = vpop.f32.mrf.mxu1 }
 0x7e5   :  { %v3875_v42 = vpack.c.bf16 %v3587_v7, %v3587_v7 }
 0x7e6   :  { %v14887_v26 = vpop.f32.mrf.mxu2 }
 0x7e7   :  { %3626 = vmatmul.bf16.gmra.mxu1 %v13783_v32  ;;  %v4506_v51 = vunpack.c.l.b16 %v3875_v42  ;;  %v4265_v32 = vpop.f32.mrf.mxu3  ;;  %v13785_v42 = vld [vmem:[#allocation2 + $0x350] sm:$0xff] }
 0x7ec   :  { %v3589_v49 = vpop.f32.mrf.mxu1 }
 0x7ed   :  { %v3876_v3 = vpack.c.bf16 %v3589_v49, %v3589_v49 }
 0x7ee   :  { %v14889_v33 = vpop.f32.mrf.mxu2 }
 0x7ef   :  { %16607 = vst [vmem:[#allocation23_spill] sm:$0xff] %v14889_v33  ;;  %v4507_v58 = vunpack.c.l.b16 %v3876_v3 }
 0x7f1   :  { %v4522_v37 = vpack.c.b16 %v4507_v58, %v4506_v51  ;;  %v14901_v51 = vpop.f32.mrf.mxu3 }
 0x7f3   :  { %4594 = vmatmul.bf16.vlgmr.msrb.gmra.mxu3 %v4522_v37 }
 0x7f4   :  { %v3592_v63 = vpop.f32.mrf.mxu1 }
 0x7f5   :  { %v3877_v1 = vpack.c.bf16 %v3592_v63, %v3592_v63 }
 0x7f6   :  { %v4417_v60 = vpop.f32.mrf.mxu2 }
 0x7f7   :  { %v14894_v56 = vadd.f32 %v4417_v60, %v4256_v19  ;;  %3631 = vmatmul.bf16.gmra.mxu1 %v13784_v31  ;;  %v4508_v21 = vunpack.c.l.b16 %v3877_v1 }
 0x7fc   :  { %v3594_v62 = vpop.f32.mrf.mxu1 }
 0x7fd   :  { %v3878_v52 = vpack.c.bf16 %v3594_v62, %v3594_v62  ;;  %v3947_v62 = vpack.c.bf16 %v14807_v38, %v14807_v38 }
 0x7fe   :  { %v14896_v12 = vpop.f32.mrf.mxu2 }
 0x7ff   :  { %v4509_v57 = vunpack.c.l.b16 %v3878_v52  ;;  %v4270_v52 = vpop.f32.mrf.mxu3 }
 0x801   :  { %v4523_v7 = vpack.c.b16 %v4509_v57, %v4508_v21  ;;  %v4266_v57 = vadd.f32 %v4265_v32, %v14853_v55 }
 0x803   :  { %4599 = vmatmul.bf16.gmra.mxu3 %v4523_v7 }
 0x804   :  { %v3597_v49 = vpop.f32.mrf.mxu1 }
 0x805   :  { %v3879_v58 = vpack.c.bf16 %v3597_v49, %v3597_v49  ;;  %v14912_v49 = vunpack.c.l.b16 %v3948_v54 }
 0x806   :  { %v4422_v35 = vpop.f32.mrf.mxu2 }
 0x807   :  { %v14899_v3 = vadd.f32 %v4422_v35, %v4261_v39  ;;  %3636 = vmatmul.bf16.gmra.mxu1 %v13785_v42  ;;  %v4510_v19 = vunpack.c.l.b16 %v3879_v58  ;;  %v14910_v42 = vunpack.c.l.b16 %v3947_v62  ;;  %v13787_v62 = vld [vmem:[#allocation2 + $0x360] sm:$0xff] }
 0x80c   :  { %v3599_v37 = vpop.f32.mrf.mxu1 }
 0x80d   :  { %v3880_v31 = vpack.c.bf16 %v3599_v37, %v3599_v37  ;;  %v14918_v37 = vpop.f32.mrf.mxu3 }
 0x80e   :  { %v14903_v63 = vpop.f32.mrf.mxu2 }
 0x80f   :  { %v4511_v60 = vunpack.c.l.b16 %v3880_v31 }
 0x811   :  { %v4524_v1 = vpack.c.b16 %v4511_v60, %v4510_v19  ;;  %v3949_v60 = vpack.c.bf16 %v14811_v41, %v14811_v41  ;;  %v13861_v41 = vld [vmem:[#allocation4 + $0x370] sm:$0xff] }
 0x813   :  { %4604 = vmatmul.bf16.gmra.mxu3 %v4524_v1  ;;  %v3950_v1 = vpack.c.bf16 %v14813_v2, %v14813_v2 }
 0x814   :  { %v3602_v21 = vpop.f32.mrf.mxu1 }
 0x815   :  { %v3881_v35 = vpack.c.bf16 %v3602_v21, %v3602_v21 }
 0x816   :  { %v4427_v7 = vpop.f32.mrf.mxu2 }
 0x817   :  { %v14914_v39 = vadd.f32 %v4427_v7, %v4266_v57  ;;  %3641 = vmatmul.bf16.gmra.mxu1 %v13786_v20  ;;  %v4512_v19 = vunpack.c.l.b16 %v3881_v35  ;;  %v4271_v20 = vadd.f32 %v4270_v52, %v14861_v17  ;;  %v14927_v57 = vunpack.c.l.b16 %v3949_v60  ;;  %v4275_v35 = vpop.f32.mrf.mxu3  ;;  %v13862_v60 = vld [vmem:[#allocation4 + $0x378] sm:$0xff] }
 0x818   :  { %v14929_v7 = vunpack.c.l.b16 %v3950_v1  ;;  %v3951_v1 = vpack.c.bf16 %v14815_v53, %v14815_v53  ;;  %4764 = vmatpush.bf16.msrb.mxu2 %v13862_v60  ;;  %v13860_v53 = vld [vmem:[#allocation4 + $0x368] sm:$0xff] }
 0x81c   :  { %v3604_v58 = vpop.f32.mrf.mxu1  ;;  %4765 = vmatpush.bf16.msrb.mxu2 %v13861_v41  ;;  %v3953_v41 = vpack.c.bf16 %v14819_v34, %v14819_v34  ;;  %v13856_v34 = vld [vmem:[#allocation4 + $0x348] sm:$0xff] }
 0x81d   :  { %v3882_v15 = vpack.c.bf16 %v3604_v58, %v3604_v58 }
 0x81e   :  { %v14920_v31 = vpop.f32.mrf.mxu2 }
 0x81f   :  { %v4513_v55 = vunpack.c.l.b16 %v3882_v15  ;;  %v14937_v52 = vpop.f32.mrf.mxu3 }
 0x820   :  { %16608 = vst [vmem:[#allocation28_spill] sm:$0xff] %v14937_v52  ;;  %4766 = vmatpush.bf16.msrb.mxu2 %v13860_v53 }
 0x821   :  { %v4525_v32 = vpack.c.b16 %v4513_v55, %v4512_v19 }
 0x823   :  { %4609 = vmatmul.bf16.gmra.mxu3 %v4525_v32 }
 0x824   :  { %v3607_v54 = vpop.f32.mrf.mxu1 }
 0x825   :  { %v3883_v15 = vpack.c.bf16 %v3607_v54, %v3607_v54  ;;  %v13788_v54 = vld [vmem:[#allocation2 + $0x368] sm:$0xff] }
 0x826   :  { %v4432_v21 = vpop.f32.mrf.mxu2 }
 0x827   :  { %v14931_v58 = vadd.f32 %v4432_v21, %v4271_v20  ;;  %3646 = vmatmul.bf16.gmra.mxu1 %v13787_v62  ;;  %v4514_v32 = vunpack.c.l.b16 %v3883_v15  ;;  %v3952_v62 = vpack.c.bf16 %v14817_v27, %v14817_v27  ;;  %v4276_v21 = vadd.f32 %v4275_v35, %v14867_v30  ;;  %v13859_v35 = vld [vmem:[#allocation4 + $0x360] sm:$0xff] }
 0x828   :  { %v14944_v15 = vunpack.c.l.b16 %v3951_v1  ;;  %4767 = vmatpush.bf16.msrb.mxu2 %v13859_v35 }
 0x82a   :  { %16609 = vst [vmem:[#allocation29_spill] sm:$0xff] %v14944_v15 }
 0x82c   :  { %v3609_v19 = vpop.f32.mrf.mxu1 }
 0x82d   :  { %v3884_v2 = vpack.c.bf16 %v3609_v19, %v3609_v19 }
 0x82e   :  { %v14935_v55 = vpop.f32.mrf.mxu2 }
 0x82f   :  { %v4515_v38 = vunpack.c.l.b16 %v3884_v2 }
 0x831   :  { %v4526_v17 = vpack.c.b16 %v4515_v38, %v4514_v32  ;;  %v14946_v38 = vunpack.c.l.b16 %v3952_v62 }
 0x833   :  { %4614 = vmatmul.bf16.gmra.mxu3 %v4526_v17  ;;  %16610 = vst [vmem:[#allocation15_spill] sm:$0xff] %v14946_v38  ;;  %v4280_v17 = vpop.f32.mrf.mxu3 }
 0x834   :  { %v3612_v20 = vpop.f32.mrf.mxu1 }
 0x835   :  { %v3885_v32 = vpack.c.bf16 %v3612_v20, %v3612_v20  ;;  %v13789_v20 = vld [vmem:[#allocation2 + $0x370] sm:$0xff] }
 0x836   :  { %v4437_v19 = vpop.f32.mrf.mxu2 }
 0x837   :  { %v14948_v2 = vadd.f32 %v4437_v19, %v4276_v21  ;;  %3651 = vmatmul.bf16.gmra.mxu1 %v13788_v54  ;;  %v4516_v1 = vunpack.c.l.b16 %v3885_v32  ;;  %v13858_v21 = vld [vmem:[#allocation4 + $0x358] sm:$0xff]  ;;  %v3954_v54 = vpack.c.bf16 %v14821_v61, %v14821_v61  ;;  %v13857_v32 = vld [vmem:[#allocation4 + $0x350] sm:$0xff] }
 0x838   :  { %4768 = vmatpush.bf16.msrb.mxu2 %v13858_v21  ;;  %v13855_v21 = vld [vmem:[#allocation4 + $0x340] sm:$0xff] }
 0x83b   :  { %v14959_v53 = vpop.f32.mrf.mxu3 }
 0x83c   :  { %v3614_v28 = vpop.f32.mrf.mxu1  ;;  %16612 = vst [vmem:[#allocation22_spill] sm:$0xff] %v14959_v53  ;;  %4769 = vmatpush.bf16.msrb.mxu2 %v13857_v32 }
 0x83d   :  { %v3886_v60 = vpack.c.bf16 %v3614_v28, %v3614_v28  ;;  %v4281_v28 = vadd.f32 %v4280_v17, %v14875_v40 }
 0x83e   :  { %v14952_v30 = vpop.f32.mrf.mxu2 }
 0x83f   :  { %16611 = vst [vmem:[#allocation16_spill] sm:$0xff] %v14952_v30  ;;  %v4517_v33 = vunpack.c.l.b16 %v3886_v60  ;;  %v14961_v60 = vunpack.c.l.b16 %v3953_v41 }
 0x840   :  { %4770 = vmatpush.bf16.msrb.mxu2 %v13856_v34 }
 0x841   :  { %v4527_v62 = vpack.c.b16 %v4517_v33, %v4516_v1  ;;  %16613 = vst [vmem:[#allocation27_spill] sm:$0xff] %v14961_v60  ;;  %v14963_v33 = vunpack.c.l.b16 %v3954_v54 }
 0x843   :  { %4619 = vmatmul.bf16.gmra.mxu3 %v4527_v62  ;;  %16614 = vst [vmem:[#allocation14_spill] sm:$0xff] %v14963_v33  ;;  %v4285_v52 = vpop.f32.mrf.mxu3 }
 0x844   :  { %v3617_v19 = vpop.f32.mrf.mxu1  ;;  %4771 = vmatpush.bf16.msrb.mxu2 %v13855_v21 }
 0x845   :  { %v3887_v61 = vpack.c.bf16 %v3617_v19, %v3617_v19 }
 0x846   :  { %v4442_v27 = vpop.f32.mrf.mxu2 }
 0x847   :  { %v14965_v35 = vadd.f32 %v4442_v27, %v4281_v28  ;;  %3656 = vmatmul.bf16.gmra.mxu1 %v13789_v20  ;;  %v4518_v30 = vunpack.c.l.b16 %v3887_v61  ;;  %v13790_v27 = vld [vmem:[#allocation2 + $0x378] sm:$0xff]  ;;  %v4286_v28 = vadd.f32 %v4285_v52, %v14881_v24  ;;  %v3958_v24 = vpack.c.bf16 %v14831_v48, %v14831_v48  ;;  %v13791_v52 = vld [vmem:[#allocation2 + $0x380] sm:$0xff] }
 0x848   :  { %5120 = vmatpush.bf16.msra.mxu2 %v13878_v8  ;;  %v13874_v8 = vld [vmem:[#allocation4 + $0x3d8] sm:$0xff] }
 0x84b   :  { %v14974_v1 = vpop.f32.mrf.mxu3 }
 0x84c   :  { %v3619_v62 = vpop.f32.mrf.mxu1  ;;  %16616 = vst [vmem:[#allocation21_spill] sm:$0xff] %v14974_v1 }
 0x84d   :  { %v3888_v40 = vpack.c.bf16 %v3619_v62, %v3619_v62 }
 0x84e   :  { %v14969_v17 = vpop.f32.mrf.mxu2 }
 0x84f   :  { %16615 = vst [vmem:[#allocation20_spill] sm:$0xff] %v14969_v17  ;;  %v4519_v41 = vunpack.c.l.b16 %v3888_v40 }
 0x851   :  { %v4528_v54 = vpack.c.b16 %v4519_v41, %v4518_v30  ;;  %v3957_v30 = vpack.c.bf16 %v14829_v0, %v14829_v0 }
 0x853   :  { %4624 = vmatmul.bf16.gmra.mxu3 %v4528_v54  ;;  %v4290_v41 = vpop.f32.mrf.mxu3 }
 0x854   :  { %v3622_v20 = vpop.f32.mrf.mxu1 }
 0x855   :  { %v3889_v34 = vpack.c.bf16 %v3622_v20, %v3622_v20 }
 0x856   :  { %v4447_v19 = vpop.f32.mrf.mxu2 }
 0x857   :  { %v14972_v32 = vadd.f32 %v4447_v19, %v4286_v28  ;;  %3661 = vmatmul.bf16.gmra.mxu1 %v13790_v27  ;;  %v4520_v61 = vunpack.c.l.b16 %v3889_v34  ;;  %v4291_v27 = vadd.f32 %v4290_v41, %v14887_v26  ;;  %v14983_v28 = vunpack.c.l.b16 %v3957_v30 }
 0x858   :  { %v14985_v19 = vunpack.c.l.b16 %v3958_v24  ;;  %v3959_v26 = vpack.c.bf16 %v14833_v50, %v14833_v50  ;;  %v3960_v30 = vpack.c.bf16 %v14835_v45, %v14835_v45  ;;  %v13792_v24 = vld [vmem:[#allocation2 + $0x388] sm:$0xff] }
 0x85c   :  { %v3624_v62 = vpop.f32.mrf.mxu1 }
 0x85d   :  { %v3890_v22 = vpack.c.bf16 %v3624_v62, %v3624_v62 }
 0x85e   :  { %v14976_v17 = vpop.f32.mrf.mxu2 }
 0x85f   :  { %16617 = vst [vmem:[#allocation35_spill] sm:$0xff] %v14976_v17  ;;  %v4521_v40 = vunpack.c.l.b16 %v3890_v22 }
 0x861   :  { %v4529_v21 = vpack.c.b16 %v4521_v40, %v4520_v61  ;;  %v14991_v61 = vpop.f32.mrf.mxu3 }
 0x862   :  { %16618 = vst [vmem:[#allocation26_spill] sm:$0xff] %v14991_v61 }
 0x863   :  { %4629 = vmatmul.bf16.gmra.mxu3 %v4529_v21 }
 0x864   :  { %v3627_v54 = vpop.f32.mrf.mxu1 }
 0x865   :  { %v3891_v22 = vpack.c.bf16 %v3627_v54, %v3627_v54  ;;  %v14997_v54 = vunpack.c.l.b16 %v3959_v26  ;;  %v3961_v26 = vpack.c.bf16 %v14837_v18, %v14837_v18 }
 0x866   :  { %v4452_v20 = vpop.f32.mrf.mxu2 }
 0x867   :  { %v14987_v34 = vadd.f32 %v4452_v20, %v4291_v27  ;;  %3666 = vmatmul.bf16.gmra.mxu1 %v13791_v52  ;;  %v4684_v40 = vunpack.c.l.b16 %v3891_v22  ;;  %v14999_v27 = vunpack.c.l.b16 %v3960_v30  ;;  %v3962_v30 = vpack.c.bf16 %v14839_v10, %v14839_v10 }
 0x86c   :  { %v3629_v62 = vpop.f32.mrf.mxu1 }
 0x86d   :  { %v3892_v48 = vpack.c.bf16 %v3629_v62, %v3629_v62  ;;  %v15014_v62 = vunpack.c.l.b16 %v3962_v30 }
 0x86f   :  { %v4685_v21 = vunpack.c.l.b16 %v3892_v48 }
 0x871   :  { %v4700_v53 = vpack.c.b16 %v4685_v21, %v4684_v40 }
 0x873   :  { %4772 = vmatmul.bf16.vlgmr.msrb.gmra.mxu2 %v4700_v53 }
 0x874   :  { %v3632_v52 = vpop.f32.mrf.mxu1 }
 0x875   :  { %v3893_v22 = vpack.c.bf16 %v3632_v52, %v3632_v52 }
 0x876   :  { %v4595_v41 = vpop.f32.mrf.mxu3 }
 0x877   :  { %v15002_v20 = vadd.f32 %v4595_v41, %v14894_v56  ;;  %3671 = vmatmul.bf16.gmra.mxu1 %v13792_v24  ;;  %v4686_v45 = vunpack.c.l.b16 %v3893_v22  ;;  %v13793_v56 = vld [vmem:[#allocation2 + $0x390] sm:$0xff]  ;;  %v15012_v41 = vunpack.c.l.b16 %v3961_v26  ;;  %v13794_v26 = vld [vmem:[#allocation2 + $0x398] sm:$0xff] }
 0x87c   :  { %v3634_v50 = vpop.f32.mrf.mxu1 }
 0x87d   :  { %v3894_v48 = vpack.c.bf16 %v3634_v50, %v3634_v50 }
 0x87e   :  { %v15006_v40 = vpop.f32.mrf.mxu3 }
 0x87f   :  { %v4687_v53 = vunpack.c.l.b16 %v3894_v48 }
 0x881   :  { %v4701_v21 = vpack.c.b16 %v4687_v53, %v4686_v45 }
 0x883   :  { %4777 = vmatmul.bf16.gmra.mxu2 %v4701_v21 }
 0x884   :  { %v3637_v24 = vpop.f32.mrf.mxu1 }
 0x885   :  { %v3895_v22 = vpack.c.bf16 %v3637_v24, %v3637_v24 }
 0x886   :  { %v4600_v52 = vpop.f32.mrf.mxu3 }
 0x887   :  { %v15017_v50 = vadd.f32 %v4600_v52, %v14899_v3  ;;  %3676 = vmatmul.bf16.gmra.mxu1 %v13793_v56  ;;  %v4688_v10 = vunpack.c.l.b16 %v3895_v22  ;;  %v13795_v22 = vld [vmem:[#allocation2 + $0x3a0] sm:$0xff] }
 0x88c   :  { %v3639_v18 = vpop.f32.mrf.mxu1 }
 0x88d   :  { %v3896_v45 = vpack.c.bf16 %v3639_v18, %v3639_v18 }
 0x88e   :  { %v15021_v53 = vpop.f32.mrf.mxu3 }
 0x88f   :  { %v4689_v21 = vunpack.c.l.b16 %v3896_v45 }
 0x891   :  { %v4702_v0 = vpack.c.b16 %v4689_v21, %v4688_v10 }
 0x893   :  { %4782 = vmatmul.bf16.gmra.mxu2 %v4702_v0 }
 0x894   :  { %v3642_v61 = vpop.f32.mrf.mxu1 }
 0x895   :  { %v3897_v3 = vpack.c.bf16 %v3642_v61, %v3642_v61 }
 0x896   :  { %v4605_v30 = vpop.f32.mrf.mxu3 }
 0x897   :  { %v15024_v4 = vadd.f32 %v4605_v30, %v14914_v39  ;;  %3681 = vmatmul.bf16.gmra.mxu1 %v13794_v26  ;;  %v4690_v48 = vunpack.c.l.b16 %v3897_v3  ;;  %v13796_v3 = vld [vmem:[#allocation2 + $0x3a8] sm:$0xff] }
 0x89c   :  { %v3644_v56 = vpop.f32.mrf.mxu1 }
 0x89d   :  { %v3898_v24 = vpack.c.bf16 %v3644_v56, %v3644_v56 }
 0x89e   :  { %v15026_v52 = vpop.f32.mrf.mxu3 }
 0x89f   :  { %v4691_v18 = vunpack.c.l.b16 %v3898_v24  ;;  %v13869_v24 = vld [vmem:[#allocation4 + $0x3b0] sm:$0xff] }
 0x8a0   :  { %4943 = vmatpush.bf16.msra.mxu3 %v13869_v24 }
 0x8a1   :  { %v4703_v17 = vpack.c.b16 %v4691_v18, %v4690_v48 }
 0x8a3   :  { %4787 = vmatmul.bf16.gmra.mxu2 %v4703_v17 }
 0x8a4   :  { %v3647_v45 = vpop.f32.mrf.mxu1 }
 0x8a5   :  { %v3899_v21 = vpack.c.bf16 %v3647_v45, %v3647_v45 }
 0x8a6   :  { %v4610_v10 = vpop.f32.mrf.mxu3 }
 0x8a7   :  { %v15029_v0 = vadd.f32 %v4610_v10, %v14931_v58  ;;  %3686 = vmatmul.bf16.gmra.mxu1 %v13795_v22  ;;  %v4692_v61 = vunpack.c.l.b16 %v3899_v21  ;;  %v13868_v58 = vld [vmem:[#allocation4 + $0x3a8] sm:$0xff] }
 0x8a8   :  { %4944 = vmatpush.bf16.msra.mxu3 %v13868_v58 }
 0x8ac   :  { %v3649_v39 = vpop.f32.mrf.mxu1 }
 0x8ad   :  { %v3900_v30 = vpack.c.bf16 %v3649_v39, %v3649_v39  ;;  %v13867_v39 = vld [vmem:[#allocation4 + $0x3a0] sm:$0xff] }
 0x8ae   :  { %v15031_v26 = vpop.f32.mrf.mxu3  ;;  %4945 = vmatpush.bf16.msra.mxu3 %v13867_v39 }
 0x8af   :  { %v4693_v56 = vunpack.c.l.b16 %v3900_v30 }
 0x8b1   :  { %v4704_v1 = vpack.c.b16 %v4693_v56, %v4692_v61  ;;  %v13797_v56 = vld [vmem:[#allocation2 + $0x3b0] sm:$0xff] }
 0x8b2   :  { %4946 = vmatpush.bf16.msra.mxu3 %v13866_v6 }
 0x8b3   :  { %4792 = vmatmul.bf16.gmra.mxu2 %v4704_v1 }
 0x8b4   :  { %v3652_v48 = vpop.f32.mrf.mxu1 }
 0x8b5   :  { %v3901_v22 = vpack.c.bf16 %v3652_v48, %v3652_v48  ;;  %v13864_v48 = vld [vmem:[#allocation4 + $0x388] sm:$0xff] }
 0x8b6   :  { %v4615_v17 = vpop.f32.mrf.mxu3 }
 0x8b7   :  { %v15034_v18 = vadd.f32 %v4615_v17, %v14948_v2  ;;  %3691 = vmatmul.bf16.gmra.mxu1 %v13796_v3  ;;  %v4694_v30 = vunpack.c.l.b16 %v3901_v22  ;;  %v13865_v3 = vld [vmem:[#allocation4 + $0x390] sm:$0xff] }
 0x8b8   :  { %4947 = vmatpush.bf16.msra.mxu3 %v13865_v3 }
 0x8bc   :  { %v3654_v45 = vpop.f32.mrf.mxu1  ;;  %4948 = vmatpush.bf16.msra.mxu3 %v13864_v48 }
 0x8bd   :  { %v3902_v10 = vpack.c.bf16 %v3654_v45, %v3654_v45 }
 0x8be   :  { %v15036_v21 = vpop.f32.mrf.mxu3 }
 0x8bf   :  { %16619 = vst [vmem:[#allocation40_spill] sm:$0xff] %v15036_v21  ;;  %v4695_v1 = vunpack.c.l.b16 %v3902_v10  ;;  %v13863_v10 = vld [vmem:[#allocation4 + $0x380] sm:$0xff] }
 0x8c0   :  { %4949 = vmatpush.bf16.msra.mxu3 %v13863_v10 }
 0x8c1   :  { %v4705_v61 = vpack.c.b16 %v4695_v1, %v4694_v30 }
 0x8c3   :  { %4797 = vmatmul.bf16.gmra.mxu2 %v4705_v61  ;;  %v13798_v61 = vld [vmem:[#allocation2 + $0x3b8] sm:$0xff] }
 0x8c4   :  { %v3657_v60 = vpop.f32.mrf.mxu1 }
 0x8c5   :  { %v3903_v24 = vpack.c.bf16 %v3657_v60, %v3657_v60 }
 0x8c6   :  { %v4620_v2 = vpop.f32.mrf.mxu3 }
 0x8c7   :  { %v15039_v17 = vadd.f32 %v4620_v2, %v14965_v35  ;;  %3696 = vmatmul.bf16.gmra.mxu1 %v13797_v56  ;;  %v4696_v39 = vunpack.c.l.b16 %v3903_v24  ;;  %v13799_v24 = vld [vmem:[#allocation2 + $0x3c0] sm:$0xff] }
 0x8cc   :  { %v3659_v58 = vpop.f32.mrf.mxu1 }
 0x8cd   :  { %v3904_v22 = vpack.c.bf16 %v3659_v58, %v3659_v58 }
 0x8ce   :  { %v15041_v45 = vpop.f32.mrf.mxu3 }
 0x8cf   :  { %16620 = vst [vmem:[#allocation19_spill] sm:$0xff] %v15041_v45  ;;  %v4697_v30 = vunpack.c.l.b16 %v3904_v22 }
 0x8d1   :  { %v4706_v1 = vpack.c.b16 %v4697_v30, %v4696_v39 }
 0x8d3   :  { %4802 = vmatmul.bf16.gmra.mxu2 %v4706_v1  ;;  %v15051_v1 = vpop.f32.mrf.mxu2 }
 0x8d4   :  { %v3662_v6 = vpop.f32.mrf.mxu1  ;;  %16622 = vst [vmem:[#allocation34_spill] sm:$0xff] %v15051_v1 }
 0x8d5   :  { %v3905_v56 = vpack.c.bf16 %v3662_v6, %v3662_v6 }
 0x8d6   :  { %v4625_v21 = vpop.f32.mrf.mxu3 }
 0x8d7   :  { %v15044_v35 = vadd.f32 %v4625_v21, %v14972_v32  ;;  %3701 = vmatmul.bf16.gmra.mxu1 %v13798_v61  ;;  %v4698_v48 = vunpack.c.l.b16 %v3905_v56  ;;  %v13800_v56 = vld [vmem:[#allocation2 + $0x3c8] sm:$0xff] }
 0x8dc   :  { %v3664_v60 = vpop.f32.mrf.mxu1 }
 0x8dd   :  { %v3906_v2 = vpack.c.bf16 %v3664_v60, %v3664_v60 }
 0x8de   :  { %v15046_v3 = vpop.f32.mrf.mxu3 }
 0x8df   :  { %16621 = vst [vmem:[#allocation25_spill] sm:$0xff] %v15046_v3  ;;  %v4699_v58 = vunpack.c.l.b16 %v3906_v2 }
 0x8e1   :  { %v4707_v45 = vpack.c.b16 %v4699_v58, %v4698_v48 }
 0x8e3   :  { %4807 = vmatmul.bf16.gmra.mxu2 %v4707_v45 }
 0x8e4   :  { %v3667_v22 = vpop.f32.mrf.mxu1 }
 0x8e5   :  { %v3907_v30 = vpack.c.bf16 %v3667_v22, %v3667_v22 }
 0x8e6   :  { %v4630_v10 = vpop.f32.mrf.mxu3 }
 0x8e7   :  { %v15049_v39 = vadd.f32 %v4630_v10, %v14987_v34  ;;  %3706 = vmatmul.bf16.gmra.mxu1 %v13799_v24  ;;  %v4862_v61 = vunpack.c.l.b16 %v3907_v30  ;;  %v13801_v30 = vld [vmem:[#allocation2 + $0x3d0] sm:$0xff] }
 0x8ec   :  { %v3669_v32 = vpop.f32.mrf.mxu1 }
 0x8ed   :  { %v3908_v21 = vpack.c.bf16 %v3669_v32, %v3669_v32 }
 0x8ef   :  { %v4863_v6 = vunpack.c.l.b16 %v3908_v21 }
 0x8f1   :  { %v4878_v60 = vpack.c.b16 %v4863_v6, %v4862_v61 }
 0x8f3   :  { %4950 = vmatmul.bf16.vlgmr.msra.gmra.mxu3 %v4878_v60 }
 0x8f4   :  { %v3672_v2 = vpop.f32.mrf.mxu1 }
 0x8f5   :  { %v3909_v58 = vpack.c.bf16 %v3672_v2, %v3672_v2 }
 0x8f6   :  { %v4773_v48 = vpop.f32.mrf.mxu2 }
 0x8f7   :  { %v15054_v45 = vadd.f32 %v4773_v48, %v15002_v20  ;;  %3711 = vmatmul.bf16.gmra.mxu1 %v13800_v56  ;;  %v4864_v22 = vunpack.c.l.b16 %v3909_v58  ;;  %v13802_v58 = vld [vmem:[#allocation2 + $0x3d8] sm:$0xff] }
 0x8fc   :  { %v3674_v34 = vpop.f32.mrf.mxu1 }
 0x8fd   :  { %v3910_v10 = vpack.c.bf16 %v3674_v34, %v3674_v34 }
 0x8fe   :  { %v15056_v24 = vpop.f32.mrf.mxu2 }
 0x8ff   :  { %v4865_v32 = vunpack.c.l.b16 %v3910_v10 }
 0x901   :  { %v4879_v3 = vpack.c.b16 %v4865_v32, %v4864_v22 }
 0x903   :  { %4955 = vmatmul.bf16.gmra.mxu3 %v4879_v3 }
 0x904   :  { %v3677_v21 = vpop.f32.mrf.mxu1 }
 0x905   :  { %v3911_v60 = vpack.c.bf16 %v3677_v21, %v3677_v21 }
 0x906   :  { %v4778_v61 = vpop.f32.mrf.mxu2 }
 0x907   :  { %v15059_v6 = vadd.f32 %v4778_v61, %v15017_v50  ;;  %3716 = vmatmul.bf16.gmra.mxu1 %v13801_v30  ;;  %v4866_v2 = vunpack.c.l.b16 %v3911_v60  ;;  %v13803_v60 = vld [vmem:[#allocation2 + $0x3e0] sm:$0xff] }
 0x90c   :  { %v3679_v20 = vpop.f32.mrf.mxu1 }
 0x90d   :  { %v3912_v48 = vpack.c.bf16 %v3679_v20, %v3679_v20 }
 0x90e   :  { %v15061_v56 = vpop.f32.mrf.mxu2 }
 0x90f   :  { %v4867_v34 = vunpack.c.l.b16 %v3912_v48 }
 0x911   :  { %v4880_v1 = vpack.c.b16 %v4867_v34, %v4866_v2 }
 0x913   :  { %4960 = vmatmul.bf16.gmra.mxu3 %v4880_v1 }
 0x914   :  { %v3682_v10 = vpop.f32.mrf.mxu1 }
 0x915   :  { %v3913_v32 = vpack.c.bf16 %v3682_v10, %v3682_v10 }
 0x916   :  { %v4783_v22 = vpop.f32.mrf.mxu2 }
 0x917   :  { %v15064_v3 = vadd.f32 %v4783_v22, %v15024_v4  ;;  %3721 = vmatmul.bf16.gmra.mxu1 %v13802_v58  ;;  %v4868_v21 = vunpack.c.l.b16 %v3913_v32  ;;  %v13804_v32 = vld [vmem:[#allocation2 + $0x3e8] sm:$0xff] }
 0x91c   :  { %v3684_v50 = vpop.f32.mrf.mxu1 }
 0x91d   :  { %v3914_v61 = vpack.c.bf16 %v3684_v50, %v3684_v50 }
 0x91e   :  { %v15066_v30 = vpop.f32.mrf.mxu2 }
 0x91f   :  { %v4869_v20 = vunpack.c.l.b16 %v3914_v61 }
 0x921   :  { %v4881_v33 = vpack.c.b16 %v4869_v20, %v4868_v21  ;;  %v13877_v21 = vld [vmem:[#allocation4 + $0x3f0] sm:$0xff] }
 0x922   :  { %5121 = vmatpush.bf16.msra.mxu2 %v13877_v21 }
 0x923   :  { %4965 = vmatmul.bf16.gmra.mxu3 %v4881_v33 }
 0x924   :  { %v3687_v48 = vpop.f32.mrf.mxu1 }
 0x925   :  { %v3915_v34 = vpack.c.bf16 %v3687_v48, %v3687_v48 }
 0x926   :  { %v4788_v2 = vpop.f32.mrf.mxu2 }
 0x927   :  { %v15069_v1 = vadd.f32 %v4788_v2, %v15029_v0  ;;  %3726 = vmatmul.bf16.gmra.mxu1 %v13803_v60  ;;  %v4870_v10 = vunpack.c.l.b16 %v3915_v34  ;;  %v13876_v0 = vld [vmem:[#allocation4 + $0x3e8] sm:$0xff] }
 0x928   :  { %5122 = vmatpush.bf16.msra.mxu2 %v13876_v0 }
 0x92c   :  { %v3689_v4 = vpop.f32.mrf.mxu1 }
 0x92d   :  { %v3916_v22 = vpack.c.bf16 %v3689_v4, %v3689_v4  ;;  %v13875_v4 = vld [vmem:[#allocation4 + $0x3e0] sm:$0xff] }
 0x92e   :  { %v15071_v58 = vpop.f32.mrf.mxu2  ;;  %5123 = vmatpush.bf16.msra.mxu2 %v13875_v4 }
 0x92f   :  { %v4871_v50 = vunpack.c.l.b16 %v3916_v22 }
 0x931   :  { %v4882_v46 = vpack.c.b16 %v4871_v50, %v4870_v10  ;;  %v13805_v50 = vld [vmem:[#allocation2 + $0x3f0] sm:$0xff] }
 0x932   :  { %5124 = vmatpush.bf16.msra.mxu2 %v13874_v8 }
 0x933   :  { %4970 = vmatmul.bf16.gmra.mxu3 %v4882_v46 }
 0x934   :  { %v3692_v61 = vpop.f32.mrf.mxu1 }
 0x935   :  { %v3917_v60 = vpack.c.bf16 %v3692_v61, %v3692_v61  ;;  %v13872_v61 = vld [vmem:[#allocation4 + $0x3c8] sm:$0xff] }
 0x936   :  { %v4793_v33 = vpop.f32.mrf.mxu2 }
 0x937   :  { %v15074_v20 = vadd.f32 %v4793_v33, %v15034_v18  ;;  %3731 = vmatmul.bf16.gmra.mxu1 %v13804_v32  ;;  %v4872_v22 = vunpack.c.l.b16 %v3917_v60  ;;  %v13873_v32 = vld [vmem:[#allocation4 + $0x3d0] sm:$0xff] }
 0x938   :  { %5125 = vmatpush.bf16.msra.mxu2 %v13873_v32 }
 0x93c   :  { %v3694_v48 = vpop.f32.mrf.mxu1  ;;  %5126 = vmatpush.bf16.msra.mxu2 %v13872_v61 }
 0x93d   :  { %v3918_v2 = vpack.c.bf16 %v3694_v48, %v3694_v48 }
 0x93e   :  { %v15076_v34 = vpop.f32.mrf.mxu2 }
 0x93f   :  { %16623 = vst [vmem:[#allocation39_spill] sm:$0xff] %v15076_v34  ;;  %v4873_v46 = vunpack.c.l.b16 %v3918_v2  ;;  %v13871_v2 = vld [vmem:[#allocation4 + $0x3c0] sm:$0xff] }
 0x940   :  { %5127 = vmatpush.bf16.msra.mxu2 %v13871_v2 }
 0x941   :  { %v4883_v10 = vpack.c.b16 %v4873_v46, %v4872_v22 }
 0x943   :  { %4975 = vmatmul.bf16.gmra.mxu3 %v4883_v10  ;;  %v13806_v10 = vld [vmem:[#allocation2 + $0x3f8] sm:$0xff] }
 0x944   :  { %v3697_v15 = vpop.f32.mrf.mxu1  ;;  %5476 = vmatpush.bf16.msrb.mxu2 %v13894_v5 }
 0x945   :  { %v3919_v21 = vpack.c.bf16 %v3697_v15, %v3697_v15 }
 0x946   :  { %v4798_v18 = vpop.f32.mrf.mxu2 }
 0x947   :  { %v15079_v33 = vadd.f32 %v4798_v18, %v15039_v17  ;;  %3736 = vmatmul.bf16.gmra.mxu1 %v13805_v50  ;;  %v4874_v4 = vunpack.c.l.b16 %v3919_v21  ;;  %v13807_v21 = vld [vmem:[#allocation2 + $0x400] sm:$0xff] }
 0x94c   :  { %v3699_v0 = vpop.f32.mrf.mxu1 }
 0x94d   :  { %v3920_v60 = vpack.c.bf16 %v3699_v0, %v3699_v0 }
 0x94e   :  { %v15081_v48 = vpop.f32.mrf.mxu2 }
 0x94f   :  { %16624 = vst [vmem:[#allocation24_spill] sm:$0xff] %v15081_v48  ;;  %v4875_v22 = vunpack.c.l.b16 %v3920_v60 }
 0x951   :  { %v4884_v46 = vpack.c.b16 %v4875_v22, %v4874_v4 }
 0x953   :  { %4980 = vmatmul.bf16.gmra.mxu3 %v4884_v46  ;;  %v15091_v46 = vpop.f32.mrf.mxu3 }
 0x954   :  { %v3702_v8 = vpop.f32.mrf.mxu1  ;;  %16626 = vst [vmem:[#allocation32_spill] sm:$0xff] %v15091_v46 }
 0x955   :  { %v3921_v50 = vpack.c.bf16 %v3702_v8, %v3702_v8 }
 0x956   :  { %v4803_v34 = vpop.f32.mrf.mxu2 }
 0x957   :  { %v15084_v17 = vadd.f32 %v4803_v34, %v15044_v35  ;;  %3741 = vmatmul.bf16.gmra.mxu1 %v13806_v10  ;;  %v4876_v61 = vunpack.c.l.b16 %v3921_v50  ;;  %v13808_v50 = vld [vmem:[#allocation2 + $0x408] sm:$0xff] }
 0x95c   :  { %v3704_v15 = vpop.f32.mrf.mxu1 }
 0x95d   :  { %v3922_v18 = vpack.c.bf16 %v3704_v15, %v3704_v15 }
 0x95e   :  { %v15086_v32 = vpop.f32.mrf.mxu2 }
 0x95f   :  { %16625 = vst [vmem:[#allocation33_spill] sm:$0xff] %v15086_v32  ;;  %v4877_v0 = vunpack.c.l.b16 %v3922_v18 }
 0x961   :  { %v4885_v48 = vpack.c.b16 %v4877_v0, %v4876_v61 }
 0x963   :  { %4985 = vmatmul.bf16.gmra.mxu3 %v4885_v48 }
 0x964   :  { %v3707_v60 = vpop.f32.mrf.mxu1 }
 0x965   :  { %v3923_v22 = vpack.c.bf16 %v3707_v60, %v3707_v60 }
 0x966   :  { %v4808_v2 = vpop.f32.mrf.mxu2 }
 0x967   :  { %v15089_v4 = vadd.f32 %v4808_v2, %v15049_v39  ;;  %3746 = vmatmul.bf16.gmra.mxu1 %v13807_v21  ;;  %v5040_v10 = vunpack.c.l.b16 %v3923_v22  ;;  %v13809_v22 = vld [vmem:[#allocation2 + $0x410] sm:$0xff] }
 0x96c   :  { %v3709_v35 = vpop.f32.mrf.mxu1 }
 0x96d   :  { %v3924_v34 = vpack.c.bf16 %v3709_v35, %v3709_v35 }
 0x96f   :  { %v5041_v8 = vunpack.c.l.b16 %v3924_v34 }
 0x971   :  { %v5056_v15 = vpack.c.b16 %v5041_v8, %v5040_v10 }
 0x973   :  { %5128 = vmatmul.bf16.vlgmr.msra.gmra.mxu2 %v5056_v15 }
 0x974   :  { %v3712_v18 = vpop.f32.mrf.mxu1 }
 0x975   :  { %v3925_v0 = vpack.c.bf16 %v3712_v18, %v3712_v18 }
 0x976   :  { %v4951_v61 = vpop.f32.mrf.mxu3 }
 0x977   :  { %v15094_v48 = vadd.f32 %v4951_v61, %v15054_v45  ;;  %3751 = vmatmul.bf16.gmra.mxu1 %v13808_v50  ;;  %v5042_v60 = vunpack.c.l.b16 %v3925_v0  ;;  %v13810_v0 = vld [vmem:[#allocation2 + $0x418] sm:$0xff] }
 0x97c   :  { %v3714_v39 = vpop.f32.mrf.mxu1 }
 0x97d   :  { %v3926_v2 = vpack.c.bf16 %v3714_v39, %v3714_v39 }
 0x97e   :  { %v15096_v21 = vpop.f32.mrf.mxu3 }
 0x97f   :  { %v5043_v35 = vunpack.c.l.b16 %v3926_v2 }
 0x981   :  { %v5057_v32 = vpack.c.b16 %v5043_v35, %v5042_v60 }
 0x983   :  { %5133 = vmatmul.bf16.gmra.mxu2 %v5057_v32 }
 0x984   :  { %v3717_v34 = vpop.f32.mrf.mxu1 }
 0x985   :  { %v3927_v15 = vpack.c.bf16 %v3717_v34, %v3717_v34 }
 0x986   :  { %v4956_v10 = vpop.f32.mrf.mxu3 }
 0x987   :  { %v15099_v8 = vadd.f32 %v4956_v10, %v15059_v6  ;;  %3756 = vmatmul.bf16.gmra.mxu1 %v13809_v22  ;;  %v5044_v18 = vunpack.c.l.b16 %v3927_v15 }
 0x98c   :  { %v3719_v45 = vpop.f32.mrf.mxu1 }
 0x98d   :  { %v3928_v61 = vpack.c.bf16 %v3719_v45, %v3719_v45 }
 0x98e   :  { %v15101_v50 = vpop.f32.mrf.mxu3 }
 0x98f   :  { %v5045_v39 = vunpack.c.l.b16 %v3928_v61 }
 0x991   :  { %v5058_v46 = vpack.c.b16 %v5045_v39, %v5044_v18 }
 0x993   :  { %5138 = vmatmul.bf16.gmra.mxu2 %v5058_v46 }
 0x994   :  { %v3722_v2 = vpop.f32.mrf.mxu1 }
 0x995   :  { %v3929_v35 = vpack.c.bf16 %v3722_v2, %v3722_v2 }
 0x996   :  { %v4961_v60 = vpop.f32.mrf.mxu3 }
 0x997   :  { %v15104_v32 = vadd.f32 %v4961_v60, %v15064_v3  ;;  %3761 = vmatmul.bf16.gmra.mxu1 %v13810_v0  ;;  %v5046_v34 = vunpack.c.l.b16 %v3929_v35 }
 0x99c   :  { %v3724_v6 = vpop.f32.mrf.mxu1 }
 0x99d   :  { %v3930_v10 = vpack.c.bf16 %v3724_v6, %v3724_v6  ;;  %v13886_v6 = vld [vmem:[#allocation4 + $0x438] sm:$0xff] }
 0x99e   :  { %v15106_v22 = vpop.f32.mrf.mxu3  ;;  %5298 = vmatpush.bf16.msrb.mxu3 %v13886_v6 }
 0x99f   :  { %v5047_v45 = vunpack.c.l.b16 %v3930_v10  ;;  %v13885_v10 = vld [vmem:[#allocation4 + $0x430] sm:$0xff] }
 0x9a1   :  { %v5059_v38 = vpack.c.b16 %v5047_v45, %v5046_v34  ;;  %v13893_v34 = vld [vmem:[#allocation4 + $0x470] sm:$0xff]  ;;  %v13884_v45 = vld [vmem:[#allocation4 + $0x428] sm:$0xff] }
 0x9a2   :  { %5299 = vmatpush.bf16.msrb.mxu3 %v13885_v10  ;;  %5477 = vmatpush.bf16.msrb.mxu2 %v13893_v34  ;;  %v13881_v34 = vld [vmem:[#allocation4 + $0x410] sm:$0xff] }
 0x9a3   :  { %5143 = vmatmul.bf16.gmra.mxu2 %v5059_v38 }
 0x9a4   :  { %v3727_v15 = vpop.f32.mrf.mxu1 }
 0x9a5   :  { %v3931_v18 = vpack.c.bf16 %v3727_v15, %v3727_v15  ;;  %v13892_v15 = vld [vmem:[#allocation4 + $0x468] sm:$0xff] }
 0x9a6   :  { %v4966_v61 = vpop.f32.mrf.mxu3  ;;  %5300 = vmatpush.bf16.msrb.mxu3 %v13884_v45  ;;  %5478 = vmatpush.bf16.msrb.mxu2 %v13892_v15  ;;  %v13889_v45 = vld [vmem:[#allocation4 + $0x450] sm:$0xff] }
 0x9a7   :  { %v15109_v46 = vadd.f32 %v4966_v61, %v15069_v1  ;;  %v5048_v0 = vunpack.c.l.b16 %v3931_v18 }
 0x9ac   :  { %v3729_v39 = vpop.f32.mrf.mxu1 }
 0x9ad   :  { %v3932_v36 = vpack.c.bf16 %v3729_v39, %v3729_v39 }
 0x9ae   :  { %v15111_v3 = vpop.f32.mrf.mxu3 }
 0x9af   :  { %v5049_v2 = vunpack.c.l.b16 %v3932_v36 }
 0x9b1   :  { %v5060_v60 = vpack.c.b16 %v5049_v2, %v5048_v0  ;;  %v13883_v0 = vld [vmem:[#allocation4 + $0x420] sm:$0xff] }
 0x9b2   :  { %v13891_v2 = vld [vmem:[#allocation4 + $0x460] sm:$0xff]  ;;  %5301 = vmatpush.bf16.msrb.mxu3 %v13883_v0 }
 0x9b3   :  { %5148 = vmatmul.bf16.gmra.mxu2 %v5060_v60 }
 0x9b4   :  { %v3732_v35 = vpop.f32.mrf.mxu1  ;;  %5479 = vmatpush.bf16.msrb.mxu2 %v13891_v2 }
 0x9b5   :  { %v3933_v61 = vpack.c.bf16 %v3732_v35, %v3732_v35 }
 0x9b6   :  { %v4971_v38 = vpop.f32.mrf.mxu3 }
 0x9b7   :  { %v15114_v1 = vadd.f32 %v4971_v38, %v15074_v20  ;;  %v5050_v5 = vunpack.c.l.b16 %v3933_v61  ;;  %v13882_v20 = vld [vmem:[#allocation4 + $0x418] sm:$0xff]  ;;  %v13888_v61 = vld [vmem:[#allocation4 + $0x448] sm:$0xff] }
 0x9b8   :  { %v13890_v38 = vld [vmem:[#allocation4 + $0x458] sm:$0xff]  ;;  %5302 = vmatpush.bf16.msrb.mxu3 %v13882_v20 }
 0x9b9   :  { %5480 = vmatpush.bf16.msrb.mxu2 %v13890_v38 }
 0x9bc   :  { %v3734_v18 = vpop.f32.mrf.mxu1  ;;  %5303 = vmatpush.bf16.msrb.mxu3 %v13881_v34 }
 0x9bd   :  { %v3934_v36 = vpack.c.bf16 %v3734_v18, %v3734_v18  ;;  %5481 = vmatpush.bf16.msrb.mxu2 %v13889_v45  ;;  %v13880_v18 = vld [vmem:[#allocation4 + $0x408] sm:$0xff] }
 0x9be   :  { %v15116_v39 = vpop.f32.mrf.mxu3 }
 0x9bf   :  { %16627 = vst [vmem:[#allocation38_spill] sm:$0xff] %v15116_v39  ;;  %v5051_v60 = vunpack.c.l.b16 %v3934_v36 }
 0x9c0   :  { %5304 = vmatpush.bf16.msrb.mxu3 %v13880_v18 }
 0x9c1   :  { %v5061_v6 = vpack.c.b16 %v5051_v60, %v5050_v5  ;;  %5482 = vmatpush.bf16.msrb.mxu2 %v13888_v61  ;;  %v13879_v60 = vld [vmem:[#allocation4 + $0x400] sm:$0xff] }
 0x9c3   :  { %5153 = vmatmul.bf16.gmra.mxu2 %v5061_v6  ;;  %v13887_v6 = vld [vmem:[#allocation4 + $0x440] sm:$0xff] }
 0x9c4   :  { %v3737_v10 = vpop.f32.mrf.mxu1  ;;  %5305 = vmatpush.bf16.msrb.mxu3 %v13879_v60 }
 0x9c5   :  { %v3935_v36 = vpack.c.bf16 %v3737_v10, %v3737_v10  ;;  %5483 = vmatpush.bf16.msrb.mxu2 %v13887_v6 }
 0x9c6   :  { %v4976_v35 = vpop.f32.mrf.mxu3 }
 0x9c7   :  { %v15119_v15 = vadd.f32 %v4976_v35, %v15079_v33  ;;  %v5052_v20 = vunpack.c.l.b16 %v3935_v36 }
 0x9c9   :  { %16628 = vst [vmem:[#allocation37_spill] sm:$0xff] %v15119_v15 }
 0x9cc   :  { %v3739_v0 = vpop.f32.mrf.mxu1 }
 0x9cd   :  { %v3936_v2 = vpack.c.bf16 %v3739_v0, %v3739_v0 }
 0x9ce   :  { %v15121_v5 = vpop.f32.mrf.mxu3 }
 0x9cf   :  { %16629 = vst [vmem:[#allocation41_spill] sm:$0xff] %v15121_v5  ;;  %v5053_v38 = vunpack.c.l.b16 %v3936_v2 }
 0x9d1   :  { %v5062_v39 = vpack.c.b16 %v5053_v38, %v5052_v20  ;;  %v15131_v38 = vpop.f32.mrf.mxu2 }
 0x9d3   :  { %5158 = vmatmul.bf16.gmra.mxu2 %v5062_v39 }
 0x9d4   :  { %v3742_v33 = vpop.f32.mrf.mxu1 }
 0x9d5   :  { %v3937_v10 = vpack.c.bf16 %v3742_v33, %v3742_v33 }
 0x9d6   :  { %v4981_v35 = vpop.f32.mrf.mxu3 }
 0x9d7   :  { %v15124_v34 = vadd.f32 %v4981_v35, %v15084_v17  ;;  %v5054_v0 = vunpack.c.l.b16 %v3937_v10  ;;  %v16630_v10 = vpack.c.b16 %v14825_v11, %v14823_v13 }
 0x9dc   :  { %v3744_v45 = vpop.f32.mrf.mxu1 }
 0x9dd   :  { %v3938_v18 = vpack.c.bf16 %v3744_v45, %v3744_v45 }
 0x9de   :  { %v15126_v61 = vpop.f32.mrf.mxu3 }
 0x9df   :  { %v5055_v5 = vunpack.c.l.b16 %v3938_v18 }
 0x9e1   :  { %v5063_v15 = vpack.c.b16 %v5055_v5, %v5054_v0 }
 0x9e3   :  { %5163 = vmatmul.bf16.gmra.mxu2 %v5063_v15  ;;  %v4258_v15 = vadd.f32 %v14885_v29, %v14843_v59  ;;  %v16631_v29 = vpack.c.b16 %v14985_v19, %v14983_v28 }
 0x9e4   :  { %v3747_v36 = vpop.f32.mrf.mxu1 }
 0x9e5   :  { %v3939_v39 = vpack.c.bf16 %v3747_v36, %v3747_v36 }
 0x9e6   :  { %v4986_v2 = vpop.f32.mrf.mxu3 }
 0x9e7   :  { %v15129_v60 = vadd.f32 %v4986_v2, %v15089_v4  ;;  %v5218_v17 = vunpack.c.l.b16 %v3939_v39  ;;  %v4458_v4 = vadd.f32 %v14896_v12, %v4258_v15 }
 0x9e9   :  { %v4636_v0 = vadd.f32 %v15006_v40, %v4458_v4  ;;  %v4263_v40 = vadd.f32 %v14892_v16, %v14849_v25  ;;  %v16632_v16 = vpack.c.b16 %v14999_v27, %v14997_v54 }
 0x9eb   :  { %v4814_v36 = vadd.f32 %v15056_v24, %v4636_v0 }
 0x9ec   :  { %v3749_v6 = vpop.f32.mrf.mxu1 }
 0x9ed   :  { %v3940_v20 = vpack.c.bf16 %v3749_v6, %v3749_v6  ;;  %v4992_v6 = vadd.f32 %v15096_v21, %v4814_v36 }
 0x9ef   :  { %v5219_v33 = vunpack.c.l.b16 %v3940_v20 }
 0x9f1   :  { %v5234_v35 = vpack.c.b16 %v5219_v33, %v5218_v17 }
 0x9f3   :  { %5306 = vmatmul.bf16.vlgmr.msrb.gmra.mxu3 %v5234_v35  ;;  %5484 = vmatmul.bf16.vlgmr.msrb.gmra.mxu2 %v16630_v10 }
 0x9f4   :  { %v3752_v5 = vpop.f32.mrf.mxu1 }
 0x9f5   :  { %v3941_v2 = vpack.c.bf16 %v3752_v5, %v3752_v5 }
 0x9f6   :  { %v5129_v45 = vpop.f32.mrf.mxu2 }
 0x9f7   :  { %v15140_v18 = vadd.f32 %v5129_v45, %v15094_v48  ;;  %v5220_v20 = vunpack.c.l.b16 %v3941_v2  ;;  %v4460_v48 = vadd.f32 %v14903_v63, %v4263_v40 }
 0x9f9   :  { %v4638_v35 = vadd.f32 %v15021_v53, %v4460_v48  ;;  %v4268_v53 = vadd.f32 %v14901_v51, %v14857_v23  ;;  %v16633_v51 = vpack.c.b16 %v15014_v62, %v15012_v41 }
 0x9fb   :  { %v4816_v10 = vadd.f32 %v15061_v56, %v4638_v35 }
 0x9fc   :  { %v3754_v39 = vpop.f32.mrf.mxu1 }
 0x9fd   :  { %v3942_v13 = vpack.c.bf16 %v3754_v39, %v3754_v39  ;;  %v4994_v45 = vadd.f32 %v15101_v50, %v4816_v10 }
 0x9fe   :  { %v5131_v11 = vpop.f32.mrf.mxu2 }
 0x9ff   :  { %v5221_v17 = vunpack.c.l.b16 %v3942_v13  ;;  %v15145_v33 = vadd.f32 %v5131_v11, %v4992_v6 }
 0xa01   :  { %v5235_v59 = vpack.c.b16 %v5221_v17, %v5220_v20 }
 0xa03   :  { %5311 = vmatmul.bf16.gmra.mxu3 %v5235_v59  ;;  %5489 = vmatmul.bf16.gmra.mxu2 %v16631_v29  ;;  %v3964_v29 = vpack.c.bf16 %v14851_v44, %v14851_v44 }
 0xa04   :  { %v3757_v12 = vpop.f32.mrf.mxu1 }
 0xa05   :  { %v3943_v5 = vpack.c.bf16 %v3757_v12, %v3757_v12  ;;  %v5405_v40 = vunpack.c.l.b16 %v3964_v29 }
 0xa06   :  { %v5134_v24 = vpop.f32.mrf.mxu2 }
 0xa07   :  { %v15154_v21 = vadd.f32 %v5134_v24, %v15099_v8  ;;  %v5222_v4 = vunpack.c.l.b16 %v3943_v5  ;;  %v4462_v8 = vadd.f32 %v14920_v31, %v4268_v53  ;;  %v4273_v31 = vadd.f32 %v14918_v37, %v14863_v9  ;;  %v16636_v5 = vld [vmem:[#allocation37_spill] sm:$0xff]  ;;  %v16642_v53 = vld [vmem:[#allocation30_spill] sm:$0xff] }
 0xa09   :  { %v4640_v2 = vadd.f32 %v15026_v52, %v4462_v8  ;;  %v16643_v8 = vld [vmem:[#allocation31_spill] sm:$0xff] }
 0xa0b   :  { %v4818_v39 = vadd.f32 %v15066_v30, %v4640_v2  ;;  %v4464_v30 = vadd.f32 %v14935_v55, %v4273_v31  ;;  %v3970_v2 = vpack.c.bf16 %v16643_v8, %v16643_v8 }
 0xa0c   :  { %v3759_v15 = vpop.f32.mrf.mxu1 }
 0xa0d   :  { %v3944_v28 = vpack.c.bf16 %v3759_v15, %v3759_v15  ;;  %v4996_v11 = vadd.f32 %v15106_v22, %v4818_v39  ;;  %v3963_v22 = vpack.c.bf16 %v14847_v14, %v14847_v14  ;;  %v4642_v12 = vadd.f32 %v15031_v26, %v4464_v30  ;;  %v16637_v15 = vld [vmem:[#allocation13_spill] sm:$0xff]  ;;  %v5542_v30 = vld [vmem:[#allocation6 + $0x8] sm:$0xff] }
 0xa0e   :  { %v5136_v19 = vpop.f32.mrf.mxu2  ;;  %v3965_v26 = vpack.c.bf16 %v14855_v43, %v14855_v43  ;;  %v3967_v43 = vpack.c.bf16 %v16637_v15, %v16637_v15 }
 0xa0f   :  { %v5223_v0 = vunpack.c.l.b16 %v3944_v28  ;;  %v15159_v36 = vadd.f32 %v5136_v19, %v4994_v45  ;;  %v4820_v62 = vadd.f32 %v15071_v58, %v4642_v12  ;;  %v5404_v41 = vunpack.c.l.b16 %v3963_v22  ;;  %v16638_v45 = vld [vmem:[#allocation18_spill] sm:$0xff] }
 0xa10   :  { %v3966_v58 = vpack.c.bf16 %v14859_v47, %v14859_v47  ;;  %v3968_v47 = vpack.c.bf16 %v16638_v45, %v16638_v45  ;;  %v5408_v28 = vunpack.c.l.b16 %v3967_v43  ;;  %v15240_v12 = vperm.slane %v5542_v30, 0 }
 0xa11   :  { %v5236_v25 = vpack.c.b16 %v5223_v0, %v5222_v4  ;;  %v4998_v9 = vadd.f32 %v15111_v3, %v4820_v62  ;;  %v5416_v55 = vpack.c.b16 %v5405_v40, %v5404_v41  ;;  %v5406_v3 = vunpack.c.l.b16 %v3965_v26 }
 0xa12   :  { %v5407_v48 = vunpack.c.l.b16 %v3966_v58  ;;  %v5409_v19 = vunpack.c.l.b16 %v3968_v47  ;;  %v15248_v58 = vperm.slane %v5542_v30, 2 }
 0xa13   :  { %5316 = vmatmul.bf16.gmra.mxu3 %v5236_v25  ;;  %5494 = vmatmul.bf16.gmra.mxu2 %v16632_v16  ;;  %v16639_v25 = vld [vmem:[#allocation15_spill] sm:$0xff]  ;;  %v16640_v16 = vld [vmem:[#allocation29_spill] sm:$0xff] }
 0xa14   :  { %v3762_v63 = vpop.f32.mrf.mxu1  ;;  %v5417_v10 = vpack.c.b16 %v5407_v48, %v5406_v3  ;;  %v5418_v0 = vpack.c.b16 %v5409_v19, %v5408_v28 }
 0xa15   :  { %v3945_v6 = vpack.c.bf16 %v3762_v63, %v3762_v63 }
 0xa16   :  { %v5139_v56 = vpop.f32.mrf.mxu2 }
 0xa17   :  { %v15168_v50 = vadd.f32 %v5139_v56, %v15104_v32  ;;  %v5224_v20 = vunpack.c.l.b16 %v3945_v6  ;;  %v3969_v56 = vpack.c.bf16 %v16642_v53, %v16642_v53  ;;  %v5411_v6 = vunpack.c.l.b16 %v3970_v2 }
 0xa19   :  { %v5410_v39 = vunpack.c.l.b16 %v3969_v56 }
 0xa1c   :  { %v3764_v13 = vpop.f32.mrf.mxu1 }
 0xa1d   :  { %v3946_v54 = vpack.c.bf16 %v3764_v13, %v3764_v13 }
 0xa1e   :  { %v5141_v27 = vpop.f32.mrf.mxu2 }
 0xa1f   :  { %v5225_v17 = vunpack.c.l.b16 %v3946_v54  ;;  %v15173_v59 = vadd.f32 %v5141_v27, %v4996_v11  ;;  %v5419_v11 = vpack.c.b16 %v5411_v6, %v5410_v39  ;;  %v16644_v54 = vld [vmem:[#allocation14_spill] sm:$0xff]  ;;  %v16645_v27 = vld [vmem:[#allocation27_spill] sm:$0xff] }
 0xa21   :  { %v5237_v23 = vpack.c.b16 %v5225_v17, %v5224_v20  ;;  %v16646_v20 = vpack.c.b16 %v16644_v54, %v16645_v27 }
 0xa23   :  { %5321 = vmatmul.bf16.gmra.mxu3 %v5237_v23  ;;  %5499 = vmatmul.bf16.gmra.mxu2 %v16633_v51  ;;  %v15235_v23 = vpop.f32.mrf.mxu3 }
 0xa26   :  { %v5144_v52 = vpop.f32.mrf.mxu2 }
 0xa27   :  { %v15182_v32 = vadd.f32 %v5144_v52, %v15109_v46  ;;  %v16634_v46 = vpack.c.b16 %v14912_v49, %v14910_v42  ;;  %v16635_v42 = vpack.c.b16 %v14929_v7, %v14927_v57  ;;  %v16641_v57 = vpack.c.b16 %v16639_v25, %v16640_v16 }
 0xa2e   :  { %v5146_v37 = vpop.f32.mrf.mxu2 }
 0xa2f   :  { %v15191_v24 = vadd.f32 %v5146_v37, %v4998_v9  ;;  %v15244_v37 = vperm.slane %v5542_v30, 1 }
 0xa33   :  { %5326 = vmatmul.bf16.gmra.mxu3 %v16634_v46  ;;  %5504 = vmatmul.bf16.gmra.mxu2 %v5416_v55 }
 0xa36   :  { %v5149_v14 = vpop.f32.mrf.mxu2 }
 0xa37   :  { %v15197_v44 = vadd.f32 %v5149_v14, %v15114_v1 }
 0xa3e   :  { %v15203_v35 = vpop.f32.mrf.mxu2 }
 0xa43   :  { %5331 = vmatmul.bf16.gmra.mxu3 %v16635_v42  ;;  %5509 = vmatmul.bf16.gmra.mxu2 %v5417_v10 }
 0xa46   :  { %v5154_v49 = vpop.f32.mrf.mxu2 }
 0xa47   :  { %v15209_v1 = vadd.f32 %v5154_v49, %v16636_v5 }
 0xa4e   :  { %v15215_v4 = vpop.f32.mrf.mxu2 }
 0xa53   :  { %5336 = vmatmul.bf16.gmra.mxu3 %v16641_v57  ;;  %5514 = vmatmul.bf16.gmra.mxu2 %v5418_v0 }
 0xa56   :  { %v5159_v7 = vpop.f32.mrf.mxu2 }
 0xa57   :  { %v15221_v63 = vadd.f32 %v5159_v7, %v15124_v34 }
 0xa5e   :  { %v15227_v13 = vpop.f32.mrf.mxu2 }
 0xa63   :  { %5341 = vmatmul.bf16.gmra.mxu3 %v16646_v20  ;;  %5519 = vmatmul.bf16.gmra.mxu2 %v5419_v11 }
 0xa66   :  { %v5164_v17 = vpop.f32.mrf.mxu2 }
 0xa67   :  { %v15233_v34 = vadd.f32 %v5164_v17, %v15129_v60 }
 0xa6e   :  { %v15237_v51 = vpop.f32.mrf.mxu2 }
 0xa76   :  { %v5307_v31 = vpop.f32.mrf.mxu3  ;;  %v5485_v52 = vpop.f32.mrf.mxu2 }
 0xa77   :  { %v5347_v22 = vadd.f32 %v5307_v31, %v15140_v18 }
 0xa79   :  { %v5525_v29 = vadd.f32 %v5485_v52, %v5347_v22 }
 0xa7b   :  { %v5544_v62 = vadd.f32 %v15240_v12, %v5525_v29 }
 0xa7d   :  { %v5560_v60 = vmax.f32 %v5544_v62, 0.0 }
 0xa7e   :  { %v5309_v41 = vpop.f32.mrf.mxu3  ;;  %v5487_v40 = vpop.f32.mrf.mxu2 }
 0xa7f   :  { %v5348_v9 = vadd.f32 %v5309_v41, %v15145_v33  ;;  %v5577_v14 = vmul.f32 %v15244_v37, %v5560_v60 }
 0xa81   :  { %v5526_v55 = vadd.f32 %v5487_v40, %v5348_v9  ;;  %v15253_v33 = vadd.f32 %v15248_v58, %v5577_v14 }
 0xa83   :  { %v5545_v46 = vadd.f32 %v15240_v12, %v5526_v55 }
 0xa85   :  { %v5561_v26 = vmax.f32 %v5545_v46, 0.0 }
 0xa86   :  { %v5312_v18 = vpop.f32.mrf.mxu3  ;;  %v5490_v3 = vpop.f32.mrf.mxu2 }
 0xa87   :  { %v5578_v48 = vmul.f32 %v15244_v37, %v5561_v26  ;;  %v5349_v10 = vadd.f32 %v5312_v18, %v15154_v21 }
 0xa89   :  { %v5527_v42 = vadd.f32 %v5490_v3, %v5349_v10  ;;  %v15256_v49 = vadd.f32 %v15248_v58, %v5578_v48 }
 0xa8b   :  { %v5610_v5 = vpack.c.bf16 %v15256_v49, %v15253_v33  ;;  %v5546_v15 = vadd.f32 %v15240_v12, %v5527_v42  ;;  %v13901_v33 = vld [vmem:[#allocation2 + $0x4b0] sm:$0xff]  ;;  %v13970_v49 = vld [vmem:[#allocation4 + $0x498] sm:$0xff] }
 0xa8d   :  { %v5562_v28 = vmax.f32 %v5546_v15, 0.0 }
 0xa8e   :  { %v5314_v43 = vpop.f32.mrf.mxu3  ;;  %v5492_v45 = vpop.f32.mrf.mxu2 }
 0xa8f   :  { %v5350_v47 = vadd.f32 %v5314_v43, %v15159_v36  ;;  %v5579_v0 = vmul.f32 %v15244_v37, %v5562_v28 }
 0xa91   :  { %v5528_v19 = vadd.f32 %v5492_v45, %v5350_v47  ;;  %v15267_v8 = vadd.f32 %v15248_v58, %v5579_v0 }
 0xa93   :  { %v5547_v21 = vadd.f32 %v15240_v12, %v5528_v19 }
 0xa95   :  { %v5563_v25 = vmax.f32 %v5547_v21, 0.0 }
 0xa96   :  { %v5317_v16 = vpop.f32.mrf.mxu3  ;;  %v5495_v57 = vpop.f32.mrf.mxu2 }
 0xa97   :  { %v5580_v7 = vmul.f32 %v15244_v37, %v5563_v25  ;;  %v5351_v53 = vadd.f32 %v5317_v16, %v15168_v50 }
 0xa99   :  { %v5529_v56 = vadd.f32 %v5495_v57, %v5351_v53  ;;  %v15270_v2 = vadd.f32 %v15248_v58, %v5580_v7  ;;  %v16648_v53 = vld [vmem:[#allocation21_spill] sm:$0xff] }
 0xa9b   :  { %v5611_v36 = vpack.c.bf16 %v15270_v2, %v15267_v8  ;;  %v5548_v39 = vadd.f32 %v15240_v12, %v5529_v56  ;;  %v13973_v8 = vld [vmem:[#allocation4 + $0x4b0] sm:$0xff]  ;;  %v13972_v2 = vld [vmem:[#allocation4 + $0x4a8] sm:$0xff] }
 0xa9d   :  { %v5564_v27 = vmax.f32 %v5548_v39, 0.0  ;;  %v16649_v39 = vld [vmem:[#allocation35_spill] sm:$0xff] }
 0xa9e   :  { %v5319_v6 = vpop.f32.mrf.mxu3  ;;  %v5497_v11 = vpop.f32.mrf.mxu2 }
 0xa9f   :  { %v5352_v54 = vadd.f32 %v5319_v6, %v15173_v59  ;;  %v5581_v17 = vmul.f32 %v15244_v37, %v5564_v27  ;;  %v16650_v27 = vld [vmem:[#allocation12_spill] sm:$0xff] }
 0xaa1   :  { %v5530_v20 = vadd.f32 %v5497_v11, %v5352_v54  ;;  %v15281_v41 = vadd.f32 %v15248_v58, %v5581_v17  ;;  %v16652_v17 = vld [vmem:[#allocation25_spill] sm:$0xff] }
 0xaa3   :  { %v5549_v50 = vadd.f32 %v15240_v12, %v5530_v20  ;;  %v16651_v20 = vld [vmem:[#allocation22_spill] sm:$0xff] }
 0xaa5   :  { %v5565_v31 = vmax.f32 %v5549_v50, 0.0  ;;  %v4283_v50 = vadd.f32 %v16651_v20, %v16650_v27  ;;  %v16664_v20 = vld [vmem:[#allocation32_spill] sm:$0xff] }
 0xaa6   :  { %v5322_v52 = vpop.f32.mrf.mxu3  ;;  %v5500_v30 = vpop.f32.mrf.mxu2 }
 0xaa7   :  { %v5582_v22 = vmul.f32 %v15244_v37, %v5565_v31  ;;  %v5353_v29 = vadd.f32 %v5322_v52, %v15182_v32  ;;  %v16653_v52 = vld [vmem:[#allocation20_spill] sm:$0xff] }
 0xaa9   :  { %v5531_v62 = vadd.f32 %v5500_v30, %v5353_v29  ;;  %v15284_v40 = vadd.f32 %v15248_v58, %v5582_v22  ;;  %v4468_v30 = vadd.f32 %v16653_v52, %v4283_v50  ;;  %v16654_v22 = vld [vmem:[#allocation33_spill] sm:$0xff] }
 0xaab   :  { %v5612_v59 = vpack.c.bf16 %v15284_v40, %v15281_v41  ;;  %v5550_v9 = vadd.f32 %v15240_v12, %v5531_v62  ;;  %v16655_v62 = vld [vmem:[#allocation36_spill] sm:$0xff]  ;;  %v13974_v40 = vld [vmem:[#allocation4 + $0x4b8] sm:$0xff] }
 0xaac   :  { %v13900_v41 = vld [vmem:[#allocation2 + $0x4a8] sm:$0xff]  ;;  %6983 = vmatpush.bf16.msra.mxu0 %v13974_v40 }
 0xaad   :  { %v5566_v14 = vmax.f32 %v5550_v9, 0.0  ;;  %v16656_v9 = vld [vmem:[#allocation28_spill] sm:$0xff] }
 0xaae   :  { %v5324_v60 = vpop.f32.mrf.mxu3  ;;  %v5502_v55 = vpop.f32.mrf.mxu2 }
 0xaaf   :  { %v5354_v46 = vadd.f32 %v5324_v60, %v15191_v24  ;;  %v5583_v18 = vmul.f32 %v15244_v37, %v5566_v14  ;;  %v4278_v60 = vadd.f32 %v16656_v9, %v16655_v62 }
 0xab0   :  { %6984 = vmatpush.bf16.msra.mxu0 %v13973_v8  ;;  %v13977_v8 = vld [vmem:[#allocation4 + $0x4d0] sm:$0xff] }
 0xab1   :  { %v5532_v26 = vadd.f32 %v5502_v55, %v5354_v46  ;;  %v15297_v45 = vadd.f32 %v15248_v58, %v5583_v18  ;;  %v16657_v55 = vld [vmem:[#allocation23_spill] sm:$0xff]  ;;  %v16658_v46 = vld [vmem:[#allocation26_spill] sm:$0xff] }
 0xab2   :  { %v4293_v14 = vadd.f32 %v16658_v46, %v16657_v55 }
 0xab3   :  { %v5551_v32 = vadd.f32 %v15240_v12, %v5532_v26  ;;  %v16659_v26 = vld [vmem:[#allocation19_spill] sm:$0xff] }
 0xab4   :  { %6985 = vmatpush.bf16.msra.mxu0 %v13972_v2  ;;  %v13976_v2 = vld [vmem:[#allocation4 + $0x4c8] sm:$0xff] }
 0xab5   :  { %v5567_v3 = vmax.f32 %v5551_v32, 0.0  ;;  %v4646_v32 = vadd.f32 %v16659_v26, %v4468_v30 }
 0xab6   :  { %v5327_v48 = vpop.f32.mrf.mxu3  ;;  %v5505_v10 = vpop.f32.mrf.mxu2 }
 0xab7   :  { %v5584_v42 = vmul.f32 %v15244_v37, %v5567_v3  ;;  %v5355_v15 = vadd.f32 %v5327_v48, %v15197_v44  ;;  %v16647_v44 = vld [vmem:[#allocation17_spill] sm:$0xff]  ;;  %v16660_v3 = vld [vmem:[#allocation16_spill] sm:$0xff] }
 0xab8   :  { %v4288_v56 = vadd.f32 %v16648_v53, %v16647_v44  ;;  %v4466_v48 = vadd.f32 %v16660_v3, %v4278_v60  ;;  %v16667_v60 = vld [vmem:[#allocation38_spill] sm:$0xff] }
 0xab9   :  { %v15294_v43 = vadd.f32 %v5505_v10, %v5355_v15  ;;  %v15300_v24 = vadd.f32 %v15248_v58, %v5584_v42  ;;  %v16661_v10 = vld [vmem:[#allocation34_spill] sm:$0xff]  ;;  %v16662_v15 = vld [vmem:[#allocation24_spill] sm:$0xff] }
 0xaba   :  { %v4470_v6 = vadd.f32 %v16649_v39, %v4288_v56  ;;  %v4472_v42 = vadd.f32 %v16661_v10, %v4293_v14  ;;  %v4824_v44 = vadd.f32 %v16662_v15, %v4646_v32  ;;  %v16663_v56 = vld [vmem:[#allocation40_spill] sm:$0xff] }
 0xabb   :  { %v5613_v47 = vpack.c.bf16 %v15300_v24, %v15297_v45  ;;  %v4644_v39 = vadd.f32 %v16663_v56, %v4466_v48  ;;  %v13898_v45 = vld [vmem:[#allocation2 + $0x498] sm:$0xff]  ;;  %v13899_v24 = vld [vmem:[#allocation2 + $0x4a0] sm:$0xff] }
 0xabc   :  { %v4648_v31 = vadd.f32 %v16652_v17, %v4470_v6  ;;  %v4650_v50 = vadd.f32 %v16664_v20, %v4472_v42  ;;  %v16665_v17 = vld [vmem:[#allocation41_spill] sm:$0xff] }
 0xabe   :  { %v5329_v28 = vpop.f32.mrf.mxu3  ;;  %v5507_v19 = vpop.f32.mrf.mxu2  ;;  %v4826_v29 = vadd.f32 %v16654_v22, %v4648_v31  ;;  %v5002_v31 = vadd.f32 %v16665_v17, %v4824_v44 }
 0xac0   :  { %v5004_v18 = vadd.f32 %v15126_v61, %v4826_v29  ;;  %v16666_v61 = vld [vmem:[#allocation39_spill] sm:$0xff]  ;;  %v4828_v29 = vadd.f32 %v15131_v38, %v4650_v50  ;;  %v5180_v62 = vadd.f32 %v15215_v4, %v5002_v31 }
 0xac1   :  { %v4822_v22 = vadd.f32 %v16666_v61, %v4644_v39 }
 0xac2   :  { %v5182_v53 = vadd.f32 %v15227_v13, %v5004_v18  ;;  %v5006_v46 = vadd.f32 %v15235_v23, %v4828_v29 }
 0xac3   :  { %v5000_v55 = vadd.f32 %v16667_v60, %v4822_v22 }
 0xac5   :  { %v5178_v32 = vadd.f32 %v15203_v35, %v5000_v55 }
 0xac6   :  { %v5332_v21 = vpop.f32.mrf.mxu3  ;;  %v5510_v0 = vpop.f32.mrf.mxu2 }
 0xac7   :  { %v5356_v4 = vadd.f32 %v5329_v28, %v5178_v32  ;;  %v13903_v32 = vld [vmem:[#allocation2 + $0x4c0] sm:$0xff] }
 0xac9   :  { %v5534_v35 = vadd.f32 %v5507_v19, %v5356_v4  ;;  %v5552_v19 = vadd.f32 %v15240_v12, %v15294_v43 }
 0xacb   :  { %v5553_v44 = vadd.f32 %v15240_v12, %v5534_v35 }
 0xacd   :  { %v5569_v50 = vmax.f32 %v5553_v44, 0.0 }
 0xace   :  { %v5334_v25 = vpop.f32.mrf.mxu3  ;;  %v5512_v16 = vpop.f32.mrf.mxu2 }
 0xacf   :  { %v5358_v14 = vadd.f32 %v5334_v25, %v5180_v62 }
 0xad1   :  { %v5536_v48 = vadd.f32 %v5512_v16, %v5358_v14  ;;  %v13897_v14 = vld [vmem:[#allocation2 + $0x490] sm:$0xff] }
 0xad6   :  { %v5337_v57 = vpop.f32.mrf.mxu3  ;;  %v5515_v7 = vpop.f32.mrf.mxu2 }
 0xad7   :  { %v5359_v9 = vadd.f32 %v5337_v57, %v15221_v63 }
 0xad9   :  { %v5537_v18 = vadd.f32 %v5515_v7, %v5359_v9 }
 0xadb   :  { %v5556_v23 = vadd.f32 %v15240_v12, %v5537_v18 }
 0xadd   :  { %v5572_v7 = vmax.f32 %v5556_v23, 0.0 }
 0xade   :  { %v5339_v11 = vpop.f32.mrf.mxu3  ;;  %v5517_v54 = vpop.f32.mrf.mxu2 }
 0xadf   :  { %v5360_v52 = vadd.f32 %v5339_v11, %v5182_v53  ;;  %v5184_v11 = vadd.f32 %v15237_v51, %v5006_v46  ;;  %v5555_v51 = vadd.f32 %v15240_v12, %v5536_v48 }
 0xae1   :  { %v5538_v26 = vadd.f32 %v5517_v54, %v5360_v52  ;;  %v5571_v53 = vmax.f32 %v5555_v51, 0.0 }
 0xae3   :  { %v5557_v63 = vadd.f32 %v15240_v12, %v5538_v26  ;;  %v5588_v17 = vmul.f32 %v15244_v37, %v5571_v53  ;;  %v13967_v26 = vld [vmem:[#allocation4 + $0x480] sm:$0xff] }
 0xae5   :  { %v5573_v15 = vmax.f32 %v5557_v63, 0.0  ;;  %v5605_v29 = vadd.f32 %v15248_v58, %v5588_v17 }
 0xae6   :  { %v5342_v6 = vpop.f32.mrf.mxu3  ;;  %v5520_v27 = vpop.f32.mrf.mxu2 }
 0xae7   :  { %v5361_v30 = vadd.f32 %v5342_v6, %v15233_v34  ;;  %v5357_v34 = vadd.f32 %v5332_v21, %v15209_v1  ;;  %v5589_v6 = vmul.f32 %v15244_v37, %v5572_v7 }
 0xae9   :  { %v5539_v13 = vadd.f32 %v5520_v27, %v5361_v30  ;;  %v5535_v42 = vadd.f32 %v5510_v0, %v5357_v34  ;;  %v5590_v0 = vmul.f32 %v15244_v37, %v5573_v15  ;;  %v5568_v30 = vmax.f32 %v5552_v19, 0.0 }
 0xaea   :  { %v5606_v22 = vadd.f32 %v15248_v58, %v5589_v6  ;;  %v13907_v6 = vld [vmem:[#allocation2 + $0x4e0] sm:$0xff] }
 0xaeb   :  { %v5558_v38 = vadd.f32 %v15240_v12, %v5539_v13  ;;  %v5554_v21 = vadd.f32 %v15240_v12, %v5535_v42  ;;  %v5607_v52 = vadd.f32 %v15248_v58, %v5590_v0  ;;  %v5585_v62 = vmul.f32 %v15244_v37, %v5568_v30 }
 0xaed   :  { %v5574_v25 = vmax.f32 %v5558_v38, 0.0  ;;  %v5570_v39 = vmax.f32 %v5554_v21, 0.0  ;;  %v5616_v43 = vpack.c.bf16 %v5607_v52, %v5606_v22  ;;  %v5602_v55 = vadd.f32 %v15248_v58, %v5585_v62 }
 0xaee   :  { %v5344_v3 = vpop.f32.mrf.mxu3  ;;  %v5522_v10 = vpop.f32.mrf.mxu2 }
 0xaef   :  { %v5362_v57 = vadd.f32 %v5344_v3, %v5184_v11  ;;  %v5591_v28 = vmul.f32 %v15244_v37, %v5574_v25  ;;  %v5587_v61 = vmul.f32 %v15244_v37, %v5570_v39  ;;  %v13904_v3 = vld [vmem:[#allocation2 + $0x4c8] sm:$0xff]  ;;  %v13905_v25 = vld [vmem:[#allocation2 + $0x4d0] sm:$0xff] }
 0xaf1   :  { %v5540_v54 = vadd.f32 %v5522_v10, %v5362_v57  ;;  %v5608_v27 = vadd.f32 %v15248_v58, %v5591_v28  ;;  %v5604_v9 = vadd.f32 %v15248_v58, %v5587_v61  ;;  %v13906_v28 = vld [vmem:[#allocation2 + $0x4d8] sm:$0xff]  ;;  %v13908_v61 = vld [vmem:[#allocation2 + $0x4e8] sm:$0xff] }
 0xaf3   :  { %v5559_v1 = vadd.f32 %v15240_v12, %v5540_v54  ;;  %v5586_v12 = vmul.f32 %v15244_v37, %v5569_v50  ;;  %v5615_v13 = vpack.c.bf16 %v5605_v29, %v5604_v9  ;;  %v13982_v29 = vld [vmem:[#allocation4 + $0x4f8] sm:$0xff]  ;;  %v13981_v9 = vld [vmem:[#allocation4 + $0x4f0] sm:$0xff] }
 0xaf4   :  { %6838 = vmatpush.bf16.msra.mxu2 %v13982_v29 }
 0xaf5   :  { %v5575_v16 = vmax.f32 %v5559_v1, 0.0  ;;  %v5603_v60 = vadd.f32 %v15248_v58, %v5586_v12 }
 0xaf7   :  { %v5592_v56 = vmul.f32 %v15244_v37, %v5575_v16  ;;  %v5614_v46 = vpack.c.bf16 %v5603_v60, %v5602_v55  ;;  %v13895_v37 = vld [vmem:[#allocation2 + $0x480] sm:$0xff] }
 0xaf8   :  { %6839 = vmatpush.bf16.msra.mxu2 %v13981_v9 }
 0xaf9   :  { %v5609_v20 = vadd.f32 %v15248_v58, %v5592_v56  ;;  %v13896_v58 = vld [vmem:[#allocation2 + $0x488] sm:$0xff] }
 0xafb   :  { %v5617_v31 = vpack.c.bf16 %v5609_v20, %v5608_v27 }
 0xafd   :  { %6195 = vmatpush.bf16.msra.mxu3 %v5617_v31 }
 0xb01   :  { %6196 = vmatpush.bf16.msra.mxu3 %v5616_v43 }
 0xb05   :  { %6197 = vmatpush.bf16.msra.mxu3 %v5615_v13  ;;  %v13980_v13 = vld [vmem:[#allocation4 + $0x4e8] sm:$0xff] }
 0xb06   :  { %6840 = vmatpush.bf16.msra.mxu2 %v13980_v13 }
 0xb09   :  { %6198 = vmatpush.bf16.msra.mxu3 %v5614_v46 }
 0xb0d   :  { %6199 = vmatpush.bf16.msra.mxu3 %v5613_v47  ;;  %v13902_v47 = vld [vmem:[#allocation2 + $0x4b8] sm:$0xff] }
 0xb11   :  { %6200 = vmatpush.bf16.msra.mxu3 %v5612_v59  ;;  %v13968_v59 = vld [vmem:[#allocation4 + $0x488] sm:$0xff] }
 0xb15   :  { %6201 = vmatpush.bf16.msra.mxu3 %v5611_v36  ;;  %v13971_v36 = vld [vmem:[#allocation4 + $0x4a0] sm:$0xff] }
 0xb16   :  { %6986 = vmatpush.bf16.msra.mxu0 %v13971_v36 }
 0xb19   :  { %6202 = vmatpush.bf16.msra.mxu3 %v5610_v5  ;;  %v13969_v5 = vld [vmem:[#allocation4 + $0x490] sm:$0xff] }
 0xb1a   :  { %6987 = vmatpush.bf16.msra.mxu0 %v13970_v49 }
 0xb1c   :  { %6203 = vmatmul.bf16.vlgmr.msra.gmra.mxu3 %v13895_v37  ;;  %v13909_v37 = vld [vmem:[#allocation2 + $0x4f0] sm:$0xff] }
 0xb1e   :  { %6988 = vmatpush.bf16.msra.mxu0 %v13969_v5  ;;  %v13910_v5 = vld [vmem:[#allocation2 + $0x4f8] sm:$0xff] }
 0xb22   :  { %6989 = vmatpush.bf16.msra.mxu0 %v13968_v59  ;;  %v13975_v59 = vld [vmem:[#allocation4 + $0x4c0] sm:$0xff] }
 0xb26   :  { %6990 = vmatpush.bf16.msra.mxu0 %v13967_v26 }
 0xb2c   :  { %6208 = vmatmul.bf16.gmra.mxu3 %v13896_v58  ;;  %v13979_v58 = vld [vmem:[#allocation4 + $0x4e0] sm:$0xff] }
 0xb2d   :  { %6841 = vmatpush.bf16.msra.mxu2 %v13979_v58 }
 0xb3c   :  { %6213 = vmatmul.bf16.gmra.mxu3 %v13897_v14 }
 0xb4c   :  { %6218 = vmatmul.bf16.gmra.mxu3 %v13898_v45 }
 0xb5c   :  { %6223 = vmatmul.bf16.gmra.mxu3 %v13899_v24 }
 0xb6c   :  { %6228 = vmatmul.bf16.gmra.mxu3 %v13900_v41  ;;  %v13978_v41 = vld [vmem:[#allocation4 + $0x4d8] sm:$0xff] }
 0xb6d   :  { %6842 = vmatpush.bf16.msra.mxu2 %v13978_v41  ;;  %v13988_v41 = vld [vmem:[#allocation4 + $0x528] sm:$0xff] }
 0xb71   :  { %6843 = vmatpush.bf16.msra.mxu2 %v13977_v8 }
 0xb75   :  { %6844 = vmatpush.bf16.msra.mxu2 %v13976_v2 }
 0xb79   :  { %6845 = vmatpush.bf16.msra.mxu2 %v13975_v59 }
 0xb7c   :  { %6233 = vmatmul.bf16.gmra.mxu3 %v13901_v33 }
 0xb8c   :  { %6238 = vmatmul.bf16.gmra.mxu3 %v13902_v47 }
 0xb9c   :  { %6243 = vmatmul.bf16.gmra.mxu3 %v13903_v32 }
 0xb9f   :  { %v6204_v11 = vpop.f32.mrf.mxu3 }
 0xba0   :  { %v6564_v34 = vpack.c.bf16 %v6204_v11, %v6204_v11 }
 0xba2   :  { %v6903_v4 = vunpack.c.l.b16 %v6564_v34 }
 0xba7   :  { %v6206_v18 = vpop.f32.mrf.mxu3 }
 0xba8   :  { %v6565_v38 = vpack.c.bf16 %v6206_v18, %v6206_v18 }
 0xbaa   :  { %v6904_v48 = vunpack.c.l.b16 %v6565_v38 }
 0xbac   :  { %v6919_v63 = vpack.c.b16 %v6904_v48, %v6903_v4  ;;  %6248 = vmatmul.bf16.gmra.mxu3 %v13904_v3  ;;  %v13911_v3 = vld [vmem:[#allocation2 + $0x500] sm:$0xff] }
 0xbae   :  { %6991 = vmatmul.bf16.vlgmr.msra.gmra.mxu0 %v6919_v63 }
 0xbaf   :  { %v6209_v57 = vpop.f32.mrf.mxu3 }
 0xbb0   :  { %v6566_v10 = vpack.c.bf16 %v6209_v57, %v6209_v57 }
 0xbb2   :  { %v6905_v54 = vunpack.c.l.b16 %v6566_v10 }
 0xbb7   :  { %v6211_v42 = vpop.f32.mrf.mxu3 }
 0xbb8   :  { %v6567_v23 = vpack.c.bf16 %v6211_v42, %v6211_v42 }
 0xbba   :  { %v6906_v35 = vunpack.c.l.b16 %v6567_v23 }
 0xbbc   :  { %6253 = vmatmul.bf16.gmra.mxu3 %v13905_v25  ;;  %v6920_v51 = vpack.c.b16 %v6906_v35, %v6905_v54  ;;  %v13912_v25 = vld [vmem:[#allocation2 + $0x508] sm:$0xff] }
 0xbbe   :  { %6996 = vmatmul.bf16.gmra.mxu0 %v6920_v51 }
 0xbbf   :  { %v6214_v15 = vpop.f32.mrf.mxu3 }
 0xbc0   :  { %v6568_v1 = vpack.c.bf16 %v6214_v15, %v6214_v15 }
 0xbc2   :  { %v6907_v16 = vunpack.c.l.b16 %v6568_v1  ;;  %v14038_v1 = vld [vmem:[#allocation4 + $0x6b8] sm:$0xff] }
 0xbc3   :  { %8213 = vmatpush.bf16.msra.mxu1 %v14038_v1 }
 0xbc7   :  { %v6216_v21 = vpop.f32.mrf.mxu3 }
 0xbc8   :  { %v6569_v7 = vpack.c.bf16 %v6216_v21, %v6216_v21 }
 0xbca   :  { %v6908_v44 = vunpack.c.l.b16 %v6569_v7 }
 0xbcc   :  { %6258 = vmatmul.bf16.gmra.mxu3 %v13906_v28  ;;  %v6921_v53 = vpack.c.b16 %v6908_v44, %v6907_v16  ;;  %v13913_v16 = vld [vmem:[#allocation2 + $0x510] sm:$0xff] }
 0xbce   :  { %7001 = vmatmul.bf16.gmra.mxu0 %v6921_v53 }
 0xbcf   :  { %v6219_v0 = vpop.f32.mrf.mxu3 }
 0xbd0   :  { %v6570_v56 = vpack.c.bf16 %v6219_v0, %v6219_v0 }
 0xbd2   :  { %v6909_v27 = vunpack.c.l.b16 %v6570_v56 }
 0xbd7   :  { %v6221_v19 = vpop.f32.mrf.mxu3 }
 0xbd8   :  { %v6571_v39 = vpack.c.bf16 %v6221_v19, %v6221_v19 }
 0xbda   :  { %v6910_v20 = vunpack.c.l.b16 %v6571_v39 }
 0xbdc   :  { %6263 = vmatmul.bf16.gmra.mxu3 %v13907_v6  ;;  %v6922_v50 = vpack.c.b16 %v6910_v20, %v6909_v27  ;;  %v13914_v27 = vld [vmem:[#allocation2 + $0x518] sm:$0xff] }
 0xbde   :  { %7006 = vmatmul.bf16.gmra.mxu0 %v6922_v50 }
 0xbdf   :  { %v6224_v17 = vpop.f32.mrf.mxu3 }
 0xbe0   :  { %v6572_v31 = vpack.c.bf16 %v6224_v17, %v6224_v17 }
 0xbe2   :  { %v6911_v22 = vunpack.c.l.b16 %v6572_v31 }
 0xbe7   :  { %v6226_v52 = vpop.f32.mrf.mxu3 }
 0xbe8   :  { %v6573_v30 = vpack.c.bf16 %v6226_v52, %v6226_v52 }
 0xbea   :  { %v6912_v12 = vunpack.c.l.b16 %v6573_v30 }
 0xbec   :  { %6268 = vmatmul.bf16.gmra.mxu3 %v13908_v61  ;;  %v6923_v43 = vpack.c.b16 %v6912_v12, %v6911_v22  ;;  %v13915_v22 = vld [vmem:[#allocation2 + $0x520] sm:$0xff] }
 0xbee   :  { %7011 = vmatmul.bf16.gmra.mxu0 %v6923_v43 }
 0xbef   :  { %v6229_v62 = vpop.f32.mrf.mxu3 }
 0xbf0   :  { %v6574_v60 = vpack.c.bf16 %v6229_v62, %v6229_v62 }
 0xbf2   :  { %v6913_v14 = vunpack.c.l.b16 %v6574_v60 }
 0xbf7   :  { %v6231_v55 = vpop.f32.mrf.mxu3 }
 0xbf8   :  { %v6575_v46 = vpack.c.bf16 %v6231_v55, %v6231_v55  ;;  %v13916_v55 = vld [vmem:[#allocation2 + $0x528] sm:$0xff] }
 0xbfa   :  { %v6914_v45 = vunpack.c.l.b16 %v6575_v46 }
 0xbfc   :  { %6273 = vmatmul.bf16.gmra.mxu3 %v13909_v37  ;;  %v6924_v24 = vpack.c.b16 %v6914_v45, %v6913_v14  ;;  %v13990_v14 = vld [vmem:[#allocation4 + $0x538] sm:$0xff] }
 0xbfd   :  { %7145 = vmatpush.bf16.msrb.mxu2 %v13990_v14 }
 0xbfe   :  { %7016 = vmatmul.bf16.gmra.mxu0 %v6924_v24  ;;  %v13989_v24 = vld [vmem:[#allocation4 + $0x530] sm:$0xff] }
 0xbff   :  { %v6234_v40 = vpop.f32.mrf.mxu3 }
 0xc00   :  { %v6576_v36 = vpack.c.bf16 %v6234_v40, %v6234_v40 }
 0xc01   :  { %7146 = vmatpush.bf16.msrb.mxu2 %v13989_v24  ;;  %v13923_v24 = vld [vmem:[#allocation2 + $0x560] sm:$0xff] }
 0xc02   :  { %v6915_v47 = vunpack.c.l.b16 %v6576_v36  ;;  %v13917_v36 = vld [vmem:[#allocation2 + $0x530] sm:$0xff] }
 0xc05   :  { %7147 = vmatpush.bf16.msrb.mxu2 %v13988_v41 }
 0xc07   :  { %v6236_v33 = vpop.f32.mrf.mxu3 }
 0xc08   :  { %v6577_v49 = vpack.c.bf16 %v6236_v33, %v6236_v33  ;;  %v13987_v33 = vld [vmem:[#allocation4 + $0x520] sm:$0xff] }
 0xc09   :  { %7148 = vmatpush.bf16.msrb.mxu2 %v13987_v33 }
 0xc0a   :  { %v6916_v26 = vunpack.c.l.b16 %v6577_v49 }
 0xc0c   :  { %6278 = vmatmul.bf16.gmra.mxu3 %v13910_v5  ;;  %v6925_v32 = vpack.c.b16 %v6916_v26, %v6915_v47  ;;  %v13986_v47 = vld [vmem:[#allocation4 + $0x518] sm:$0xff] }
 0xc0d   :  { %7149 = vmatpush.bf16.msrb.mxu2 %v13986_v47  ;;  %v13924_v47 = vld [vmem:[#allocation2 + $0x568] sm:$0xff] }
 0xc0e   :  { %7021 = vmatmul.bf16.gmra.mxu0 %v6925_v32  ;;  %v13985_v32 = vld [vmem:[#allocation4 + $0x510] sm:$0xff] }
 0xc0f   :  { %v6239_v11 = vpop.f32.mrf.mxu3 }
 0xc10   :  { %v6578_v34 = vpack.c.bf16 %v6239_v11, %v6239_v11  ;;  %v13984_v11 = vld [vmem:[#allocation4 + $0x508] sm:$0xff] }
 0xc11   :  { %7150 = vmatpush.bf16.msrb.mxu2 %v13985_v32 }
 0xc12   :  { %v6917_v4 = vunpack.c.l.b16 %v6578_v34 }
 0xc15   :  { %7151 = vmatpush.bf16.msrb.mxu2 %v13984_v11 }
 0xc17   :  { %v6241_v18 = vpop.f32.mrf.mxu3 }
 0xc18   :  { %v6579_v38 = vpack.c.bf16 %v6241_v18, %v6241_v18 }
 0xc1a   :  { %v6918_v48 = vunpack.c.l.b16 %v6579_v38 }
 0xc1c   :  { %6283 = vmatmul.bf16.gmra.mxu3 %v13911_v3  ;;  %v6926_v63 = vpack.c.b16 %v6918_v48, %v6917_v4  ;;  %v13918_v3 = vld [vmem:[#allocation2 + $0x538] sm:$0xff]  ;;  %v13983_v4 = vld [vmem:[#allocation4 + $0x500] sm:$0xff] }
 0xc1d   :  { %7152 = vmatpush.bf16.msrb.mxu2 %v13983_v4  ;;  %v13997_v4 = vld [vmem:[#allocation4 + $0x570] sm:$0xff] }
 0xc1e   :  { %7026 = vmatmul.bf16.gmra.mxu0 %v6926_v63 }
 0xc1f   :  { %v6244_v57 = vpop.f32.mrf.mxu3 }
 0xc20   :  { %v6580_v10 = vpack.c.bf16 %v6244_v57, %v6244_v57 }
 0xc22   :  { %v6758_v54 = vunpack.c.l.b16 %v6580_v10 }
 0xc27   :  { %v6246_v42 = vpop.f32.mrf.mxu3 }
 0xc28   :  { %v6581_v23 = vpack.c.bf16 %v6246_v42, %v6246_v42 }
 0xc2a   :  { %v6759_v35 = vunpack.c.l.b16 %v6581_v23 }
 0xc2c   :  { %v6774_v51 = vpack.c.b16 %v6759_v35, %v6758_v54  ;;  %6288 = vmatmul.bf16.gmra.mxu3 %v13912_v25  ;;  %v13919_v54 = vld [vmem:[#allocation2 + $0x540] sm:$0xff] }
 0xc2e   :  { %6846 = vmatmul.bf16.vlgmr.msra.gmra.mxu2 %v6774_v51 }
 0xc2f   :  { %v6249_v15 = vpop.f32.mrf.mxu3 }
 0xc30   :  { %v6582_v21 = vpack.c.bf16 %v6249_v15, %v6249_v15 }
 0xc32   :  { %v6760_v44 = vunpack.c.l.b16 %v6582_v21 }
 0xc37   :  { %v6251_v7 = vpop.f32.mrf.mxu3 }
 0xc38   :  { %v6583_v28 = vpack.c.bf16 %v6251_v7, %v6251_v7 }
 0xc3a   :  { %v6761_v53 = vunpack.c.l.b16 %v6583_v28 }
 0xc3c   :  { %6293 = vmatmul.bf16.gmra.mxu3 %v13913_v16  ;;  %v6775_v0 = vpack.c.b16 %v6761_v53, %v6760_v44  ;;  %v13920_v16 = vld [vmem:[#allocation2 + $0x548] sm:$0xff] }
 0xc3e   :  { %6851 = vmatmul.bf16.gmra.mxu2 %v6775_v0  ;;  %v14037_v0 = vld [vmem:[#allocation4 + $0x6b0] sm:$0xff] }
 0xc3f   :  { %v6254_v56 = vpop.f32.mrf.mxu3  ;;  %8214 = vmatpush.bf16.msra.mxu1 %v14037_v0  ;;  %v13926_v0 = vld [vmem:[#allocation2 + $0x578] sm:$0xff] }
 0xc40   :  { %v6584_v19 = vpack.c.bf16 %v6254_v56, %v6254_v56 }
 0xc42   :  { %v6762_v20 = vunpack.c.l.b16 %v6584_v19 }
 0xc47   :  { %v6256_v39 = vpop.f32.mrf.mxu3 }
 0xc48   :  { %v6585_v6 = vpack.c.bf16 %v6256_v39, %v6256_v39 }
 0xc4a   :  { %v6763_v50 = vunpack.c.l.b16 %v6585_v6 }
 0xc4c   :  { %6298 = vmatmul.bf16.gmra.mxu3 %v13914_v27  ;;  %v6776_v17 = vpack.c.b16 %v6763_v50, %v6762_v20  ;;  %v13921_v50 = vld [vmem:[#allocation2 + $0x550] sm:$0xff] }
 0xc4e   :  { %6856 = vmatmul.bf16.gmra.mxu2 %v6776_v17 }
 0xc4f   :  { %v6259_v31 = vpop.f32.mrf.mxu3 }
 0xc50   :  { %v6586_v52 = vpack.c.bf16 %v6259_v31, %v6259_v31 }
 0xc52   :  { %v6764_v12 = vunpack.c.l.b16 %v6586_v52 }
 0xc57   :  { %v6261_v30 = vpop.f32.mrf.mxu3 }
 0xc58   :  { %v6587_v61 = vpack.c.bf16 %v6261_v30, %v6261_v30 }
 0xc5a   :  { %v6765_v43 = vunpack.c.l.b16 %v6587_v61 }
 0xc5c   :  { %6303 = vmatmul.bf16.gmra.mxu3 %v13915_v22  ;;  %v6777_v29 = vpack.c.b16 %v6765_v43, %v6764_v12 }
 0xc5e   :  { %6861 = vmatmul.bf16.gmra.mxu2 %v6777_v29 }
 0xc5f   :  { %v6264_v62 = vpop.f32.mrf.mxu3 }
 0xc60   :  { %v6588_v9 = vpack.c.bf16 %v6264_v62, %v6264_v62  ;;  %v13922_v62 = vld [vmem:[#allocation2 + $0x558] sm:$0xff] }
 0xc62   :  { %v6766_v46 = vunpack.c.l.b16 %v6588_v9 }
 0xc67   :  { %v6266_v13 = vpop.f32.mrf.mxu3 }
 0xc68   :  { %v6589_v60 = vpack.c.bf16 %v6266_v13, %v6266_v13 }
 0xc6a   :  { %v6767_v37 = vunpack.c.l.b16 %v6589_v60 }
 0xc6c   :  { %6308 = vmatmul.bf16.gmra.mxu3 %v13916_v55  ;;  %v6778_v58 = vpack.c.b16 %v6767_v37, %v6766_v46 }
 0xc6e   :  { %6866 = vmatmul.bf16.gmra.mxu2 %v6778_v58 }
 0xc6f   :  { %v6269_v45 = vpop.f32.mrf.mxu3 }
 0xc70   :  { %v6590_v40 = vpack.c.bf16 %v6269_v45, %v6269_v45 }
 0xc72   :  { %v6768_v49 = vunpack.c.l.b16 %v6590_v40 }
 0xc77   :  { %v6271_v8 = vpop.f32.mrf.mxu3 }
 0xc78   :  { %v6591_v2 = vpack.c.bf16 %v6271_v8, %v6271_v8 }
 0xc7a   :  { %v6769_v5 = vunpack.c.l.b16 %v6591_v2 }
 0xc7c   :  { %6313 = vmatmul.bf16.gmra.mxu3 %v13917_v36  ;;  %v6779_v59 = vpack.c.b16 %v6769_v5, %v6768_v49 }
 0xc7e   :  { %6871 = vmatmul.bf16.gmra.mxu2 %v6779_v59 }
 0xc7f   :  { %v6274_v26 = vpop.f32.mrf.mxu3 }
 0xc80   :  { %v6592_v34 = vpack.c.bf16 %v6274_v26, %v6274_v26 }
 0xc82   :  { %v6770_v48 = vunpack.c.l.b16 %v6592_v34 }
 0xc87   :  { %v6276_v18 = vpop.f32.mrf.mxu3 }
 0xc88   :  { %v6593_v38 = vpack.c.bf16 %v6276_v18, %v6276_v18  ;;  %v13998_v18 = vld [vmem:[#allocation4 + $0x578] sm:$0xff] }
 0xc89   :  { %7323 = vmatpush.bf16.msrb.mxu0 %v13998_v18 }
 0xc8a   :  { %v6771_v63 = vunpack.c.l.b16 %v6593_v38 }
 0xc8c   :  { %6318 = vmatmul.bf16.gmra.mxu3 %v13918_v3  ;;  %v6780_v57 = vpack.c.b16 %v6771_v63, %v6770_v48  ;;  %v13996_v48 = vld [vmem:[#allocation4 + $0x568] sm:$0xff] }
 0xc8d   :  { %7324 = vmatpush.bf16.msrb.mxu0 %v13997_v4 }
 0xc8e   :  { %6876 = vmatmul.bf16.gmra.mxu2 %v6780_v57 }
 0xc8f   :  { %v6279_v10 = vpop.f32.mrf.mxu3 }
 0xc90   :  { %v6594_v42 = vpack.c.bf16 %v6279_v10, %v6279_v10 }
 0xc91   :  { %7325 = vmatpush.bf16.msrb.mxu0 %v13996_v48 }
 0xc92   :  { %v6772_v35 = vunpack.c.l.b16 %v6594_v42  ;;  %v13925_v42 = vld [vmem:[#allocation2 + $0x570] sm:$0xff] }
 0xc97   :  { %v6281_v23 = vpop.f32.mrf.mxu3 }
 0xc98   :  { %v6595_v25 = vpack.c.bf16 %v6281_v23, %v6281_v23 }
 0xc9a   :  { %v6773_v51 = vunpack.c.l.b16 %v6595_v25  ;;  %v13995_v25 = vld [vmem:[#allocation4 + $0x560] sm:$0xff] }
 0xc9b   :  { %7326 = vmatpush.bf16.msrb.mxu0 %v13995_v25 }
 0xc9c   :  { %6323 = vmatmul.bf16.gmra.mxu3 %v13919_v54  ;;  %v6781_v15 = vpack.c.b16 %v6773_v51, %v6772_v35 }
 0xc9e   :  { %6881 = vmatmul.bf16.gmra.mxu2 %v6781_v15  ;;  %v13994_v15 = vld [vmem:[#allocation4 + $0x558] sm:$0xff] }
 0xc9f   :  { %v6284_v1 = vpop.f32.mrf.mxu3  ;;  %7327 = vmatpush.bf16.msrb.mxu0 %v13994_v15 }
 0xca0   :  { %v6596_v21 = vpack.c.bf16 %v6284_v1, %v6284_v1 }
 0xca2   :  { %v7065_v44 = vunpack.c.l.b16 %v6596_v21 }
 0xca7   :  { %v6286_v7 = vpop.f32.mrf.mxu3 }
 0xca8   :  { %v6597_v28 = vpack.c.bf16 %v6286_v7, %v6286_v7  ;;  %v13993_v7 = vld [vmem:[#allocation4 + $0x550] sm:$0xff] }
 0xca9   :  { %7328 = vmatpush.bf16.msrb.mxu0 %v13993_v7 }
 0xcaa   :  { %v7066_v53 = vunpack.c.l.b16 %v6597_v28  ;;  %v13992_v28 = vld [vmem:[#allocation4 + $0x548] sm:$0xff] }
 0xcac   :  { %v7081_v56 = vpack.c.b16 %v7066_v53, %v7065_v44  ;;  %6328 = vmatmul.bf16.gmra.mxu3 %v13920_v16 }
 0xcad   :  { %7329 = vmatpush.bf16.msrb.mxu0 %v13992_v28 }
 0xcae   :  { %7153 = vmatmul.bf16.vlgmr.msrb.gmra.mxu2 %v7081_v56 }
 0xcaf   :  { %v6289_v19 = vpop.f32.mrf.mxu3 }
 0xcb0   :  { %v6598_v6 = vpack.c.bf16 %v6289_v19, %v6289_v19  ;;  %v13991_v19 = vld [vmem:[#allocation4 + $0x540] sm:$0xff] }
 0xcb1   :  { %v15372_v39 = vpop.f32.mrf.mxu2  ;;  %7330 = vmatpush.bf16.msrb.mxu0 %v13991_v19 }
 0xcb2   :  { %v7067_v31 = vunpack.c.l.b16 %v6598_v6 }
 0xcb7   :  { %v6291_v27 = vpop.f32.mrf.mxu3 }
 0xcb8   :  { %v6599_v20 = vpack.c.bf16 %v6291_v27, %v6291_v27 }
 0xcb9   :  { %v15374_v17 = vpop.f32.mrf.mxu2 }
 0xcba   :  { %v7068_v52 = vunpack.c.l.b16 %v6599_v20 }
 0xcbc   :  { %6333 = vmatmul.bf16.gmra.mxu3 %v13921_v50  ;;  %v7082_v30 = vpack.c.b16 %v7068_v52, %v7067_v31  ;;  %v6992_v50 = vpop.f32.mrf.mxu0 }
 0xcbe   :  { %7158 = vmatmul.bf16.gmra.mxu2 %v7082_v30 }
 0xcbf   :  { %v6294_v61 = vpop.f32.mrf.mxu3 }
 0xcc0   :  { %v6600_v12 = vpack.c.bf16 %v6294_v61, %v6294_v61 }
 0xcc1   :  { %v15376_v22 = vpop.f32.mrf.mxu2 }
 0xcc2   :  { %v7069_v13 = vunpack.c.l.b16 %v6600_v12 }
 0xcc4   :  { %v15398_v61 = vpop.f32.mrf.mxu0 }
 0xcc7   :  { %v6296_v43 = vpop.f32.mrf.mxu3 }
 0xcc8   :  { %v6601_v29 = vpack.c.bf16 %v6296_v43, %v6296_v43 }
 0xcc9   :  { %v15378_v9 = vpop.f32.mrf.mxu2 }
 0xcca   :  { %v7070_v60 = vunpack.c.l.b16 %v6601_v29  ;;  %v13927_v29 = vld [vmem:[#allocation2 + $0x580] sm:$0xff] }
 0xccc   :  { %6338 = vmatmul.bf16.gmra.mxu3 %v13922_v62  ;;  %v7083_v55 = vpack.c.b16 %v7070_v60, %v7069_v13 }
 0xcce   :  { %7163 = vmatmul.bf16.gmra.mxu2 %v7083_v55 }
 0xccf   :  { %v6299_v46 = vpop.f32.mrf.mxu3 }
 0xcd0   :  { %v6602_v58 = vpack.c.bf16 %v6299_v46, %v6299_v46 }
 0xcd1   :  { %v15380_v37 = vpop.f32.mrf.mxu2 }
 0xcd2   :  { %v7071_v40 = vunpack.c.l.b16 %v6602_v58  ;;  %v6997_v58 = vpop.f32.mrf.mxu0 }
 0xcd7   :  { %v6301_v14 = vpop.f32.mrf.mxu3 }
 0xcd8   :  { %v6603_v45 = vpack.c.bf16 %v6301_v14, %v6301_v14 }
 0xcd9   :  { %v15382_v41 = vpop.f32.mrf.mxu2 }
 0xcda   :  { %v7072_v8 = vunpack.c.l.b16 %v6603_v45  ;;  %v14036_v45 = vld [vmem:[#allocation4 + $0x6a8] sm:$0xff] }
 0xcdb   :  { %8215 = vmatpush.bf16.msra.mxu1 %v14036_v45 }
 0xcdc   :  { %6343 = vmatmul.bf16.gmra.mxu3 %v13923_v24  ;;  %v7084_v2 = vpack.c.b16 %v7072_v8, %v7071_v40 }
 0xcde   :  { %7168 = vmatmul.bf16.gmra.mxu2 %v7084_v2  ;;  %v13928_v2 = vld [vmem:[#allocation2 + $0x588] sm:$0xff] }
 0xcdf   :  { %v6304_v36 = vpop.f32.mrf.mxu3 }
 0xce0   :  { %v6604_v49 = vpack.c.bf16 %v6304_v36, %v6304_v36 }
 0xce1   :  { %v15384_v33 = vpop.f32.mrf.mxu2 }
 0xce2   :  { %v7073_v32 = vunpack.c.l.b16 %v6604_v49 }
 0xce7   :  { %v6306_v5 = vpop.f32.mrf.mxu3 }
 0xce8   :  { %v6605_v59 = vpack.c.bf16 %v6306_v5, %v6306_v5 }
 0xce9   :  { %v15386_v26 = vpop.f32.mrf.mxu2 }
 0xcea   :  { %v7074_v11 = vunpack.c.l.b16 %v6605_v59  ;;  %v15406_v59 = vpop.f32.mrf.mxu0 }
 0xcec   :  { %6348 = vmatmul.bf16.gmra.mxu3 %v13924_v47  ;;  %v7085_v34 = vpack.c.b16 %v7074_v11, %v7073_v32  ;;  %v6993_v11 = vadd.f32 %v6992_v50, %v15372_v39  ;;  %v6998_v39 = vadd.f32 %v6997_v58, %v15376_v22 }
 0xcee   :  { %7173 = vmatmul.bf16.gmra.mxu2 %v7085_v34 }
 0xcef   :  { %v6309_v38 = vpop.f32.mrf.mxu3 }
 0xcf0   :  { %v6606_v63 = vpack.c.bf16 %v6309_v38, %v6309_v38 }
 0xcf1   :  { %v15388_v3 = vpop.f32.mrf.mxu2 }
 0xcf2   :  { %v7075_v54 = vunpack.c.l.b16 %v6606_v63  ;;  %v7002_v38 = vpop.f32.mrf.mxu0 }
 0xcf3   :  { %v7003_v50 = vadd.f32 %v7002_v38, %v15380_v37 }
 0xcf7   :  { %v6311_v57 = vpop.f32.mrf.mxu3 }
 0xcf8   :  { %v6607_v10 = vpack.c.bf16 %v6311_v57, %v6311_v57  ;;  %v13929_v57 = vld [vmem:[#allocation2 + $0x590] sm:$0xff] }
 0xcf9   :  { %v15390_v23 = vpop.f32.mrf.mxu2 }
 0xcfa   :  { %16668 = vst [vmem:[#allocation37_spill] sm:$0xff] %v15390_v23  ;;  %v7076_v35 = vunpack.c.l.b16 %v6607_v10 }
 0xcfc   :  { %6353 = vmatmul.bf16.gmra.mxu3 %v13925_v42  ;;  %v7086_v51 = vpack.c.b16 %v7076_v35, %v7075_v54  ;;  %v15413_v35 = vpop.f32.mrf.mxu0 }
 0xcfe   :  { %7178 = vmatmul.bf16.gmra.mxu2 %v7086_v51 }
 0xcff   :  { %v6314_v1 = vpop.f32.mrf.mxu3 }
 0xd00   :  { %v6608_v16 = vpack.c.bf16 %v6314_v1, %v6314_v1 }
 0xd01   :  { %v15392_v21 = vpop.f32.mrf.mxu2 }
 0xd02   :  { %v7077_v6 = vunpack.c.l.b16 %v6608_v16 }
 0xd07   :  { %v6316_v44 = vpop.f32.mrf.mxu3 }
 0xd08   :  { %v6609_v53 = vpack.c.bf16 %v6316_v44, %v6316_v44  ;;  %v13930_v44 = vld [vmem:[#allocation2 + $0x598] sm:$0xff] }
 0xd09   :  { %v15394_v56 = vpop.f32.mrf.mxu2 }
 0xd0a   :  { %v7078_v27 = vunpack.c.l.b16 %v6609_v53  ;;  %v7007_v53 = vpop.f32.mrf.mxu0 }
 0xd0b   :  { %v7008_v37 = vadd.f32 %v7007_v53, %v15384_v33 }
 0xd0c   :  { %6358 = vmatmul.bf16.gmra.mxu3 %v13926_v0  ;;  %v7087_v20 = vpack.c.b16 %v7078_v27, %v7077_v6 }
 0xd0e   :  { %7183 = vmatmul.bf16.gmra.mxu2 %v7087_v20 }
 0xd0f   :  { %v6319_v31 = vpop.f32.mrf.mxu3 }
 0xd10   :  { %v6610_v30 = vpack.c.bf16 %v6319_v31, %v6319_v31 }
 0xd11   :  { %v15396_v52 = vpop.f32.mrf.mxu2 }
 0xd12   :  { %v7079_v13 = vunpack.c.l.b16 %v6610_v30  ;;  %v15423_v30 = vpop.f32.mrf.mxu0 }
 0xd17   :  { %v6321_v12 = vpop.f32.mrf.mxu3 }
 0xd18   :  { %v6611_v43 = vpack.c.bf16 %v6321_v12, %v6321_v12 }
 0xd19   :  { %v15400_v62 = vpop.f32.mrf.mxu2 }
 0xd1a   :  { %v7080_v60 = vunpack.c.l.b16 %v6611_v43  ;;  %v7012_v45 = vpop.f32.mrf.mxu0 }
 0xd1b   :  { %v7013_v33 = vadd.f32 %v7012_v45, %v15388_v3  ;;  %v13934_v45 = vld [vmem:[#allocation2 + $0x5b8] sm:$0xff] }
 0xd1c   :  { %6363 = vmatmul.bf16.gmra.mxu3 %v13927_v29  ;;  %v7088_v55 = vpack.c.b16 %v7080_v60, %v7079_v13  ;;  %v13931_v13 = vld [vmem:[#allocation2 + $0x5a0] sm:$0xff] }
 0xd1e   :  { %7188 = vmatmul.bf16.gmra.mxu2 %v7088_v55 }
 0xd1f   :  { %v6324_v46 = vpop.f32.mrf.mxu3 }
 0xd20   :  { %v6612_v24 = vpack.c.bf16 %v6324_v46, %v6324_v46 }
 0xd21   :  { %v15402_v14 = vpop.f32.mrf.mxu2 }
 0xd22   :  { %v7243_v49 = vunpack.c.l.b16 %v6612_v24 }
 0xd27   :  { %v6326_v40 = vpop.f32.mrf.mxu3 }
 0xd28   :  { %v6613_v8 = vpack.c.bf16 %v6326_v40, %v6326_v40 }
 0xd29   :  { %v15404_v36 = vpop.f32.mrf.mxu2 }
 0xd2a   :  { %v7244_v5 = vunpack.c.l.b16 %v6613_v8 }
 0xd2c   :  { %v7259_v47 = vpack.c.b16 %v7244_v5, %v7243_v49  ;;  %6368 = vmatmul.bf16.gmra.mxu3 %v13928_v2  ;;  %v15430_v49 = vpop.f32.mrf.mxu0 }
 0xd2d   :  { %16669 = vst [vmem:[#allocation13_spill] sm:$0xff] %v15430_v49 }
 0xd2e   :  { %7331 = vmatmul.bf16.vlgmr.msrb.gmra.mxu0 %v7259_v47 }
 0xd2f   :  { %v6329_v32 = vpop.f32.mrf.mxu3 }
 0xd30   :  { %v6614_v4 = vpack.c.bf16 %v6329_v32, %v6329_v32  ;;  %v13932_v32 = vld [vmem:[#allocation2 + $0x5a8] sm:$0xff] }
 0xd31   :  { %v7154_v34 = vpop.f32.mrf.mxu2 }
 0xd32   :  { %v15409_v18 = vadd.f32 %v7154_v34, %v6993_v11  ;;  %v7245_v42 = vunpack.c.l.b16 %v6614_v4 }
 0xd37   :  { %v6331_v48 = vpop.f32.mrf.mxu3 }
 0xd38   :  { %v6615_v63 = vpack.c.bf16 %v6331_v48, %v6331_v48  ;;  %v14006_v48 = vld [vmem:[#allocation4 + $0x5b8] sm:$0xff] }
 0xd39   :  { %v15411_v10 = vpop.f32.mrf.mxu2  ;;  %7501 = vmatpush.bf16.msra.mxu2 %v14006_v48 }
 0xd3a   :  { %v7246_v25 = vunpack.c.l.b16 %v6615_v63 }
 0xd3c   :  { %6373 = vmatmul.bf16.gmra.mxu3 %v13929_v57  ;;  %v7260_v54 = vpack.c.b16 %v7246_v25, %v7245_v42  ;;  %v7017_v57 = vpop.f32.mrf.mxu0  ;;  %v14005_v25 = vld [vmem:[#allocation4 + $0x5b0] sm:$0xff] }
 0xd3d   :  { %7502 = vmatpush.bf16.msra.mxu2 %v14005_v25 }
 0xd3e   :  { %7336 = vmatmul.bf16.gmra.mxu0 %v7260_v54 }
 0xd3f   :  { %v6334_v51 = vpop.f32.mrf.mxu3 }
 0xd40   :  { %v6616_v7 = vpack.c.bf16 %v6334_v51, %v6334_v51  ;;  %v14004_v51 = vld [vmem:[#allocation4 + $0x5a8] sm:$0xff] }
 0xd41   :  { %v7159_v15 = vpop.f32.mrf.mxu2  ;;  %7503 = vmatpush.bf16.msra.mxu2 %v14004_v51 }
 0xd42   :  { %v15416_v1 = vadd.f32 %v7159_v15, %v6998_v39  ;;  %v7247_v19 = vunpack.c.l.b16 %v6616_v7 }
 0xd47   :  { %v6336_v28 = vpop.f32.mrf.mxu3 }
 0xd48   :  { %v6617_v16 = vpack.c.bf16 %v6336_v28, %v6336_v28  ;;  %v13933_v28 = vld [vmem:[#allocation2 + $0x5b0] sm:$0xff] }
 0xd49   :  { %v15418_v0 = vpop.f32.mrf.mxu2 }
 0xd4a   :  { %v7248_v6 = vunpack.c.l.b16 %v6617_v16 }
 0xd4c   :  { %6378 = vmatmul.bf16.gmra.mxu3 %v13930_v44  ;;  %v7261_v27 = vpack.c.b16 %v7248_v6, %v7247_v19  ;;  %v14003_v44 = vld [vmem:[#allocation4 + $0x5a0] sm:$0xff]  ;;  %v15439_v6 = vpop.f32.mrf.mxu0 }
 0xd4d   :  { %7504 = vmatpush.bf16.msra.mxu2 %v14003_v44 }
 0xd4e   :  { %7341 = vmatmul.bf16.gmra.mxu0 %v7261_v27  ;;  %v14002_v27 = vld [vmem:[#allocation4 + $0x598] sm:$0xff] }
 0xd4f   :  { %v6339_v20 = vpop.f32.mrf.mxu3 }
 0xd50   :  { %v6618_v12 = vpack.c.bf16 %v6339_v20, %v6339_v20 }
 0xd51   :  { %v7164_v31 = vpop.f32.mrf.mxu2  ;;  %7505 = vmatpush.bf16.msra.mxu2 %v14002_v27 }
 0xd52   :  { %v15421_v22 = vadd.f32 %v7164_v31, %v7003_v50  ;;  %v7249_v55 = vunpack.c.l.b16 %v6618_v12  ;;  %v7018_v50 = vadd.f32 %v7017_v57, %v15392_v21  ;;  %v14001_v12 = vld [vmem:[#allocation4 + $0x590] sm:$0xff] }
 0xd55   :  { %7506 = vmatpush.bf16.msra.mxu2 %v14001_v12 }
 0xd57   :  { %v6341_v43 = vpop.f32.mrf.mxu3 }
 0xd58   :  { %v6619_v29 = vpack.c.bf16 %v6341_v43, %v6341_v43 }
 0xd59   :  { %v15425_v60 = vpop.f32.mrf.mxu2 }
 0xd5a   :  { %v7250_v46 = vunpack.c.l.b16 %v6619_v29  ;;  %v7022_v29 = vpop.f32.mrf.mxu0 }
 0xd5c   :  { %6383 = vmatmul.bf16.gmra.mxu3 %v13931_v13  ;;  %v7262_v58 = vpack.c.b16 %v7250_v46, %v7249_v55  ;;  %v14000_v13 = vld [vmem:[#allocation4 + $0x588] sm:$0xff] }
 0xd5d   :  { %7507 = vmatpush.bf16.msra.mxu2 %v14000_v13 }
 0xd5e   :  { %7346 = vmatmul.bf16.gmra.mxu0 %v7262_v58 }
 0xd5f   :  { %v6344_v24 = vpop.f32.mrf.mxu3 }
 0xd60   :  { %v6620_v2 = vpack.c.bf16 %v6344_v24, %v6344_v24 }
 0xd61   :  { %v7169_v40 = vpop.f32.mrf.mxu2 }
 0xd62   :  { %v15428_v8 = vadd.f32 %v7169_v40, %v7008_v37  ;;  %v7251_v34 = vunpack.c.l.b16 %v6620_v2  ;;  %v13999_v37 = vld [vmem:[#allocation4 + $0x580] sm:$0xff] }
 0xd63   :  { %7508 = vmatpush.bf16.msra.mxu2 %v13999_v37  ;;  %v13937_v37 = vld [vmem:[#allocation2 + $0x5d0] sm:$0xff] }
 0xd67   :  { %v6346_v5 = vpop.f32.mrf.mxu3 }
 0xd68   :  { %v6621_v47 = vpack.c.bf16 %v6346_v5, %v6346_v5  ;;  %v15446_v5 = vpop.f32.mrf.mxu0 }
 0xd69   :  { %v15432_v11 = vpop.f32.mrf.mxu2 }
 0xd6a   :  { %v7252_v38 = vunpack.c.l.b16 %v6621_v47 }
 0xd6c   :  { %6388 = vmatmul.bf16.gmra.mxu3 %v13932_v32  ;;  %v7263_v4 = vpack.c.b16 %v7252_v38, %v7251_v34  ;;  %v7023_v32 = vadd.f32 %v7022_v29, %v15396_v52 }
 0xd6e   :  { %7351 = vmatmul.bf16.gmra.mxu0 %v7263_v4 }
 0xd6f   :  { %v6349_v63 = vpop.f32.mrf.mxu3 }
 0xd70   :  { %v6622_v39 = vpack.c.bf16 %v6349_v63, %v6349_v63  ;;  %v7027_v57 = vpop.f32.mrf.mxu0 }
 0xd71   :  { %v7174_v42 = vpop.f32.mrf.mxu2  ;;  %v7028_v52 = vadd.f32 %v7027_v57, %v15402_v14 }
 0xd72   :  { %v15435_v54 = vadd.f32 %v7174_v42, %v7013_v33  ;;  %v7253_v53 = vunpack.c.l.b16 %v6622_v39  ;;  %v13935_v33 = vld [vmem:[#allocation2 + $0x5c0] sm:$0xff] }
 0xd73   :  { %v14035_v39 = vld [vmem:[#allocation4 + $0x6a0] sm:$0xff] }
 0xd74   :  { %8216 = vmatpush.bf16.msra.mxu1 %v14035_v39 }
 0xd77   :  { %v6351_v15 = vpop.f32.mrf.mxu3 }
 0xd78   :  { %v6623_v7 = vpack.c.bf16 %v6351_v15, %v6351_v15 }
 0xd79   :  { %v15437_v16 = vpop.f32.mrf.mxu2 }
 0xd7a   :  { %16670 = vst [vmem:[#allocation18_spill] sm:$0xff] %v15437_v16  ;;  %v7254_v19 = vunpack.c.l.b16 %v6623_v7 }
 0xd7c   :  { %6393 = vmatmul.bf16.gmra.mxu3 %v13933_v28  ;;  %v7264_v3 = vpack.c.b16 %v7254_v19, %v7253_v53  ;;  %v15456_v53 = vpop.f32.mrf.mxu0 }
 0xd7d   :  { %16672 = vst [vmem:[#allocation29_spill] sm:$0xff] %v15456_v53 }
 0xd7e   :  { %7356 = vmatmul.bf16.gmra.mxu0 %v7264_v3 }
 0xd7f   :  { %v6354_v20 = vpop.f32.mrf.mxu3 }
 0xd80   :  { %v6624_v55 = vpack.c.bf16 %v6354_v20, %v6354_v20  ;;  %v13936_v20 = vld [vmem:[#allocation2 + $0x5c8] sm:$0xff] }
 0xd81   :  { %v7179_v31 = vpop.f32.mrf.mxu2 }
 0xd82   :  { %v15442_v43 = vadd.f32 %v7179_v31, %v7018_v50  ;;  %v7255_v40 = vunpack.c.l.b16 %v6624_v55 }
 0xd87   :  { %v6356_v46 = vpop.f32.mrf.mxu3 }
 0xd88   :  { %v6625_v58 = vpack.c.bf16 %v6356_v46, %v6356_v46 }
 0xd89   :  { %v15444_v24 = vpop.f32.mrf.mxu2 }
 0xd8a   :  { %16671 = vst [vmem:[#allocation15_spill] sm:$0xff] %v15444_v24  ;;  %v7256_v2 = vunpack.c.l.b16 %v6625_v58 }
 0xd8c   :  { %6398 = vmatmul.bf16.gmra.mxu3 %v13934_v45  ;;  %v7265_v21 = vpack.c.b16 %v7256_v2, %v7255_v40 }
 0xd8e   :  { %7361 = vmatmul.bf16.gmra.mxu0 %v7265_v21 }
 0xd8f   :  { %v6359_v47 = vpop.f32.mrf.mxu3 }
 0xd90   :  { %v6626_v4 = vpack.c.bf16 %v6359_v47, %v6359_v47 }
 0xd91   :  { %v7184_v34 = vpop.f32.mrf.mxu2 }
 0xd92   :  { %v15449_v38 = vadd.f32 %v7184_v34, %v7023_v32  ;;  %v7257_v25 = vunpack.c.l.b16 %v6626_v4 }
 0xd97   :  { %v6361_v48 = vpop.f32.mrf.mxu3 }
 0xd98   :  { %v6627_v63 = vpack.c.bf16 %v6361_v48, %v6361_v48 }
 0xd99   :  { %v15451_v42 = vpop.f32.mrf.mxu2 }
 0xd9a   :  { %v7258_v51 = vunpack.c.l.b16 %v6627_v63 }
 0xd9c   :  { %6403 = vmatmul.bf16.gmra.mxu3 %v13935_v33  ;;  %v7266_v15 = vpack.c.b16 %v7258_v51, %v7257_v25  ;;  %v13938_v33 = vld [vmem:[#allocation2 + $0x5d8] sm:$0xff] }
 0xd9e   :  { %7366 = vmatmul.bf16.gmra.mxu0 %v7266_v15 }
 0xd9f   :  { %v6364_v7 = vpop.f32.mrf.mxu3 }
 0xda0   :  { %v6628_v19 = vpack.c.bf16 %v6364_v7, %v6364_v7 }
 0xda1   :  { %v7189_v28 = vpop.f32.mrf.mxu2 }
 0xda2   :  { %v15454_v44 = vadd.f32 %v7189_v28, %v7028_v52  ;;  %v7421_v50 = vunpack.c.l.b16 %v6628_v19 }
 0xda7   :  { %v6366_v3 = vpop.f32.mrf.mxu3 }
 0xda8   :  { %v6629_v27 = vpack.c.bf16 %v6366_v3, %v6366_v3  ;;  %v13939_v3 = vld [vmem:[#allocation2 + $0x5e0] sm:$0xff] }
 0xdaa   :  { %v7422_v31 = vunpack.c.l.b16 %v6629_v27 }
 0xdab   :  { %v7332_v12 = vpop.f32.mrf.mxu0 }
 0xdac   :  { %v7437_v29 = vpack.c.b16 %v7422_v31, %v7421_v50  ;;  %v15459_v13 = vadd.f32 %v7332_v12, %v15409_v18  ;;  %6408 = vmatmul.bf16.gmra.mxu3 %v13936_v20 }
 0xdae   :  { %7509 = vmatmul.bf16.vlgmr.msra.gmra.mxu2 %v7437_v29 }
 0xdaf   :  { %v6369_v55 = vpop.f32.mrf.mxu3 }
 0xdb0   :  { %v6630_v46 = vpack.c.bf16 %v6369_v55, %v6369_v55 }
 0xdb2   :  { %v7423_v40 = vunpack.c.l.b16 %v6630_v46 }
 0xdb3   :  { %v15461_v14 = vpop.f32.mrf.mxu0 }
 0xdb7   :  { %v6371_v58 = vpop.f32.mrf.mxu3 }
 0xdb8   :  { %v6631_v45 = vpack.c.bf16 %v6371_v58, %v6371_v58 }
 0xdba   :  { %v7424_v2 = vunpack.c.l.b16 %v6631_v45  ;;  %v13940_v45 = vld [vmem:[#allocation2 + $0x5e8] sm:$0xff] }
 0xdbb   :  { %v7337_v21 = vpop.f32.mrf.mxu0 }
 0xdbc   :  { %v15464_v47 = vadd.f32 %v7337_v21, %v15416_v1  ;;  %6413 = vmatmul.bf16.gmra.mxu3 %v13937_v37  ;;  %v7438_v32 = vpack.c.b16 %v7424_v2, %v7423_v40 }
 0xdbe   :  { %7514 = vmatmul.bf16.gmra.mxu2 %v7438_v32 }
 0xdbf   :  { %v6374_v18 = vpop.f32.mrf.mxu3 }
 0xdc0   :  { %v6632_v4 = vpack.c.bf16 %v6374_v18, %v6374_v18 }
 0xdc2   :  { %v7425_v57 = vunpack.c.l.b16 %v6632_v4  ;;  %v14013_v4 = vld [vmem:[#allocation4 + $0x5f0] sm:$0xff] }
 0xdc3   :  { %v15466_v34 = vpop.f32.mrf.mxu0 }
 0xdc7   :  { %v6376_v48 = vpop.f32.mrf.mxu3 }
 0xdc8   :  { %v6633_v63 = vpack.c.bf16 %v6376_v48, %v6376_v48 }
 0xdca   :  { %v7426_v25 = vunpack.c.l.b16 %v6633_v63  ;;  %v14012_v63 = vld [vmem:[#allocation4 + $0x5e8] sm:$0xff] }
 0xdcb   :  { %v7342_v51 = vpop.f32.mrf.mxu0 }
 0xdcc   :  { %v15469_v39 = vadd.f32 %v7342_v51, %v15421_v22  ;;  %6418 = vmatmul.bf16.gmra.mxu3 %v13938_v33  ;;  %v7439_v15 = vpack.c.b16 %v7426_v25, %v7425_v57  ;;  %v13941_v51 = vld [vmem:[#allocation2 + $0x5f0] sm:$0xff] }
 0xdce   :  { %7519 = vmatmul.bf16.gmra.mxu2 %v7439_v15  ;;  %v14011_v15 = vld [vmem:[#allocation4 + $0x5e0] sm:$0xff] }
 0xdcf   :  { %v6379_v1 = vpop.f32.mrf.mxu3 }
 0xdd0   :  { %v6634_v52 = vpack.c.bf16 %v6379_v1, %v6379_v1 }
 0xdd2   :  { %v7427_v27 = vunpack.c.l.b16 %v6634_v52 }
 0xdd3   :  { %v15471_v7 = vpop.f32.mrf.mxu0 }
 0xdd7   :  { %v6381_v28 = vpop.f32.mrf.mxu3 }
 0xdd8   :  { %v6635_v19 = vpack.c.bf16 %v6381_v28, %v6381_v28 }
 0xdda   :  { %v7428_v20 = vunpack.c.l.b16 %v6635_v19 }
 0xddb   :  { %v7347_v50 = vpop.f32.mrf.mxu0 }
 0xddc   :  { %v15474_v31 = vadd.f32 %v7347_v50, %v15428_v8  ;;  %6423 = vmatmul.bf16.gmra.mxu3 %v13939_v3  ;;  %v7440_v12 = vpack.c.b16 %v7428_v20, %v7427_v27  ;;  %v14014_v8 = vld [vmem:[#allocation4 + $0x5f8] sm:$0xff]  ;;  %v14009_v20 = vld [vmem:[#allocation4 + $0x5d0] sm:$0xff] }
 0xddd   :  { %7679 = vmatpush.bf16.msra.mxu0 %v14014_v8  ;;  %v14010_v3 = vld [vmem:[#allocation4 + $0x5d8] sm:$0xff] }
 0xdde   :  { %7524 = vmatmul.bf16.gmra.mxu2 %v7440_v12  ;;  %v14008_v12 = vld [vmem:[#allocation4 + $0x5c8] sm:$0xff] }
 0xddf   :  { %v6384_v22 = vpop.f32.mrf.mxu3 }
 0xde0   :  { %v6636_v55 = vpack.c.bf16 %v6384_v22, %v6384_v22 }
 0xde1   :  { %7680 = vmatpush.bf16.msra.mxu0 %v14013_v4 }
 0xde2   :  { %v7429_v37 = vunpack.c.l.b16 %v6636_v55 }
 0xde3   :  { %v15476_v29 = vpop.f32.mrf.mxu0 }
 0xde5   :  { %7681 = vmatpush.bf16.msra.mxu0 %v14012_v63 }
 0xde7   :  { %v6386_v46 = vpop.f32.mrf.mxu3 }
 0xde8   :  { %v6637_v58 = vpack.c.bf16 %v6386_v46, %v6386_v46 }
 0xde9   :  { %7682 = vmatpush.bf16.msra.mxu0 %v14011_v15 }
 0xdea   :  { %v7430_v40 = vunpack.c.l.b16 %v6637_v58  ;;  %v13942_v58 = vld [vmem:[#allocation2 + $0x5f8] sm:$0xff] }
 0xdeb   :  { %v7352_v2 = vpop.f32.mrf.mxu0 }
 0xdec   :  { %v15479_v21 = vadd.f32 %v7352_v2, %v15435_v54  ;;  %6428 = vmatmul.bf16.gmra.mxu3 %v13940_v45  ;;  %v7441_v32 = vpack.c.b16 %v7430_v40, %v7429_v37  ;;  %v14007_v45 = vld [vmem:[#allocation4 + $0x5c0] sm:$0xff] }
 0xded   :  { %7683 = vmatpush.bf16.msra.mxu0 %v14010_v3 }
 0xdee   :  { %7529 = vmatmul.bf16.gmra.mxu2 %v7441_v32 }
 0xdef   :  { %v6389_v18 = vpop.f32.mrf.mxu3 }
 0xdf0   :  { %v6638_v33 = vpack.c.bf16 %v6389_v18, %v6389_v18  ;;  %v14034_v18 = vld [vmem:[#allocation4 + $0x698] sm:$0xff] }
 0xdf1   :  { %7684 = vmatpush.bf16.msra.mxu0 %v14009_v20  ;;  %8217 = vmatpush.bf16.msra.mxu1 %v14034_v18  ;;  %v13944_v20 = vld [vmem:[#allocation2 + $0x608] sm:$0xff] }
 0xdf2   :  { %v7431_v1 = vunpack.c.l.b16 %v6638_v33 }
 0xdf3   :  { %v15481_v48 = vpop.f32.mrf.mxu0 }
 0xdf4   :  { %16673 = vst [vmem:[#allocation30_spill] sm:$0xff] %v15481_v48 }
 0xdf5   :  { %7685 = vmatpush.bf16.msra.mxu0 %v14008_v12  ;;  %v15496_v12 = vpop.f32.mrf.mxu2 }
 0xdf6   :  { %16675 = vst [vmem:[#allocation14_spill] sm:$0xff] %v15496_v12 }
 0xdf7   :  { %v6391_v57 = vpop.f32.mrf.mxu3 }
 0xdf8   :  { %v6639_v25 = vpack.c.bf16 %v6391_v57, %v6391_v57 }
 0xdf9   :  { %7686 = vmatpush.bf16.msra.mxu0 %v14007_v45 }
 0xdfa   :  { %v7432_v54 = vunpack.c.l.b16 %v6639_v25  ;;  %v13943_v25 = vld [vmem:[#allocation2 + $0x600] sm:$0xff] }
 0xdfb   :  { %v7357_v52 = vpop.f32.mrf.mxu0 }
 0xdfc   :  { %v15484_v28 = vadd.f32 %v7357_v52, %v15442_v43  ;;  %6433 = vmatmul.bf16.gmra.mxu3 %v13941_v51  ;;  %v7442_v19 = vpack.c.b16 %v7432_v54, %v7431_v1 }
 0xdfe   :  { %7534 = vmatmul.bf16.gmra.mxu2 %v7442_v19 }
 0xdff   :  { %v6394_v27 = vpop.f32.mrf.mxu3 }
 0xe00   :  { %v6640_v22 = vpack.c.bf16 %v6394_v27, %v6394_v27 }
 0xe02   :  { %v7433_v37 = vunpack.c.l.b16 %v6640_v22 }
 0xe03   :  { %v15486_v50 = vpop.f32.mrf.mxu0 }
 0xe04   :  { %16674 = vst [vmem:[#allocation31_spill] sm:$0xff] %v15486_v50 }
 0xe07   :  { %v6396_v55 = vpop.f32.mrf.mxu3 }
 0xe08   :  { %v6641_v46 = vpack.c.bf16 %v6396_v55, %v6396_v55 }
 0xe0a   :  { %v7434_v43 = vunpack.c.l.b16 %v6641_v46 }
 0xe0b   :  { %v7362_v40 = vpop.f32.mrf.mxu0 }
 0xe0c   :  { %v15489_v2 = vadd.f32 %v7362_v40, %v15449_v38  ;;  %6438 = vmatmul.bf16.gmra.mxu3 %v13942_v58  ;;  %v7443_v32 = vpack.c.b16 %v7434_v43, %v7433_v37 }
 0xe0e   :  { %7539 = vmatmul.bf16.gmra.mxu2 %v7443_v32  ;;  %v13945_v32 = vld [vmem:[#allocation2 + $0x610] sm:$0xff] }
 0xe0f   :  { %v6399_v8 = vpop.f32.mrf.mxu3 }
 0xe10   :  { %v6642_v63 = vpack.c.bf16 %v6399_v8, %v6399_v8 }
 0xe12   :  { %v7435_v51 = vunpack.c.l.b16 %v6642_v63 }
 0xe13   :  { %v15491_v4 = vpop.f32.mrf.mxu0 }
 0xe17   :  { %v6401_v33 = vpop.f32.mrf.mxu3 }
 0xe18   :  { %v6643_v57 = vpack.c.bf16 %v6401_v33, %v6401_v33 }
 0xe1a   :  { %v7436_v15 = vunpack.c.l.b16 %v6643_v57 }
 0xe1b   :  { %v7367_v1 = vpop.f32.mrf.mxu0 }
 0xe1c   :  { %v15494_v54 = vadd.f32 %v7367_v1, %v15454_v44  ;;  %6443 = vmatmul.bf16.gmra.mxu3 %v13943_v25  ;;  %v7444_v38 = vpack.c.b16 %v7436_v15, %v7435_v51 }
 0xe1e   :  { %7544 = vmatmul.bf16.gmra.mxu2 %v7444_v38  ;;  %v13946_v38 = vld [vmem:[#allocation2 + $0x618] sm:$0xff] }
 0xe1f   :  { %v6404_v52 = vpop.f32.mrf.mxu3 }
 0xe20   :  { %v6644_v19 = vpack.c.bf16 %v6404_v52, %v6404_v52 }
 0xe22   :  { %v7599_v22 = vunpack.c.l.b16 %v6644_v19 }
 0xe27   :  { %v6406_v3 = vpop.f32.mrf.mxu3 }
 0xe28   :  { %v6645_v27 = vpack.c.bf16 %v6406_v3, %v6406_v3 }
 0xe2a   :  { %v7600_v55 = vunpack.c.l.b16 %v6645_v27 }
 0xe2c   :  { %v7615_v46 = vpack.c.b16 %v7600_v55, %v7599_v22  ;;  %6448 = vmatmul.bf16.gmra.mxu3 %v13944_v20 }
 0xe2e   :  { %7687 = vmatmul.bf16.vlgmr.msra.gmra.mxu0 %v7615_v46 }
 0xe2f   :  { %v6409_v58 = vpop.f32.mrf.mxu3 }
 0xe30   :  { %v6646_v37 = vpack.c.bf16 %v6409_v58, %v6409_v58 }
 0xe31   :  { %v7510_v45 = vpop.f32.mrf.mxu2 }
 0xe32   :  { %v15499_v44 = vadd.f32 %v7510_v45, %v15459_v13  ;;  %v7601_v18 = vunpack.c.l.b16 %v6646_v37  ;;  %v13947_v45 = vld [vmem:[#allocation2 + $0x620] sm:$0xff] }
 0xe37   :  { %v6411_v43 = vpop.f32.mrf.mxu3 }
 0xe38   :  { %v6647_v40 = vpack.c.bf16 %v6411_v43, %v6411_v43 }
 0xe39   :  { %v15501_v8 = vpop.f32.mrf.mxu2 }
 0xe3a   :  { %v7602_v63 = vunpack.c.l.b16 %v6647_v40 }
 0xe3c   :  { %6453 = vmatmul.bf16.gmra.mxu3 %v13945_v32  ;;  %v7616_v33 = vpack.c.b16 %v7602_v63, %v7601_v18 }
 0xe3e   :  { %7692 = vmatmul.bf16.gmra.mxu0 %v7616_v33 }
 0xe3f   :  { %v6414_v57 = vpop.f32.mrf.mxu3 }
 0xe40   :  { %v6648_v15 = vpack.c.bf16 %v6414_v57, %v6414_v57 }
 0xe41   :  { %v7515_v25 = vpop.f32.mrf.mxu2 }
 0xe42   :  { %v15504_v51 = vadd.f32 %v7515_v25, %v15464_v47  ;;  %v7603_v19 = vunpack.c.l.b16 %v6648_v15  ;;  %v13948_v15 = vld [vmem:[#allocation2 + $0x628] sm:$0xff] }
 0xe47   :  { %v6416_v1 = vpop.f32.mrf.mxu3 }
 0xe48   :  { %v6649_v13 = vpack.c.bf16 %v6416_v1, %v6416_v1 }
 0xe49   :  { %v15506_v52 = vpop.f32.mrf.mxu2 }
 0xe4a   :  { %v7604_v3 = vunpack.c.l.b16 %v6649_v13 }
 0xe4c   :  { %6458 = vmatmul.bf16.gmra.mxu3 %v13946_v38  ;;  %v7617_v27 = vpack.c.b16 %v7604_v3, %v7603_v19  ;;  %v14022_v3 = vld [vmem:[#allocation4 + $0x638] sm:$0xff] }
 0xe4d   :  { %7857 = vmatpush.bf16.msrb.mxu2 %v14022_v3 }
 0xe4e   :  { %7697 = vmatmul.bf16.gmra.mxu0 %v7617_v27 }
 0xe4f   :  { %v6419_v20 = vpop.f32.mrf.mxu3 }
 0xe50   :  { %v6650_v46 = vpack.c.bf16 %v6419_v20, %v6419_v20 }
 0xe51   :  { %v7520_v22 = vpop.f32.mrf.mxu2 }
 0xe52   :  { %v15509_v55 = vadd.f32 %v7520_v22, %v15469_v39  ;;  %v7605_v43 = vunpack.c.l.b16 %v6650_v46  ;;  %v14021_v22 = vld [vmem:[#allocation4 + $0x630] sm:$0xff] }
 0xe53   :  { %7858 = vmatpush.bf16.msrb.mxu2 %v14021_v22 }
 0xe57   :  { %v6421_v58 = vpop.f32.mrf.mxu3 }
 0xe58   :  { %v6651_v47 = vpack.c.bf16 %v6421_v58, %v6421_v58 }
 0xe59   :  { %v15511_v37 = vpop.f32.mrf.mxu2 }
 0xe5a   :  { %v7606_v40 = vunpack.c.l.b16 %v6651_v47 }
 0xe5c   :  { %6463 = vmatmul.bf16.gmra.mxu3 %v13947_v45  ;;  %v7618_v32 = vpack.c.b16 %v7606_v40, %v7605_v43  ;;  %v13949_v43 = vld [vmem:[#allocation2 + $0x630] sm:$0xff] }
 0xe5e   :  { %7702 = vmatmul.bf16.gmra.mxu0 %v7618_v32  ;;  %v14019_v32 = vld [vmem:[#allocation4 + $0x620] sm:$0xff] }
 0xe5f   :  { %v6424_v18 = vpop.f32.mrf.mxu3 }
 0xe60   :  { %v6652_v57 = vpack.c.bf16 %v6424_v18, %v6424_v18 }
 0xe61   :  { %v7525_v63 = vpop.f32.mrf.mxu2 }
 0xe62   :  { %v15514_v33 = vadd.f32 %v7525_v63, %v15474_v31  ;;  %v7607_v13 = vunpack.c.l.b16 %v6652_v57  ;;  %v14020_v31 = vld [vmem:[#allocation4 + $0x628] sm:$0xff] }
 0xe63   :  { %7859 = vmatpush.bf16.msrb.mxu2 %v14020_v31  ;;  %v14015_v31 = vld [vmem:[#allocation4 + $0x600] sm:$0xff] }
 0xe67   :  { %v6426_v25 = vpop.f32.mrf.mxu3  ;;  %7860 = vmatpush.bf16.msrb.mxu2 %v14019_v32 }
 0xe68   :  { %v6653_v39 = vpack.c.bf16 %v6426_v25, %v6426_v25  ;;  %v14018_v25 = vld [vmem:[#allocation4 + $0x618] sm:$0xff] }
 0xe69   :  { %v15516_v1 = vpop.f32.mrf.mxu2 }
 0xe6a   :  { %v7608_v38 = vunpack.c.l.b16 %v6653_v39 }
 0xe6b   :  { %7861 = vmatpush.bf16.msrb.mxu2 %v14018_v25 }
 0xe6c   :  { %6468 = vmatmul.bf16.gmra.mxu3 %v13948_v15  ;;  %v7619_v19 = vpack.c.b16 %v7608_v38, %v7607_v13  ;;  %v14017_v15 = vld [vmem:[#allocation4 + $0x610] sm:$0xff]  ;;  %v14016_v38 = vld [vmem:[#allocation4 + $0x608] sm:$0xff] }
 0xe6e   :  { %7707 = vmatmul.bf16.gmra.mxu0 %v7619_v19 }
 0xe6f   :  { %v6429_v27 = vpop.f32.mrf.mxu3  ;;  %7862 = vmatpush.bf16.msrb.mxu2 %v14017_v15 }
 0xe70   :  { %v6654_v58 = vpack.c.bf16 %v6429_v27, %v6429_v27 }
 0xe71   :  { %v7530_v20 = vpop.f32.mrf.mxu2 }
 0xe72   :  { %v15519_v46 = vadd.f32 %v7530_v20, %v15479_v21  ;;  %v7609_v18 = vunpack.c.l.b16 %v6654_v58  ;;  %v13950_v20 = vld [vmem:[#allocation2 + $0x638] sm:$0xff] }
 0xe73   :  { %7863 = vmatpush.bf16.msrb.mxu2 %v14016_v38 }
 0xe77   :  { %v6431_v47 = vpop.f32.mrf.mxu3  ;;  %7864 = vmatpush.bf16.msrb.mxu2 %v14015_v31  ;;  %v15536_v31 = vpop.f32.mrf.mxu0 }
 0xe78   :  { %v6655_v45 = vpack.c.bf16 %v6431_v47, %v6431_v47  ;;  %16679 = vst [vmem:[#allocation35_spill] sm:$0xff] %v15536_v31 }
 0xe79   :  { %v15521_v40 = vpop.f32.mrf.mxu2 }
 0xe7a   :  { %16676 = vst [vmem:[#allocation27_spill] sm:$0xff] %v15521_v40  ;;  %v7610_v63 = vunpack.c.l.b16 %v6655_v45 }
 0xe7c   :  { %6473 = vmatmul.bf16.gmra.mxu3 %v13949_v43  ;;  %v7620_v57 = vpack.c.b16 %v7610_v63, %v7609_v18  ;;  %v14033_v43 = vld [vmem:[#allocation4 + $0x690] sm:$0xff] }
 0xe7d   :  { %8218 = vmatpush.bf16.msra.mxu1 %v14033_v43 }
 0xe7e   :  { %7712 = vmatmul.bf16.gmra.mxu0 %v7620_v57 }
 0xe7f   :  { %v6434_v39 = vpop.f32.mrf.mxu3 }
 0xe80   :  { %v6656_v19 = vpack.c.bf16 %v6434_v39, %v6434_v39  ;;  %v13951_v39 = vld [vmem:[#allocation2 + $0x640] sm:$0xff] }
 0xe81   :  { %v7535_v21 = vpop.f32.mrf.mxu2 }
 0xe82   :  { %v15524_v13 = vadd.f32 %v7535_v21, %v15484_v28  ;;  %v7611_v58 = vunpack.c.l.b16 %v6656_v19 }
 0xe87   :  { %v6436_v3 = vpop.f32.mrf.mxu3 }
 0xe88   :  { %v6657_v27 = vpack.c.bf16 %v6436_v3, %v6436_v3 }
 0xe89   :  { %v15526_v22 = vpop.f32.mrf.mxu2 }
 0xe8a   :  { %16677 = vst [vmem:[#allocation17_spill] sm:$0xff] %v15526_v22  ;;  %v7612_v47 = vunpack.c.l.b16 %v6657_v27 }
 0xe8c   :  { %6478 = vmatmul.bf16.gmra.mxu3 %v13950_v20  ;;  %v7621_v45 = vpack.c.b16 %v7612_v47, %v7611_v58 }
 0xe8e   :  { %7717 = vmatmul.bf16.gmra.mxu0 %v7621_v45  ;;  %v13952_v45 = vld [vmem:[#allocation2 + $0x648] sm:$0xff] }
 0xe8f   :  { %v6439_v28 = vpop.f32.mrf.mxu3 }
 0xe90   :  { %v6658_v63 = vpack.c.bf16 %v6439_v28, %v6439_v28 }
 0xe91   :  { %v7540_v32 = vpop.f32.mrf.mxu2 }
 0xe92   :  { %v15529_v18 = vadd.f32 %v7540_v32, %v15489_v2  ;;  %v7613_v15 = vunpack.c.l.b16 %v6658_v63 }
 0xe97   :  { %v6441_v57 = vpop.f32.mrf.mxu3 }
 0xe98   :  { %v6659_v25 = vpack.c.bf16 %v6441_v57, %v6441_v57 }
 0xe99   :  { %v15531_v21 = vpop.f32.mrf.mxu2 }
 0xe9a   :  { %16678 = vst [vmem:[#allocation21_spill] sm:$0xff] %v15531_v21  ;;  %v7614_v38 = vunpack.c.l.b16 %v6659_v25 }
 0xe9c   :  { %6483 = vmatmul.bf16.gmra.mxu3 %v13951_v39  ;;  %v7622_v19 = vpack.c.b16 %v7614_v38, %v7613_v15 }
 0xe9e   :  { %7722 = vmatmul.bf16.gmra.mxu0 %v7622_v19  ;;  %v13953_v19 = vld [vmem:[#allocation2 + $0x650] sm:$0xff] }
 0xe9f   :  { %v6444_v3 = vpop.f32.mrf.mxu3 }
 0xea0   :  { %v6660_v2 = vpack.c.bf16 %v6444_v3, %v6444_v3 }
 0xea1   :  { %v7545_v27 = vpop.f32.mrf.mxu2 }
 0xea2   :  { %v15534_v20 = vadd.f32 %v7545_v27, %v15494_v54  ;;  %v7777_v43 = vunpack.c.l.b16 %v6660_v2 }
 0xea7   :  { %v6446_v58 = vpop.f32.mrf.mxu3 }
 0xea8   :  { %v6661_v47 = vpack.c.bf16 %v6446_v58, %v6446_v58 }
 0xeaa   :  { %v7778_v28 = vunpack.c.l.b16 %v6661_v47 }
 0xeab   :  { %v7688_v32 = vpop.f32.mrf.mxu0 }
 0xeac   :  { %v7793_v57 = vpack.c.b16 %v7778_v28, %v7777_v43  ;;  %v15539_v63 = vadd.f32 %v7688_v32, %v15499_v44  ;;  %6488 = vmatmul.bf16.gmra.mxu3 %v13952_v45 }
 0xeae   :  { %7865 = vmatmul.bf16.vlgmr.msrb.gmra.mxu2 %v7793_v57  ;;  %v13954_v57 = vld [vmem:[#allocation2 + $0x658] sm:$0xff] }
 0xeaf   :  { %v6449_v25 = vpop.f32.mrf.mxu3 }
 0xeb0   :  { %v6662_v54 = vpack.c.bf16 %v6449_v25, %v6449_v25 }
 0xeb2   :  { %v7779_v3 = vunpack.c.l.b16 %v6662_v54 }
 0xeb3   :  { %v15541_v39 = vpop.f32.mrf.mxu0 }
 0xeb7   :  { %v6451_v15 = vpop.f32.mrf.mxu3 }
 0xeb8   :  { %v6663_v38 = vpack.c.bf16 %v6451_v15, %v6451_v15 }
 0xeba   :  { %v7780_v27 = vunpack.c.l.b16 %v6663_v38 }
 0xebb   :  { %v7693_v58 = vpop.f32.mrf.mxu0 }
 0xebc   :  { %v15544_v2 = vadd.f32 %v7693_v58, %v15504_v51  ;;  %6493 = vmatmul.bf16.gmra.mxu3 %v13953_v19  ;;  %v7794_v47 = vpack.c.b16 %v7780_v27, %v7779_v3 }
 0xebe   :  { %7870 = vmatmul.bf16.gmra.mxu2 %v7794_v47  ;;  %v13955_v47 = vld [vmem:[#allocation2 + $0x660] sm:$0xff] }
 0xebf   :  { %v6454_v44 = vpop.f32.mrf.mxu3 }
 0xec0   :  { %v6664_v45 = vpack.c.bf16 %v6454_v44, %v6454_v44 }
 0xec2   :  { %v7781_v25 = vunpack.c.l.b16 %v6664_v45 }
 0xec3   :  { %v15546_v43 = vpop.f32.mrf.mxu0 }
 0xec7   :  { %v6456_v28 = vpop.f32.mrf.mxu3 }
 0xec8   :  { %v6665_v32 = vpack.c.bf16 %v6456_v28, %v6456_v28 }
 0xeca   :  { %v7782_v40 = vunpack.c.l.b16 %v6665_v32 }
 0xecb   :  { %v7698_v15 = vpop.f32.mrf.mxu0 }
 0xecc   :  { %v15549_v54 = vadd.f32 %v7698_v15, %v15509_v55  ;;  %6498 = vmatmul.bf16.gmra.mxu3 %v13954_v57  ;;  %v7795_v38 = vpack.c.b16 %v7782_v40, %v7781_v25 }
 0xece   :  { %7875 = vmatmul.bf16.gmra.mxu2 %v7795_v38  ;;  %v13956_v38 = vld [vmem:[#allocation2 + $0x668] sm:$0xff] }
 0xecf   :  { %v6459_v51 = vpop.f32.mrf.mxu3 }
 0xed0   :  { %v6666_v3 = vpack.c.bf16 %v6459_v51, %v6459_v51 }
 0xed2   :  { %v7783_v44 = vunpack.c.l.b16 %v6666_v3 }
 0xed3   :  { %v15551_v19 = vpop.f32.mrf.mxu0 }
 0xed7   :  { %v6461_v27 = vpop.f32.mrf.mxu3 }
 0xed8   :  { %v6667_v58 = vpack.c.bf16 %v6461_v27, %v6461_v27 }
 0xeda   :  { %v7784_v48 = vunpack.c.l.b16 %v6667_v58 }
 0xedb   :  { %v7703_v28 = vpop.f32.mrf.mxu0 }
 0xedc   :  { %v15554_v45 = vadd.f32 %v7703_v28, %v15514_v33  ;;  %6503 = vmatmul.bf16.gmra.mxu3 %v13955_v47  ;;  %v7796_v32 = vpack.c.b16 %v7784_v48, %v7783_v44  ;;  %v14030_v33 = vld [vmem:[#allocation4 + $0x678] sm:$0xff]  ;;  %v14029_v48 = vld [vmem:[#allocation4 + $0x670] sm:$0xff]  ;;  %v14028_v28 = vld [vmem:[#allocation4 + $0x668] sm:$0xff] }
 0xedd   :  { %8035 = vmatpush.bf16.msrb.mxu0 %v14030_v33  ;;  %v14025_v33 = vld [vmem:[#allocation4 + $0x650] sm:$0xff] }
 0xede   :  { %7880 = vmatmul.bf16.gmra.mxu2 %v7796_v32 }
 0xedf   :  { %v6464_v55 = vpop.f32.mrf.mxu3 }
 0xee0   :  { %v6668_v40 = vpack.c.bf16 %v6464_v55, %v6464_v55 }
 0xee1   :  { %8036 = vmatpush.bf16.msrb.mxu0 %v14029_v48 }
 0xee2   :  { %v7785_v51 = vunpack.c.l.b16 %v6668_v40 }
 0xee3   :  { %v15556_v57 = vpop.f32.mrf.mxu0 }
 0xee5   :  { %8037 = vmatpush.bf16.msrb.mxu0 %v14028_v28  ;;  %v14024_v28 = vld [vmem:[#allocation4 + $0x648] sm:$0xff] }
 0xee7   :  { %v6466_v25 = vpop.f32.mrf.mxu3 }
 0xee8   :  { %v6669_v15 = vpack.c.bf16 %v6466_v25, %v6466_v25  ;;  %v13957_v25 = vld [vmem:[#allocation2 + $0x670] sm:$0xff] }
 0xeea   :  { %v7786_v22 = vunpack.c.l.b16 %v6669_v15  ;;  %v14027_v15 = vld [vmem:[#allocation4 + $0x660] sm:$0xff] }
 0xeeb   :  { %v7708_v27 = vpop.f32.mrf.mxu0  ;;  %8038 = vmatpush.bf16.msrb.mxu0 %v14027_v15  ;;  %v13958_v15 = vld [vmem:[#allocation2 + $0x678] sm:$0xff] }
 0xeec   :  { %v15559_v3 = vadd.f32 %v7708_v27, %v15519_v46  ;;  %6508 = vmatmul.bf16.gmra.mxu3 %v13956_v38  ;;  %v7797_v58 = vpack.c.b16 %v7786_v22, %v7785_v51  ;;  %v14026_v51 = vld [vmem:[#allocation4 + $0x658] sm:$0xff] }
 0xeee   :  { %7885 = vmatmul.bf16.gmra.mxu2 %v7797_v58 }
 0xeef   :  { %v6469_v47 = vpop.f32.mrf.mxu3  ;;  %8039 = vmatpush.bf16.msrb.mxu0 %v14026_v51 }
 0xef0   :  { %v6670_v32 = vpack.c.bf16 %v6469_v47, %v6469_v47  ;;  %v14032_v47 = vld [vmem:[#allocation4 + $0x688] sm:$0xff] }
 0xef1   :  { %8219 = vmatpush.bf16.msra.mxu1 %v14032_v47 }
 0xef2   :  { %v7787_v31 = vunpack.c.l.b16 %v6670_v32 }
 0xef3   :  { %v15561_v44 = vpop.f32.mrf.mxu0  ;;  %8040 = vmatpush.bf16.msrb.mxu0 %v14025_v33 }
 0xef4   :  { %16680 = vst [vmem:[#allocation12_spill] sm:$0xff] %v15561_v44 }
 0xef7   :  { %v6471_v55 = vpop.f32.mrf.mxu3  ;;  %8041 = vmatpush.bf16.msrb.mxu0 %v14024_v28  ;;  %v13959_v28 = vld [vmem:[#allocation2 + $0x680] sm:$0xff] }
 0xef8   :  { %v6671_v40 = vpack.c.bf16 %v6471_v55, %v6471_v55 }
 0xefa   :  { %v7788_v46 = vunpack.c.l.b16 %v6671_v40 }
 0xefb   :  { %v7713_v27 = vpop.f32.mrf.mxu0 }
 0xefc   :  { %v15564_v22 = vadd.f32 %v7713_v27, %v15524_v13  ;;  %6513 = vmatmul.bf16.gmra.mxu3 %v13957_v25  ;;  %v7798_v38 = vpack.c.b16 %v7788_v46, %v7787_v31  ;;  %v14023_v13 = vld [vmem:[#allocation4 + $0x640] sm:$0xff] }
 0xefd   :  { %8042 = vmatpush.bf16.msrb.mxu0 %v14023_v13 }
 0xefe   :  { %16681 = vst [vmem:[#allocation22_spill] sm:$0xff] %v15564_v22  ;;  %7890 = vmatmul.bf16.gmra.mxu2 %v7798_v38 }
 0xeff   :  { %v6474_v58 = vpop.f32.mrf.mxu3 }
 0xf00   :  { %v6672_v32 = vpack.c.bf16 %v6474_v58, %v6474_v58 }
 0xf02   :  { %v7789_v27 = vunpack.c.l.b16 %v6672_v32 }
 0xf03   :  { %v15566_v48 = vpop.f32.mrf.mxu0 }
 0xf04   :  { %16682 = vst [vmem:[#allocation25_spill] sm:$0xff] %v15566_v48 }
 0xf07   :  { %v6476_v55 = vpop.f32.mrf.mxu3 }
 0xf08   :  { %v6673_v40 = vpack.c.bf16 %v6476_v55, %v6476_v55 }
 0xf0a   :  { %v7790_v25 = vunpack.c.l.b16 %v6673_v40 }
 0xf0b   :  { %v7718_v31 = vpop.f32.mrf.mxu0 }
 0xf0c   :  { %v15569_v46 = vadd.f32 %v7718_v31, %v15529_v18  ;;  %6518 = vmatmul.bf16.gmra.mxu3 %v13958_v15  ;;  %v7799_v38 = vpack.c.b16 %v7790_v25, %v7789_v27  ;;  %v13960_v25 = vld [vmem:[#allocation2 + $0x688] sm:$0xff]  ;;  %v15576_v31 = vpop.f32.mrf.mxu2 }
 0xf0d   :  { %16686 = vst [vmem:[#allocation28_spill] sm:$0xff] %v15576_v31 }
 0xf0e   :  { %16683 = vst [vmem:[#allocation20_spill] sm:$0xff] %v15569_v46  ;;  %7895 = vmatmul.bf16.gmra.mxu2 %v7799_v38 }
 0xf0f   :  { %v6479_v51 = vpop.f32.mrf.mxu3 }
 0xf10   :  { %v6674_v47 = vpack.c.bf16 %v6479_v51, %v6479_v51 }
 0xf12   :  { %v7791_v55 = vunpack.c.l.b16 %v6674_v47 }
 0xf13   :  { %v15571_v33 = vpop.f32.mrf.mxu0 }
 0xf14   :  { %16684 = vst [vmem:[#allocation33_spill] sm:$0xff] %v15571_v33 }
 0xf17   :  { %v6481_v58 = vpop.f32.mrf.mxu3 }
 0xf18   :  { %v6675_v22 = vpack.c.bf16 %v6481_v58, %v6481_v58 }
 0xf1a   :  { %v7792_v44 = vunpack.c.l.b16 %v6675_v22 }
 0xf1b   :  { %v7723_v48 = vpop.f32.mrf.mxu0 }
 0xf1c   :  { %v15574_v32 = vadd.f32 %v7723_v48, %v15534_v20  ;;  %6523 = vmatmul.bf16.gmra.mxu3 %v13959_v28  ;;  %v7800_v40 = vpack.c.b16 %v7792_v44, %v7791_v55  ;;  %v13961_v55 = vld [vmem:[#allocation2 + $0x690] sm:$0xff] }
 0xf1e   :  { %16685 = vst [vmem:[#allocation36_spill] sm:$0xff] %v15574_v32  ;;  %7900 = vmatmul.bf16.gmra.mxu2 %v7800_v40 }
 0xf1f   :  { %v6484_v18 = vpop.f32.mrf.mxu3 }
 0xf20   :  { %v6676_v15 = vpack.c.bf16 %v6484_v18, %v6484_v18 }
 0xf22   :  { %v7955_v38 = vunpack.c.l.b16 %v6676_v15 }
 0xf27   :  { %v6486_v13 = vpop.f32.mrf.mxu3 }
 0xf28   :  { %v6677_v27 = vpack.c.bf16 %v6486_v13, %v6486_v13 }
 0xf2a   :  { %v7956_v51 = vunpack.c.l.b16 %v6677_v27 }
 0xf2c   :  { %v7971_v58 = vpack.c.b16 %v7956_v51, %v7955_v38  ;;  %6528 = vmatmul.bf16.gmra.mxu3 %v13960_v25 }
 0xf2e   :  { %8043 = vmatmul.bf16.vlgmr.msrb.gmra.mxu0 %v7971_v58  ;;  %v13962_v58 = vld [vmem:[#allocation2 + $0x698] sm:$0xff] }
 0xf2f   :  { %v6489_v22 = vpop.f32.mrf.mxu3 }
 0xf30   :  { %v6678_v48 = vpack.c.bf16 %v6489_v22, %v6489_v22 }
 0xf31   :  { %v7866_v47 = vpop.f32.mrf.mxu2 }
 0xf32   :  { %v15579_v20 = vadd.f32 %v7866_v47, %v15539_v63  ;;  %v7957_v18 = vunpack.c.l.b16 %v6678_v48 }
 0xf37   :  { %v6491_v44 = vpop.f32.mrf.mxu3 }
 0xf38   :  { %v6679_v28 = vpack.c.bf16 %v6491_v44, %v6491_v44 }
 0xf39   :  { %v15581_v40 = vpop.f32.mrf.mxu2 }
 0xf3a   :  { %v7958_v13 = vunpack.c.l.b16 %v6679_v28 }
 0xf3c   :  { %6533 = vmatmul.bf16.gmra.mxu3 %v13961_v55  ;;  %v7972_v46 = vpack.c.b16 %v7958_v13, %v7957_v18  ;;  %v13963_v13 = vld [vmem:[#allocation2 + $0x6a0] sm:$0xff] }
 0xf3e   :  { %8048 = vmatmul.bf16.gmra.mxu0 %v7972_v46 }
 0xf3f   :  { %v6494_v15 = vpop.f32.mrf.mxu3 }
 0xf40   :  { %v6680_v38 = vpack.c.bf16 %v6494_v15, %v6494_v15 }
 0xf41   :  { %v7871_v27 = vpop.f32.mrf.mxu2 }
 0xf42   :  { %v15584_v25 = vadd.f32 %v7871_v27, %v15544_v2  ;;  %v7959_v47 = vunpack.c.l.b16 %v6680_v38 }
 0xf47   :  { %v6496_v51 = vpop.f32.mrf.mxu3 }
 0xf48   :  { %v6681_v63 = vpack.c.bf16 %v6496_v51, %v6496_v51 }
 0xf49   :  { %v15586_v22 = vpop.f32.mrf.mxu2 }
 0xf4a   :  { %v7960_v44 = vunpack.c.l.b16 %v6681_v63 }
 0xf4c   :  { %6538 = vmatmul.bf16.gmra.mxu3 %v13962_v58  ;;  %v7973_v31 = vpack.c.b16 %v7960_v44, %v7959_v47  ;;  %v13964_v44 = vld [vmem:[#allocation2 + $0x6a8] sm:$0xff] }
 0xf4e   :  { %8053 = vmatmul.bf16.gmra.mxu0 %v7973_v31 }
 0xf4f   :  { %v6499_v48 = vpop.f32.mrf.mxu3 }
 0xf50   :  { %v6682_v55 = vpack.c.bf16 %v6499_v48, %v6499_v48 }
 0xf51   :  { %v7876_v28 = vpop.f32.mrf.mxu2 }
 0xf52   :  { %v15589_v46 = vadd.f32 %v7876_v28, %v15549_v54  ;;  %v7961_v27 = vunpack.c.l.b16 %v6682_v55 }
 0xf57   :  { %v6501_v18 = vpop.f32.mrf.mxu3 }
 0xf58   :  { %v6683_v2 = vpack.c.bf16 %v6501_v18, %v6501_v18 }
 0xf59   :  { %v15591_v15 = vpop.f32.mrf.mxu2 }
 0xf5a   :  { %v7962_v51 = vunpack.c.l.b16 %v6683_v2 }
 0xf5c   :  { %6543 = vmatmul.bf16.gmra.mxu3 %v13963_v13  ;;  %v7974_v16 = vpack.c.b16 %v7962_v51, %v7961_v27  ;;  %v13965_v51 = vld [vmem:[#allocation2 + $0x6b0] sm:$0xff] }
 0xf5e   :  { %8058 = vmatmul.bf16.gmra.mxu0 %v7974_v16 }
 0xf5f   :  { %v6504_v38 = vpop.f32.mrf.mxu3 }
 0xf60   :  { %v6684_v58 = vpack.c.bf16 %v6504_v38, %v6504_v38 }
 0xf61   :  { %v7881_v63 = vpop.f32.mrf.mxu2 }
 0xf62   :  { %v15594_v31 = vadd.f32 %v7881_v63, %v15554_v45  ;;  %v7963_v28 = vunpack.c.l.b16 %v6684_v58 }
 0xf67   :  { %v6506_v47 = vpop.f32.mrf.mxu3 }
 0xf68   :  { %v6685_v54 = vpack.c.bf16 %v6506_v47, %v6506_v47  ;;  %v14031_v47 = vld [vmem:[#allocation4 + $0x680] sm:$0xff] }
 0xf69   :  { %v15596_v48 = vpop.f32.mrf.mxu2  ;;  %8220 = vmatpush.bf16.msra.mxu1 %v14031_v47 }
 0xf6a   :  { %v7964_v18 = vunpack.c.l.b16 %v6685_v54 }
 0xf6c   :  { %6548 = vmatmul.bf16.gmra.mxu3 %v13964_v44  ;;  %v7975_v32 = vpack.c.b16 %v7964_v18, %v7963_v28  ;;  %v13966_v28 = vld [vmem:[#allocation2 + $0x6b8] sm:$0xff] }
 0xf6e   :  { %8063 = vmatmul.bf16.gmra.mxu0 %v7975_v32 }
 0xf6f   :  { %v6509_v55 = vpop.f32.mrf.mxu3 }
 0xf70   :  { %v6686_v13 = vpack.c.bf16 %v6509_v55, %v6509_v55 }
 0xf71   :  { %v7886_v2 = vpop.f32.mrf.mxu2 }
 0xf72   :  { %v15599_v16 = vadd.f32 %v7886_v2, %v15559_v3  ;;  %v7965_v38 = vunpack.c.l.b16 %v6686_v13 }
 0xf77   :  { %v6511_v27 = vpop.f32.mrf.mxu3 }
 0xf78   :  { %v6687_v45 = vpack.c.bf16 %v6511_v27, %v6511_v27 }
 0xf7a   :  { %v7966_v63 = vunpack.c.l.b16 %v6687_v45 }
 0xf7c   :  { %6553 = vmatmul.bf16.gmra.mxu3 %v13965_v51  ;;  %v7976_v33 = vpack.c.b16 %v7966_v63, %v7965_v38 }
 0xf7e   :  { %8068 = vmatmul.bf16.gmra.mxu0 %v7976_v33  ;;  %v15601_v33 = vpop.f32.mrf.mxu0 }
 0xf7f   :  { %v6514_v58 = vpop.f32.mrf.mxu3  ;;  %16687 = vst [vmem:[#allocation23_spill] sm:$0xff] %v15601_v33 }
 0xf80   :  { %v6688_v54 = vpack.c.bf16 %v6514_v58, %v6514_v58 }
 0xf82   :  { %v7967_v18 = vunpack.c.l.b16 %v6688_v54 }
 0xf87   :  { %v6516_v44 = vpop.f32.mrf.mxu3 }
 0xf88   :  { %v6689_v32 = vpack.c.bf16 %v6516_v44, %v6516_v44 }
 0xf8a   :  { %v7968_v50 = vunpack.c.l.b16 %v6689_v32 }
 0xf8c   :  { %6558 = vmatmul.bf16.gmra.mxu3 %v13966_v28  ;;  %v7977_v3 = vpack.c.b16 %v7968_v50, %v7967_v18 }
 0xf8e   :  { %8073 = vmatmul.bf16.gmra.mxu0 %v7977_v3 }
 0xf8f   :  { %v6519_v55 = vpop.f32.mrf.mxu3 }
 0xf90   :  { %v6690_v2 = vpack.c.bf16 %v6519_v55, %v6519_v55 }
 0xf92   :  { %v7969_v45 = vunpack.c.l.b16 %v6690_v2 }
 0xf97   :  { %v6521_v27 = vpop.f32.mrf.mxu3 }
 0xf98   :  { %v6691_v13 = vpack.c.bf16 %v6521_v27, %v6521_v27 }
 0xf9a   :  { %v7970_v12 = vunpack.c.l.b16 %v6691_v13 }
 0xf9c   :  { %v7978_v51 = vpack.c.b16 %v7970_v12, %v7969_v45 }
 0xf9e   :  { %8078 = vmatmul.bf16.gmra.mxu0 %v7978_v51 }
 0xf9f   :  { %v6524_v38 = vpop.f32.mrf.mxu3 }
 0xfa0   :  { %v6692_v63 = vpack.c.bf16 %v6524_v38, %v6524_v38 }
 0xfa2   :  { %v8133_v44 = vunpack.c.l.b16 %v6692_v63 }
 0xfa7   :  { %v6526_v47 = vpop.f32.mrf.mxu3 }
 0xfa8   :  { %v6693_v58 = vpack.c.bf16 %v6526_v47, %v6526_v47  ;;  %v14182_v47 = vld [vmem:[#allocation4 + $0x8f8] sm:$0xff] }
 0xfa9   :  { %10950 = vmatpush.bf16.msrb.mxu3 %v14182_v47 }
 0xfaa   :  { %v8134_v54 = vunpack.c.l.b16 %v6693_v58 }
 0xfab   :  { %v8044_v32 = vpop.f32.mrf.mxu0 }
 0xfac   :  { %v8149_v28 = vpack.c.b16 %v8134_v54, %v8133_v44  ;;  %v15604_v50 = vadd.f32 %v8044_v32, %v15579_v20 }
 0xfae   :  { %8221 = vmatmul.bf16.vlgmr.msra.gmra.mxu1 %v8149_v28 }
 0xfaf   :  { %v6529_v18 = vpop.f32.mrf.mxu3 }
 0xfb0   :  { %v6694_v55 = vpack.c.bf16 %v6529_v18, %v6529_v18 }
 0xfb2   :  { %v8135_v27 = vunpack.c.l.b16 %v6694_v55 }
 0xfb3   :  { %v15606_v3 = vpop.f32.mrf.mxu0 }
 0xfb7   :  { %v6531_v12 = vpop.f32.mrf.mxu3 }
 0xfb8   :  { %v6695_v2 = vpack.c.bf16 %v6531_v12, %v6531_v12 }
 0xfba   :  { %v8136_v13 = vunpack.c.l.b16 %v6695_v2 }
 0xfbb   :  { %v8049_v45 = vpop.f32.mrf.mxu0 }
 0xfbc   :  { %v15609_v51 = vadd.f32 %v8049_v45, %v15584_v25  ;;  %v8150_v38 = vpack.c.b16 %v8136_v13, %v8135_v27 }
 0xfbe   :  { %8226 = vmatmul.bf16.gmra.mxu1 %v8150_v38 }
 0xfbf   :  { %v6534_v63 = vpop.f32.mrf.mxu3 }
 0xfc0   :  { %v6696_v20 = vpack.c.bf16 %v6534_v63, %v6534_v63 }
 0xfc2   :  { %v8137_v32 = vunpack.c.l.b16 %v6696_v20 }
 0xfc3   :  { %v15611_v58 = vpop.f32.mrf.mxu0 }
 0xfc7   :  { %v6536_v44 = vpop.f32.mrf.mxu3 }
 0xfc8   :  { %v6697_v54 = vpack.c.bf16 %v6536_v44, %v6536_v44 }
 0xfca   :  { %v8138_v28 = vunpack.c.l.b16 %v6697_v54 }
 0xfcb   :  { %v8054_v18 = vpop.f32.mrf.mxu0 }
 0xfcc   :  { %v15614_v55 = vadd.f32 %v8054_v18, %v15589_v46  ;;  %v8151_v12 = vpack.c.b16 %v8138_v28, %v8137_v32 }
 0xfce   :  { %8231 = vmatmul.bf16.gmra.mxu1 %v8151_v12 }
 0xfcf   :  { %v6539_v25 = vpop.f32.mrf.mxu3 }
 0xfd0   :  { %v6698_v27 = vpack.c.bf16 %v6539_v25, %v6539_v25 }
 0xfd2   :  { %v8139_v38 = vunpack.c.l.b16 %v6698_v27 }
 0xfd3   :  { %v15616_v2 = vpop.f32.mrf.mxu0 }
 0xfd7   :  { %v6541_v13 = vpop.f32.mrf.mxu3 }
 0xfd8   :  { %v6699_v45 = vpack.c.bf16 %v6541_v13, %v6541_v13 }
 0xfda   :  { %v8140_v33 = vunpack.c.l.b16 %v6699_v45 }
 0xfdb   :  { %v8059_v47 = vpop.f32.mrf.mxu0 }
 0xfdc   :  { %v15619_v63 = vadd.f32 %v8059_v47, %v15594_v31  ;;  %v8152_v20 = vpack.c.b16 %v8140_v33, %v8139_v38 }
 0xfde   :  { %8236 = vmatmul.bf16.gmra.mxu1 %v8152_v20 }
 0xfdf   :  { %v6544_v44 = vpop.f32.mrf.mxu3 }
 0xfe0   :  { %v6700_v46 = vpack.c.bf16 %v6544_v44, %v6544_v44 }
 0xfe2   :  { %v8141_v18 = vunpack.c.l.b16 %v6700_v46 }
 0xfe3   :  { %v15621_v54 = vpop.f32.mrf.mxu0 }
 0xfe7   :  { %v6546_v32 = vpop.f32.mrf.mxu3 }
 0xfe8   :  { %v6701_v28 = vpack.c.bf16 %v6546_v32, %v6546_v32 }
 0xfea   :  { %v8142_v12 = vunpack.c.l.b16 %v6701_v28 }
 0xfeb   :  { %v8064_v49 = vpop.f32.mrf.mxu0 }
 0xfec   :  { %v8153_v25 = vpack.c.b16 %v8142_v12, %v8141_v18  ;;  %v15624_v13 = vadd.f32 %v8064_v49, %v15599_v16 }
 0xfee   :  { %8241 = vmatmul.bf16.gmra.mxu1 %v8153_v25 }
 0xfef   :  { %v6549_v27 = vpop.f32.mrf.mxu3 }
 0xff0   :  { %v6702_v45 = vpack.c.bf16 %v6549_v27, %v6549_v27 }
 0xff2   :  { %v8143_v33 = vunpack.c.l.b16 %v6702_v45  ;;  %v6995_v45 = vadd.f32 %v15398_v61, %v15374_v17 }
 0xff7   :  { %v6551_v31 = vpop.f32.mrf.mxu3 }
 0xff8   :  { %v6703_v47 = vpack.c.bf16 %v6551_v31, %v6551_v31  ;;  %v7195_v31 = vadd.f32 %v15411_v10, %v6995_v45 }
 0xffa   :  { %v8144_v38 = vunpack.c.l.b16 %v6703_v47 }
 0xffc   :  { %v8154_v20 = vpack.c.b16 %v8144_v38, %v8143_v33 }
 0xffe   :  { %8246 = vmatmul.bf16.gmra.mxu1 %v8154_v20 }
 0xfff   :  { %v6554_v23 = vpop.f32.mrf.mxu3 }
0x1000   :  { %v6704_v44 = vpack.c.bf16 %v6554_v23, %v6554_v23  ;;  %v8279_v23 = vld [vmem:[#allocation6 + $0x10] sm:$0xff] }
0x1001   :  { %v15632_v38 = vperm.slane %v8279_v23, 0 }
0x1002   :  { %v8145_v46 = vunpack.c.l.b16 %v6704_v44 }
0x1007   :  { %v6556_v21 = vpop.f32.mrf.mxu3 }
0x1008   :  { %v6705_v32 = vpack.c.bf16 %v6556_v21, %v6556_v21  ;;  %v7373_v21 = vadd.f32 %v15461_v14, %v7195_v31 }
0x100a   :  { %v8146_v28 = vunpack.c.l.b16 %v6705_v32  ;;  %v7551_v33 = vadd.f32 %v15501_v8, %v7373_v21  ;;  %v15638_v32 = vperm.slane %v8279_v23, 1  ;;  %v7000_v8 = vadd.f32 %v15406_v59, %v15378_v9 }
0x100c   :  { %v8155_v24 = vpack.c.b16 %v8146_v28, %v8145_v46  ;;  %v7729_v20 = vadd.f32 %v15541_v39, %v7551_v33  ;;  %v7197_v46 = vadd.f32 %v15418_v0, %v7000_v8 }
0x100e   :  { %8251 = vmatmul.bf16.gmra.mxu1 %v8155_v24  ;;  %v7907_v44 = vadd.f32 %v15581_v40, %v7729_v20  ;;  %v15645_v40 = vperm.slane %v8279_v23, 2 }
0x100f   :  { %v6559_v18 = vpop.f32.mrf.mxu3 }
0x1010   :  { %v6706_v49 = vpack.c.bf16 %v6559_v18, %v6559_v18  ;;  %v8085_v17 = vadd.f32 %v15606_v3, %v7907_v44  ;;  %v7375_v18 = vadd.f32 %v15466_v34, %v7197_v46 }
0x1012   :  { %v8147_v25 = vunpack.c.l.b16 %v6706_v49 }
0x1017   :  { %v6561_v16 = vpop.f32.mrf.mxu3 }
0x1018   :  { %v6707_v12 = vpack.c.bf16 %v6561_v16, %v6561_v16  ;;  %v7553_v16 = vadd.f32 %v15506_v52, %v7375_v18  ;;  %v7005_v52 = vadd.f32 %v15413_v35, %v15382_v41 }
0x101a   :  { %v8148_v27 = vunpack.c.l.b16 %v6707_v12  ;;  %v7731_v0 = vadd.f32 %v15546_v43, %v7553_v16 }
0x101c   :  { %v8156_v53 = vpack.c.b16 %v8148_v27, %v8147_v25  ;;  %v7909_v27 = vadd.f32 %v15586_v22, %v7731_v0 }
0x101e   :  { %8256 = vmatmul.bf16.gmra.mxu1 %v8156_v53  ;;  %v8087_v34 = vadd.f32 %v15611_v58, %v7909_v27 }
0x102b   :  { %v8222_v47 = vpop.f32.mrf.mxu1 }
0x102c   :  { %v8262_v24 = vadd.f32 %v8222_v47, %v15604_v50  ;;  %v7199_v47 = vadd.f32 %v15425_v60, %v7005_v52 }
0x102e   :  { %v8281_v53 = vadd.f32 %v15632_v38, %v8262_v24  ;;  %v7377_v24 = vadd.f32 %v15471_v7, %v7199_v47 }
0x1030   :  { %v8297_v10 = vmax.f32 %v8281_v53, 0.0  ;;  %v7555_v58 = vadd.f32 %v15511_v37, %v7377_v24 }
0x1032   :  { %v8314_v39 = vmul.f32 %v15638_v32, %v8297_v10  ;;  %v7733_v35 = vadd.f32 %v15551_v19, %v7555_v58  ;;  %v14181_v10 = vld [vmem:[#allocation4 + $0x8f0] sm:$0xff] }
0x1033   :  { %v8224_v61 = vpop.f32.mrf.mxu1  ;;  %10951 = vmatpush.bf16.msrb.mxu3 %v14181_v10 }
0x1034   :  { %v8263_v14 = vadd.f32 %v8224_v61, %v8085_v17  ;;  %v8331_v9 = vadd.f32 %v15645_v40, %v8314_v39  ;;  %v7911_v60 = vadd.f32 %v15591_v15, %v7733_v35 }
0x1036   :  { %v8282_v50 = vadd.f32 %v15632_v38, %v8263_v14  ;;  %v8089_v7 = vadd.f32 %v15616_v2, %v7911_v60 }
0x1038   :  { %v8298_v28 = vmax.f32 %v8282_v50, 0.0 }
0x103a   :  { %v8315_v3 = vmul.f32 %v15638_v32, %v8298_v28 }
0x103b   :  { %v8227_v49 = vpop.f32.mrf.mxu1 }
0x103c   :  { %v8264_v12 = vadd.f32 %v8227_v49, %v15609_v51  ;;  %v8332_v59 = vadd.f32 %v15645_v40, %v8315_v3 }
0x103e   :  { %v15654_v25 = vpack.c.bf16 %v8332_v59, %v8331_v9  ;;  %v8283_v45 = vadd.f32 %v15632_v38, %v8264_v12  ;;  %v15695_v59 = vpop.f32.mrf.mxu0 }
0x1040   :  { %v8299_v23 = vmax.f32 %v8283_v45, 0.0 }
0x1042   :  { %v8316_v43 = vmul.f32 %v15638_v32, %v8299_v23 }
0x1043   :  { %v8229_v31 = vpop.f32.mrf.mxu1 }
0x1044   :  { %v8265_v21 = vadd.f32 %v8229_v31, %v8087_v34  ;;  %v8333_v53 = vadd.f32 %v15645_v40, %v8316_v43 }
0x1046   :  { %v8284_v51 = vadd.f32 %v15632_v38, %v8265_v21  ;;  %v8069_v52 = vpop.f32.mrf.mxu0 }
0x1048   :  { %v8300_v33 = vmax.f32 %v8284_v51, 0.0 }
0x104a   :  { %v8317_v22 = vmul.f32 %v15638_v32, %v8300_v33 }
0x104b   :  { %v8232_v20 = vpop.f32.mrf.mxu1 }
0x104c   :  { %v8266_v44 = vadd.f32 %v8232_v20, %v15614_v55  ;;  %v8334_v41 = vadd.f32 %v15645_v40, %v8317_v22  ;;  %v7010_v55 = vadd.f32 %v15423_v30, %v15386_v26 }
0x104e   :  { %v15671_v17 = vpack.c.bf16 %v8334_v41, %v8333_v53  ;;  %v8285_v61 = vadd.f32 %v15632_v38, %v8266_v44  ;;  %v7201_v19 = vadd.f32 %v15432_v11, %v7010_v55  ;;  %v8071_v33 = vpop.f32.mrf.mxu0  ;;  %v16689_v55 = vld [vmem:[#allocation15_spill] sm:$0xff] }
0x1050   :  { %v8301_v8 = vmax.f32 %v8285_v61, 0.0  ;;  %v7379_v15 = vadd.f32 %v15476_v29, %v7201_v19  ;;  %v15692_v29 = vpop.f32.mrf.mxu2  ;;  %v16690_v19 = vld [vmem:[#allocation21_spill] sm:$0xff] }
0x1052   :  { %v8318_v46 = vmul.f32 %v15638_v32, %v8301_v8  ;;  %v7557_v18 = vadd.f32 %v15516_v1, %v7379_v15  ;;  %v16692_v15 = vld [vmem:[#allocation13_spill] sm:$0xff] }
0x1053   :  { %v8234_v14 = vpop.f32.mrf.mxu1 }
0x1054   :  { %v8267_v37 = vadd.f32 %v8234_v14, %v8089_v7  ;;  %v8335_v49 = vadd.f32 %v15645_v40, %v8318_v46  ;;  %v7735_v30 = vadd.f32 %v15556_v57, %v7557_v18  ;;  %v7020_v7 = vadd.f32 %v15439_v6, %v15394_v56  ;;  %v16688_v14 = vld [vmem:[#allocation29_spill] sm:$0xff]  ;;  %v16696_v56 = vld [vmem:[#allocation36_spill] sm:$0xff] }
0x1055   :  { %v7030_v8 = vadd.f32 %v16688_v14, %v15404_v36  ;;  %v16695_v18 = vld [vmem:[#allocation33_spill] sm:$0xff] }
0x1056   :  { %v8286_v50 = vadd.f32 %v15632_v38, %v8267_v37  ;;  %v7913_v11 = vadd.f32 %v15596_v48, %v7735_v30  ;;  %v8074_v20 = vpop.f32.mrf.mxu0  ;;  %v16699_v30 = vld [vmem:[#allocation17_spill] sm:$0xff] }
0x1058   :  { %v8302_v39 = vmax.f32 %v8286_v50, 0.0  ;;  %v8091_v9 = vadd.f32 %v15621_v54, %v7913_v11  ;;  %v7891_v31 = vpop.f32.mrf.mxu2  ;;  %v7205_v50 = vadd.f32 %v16689_v55, %v7020_v7 }
0x105a   :  { %v8319_v28 = vmul.f32 %v15638_v32, %v8302_v39  ;;  %v16691_v39 = vld [vmem:[#allocation37_spill] sm:$0xff] }
0x105b   :  { %v8237_v2 = vpop.f32.mrf.mxu1 }
0x105c   :  { %v8268_v3 = vadd.f32 %v8237_v2, %v15619_v63  ;;  %v8336_v26 = vadd.f32 %v15645_v40, %v8319_v28  ;;  %v16694_v28 = vld [vmem:[#allocation31_spill] sm:$0xff] }
0x105d   :  { %v7383_v2 = vadd.f32 %v16694_v28, %v7205_v50 }
0x105e   :  { %v15688_v16 = vpack.c.bf16 %v8336_v26, %v8335_v49  ;;  %v8287_v12 = vadd.f32 %v15632_v38, %v8268_v3  ;;  %v8076_v53 = vpop.f32.mrf.mxu0  ;;  %v16698_v26 = vld [vmem:[#allocation35_spill] sm:$0xff] }
0x105f   :  { %v7561_v11 = vadd.f32 %v16699_v30, %v7383_v2 }
0x1060   :  { %v8303_v63 = vmax.f32 %v8287_v12, 0.0  ;;  %v7893_v43 = vpop.f32.mrf.mxu2 }
0x1062   :  { %v8320_v45 = vmul.f32 %v15638_v32, %v8303_v63 }
0x1063   :  { %v8239_v1 = vpop.f32.mrf.mxu1 }
0x1064   :  { %v8269_v0 = vadd.f32 %v8239_v1, %v8091_v9  ;;  %v8337_v21 = vadd.f32 %v15645_v40, %v8320_v45  ;;  %v16700_v1 = vld [vmem:[#allocation30_spill] sm:$0xff] }
0x1066   :  { %v8288_v27 = vadd.f32 %v15632_v38, %v8269_v0  ;;  %v8079_v37 = vpop.f32.mrf.mxu0  ;;  %v16701_v0 = vld [vmem:[#allocation28_spill] sm:$0xff] }
0x1068   :  { %v8304_v57 = vmax.f32 %v8288_v27, 0.0  ;;  %v7896_v22 = vpop.f32.mrf.mxu2 }
0x106a   :  { %v8321_v34 = vmul.f32 %v15638_v32, %v8304_v57  ;;  %v16702_v57 = vld [vmem:[#allocation25_spill] sm:$0xff] }
0x106b   :  { %v8242_v48 = vpop.f32.mrf.mxu1 }
0x106c   :  { %v15701_v23 = vadd.f32 %v8242_v48, %v15624_v13  ;;  %v8338_v54 = vadd.f32 %v15645_v40, %v8321_v34  ;;  %v7025_v13 = vadd.f32 %v15446_v5, %v15400_v62  ;;  %v7015_v62 = vadd.f32 %v16692_v15, %v16691_v39  ;;  %v16693_v5 = vld [vmem:[#allocation14_spill] sm:$0xff]  ;;  %v16703_v48 = vld [vmem:[#allocation20_spill] sm:$0xff] }
0x106d   :  { %v7739_v34 = vadd.f32 %v16702_v57, %v7561_v11 }
0x106e   :  { %v15705_v51 = vpack.c.bf16 %v8338_v54, %v8337_v21  ;;  %v7207_v35 = vadd.f32 %v15451_v42, %v7025_v13  ;;  %v7209_v42 = vadd.f32 %v16693_v5, %v7030_v8  ;;  %v7918_v21 = vadd.f32 %v7896_v22, %v16703_v48  ;;  %v8081_v39 = vpop.f32.mrf.mxu0 }
0x106f   :  { %v7917_v8 = vadd.f32 %v7893_v43, %v7739_v34 }
0x1070   :  { %v7898_v44 = vpop.f32.mrf.mxu2  ;;  %v7385_v10 = vadd.f32 %v15491_v4, %v7207_v35  ;;  %v16697_v4 = vld [vmem:[#allocation18_spill] sm:$0xff]  ;;  %v7387_v36 = vadd.f32 %v16698_v26, %v7209_v42  ;;  %v16704_v35 = vld [vmem:[#allocation27_spill] sm:$0xff]  ;;  %v8096_v55 = vadd.f32 %v8074_v20, %v7918_v21 }
0x1071   :  { %v7203_v49 = vadd.f32 %v16697_v4, %v7015_v62  ;;  %v8095_v62 = vadd.f32 %v8071_v33, %v7917_v8  ;;  %v14041_v8 = vld [vmem:[#allocation2 + $0x6d0] sm:$0xff] }
0x1072   :  { %v7563_v46 = vadd.f32 %v16690_v19, %v7385_v10  ;;  %v7565_v27 = vadd.f32 %v16701_v0, %v7387_v36  ;;  %v16705_v10 = vld [vmem:[#allocation23_spill] sm:$0xff]  ;;  %v16707_v19 = vld [vmem:[#allocation22_spill] sm:$0xff] }
0x1073   :  { %v8244_v47 = vpop.f32.mrf.mxu1  ;;  %v7381_v63 = vadd.f32 %v16700_v1, %v7203_v49 }
0x1074   :  { %v7741_v3 = vadd.f32 %v16695_v18, %v7563_v46  ;;  %v7743_v14 = vadd.f32 %v16705_v10, %v7565_v27  ;;  %v7916_v46 = vadd.f32 %v7891_v31, %v16707_v19  ;;  %v14061_v10 = vld [vmem:[#allocation2 + $0x770] sm:$0xff] }
0x1075   :  { %v14045_v19 = vld [vmem:[#allocation2 + $0x6f0] sm:$0xff] }
0x1076   :  { %v7919_v12 = vadd.f32 %v7898_v44, %v7741_v3  ;;  %v8094_v42 = vadd.f32 %v8069_v52, %v7916_v46  ;;  %v14067_v46 = vld [vmem:[#allocation2 + $0x7a0] sm:$0xff] }
0x1078   :  { %v7901_v60 = vpop.f32.mrf.mxu2  ;;  %v8097_v54 = vadd.f32 %v8076_v53, %v7919_v12 }
0x1079   :  { %v7920_v6 = vadd.f32 %v7901_v60, %v16696_v56  ;;  %v7559_v60 = vadd.f32 %v16704_v35, %v7381_v63 }
0x107b   :  { %v8247_v24 = vpop.f32.mrf.mxu1  ;;  %v8098_v9 = vadd.f32 %v8079_v37, %v7920_v6  ;;  %v16706_v37 = vld [vmem:[#allocation12_spill] sm:$0xff] }
0x107c   :  { %v7737_v50 = vadd.f32 %v16706_v37, %v7559_v60  ;;  %v14065_v37 = vld [vmem:[#allocation2 + $0x790] sm:$0xff] }
0x107e   :  { %v7915_v53 = vadd.f32 %v15692_v29, %v7737_v50  ;;  %v14066_v50 = vld [vmem:[#allocation2 + $0x798] sm:$0xff] }
0x1080   :  { %v7903_v7 = vpop.f32.mrf.mxu2  ;;  %v8093_v43 = vadd.f32 %v15695_v59, %v7915_v53 }
0x1081   :  { %v7921_v15 = vadd.f32 %v7903_v7, %v7743_v14  ;;  %v14062_v14 = vld [vmem:[#allocation2 + $0x778] sm:$0xff] }
0x1082   :  { %v8271_v6 = vadd.f32 %v8244_v47, %v8093_v43  ;;  %v8289_v47 = vadd.f32 %v15632_v38, %v15701_v23 }
0x1083   :  { %v8249_v58 = vpop.f32.mrf.mxu1  ;;  %v8099_v28 = vadd.f32 %v8081_v39, %v7921_v15  ;;  %v14046_v39 = vld [vmem:[#allocation2 + $0x6f8] sm:$0xff]  ;;  %v14068_v15 = vld [vmem:[#allocation2 + $0x7a8] sm:$0xff] }
0x1084   :  { %v8273_v2 = vadd.f32 %v8249_v58, %v8095_v62  ;;  %v8290_v59 = vadd.f32 %v15632_v38, %v8271_v6  ;;  %v14047_v62 = vld [vmem:[#allocation2 + $0x700] sm:$0xff]  ;;  %v14070_v6 = vld [vmem:[#allocation2 + $0x7b8] sm:$0xff] }
0x1086   :  { %v8292_v33 = vadd.f32 %v15632_v38, %v8273_v2  ;;  %v8306_v1 = vmax.f32 %v8290_v59, 0.0 }
0x1088   :  { %v8308_v26 = vmax.f32 %v8292_v33, 0.0  ;;  %v8323_v23 = vmul.f32 %v15638_v32, %v8306_v1 }
0x108a   :  { %v8325_v63 = vmul.f32 %v15638_v32, %v8308_v26  ;;  %v8340_v35 = vadd.f32 %v15645_v40, %v8323_v23  ;;  %v14072_v23 = vld [vmem:[#allocation2 + $0x7c8] sm:$0xff] }
0x108b   :  { %v8252_v41 = vpop.f32.mrf.mxu1 }
0x108c   :  { %v8274_v5 = vadd.f32 %v8252_v41, %v8096_v55  ;;  %v8342_v48 = vadd.f32 %v15645_v40, %v8325_v63  ;;  %v14042_v55 = vld [vmem:[#allocation2 + $0x6d8] sm:$0xff] }
0x108e   :  { %v8293_v3 = vadd.f32 %v15632_v38, %v8274_v5  ;;  %v14069_v5 = vld [vmem:[#allocation2 + $0x7b0] sm:$0xff] }
0x1090   :  { %v8309_v52 = vmax.f32 %v8293_v3, 0.0 }
0x1092   :  { %v8326_v11 = vmul.f32 %v15638_v32, %v8309_v52 }
0x1093   :  { %v8254_v61 = vpop.f32.mrf.mxu1 }
0x1094   :  { %v8275_v44 = vadd.f32 %v8254_v61, %v8097_v54  ;;  %v8272_v61 = vadd.f32 %v8247_v24, %v8094_v42 }
0x1096   :  { %v8294_v18 = vadd.f32 %v15632_v38, %v8275_v44  ;;  %v8291_v29 = vadd.f32 %v15632_v38, %v8272_v61  ;;  %v14043_v44 = vld [vmem:[#allocation2 + $0x6e0] sm:$0xff] }
0x1098   :  { %v8310_v41 = vmax.f32 %v8294_v18, 0.0  ;;  %v8307_v30 = vmax.f32 %v8291_v29, 0.0 }
0x109a   :  { %v8327_v24 = vmul.f32 %v15638_v32, %v8310_v41  ;;  %v8324_v57 = vmul.f32 %v15638_v32, %v8307_v30 }
0x109b   :  { %v8257_v45 = vpop.f32.mrf.mxu1 }
0x109c   :  { %v8276_v13 = vadd.f32 %v8257_v45, %v8098_v9  ;;  %v8344_v27 = vadd.f32 %v15645_v40, %v8327_v24  ;;  %v8305_v45 = vmax.f32 %v8289_v47, 0.0  ;;  %v8341_v54 = vadd.f32 %v15645_v40, %v8324_v57  ;;  %v14071_v47 = vld [vmem:[#allocation2 + $0x7c0] sm:$0xff] }
0x109e   :  { %v8295_v22 = vadd.f32 %v15632_v38, %v8276_v13  ;;  %v8322_v21 = vmul.f32 %v15638_v32, %v8305_v45  ;;  %v8352_v13 = vpack.c.bf16 %v8342_v48, %v8341_v54  ;;  %v14111_v54 = vld [vmem:[#allocation4 + $0x6c0] sm:$0xff] }
0x10a0   :  { %v8311_v31 = vmax.f32 %v8295_v22, 0.0  ;;  %v8339_v60 = vadd.f32 %v15645_v40, %v8322_v21 }
0x10a2   :  { %v8328_v58 = vmul.f32 %v15638_v32, %v8311_v31  ;;  %v8351_v7 = vpack.c.bf16 %v8340_v35, %v8339_v60 }
0x10a3   :  { %v8259_v20 = vpop.f32.mrf.mxu1 }
0x10a4   :  { %v8277_v56 = vadd.f32 %v8259_v20, %v8099_v28  ;;  %v8345_v12 = vadd.f32 %v15645_v40, %v8328_v58 }
0x10a6   :  { %v8296_v4 = vadd.f32 %v15632_v38, %v8277_v56  ;;  %v8343_v38 = vadd.f32 %v15645_v40, %v8326_v11  ;;  %v14048_v56 = vld [vmem:[#allocation2 + $0x708] sm:$0xff] }
0x10a8   :  { %v8312_v49 = vmax.f32 %v8296_v4, 0.0  ;;  %v8353_v34 = vpack.c.bf16 %v8344_v27, %v8343_v38  ;;  %v14050_v38 = vld [vmem:[#allocation2 + $0x718] sm:$0xff] }
0x10aa   :  { %v8329_v36 = vmul.f32 %v15638_v32, %v8312_v49  ;;  %v14039_v32 = vld [vmem:[#allocation2 + $0x6c0] sm:$0xff]  ;;  %v14118_v49 = vld [vmem:[#allocation4 + $0x6f8] sm:$0xff] }
0x10ac   :  { %v8346_v9 = vadd.f32 %v15645_v40, %v8329_v36  ;;  %v14040_v40 = vld [vmem:[#allocation2 + $0x6c8] sm:$0xff]  ;;  %v14049_v36 = vld [vmem:[#allocation2 + $0x710] sm:$0xff] }
0x10ae   :  { %v8354_v0 = vpack.c.bf16 %v8346_v9, %v8345_v12  ;;  %v14112_v9 = vld [vmem:[#allocation4 + $0x6c8] sm:$0xff] }
0x10b0   :  { %8932 = vmatpush.bf16.msrb.mxu1 %v8354_v0  ;;  %14207 = vmatpush.bf16.msra.mxu2 %v8354_v0  ;;  %v14179_v0 = vld [vmem:[#allocation4 + $0x8e0] sm:$0xff] }
0x10b4   :  { %8933 = vmatpush.bf16.msrb.mxu1 %v8353_v34  ;;  %14208 = vmatpush.bf16.msra.mxu2 %v8353_v34 }
0x10b8   :  { %8934 = vmatpush.bf16.msrb.mxu1 %v8352_v13  ;;  %14209 = vmatpush.bf16.msra.mxu2 %v8352_v13 }
0x10bc   :  { %8935 = vmatpush.bf16.msrb.mxu1 %v8351_v7  ;;  %14210 = vmatpush.bf16.msra.mxu2 %v8351_v7 }
0x10c0   :  { %8936 = vmatpush.bf16.msrb.mxu1 %v15705_v51  ;;  %14211 = vmatpush.bf16.msra.mxu2 %v15705_v51  ;;  %v14180_v51 = vld [vmem:[#allocation4 + $0x8e8] sm:$0xff] }
0x10c1   :  { %10952 = vmatpush.bf16.msrb.mxu3 %v14180_v51 }
0x10c4   :  { %8937 = vmatpush.bf16.msrb.mxu1 %v15688_v16  ;;  %14212 = vmatpush.bf16.msra.mxu2 %v15688_v16  ;;  %v14063_v16 = vld [vmem:[#allocation2 + $0x780] sm:$0xff] }
0x10c5   :  { %10953 = vmatpush.bf16.msrb.mxu3 %v14179_v0 }
0x10c8   :  { %8938 = vmatpush.bf16.msrb.mxu1 %v15671_v17  ;;  %14213 = vmatpush.bf16.msra.mxu2 %v15671_v17  ;;  %v14064_v17 = vld [vmem:[#allocation2 + $0x788] sm:$0xff] }
0x10cc   :  { %8939 = vmatpush.bf16.msrb.mxu1 %v15654_v25  ;;  %14214 = vmatpush.bf16.msra.mxu2 %v15654_v25  ;;  %v14044_v25 = vld [vmem:[#allocation2 + $0x6e8] sm:$0xff] }
0x10cf   :  { %8940 = vmatmul.bf16.vlgmr.msrb.gmra.mxu1 %v14039_v32  ;;  %9050 = vmatmul.bf16.vlgmr.msra.gmra.mxu2 %v14061_v10  ;;  %v14051_v10 = vld [vmem:[#allocation2 + $0x720] sm:$0xff] }
0x10d0   :  { %9720 = vmatpush.bf16.msra.mxu1 %v14118_v49 }
0x10df   :  { %8945 = vmatmul.bf16.gmra.mxu1 %v14040_v40  ;;  %9055 = vmatmul.bf16.gmra.mxu2 %v14062_v14  ;;  %v14073_v40 = vld [vmem:[#allocation2 + $0x7d0] sm:$0xff] }
0x10ef   :  { %8950 = vmatmul.bf16.gmra.mxu1 %v14041_v8  ;;  %9060 = vmatmul.bf16.gmra.mxu2 %v14063_v16 }
0x10ff   :  { %8955 = vmatmul.bf16.gmra.mxu1 %v14042_v55  ;;  %9065 = vmatmul.bf16.gmra.mxu2 %v14064_v17 }
0x110f   :  { %8960 = vmatmul.bf16.gmra.mxu1 %v14043_v44  ;;  %9070 = vmatmul.bf16.gmra.mxu2 %v14065_v37 }
0x111f   :  { %8965 = vmatmul.bf16.gmra.mxu1 %v14044_v25  ;;  %9075 = vmatmul.bf16.gmra.mxu2 %v14066_v50 }
0x112f   :  { %8970 = vmatmul.bf16.gmra.mxu1 %v14045_v19  ;;  %9080 = vmatmul.bf16.gmra.mxu2 %v14067_v46  ;;  %v14117_v19 = vld [vmem:[#allocation4 + $0x6f0] sm:$0xff] }
0x1130   :  { %9721 = vmatpush.bf16.msra.mxu1 %v14117_v19  ;;  %v14054_v19 = vld [vmem:[#allocation2 + $0x738] sm:$0xff] }
0x113f   :  { %8975 = vmatmul.bf16.gmra.mxu1 %v14046_v39  ;;  %9085 = vmatmul.bf16.gmra.mxu2 %v14068_v15 }
0x114c   :  { %v8941_v22 = vpop.f32.mrf.mxu1 }
0x114d   :  { %v9301_v53 = vpack.c.bf16 %v8941_v22, %v8941_v22  ;;  %v14052_v22 = vld [vmem:[#allocation2 + $0x728] sm:$0xff] }
0x114f   :  { %8980 = vmatmul.bf16.gmra.mxu1 %v14047_v62  ;;  %9090 = vmatmul.bf16.gmra.mxu2 %v14069_v5  ;;  %v15769_v2 = vunpack.c.l.b16 %v9301_v53  ;;  %v14126_v62 = vld [vmem:[#allocation4 + $0x738] sm:$0xff] }
0x1150   :  { %v14074_v53 = vld [vmem:[#allocation2 + $0x7d8] sm:$0xff]  ;;  %9575 = vmatpush.bf16.msra.mxu0 %v14126_v62 }
0x1152   :  { %v9051_v42 = vpop.f32.mrf.mxu2 }
0x1153   :  { %v9345_v20 = vpack.c.bf16 %v9051_v42, %v9051_v42 }
0x1154   :  { %v8943_v28 = vpop.f32.mrf.mxu1 }
0x1155   :  { %v9302_v18 = vpack.c.bf16 %v8943_v28, %v8943_v28  ;;  %v15775_v41 = vunpack.c.l.b16 %v9345_v20  ;;  %v14125_v20 = vld [vmem:[#allocation4 + $0x730] sm:$0xff] }
0x1156   :  { %9576 = vmatpush.bf16.msra.mxu0 %v14125_v20  ;;  %v14116_v20 = vld [vmem:[#allocation4 + $0x6e8] sm:$0xff] }
0x1157   :  { %v15771_v43 = vunpack.c.l.b16 %v9302_v18  ;;  %9722 = vmatpush.bf16.msra.mxu1 %v14116_v20 }
0x1159   :  { %v9656_v61 = vpack.c.b16 %v15771_v43, %v15769_v2  ;;  %v14084_v2 = vld [vmem:[#allocation2 + $0x828] sm:$0xff] }
0x115a   :  { %v9053_v3 = vpop.f32.mrf.mxu2 }
0x115b   :  { %v9346_v31 = vpack.c.bf16 %v9053_v3, %v9053_v3 }
0x115c   :  { %v8946_v33 = vpop.f32.mrf.mxu1 }
0x115d   :  { %v15777_v4 = vunpack.c.l.b16 %v9346_v31  ;;  %v9303_v16 = vpack.c.bf16 %v8946_v33, %v8946_v33  ;;  %v14124_v33 = vld [vmem:[#allocation4 + $0x728] sm:$0xff] }
0x115e   :  { %9577 = vmatpush.bf16.msra.mxu0 %v14124_v33 }
0x115f   :  { %8985 = vmatmul.bf16.gmra.mxu1 %v14048_v56  ;;  %9095 = vmatmul.bf16.gmra.mxu2 %v14070_v6  ;;  %v15805_v37 = vunpack.c.l.b16 %v9303_v16  ;;  %v14119_v16 = vld [vmem:[#allocation4 + $0x700] sm:$0xff] }
0x1162   :  { %v9056_v52 = vpop.f32.mrf.mxu2 }
0x1163   :  { %v9347_v59 = vpack.c.bf16 %v9056_v52, %v9056_v52 }
0x1164   :  { %v8948_v58 = vpop.f32.mrf.mxu1 }
0x1165   :  { %v15781_v11 = vunpack.c.l.b16 %v9347_v59  ;;  %v9304_v55 = vpack.c.bf16 %v8948_v58, %v8948_v58  ;;  %v14123_v59 = vld [vmem:[#allocation4 + $0x720] sm:$0xff] }
0x1166   :  { %9578 = vmatpush.bf16.msra.mxu0 %v14123_v59 }
0x1167   :  { %v15807_v25 = vunpack.c.l.b16 %v9304_v55 }
0x1169   :  { %v9657_v46 = vpack.c.b16 %v15807_v25, %v15805_v37  ;;  %v14139_v25 = vld [vmem:[#allocation4 + $0x7a0] sm:$0xff] }
0x116a   :  { %v9058_v26 = vpop.f32.mrf.mxu2 }
0x116b   :  { %v9348_v24 = vpack.c.bf16 %v9058_v26, %v9058_v26 }
0x116c   :  { %v8951_v30 = vpop.f32.mrf.mxu1 }
0x116d   :  { %v15783_v12 = vunpack.c.l.b16 %v9348_v24  ;;  %v9305_v3 = vpack.c.bf16 %v8951_v30, %v8951_v30 }
0x116f   :  { %8990 = vmatmul.bf16.gmra.mxu1 %v14049_v36  ;;  %9100 = vmatmul.bf16.gmra.mxu2 %v14071_v47  ;;  %v15821_v52 = vunpack.c.l.b16 %v9305_v3  ;;  %v14122_v47 = vld [vmem:[#allocation4 + $0x718] sm:$0xff] }
0x1170   :  { %9579 = vmatpush.bf16.msra.mxu0 %v14122_v47  ;;  %v14055_v47 = vld [vmem:[#allocation2 + $0x740] sm:$0xff] }
0x1172   :  { %v9061_v1 = vpop.f32.mrf.mxu2 }
0x1173   :  { %v9349_v27 = vpack.c.bf16 %v9061_v1, %v9061_v1  ;;  %v14053_v1 = vld [vmem:[#allocation2 + $0x730] sm:$0xff] }
0x1174   :  { %v8953_v63 = vpop.f32.mrf.mxu1 }
0x1175   :  { %v15789_v48 = vunpack.c.l.b16 %v9349_v27  ;;  %v9306_v31 = vpack.c.bf16 %v8953_v63, %v8953_v63  ;;  %v14075_v63 = vld [vmem:[#allocation2 + $0x7e0] sm:$0xff] }
0x1177   :  { %v15823_v58 = vunpack.c.l.b16 %v9306_v31 }
0x1179   :  { %v9658_v26 = vpack.c.b16 %v15823_v58, %v15821_v52 }
0x117a   :  { %v9063_v45 = vpop.f32.mrf.mxu2 }
0x117b   :  { %v9350_v57 = vpack.c.bf16 %v9063_v45, %v9063_v45 }
0x117c   :  { %v15787_v34 = vpop.f32.mrf.mxu1 }
0x117d   :  { %v15791_v21 = vunpack.c.l.b16 %v9350_v57  ;;  %v14121_v57 = vld [vmem:[#allocation4 + $0x710] sm:$0xff] }
0x117e   :  { %9580 = vmatpush.bf16.msra.mxu0 %v14121_v57 }
0x117f   :  { %8995 = vmatmul.bf16.gmra.mxu1 %v14050_v38  ;;  %9105 = vmatmul.bf16.gmra.mxu2 %v14072_v23  ;;  %v9307_v38 = vpack.c.bf16 %v15787_v34, %v15787_v34 }
0x1182   :  { %v9066_v13 = vpop.f32.mrf.mxu2 }
0x1183   :  { %v9351_v60 = vpack.c.bf16 %v9066_v13, %v9066_v13 }
0x1184   :  { %v15795_v35 = vpop.f32.mrf.mxu1 }
0x1185   :  { %v15799_v51 = vunpack.c.l.b16 %v9351_v60  ;;  %v9308_v23 = vpack.c.bf16 %v15795_v35, %v15795_v35 }
0x118a   :  { %v9068_v7 = vpop.f32.mrf.mxu2 }
0x118b   :  { %v9352_v32 = vpack.c.bf16 %v9068_v7, %v9068_v7  ;;  %v14120_v7 = vld [vmem:[#allocation4 + $0x708] sm:$0xff] }
0x118c   :  { %v15797_v14 = vpop.f32.mrf.mxu1  ;;  %9581 = vmatpush.bf16.msra.mxu0 %v14120_v7 }
0x118d   :  { %v15801_v8 = vunpack.c.l.b16 %v9352_v32  ;;  %v15841_v32 = vunpack.c.l.b16 %v9307_v38 }
0x118f   :  { %9000 = vmatmul.bf16.gmra.mxu1 %v14051_v10  ;;  %9110 = vmatmul.bf16.gmra.mxu2 %v14073_v40  ;;  %v15843_v10 = vunpack.c.l.b16 %v9308_v23 }
0x1190   :  { %9582 = vmatpush.bf16.msra.mxu0 %v14119_v16 }
0x1191   :  { %v9659_v34 = vpack.c.b16 %v15843_v10, %v15841_v32  ;;  %v14087_v32 = vld [vmem:[#allocation2 + $0x840] sm:$0xff] }
0x1192   :  { %v9071_v44 = vpop.f32.mrf.mxu2 }
0x1193   :  { %v9353_v39 = vpack.c.bf16 %v9071_v44, %v9071_v44 }
0x1194   :  { %v15809_v50 = vpop.f32.mrf.mxu1 }
0x1195   :  { %v15815_v28 = vunpack.c.l.b16 %v9353_v39  ;;  %v14076_v39 = vld [vmem:[#allocation2 + $0x7e8] sm:$0xff] }
0x119a   :  { %v9073_v15 = vpop.f32.mrf.mxu2 }
0x119b   :  { %v9354_v5 = vpack.c.bf16 %v9073_v15, %v9073_v15 }
0x119c   :  { %v15813_v42 = vpop.f32.mrf.mxu1 }
0x119d   :  { %v15817_v18 = vunpack.c.l.b16 %v9354_v5  ;;  %v9311_v38 = vpack.c.bf16 %v15813_v42, %v15813_v42  ;;  %v14130_v42 = vld [vmem:[#allocation4 + $0x758] sm:$0xff] }
0x119f   :  { %9005 = vmatmul.bf16.gmra.mxu1 %v14052_v22  ;;  %9115 = vmatmul.bf16.gmra.mxu2 %v14074_v53  ;;  %v9309_v22 = vpack.c.bf16 %v15797_v14, %v15797_v14  ;;  %v9310_v53 = vpack.c.bf16 %v15809_v50, %v15809_v50 }
0x11a1   :  { %v15863_v33 = vunpack.c.l.b16 %v9310_v53 }
0x11a2   :  { %v9076_v6 = vpop.f32.mrf.mxu2 }
0x11a3   :  { %v9355_v24 = vpack.c.bf16 %v9076_v6, %v9076_v6  ;;  %v15861_v6 = vunpack.c.l.b16 %v9309_v22 }
0x11a4   :  { %v15825_v49 = vpop.f32.mrf.mxu1 }
0x11a5   :  { %v15831_v27 = vunpack.c.l.b16 %v9355_v24  ;;  %v9312_v23 = vpack.c.bf16 %v15825_v49, %v15825_v49 }
0x11aa   :  { %v9078_v36 = vpop.f32.mrf.mxu2 }
0x11ab   :  { %v9356_v30 = vpack.c.bf16 %v9078_v36, %v9078_v36 }
0x11ac   :  { %v15829_v0 = vpop.f32.mrf.mxu1 }
0x11ad   :  { %v15833_v45 = vunpack.c.l.b16 %v9356_v30  ;;  %v14077_v30 = vld [vmem:[#allocation2 + $0x7f0] sm:$0xff] }
0x11af   :  { %9010 = vmatmul.bf16.gmra.mxu1 %v14053_v1  ;;  %9120 = vmatmul.bf16.gmra.mxu2 %v14075_v63 }
0x11b2   :  { %v9081_v60 = vpop.f32.mrf.mxu2 }
0x11b3   :  { %v9357_v35 = vpack.c.bf16 %v9081_v60, %v9081_v60 }
0x11b4   :  { %v15845_v40 = vpop.f32.mrf.mxu1 }
0x11b5   :  { %v15851_v62 = vunpack.c.l.b16 %v9357_v35  ;;  %v15879_v35 = vunpack.c.l.b16 %v9311_v38  ;;  %v9314_v38 = vpack.c.bf16 %v15845_v40, %v15845_v40 }
0x11ba   :  { %v9083_v55 = vpop.f32.mrf.mxu2 }
0x11bb   :  { %v9358_v44 = vpack.c.bf16 %v9083_v55, %v9083_v55  ;;  %v15881_v55 = vunpack.c.l.b16 %v9312_v23  ;;  %v14079_v23 = vld [vmem:[#allocation2 + $0x800] sm:$0xff] }
0x11bc   :  { %v15849_v15 = vpop.f32.mrf.mxu1 }
0x11bd   :  { %v15853_v5 = vunpack.c.l.b16 %v9358_v44 }
0x11bf   :  { %9015 = vmatmul.bf16.gmra.mxu1 %v14054_v19  ;;  %9125 = vmatmul.bf16.gmra.mxu2 %v14076_v39 }
0x11c2   :  { %v9086_v31 = vpop.f32.mrf.mxu2 }
0x11c3   :  { %v9359_v24 = vpack.c.bf16 %v9086_v31, %v9086_v31 }
0x11c4   :  { %v15865_v59 = vpop.f32.mrf.mxu1 }
0x11c5   :  { %v15869_v63 = vunpack.c.l.b16 %v9359_v24  ;;  %v14056_v24 = vld [vmem:[#allocation2 + $0x748] sm:$0xff] }
0x11ca   :  { %v9088_v36 = vpop.f32.mrf.mxu2 }
0x11cb   :  { %v9360_v50 = vpack.c.bf16 %v9088_v36, %v9088_v36  ;;  %v14078_v36 = vld [vmem:[#allocation2 + $0x7f8] sm:$0xff] }
0x11cc   :  { %v8981_v1 = vpop.f32.mrf.mxu1 }
0x11cd   :  { %v15871_v57 = vunpack.c.l.b16 %v9360_v50  ;;  %v9317_v7 = vpack.c.bf16 %v8981_v1, %v8981_v1  ;;  %v9313_v1 = vpack.c.bf16 %v15829_v0, %v15829_v0 }
0x11cf   :  { %9020 = vmatmul.bf16.gmra.mxu1 %v14055_v47  ;;  %9130 = vmatmul.bf16.gmra.mxu2 %v14077_v30  ;;  %v9495_v19 = vunpack.c.l.b16 %v9317_v7 }
0x11d2   :  { %v9091_v16 = vpop.f32.mrf.mxu2 }
0x11d3   :  { %v9361_v53 = vpack.c.bf16 %v9091_v16, %v9091_v16 }
0x11d4   :  { %v8983_v44 = vpop.f32.mrf.mxu1 }
0x11d5   :  { %v9318_v39 = vpack.c.bf16 %v8983_v44, %v8983_v44  ;;  %v15885_v47 = vunpack.c.l.b16 %v9361_v53  ;;  %v15895_v44 = vunpack.c.l.b16 %v9313_v1 }
0x11d7   :  { %v9496_v22 = vunpack.c.l.b16 %v9318_v39 }
0x11d9   :  { %v9511_v49 = vpack.c.b16 %v9496_v22, %v9495_v19  ;;  %v15897_v19 = vunpack.c.l.b16 %v9314_v38  ;;  %v14115_v38 = vld [vmem:[#allocation4 + $0x6e0] sm:$0xff] }
0x11da   :  { %v9093_v20 = vpop.f32.mrf.mxu2  ;;  %9723 = vmatpush.bf16.msra.mxu1 %v14115_v38  ;;  %v14080_v38 = vld [vmem:[#allocation2 + $0x808] sm:$0xff] }
0x11db   :  { %v9362_v31 = vpack.c.bf16 %v9093_v20, %v9093_v20  ;;  %9583 = vmatmul.bf16.vlgmr.msra.gmra.mxu0 %v9511_v49 }
0x11dc   :  { %v8986_v50 = vpop.f32.mrf.mxu1 }
0x11dd   :  { %v15887_v30 = vunpack.c.l.b16 %v9362_v31  ;;  %v9319_v7 = vpack.c.bf16 %v8986_v50, %v8986_v50 }
0x11df   :  { %9025 = vmatmul.bf16.gmra.mxu1 %v14056_v24  ;;  %9135 = vmatmul.bf16.gmra.mxu2 %v14078_v36  ;;  %v9497_v22 = vunpack.c.l.b16 %v9319_v7  ;;  %v14057_v36 = vld [vmem:[#allocation2 + $0x750] sm:$0xff]  ;;  %v9315_v7 = vpack.c.bf16 %v15849_v15, %v15849_v15  ;;  %v14134_v15 = vld [vmem:[#allocation4 + $0x778] sm:$0xff] }
0x11e0   :  { %9882 = vmatpush.bf16.msrb.mxu0 %v14134_v15 }
0x11e2   :  { %v9096_v16 = vpop.f32.mrf.mxu2 }
0x11e3   :  { %v9363_v20 = vpack.c.bf16 %v9096_v16, %v9096_v16  ;;  %v14058_v16 = vld [vmem:[#allocation2 + $0x758] sm:$0xff] }
0x11e4   :  { %v8988_v39 = vpop.f32.mrf.mxu1 }
0x11e5   :  { %v9320_v53 = vpack.c.bf16 %v8988_v39, %v8988_v39  ;;  %v15901_v60 = vunpack.c.l.b16 %v9363_v20  ;;  %v9316_v39 = vpack.c.bf16 %v15865_v59, %v15865_v59 }
0x11e7   :  { %v9498_v49 = vunpack.c.l.b16 %v9320_v53  ;;  %v15913_v20 = vunpack.c.l.b16 %v9316_v39  ;;  %v14114_v39 = vld [vmem:[#allocation4 + $0x6d8] sm:$0xff] }
0x11e8   :  { %9724 = vmatpush.bf16.msra.mxu1 %v14114_v39 }
0x11e9   :  { %v9512_v40 = vpack.c.b16 %v9498_v49, %v9497_v22  ;;  %v15911_v49 = vunpack.c.l.b16 %v9315_v7 }
0x11ea   :  { %v9098_v31 = vpop.f32.mrf.mxu2 }
0x11eb   :  { %v9364_v24 = vpack.c.bf16 %v9098_v31, %v9098_v31  ;;  %9588 = vmatmul.bf16.gmra.mxu0 %v9512_v40 }
0x11ec   :  { %v8991_v50 = vpop.f32.mrf.mxu1 }
0x11ed   :  { %v15903_v1 = vunpack.c.l.b16 %v9364_v24  ;;  %v9321_v22 = vpack.c.bf16 %v8991_v50, %v8991_v50 }
0x11ef   :  { %9030 = vmatmul.bf16.gmra.mxu1 %v14057_v36  ;;  %9140 = vmatmul.bf16.gmra.mxu2 %v14079_v23  ;;  %v9499_v31 = vunpack.c.l.b16 %v9321_v22 }
0x11f2   :  { %v9101_v53 = vpop.f32.mrf.mxu2 }
0x11f3   :  { %v9365_v59 = vpack.c.bf16 %v9101_v53, %v9101_v53 }
0x11f4   :  { %v8993_v40 = vpop.f32.mrf.mxu1 }
0x11f5   :  { %v9322_v24 = vpack.c.bf16 %v8993_v40, %v8993_v40  ;;  %v15917_v56 = vunpack.c.l.b16 %v9365_v59 }
0x11f7   :  { %v9500_v3 = vunpack.c.l.b16 %v9322_v24 }
0x11f9   :  { %v9513_v36 = vpack.c.b16 %v9500_v3, %v9499_v31  ;;  %v14113_v3 = vld [vmem:[#allocation4 + $0x6d0] sm:$0xff] }
0x11fa   :  { %v9103_v23 = vpop.f32.mrf.mxu2  ;;  %9725 = vmatpush.bf16.msra.mxu1 %v14113_v3 }
0x11fb   :  { %v9366_v13 = vpack.c.bf16 %v9103_v23, %v9103_v23  ;;  %9593 = vmatmul.bf16.gmra.mxu0 %v9513_v36  ;;  %v14178_v23 = vld [vmem:[#allocation4 + $0x8d8] sm:$0xff] }
0x11fc   :  { %v8996_v50 = vpop.f32.mrf.mxu1  ;;  %10954 = vmatpush.bf16.msrb.mxu3 %v14178_v23 }
0x11fd   :  { %v15919_v7 = vunpack.c.l.b16 %v9366_v13  ;;  %v9323_v40 = vpack.c.bf16 %v8996_v50, %v8996_v50 }
0x11fe   :  { %9726 = vmatpush.bf16.msra.mxu1 %v14112_v9 }
0x11ff   :  { %9035 = vmatmul.bf16.gmra.mxu1 %v14058_v16  ;;  %9145 = vmatmul.bf16.gmra.mxu2 %v14080_v38  ;;  %v9501_v24 = vunpack.c.l.b16 %v9323_v40  ;;  %v14059_v16 = vld [vmem:[#allocation2 + $0x760] sm:$0xff]  ;;  %v14081_v38 = vld [vmem:[#allocation2 + $0x810] sm:$0xff] }
0x1202   :  { %v9106_v53 = vpop.f32.mrf.mxu2  ;;  %9727 = vmatpush.bf16.msra.mxu1 %v14111_v54 }
0x1203   :  { %v9367_v13 = vpack.c.bf16 %v9106_v53, %v9106_v53 }
0x1204   :  { %v8998_v31 = vpop.f32.mrf.mxu1 }
0x1205   :  { %v9324_v36 = vpack.c.bf16 %v8998_v31, %v8998_v31  ;;  %v15923_v39 = vunpack.c.l.b16 %v9367_v13  ;;  %v14060_v13 = vld [vmem:[#allocation2 + $0x768] sm:$0xff] }
0x1207   :  { %v9502_v59 = vunpack.c.l.b16 %v9324_v36 }
0x1209   :  { %v9514_v17 = vpack.c.b16 %v9502_v59, %v9501_v24 }
0x120a   :  { %v9108_v29 = vpop.f32.mrf.mxu2 }
0x120b   :  { %v9368_v22 = vpack.c.bf16 %v9108_v29, %v9108_v29  ;;  %9598 = vmatmul.bf16.gmra.mxu0 %v9514_v17 }
0x120c   :  { %v9001_v50 = vpop.f32.mrf.mxu1 }
0x120d   :  { %v15925_v3 = vunpack.c.l.b16 %v9368_v22  ;;  %v9325_v9 = vpack.c.bf16 %v9001_v50, %v9001_v50  ;;  %v14082_v22 = vld [vmem:[#allocation2 + $0x818] sm:$0xff]  ;;  %v14133_v50 = vld [vmem:[#allocation4 + $0x770] sm:$0xff] }
0x120e   :  { %9883 = vmatpush.bf16.msrb.mxu0 %v14133_v50 }
0x120f   :  { %9040 = vmatmul.bf16.gmra.mxu1 %v14059_v16  ;;  %9150 = vmatmul.bf16.gmra.mxu2 %v14081_v38  ;;  %v9503_v24 = vunpack.c.l.b16 %v9325_v9  ;;  %v14129_v9 = vld [vmem:[#allocation4 + $0x750] sm:$0xff] }
0x1212   :  { %v9111_v53 = vpop.f32.mrf.mxu2 }
0x1213   :  { %v9369_v17 = vpack.c.bf16 %v9111_v53, %v9111_v53 }
0x1214   :  { %v9003_v31 = vpop.f32.mrf.mxu1 }
0x1215   :  { %v9326_v36 = vpack.c.bf16 %v9003_v31, %v9003_v31  ;;  %v15929_v16 = vunpack.c.l.b16 %v9369_v17 }
0x1217   :  { %v9504_v29 = vunpack.c.l.b16 %v9326_v36 }
0x1219   :  { %v9515_v23 = vpack.c.b16 %v9504_v29, %v9503_v24  ;;  %v14132_v24 = vld [vmem:[#allocation4 + $0x768] sm:$0xff] }
0x121a   :  { %v9113_v59 = vpop.f32.mrf.mxu2  ;;  %9884 = vmatpush.bf16.msrb.mxu0 %v14132_v24  ;;  %v14128_v24 = vld [vmem:[#allocation4 + $0x748] sm:$0xff] }
0x121b   :  { %v9370_v54 = vpack.c.bf16 %v9113_v59, %v9113_v59  ;;  %9603 = vmatmul.bf16.gmra.mxu0 %v9515_v23  ;;  %v14131_v59 = vld [vmem:[#allocation4 + $0x760] sm:$0xff] }
0x121c   :  { %v9006_v0 = vpop.f32.mrf.mxu1 }
0x121d   :  { %v15931_v38 = vunpack.c.l.b16 %v9370_v54  ;;  %v9327_v53 = vpack.c.bf16 %v9006_v0, %v9006_v0 }
0x121e   :  { %9885 = vmatpush.bf16.msrb.mxu0 %v14131_v59 }
0x121f   :  { %9045 = vmatmul.bf16.gmra.mxu1 %v14060_v13  ;;  %9155 = vmatmul.bf16.gmra.mxu2 %v14082_v22  ;;  %v9505_v29 = vunpack.c.l.b16 %v9327_v53  ;;  %v14083_v22 = vld [vmem:[#allocation2 + $0x820] sm:$0xff] }
0x1222   :  { %v9116_v31 = vpop.f32.mrf.mxu2  ;;  %9886 = vmatpush.bf16.msrb.mxu0 %v14130_v42 }
0x1223   :  { %v9371_v17 = vpack.c.bf16 %v9116_v31, %v9116_v31 }
0x1224   :  { %v9008_v36 = vpop.f32.mrf.mxu1 }
0x1225   :  { %v9328_v23 = vpack.c.bf16 %v9008_v36, %v9008_v36  ;;  %v15935_v50 = vunpack.c.l.b16 %v9371_v17 }
0x1226   :  { %9887 = vmatpush.bf16.msrb.mxu0 %v14129_v9 }
0x1227   :  { %v9506_v15 = vunpack.c.l.b16 %v9328_v23  ;;  %v14127_v23 = vld [vmem:[#allocation4 + $0x740] sm:$0xff] }
0x1229   :  { %v9516_v54 = vpack.c.b16 %v9506_v15, %v9505_v29 }
0x122a   :  { %v9118_v40 = vpop.f32.mrf.mxu2  ;;  %9888 = vmatpush.bf16.msrb.mxu0 %v14128_v24 }
0x122b   :  { %v9372_v13 = vpack.c.bf16 %v9118_v40, %v9118_v40  ;;  %9608 = vmatmul.bf16.gmra.mxu0 %v9516_v54 }
0x122c   :  { %v9011_v14 = vpop.f32.mrf.mxu1 }
0x122d   :  { %v15937_v0 = vunpack.c.l.b16 %v9372_v13  ;;  %v9329_v31 = vpack.c.bf16 %v9011_v14, %v9011_v14  ;;  %v14088_v14 = vld [vmem:[#allocation2 + $0x848] sm:$0xff] }
0x122e   :  { %9889 = vmatpush.bf16.msrb.mxu0 %v14127_v23 }
0x122f   :  { %9160 = vmatmul.bf16.gmra.mxu2 %v14083_v22  ;;  %9728 = vmatmul.bf16.vlgmr.msra.gmra.mxu1 %v9656_v61  ;;  %v9507_v42 = vunpack.c.l.b16 %v9329_v31 }
0x1232   :  { %v9121_v40 = vpop.f32.mrf.mxu2 }
0x1233   :  { %v9373_v15 = vpack.c.bf16 %v9121_v40, %v9121_v40 }
0x1234   :  { %v9013_v36 = vpop.f32.mrf.mxu1 }
0x1235   :  { %v9330_v29 = vpack.c.bf16 %v9013_v36, %v9013_v36  ;;  %v15944_v61 = vunpack.c.l.b16 %v9373_v15 }
0x1237   :  { %v9508_v59 = vunpack.c.l.b16 %v9330_v29 }
0x1239   :  { %v9517_v17 = vpack.c.b16 %v9508_v59, %v9507_v42 }
0x123a   :  { %v9123_v54 = vpop.f32.mrf.mxu2 }
0x123b   :  { %v9374_v13 = vpack.c.bf16 %v9123_v54, %v9123_v54  ;;  %9613 = vmatmul.bf16.gmra.mxu0 %v9517_v17  ;;  %v14085_v17 = vld [vmem:[#allocation2 + $0x830] sm:$0xff] }
0x123c   :  { %v9016_v43 = vpop.f32.mrf.mxu1 }
0x123d   :  { %v15946_v9 = vunpack.c.l.b16 %v9374_v13  ;;  %v9331_v22 = vpack.c.bf16 %v9016_v43, %v9016_v43 }
0x123f   :  { %9165 = vmatmul.bf16.gmra.mxu2 %v14084_v2  ;;  %9733 = vmatmul.bf16.gmra.mxu1 %v9657_v46  ;;  %v9509_v24 = vunpack.c.l.b16 %v9331_v22 }
0x1242   :  { %v9126_v31 = vpop.f32.mrf.mxu2 }
0x1243   :  { %v9375_v29 = vpack.c.bf16 %v9126_v31, %v9126_v31 }
0x1244   :  { %v9018_v40 = vpop.f32.mrf.mxu1 }
0x1245   :  { %v9332_v36 = vpack.c.bf16 %v9018_v40, %v9018_v40  ;;  %v15953_v13 = vunpack.c.l.b16 %v9375_v29 }
0x1247   :  { %v9510_v42 = vunpack.c.l.b16 %v9332_v36 }
0x1249   :  { %v9518_v23 = vpack.c.b16 %v9510_v42, %v9509_v24 }
0x124a   :  { %v9128_v59 = vpop.f32.mrf.mxu2 }
0x124b   :  { %v9376_v15 = vpack.c.bf16 %v9128_v59, %v9128_v59  ;;  %9618 = vmatmul.bf16.gmra.mxu0 %v9518_v23  ;;  %v14086_v59 = vld [vmem:[#allocation2 + $0x838] sm:$0xff] }
0x124c   :  { %v9021_v54 = vpop.f32.mrf.mxu1 }
0x124d   :  { %v15955_v37 = vunpack.c.l.b16 %v9376_v15  ;;  %v9333_v46 = vpack.c.bf16 %v9021_v54, %v9021_v54 }
0x124f   :  { %9170 = vmatmul.bf16.gmra.mxu2 %v14085_v17  ;;  %9738 = vmatmul.bf16.gmra.mxu1 %v9658_v26  ;;  %v9802_v22 = vunpack.c.l.b16 %v9333_v46  ;;  %v14142_v26 = vld [vmem:[#allocation4 + $0x7b8] sm:$0xff] }
0x1250   :  { %10060 = vmatpush.bf16.msrb.mxu1 %v14142_v26 }
0x1252   :  { %v9131_v2 = vpop.f32.mrf.mxu2 }
0x1253   :  { %v9377_v36 = vpack.c.bf16 %v9131_v2, %v9131_v2 }
0x1254   :  { %v9023_v43 = vpop.f32.mrf.mxu1 }
0x1255   :  { %v9334_v31 = vpack.c.bf16 %v9023_v43, %v9023_v43  ;;  %v15964_v52 = vunpack.c.l.b16 %v9377_v36 }
0x1257   :  { %v9803_v40 = vunpack.c.l.b16 %v9334_v31 }
0x1258   :  { %v15962_v24 = vpop.f32.mrf.mxu0 }
0x1259   :  { %v9818_v42 = vpack.c.b16 %v9803_v40, %v9802_v22 }
0x125a   :  { %v9133_v29 = vpop.f32.mrf.mxu2 }
0x125b   :  { %v9378_v23 = vpack.c.bf16 %v9133_v29, %v9133_v29  ;;  %9890 = vmatmul.bf16.vlgmr.msrb.gmra.mxu0 %v9818_v42 }
0x125c   :  { %v9026_v15 = vpop.f32.mrf.mxu1 }
0x125d   :  { %v15966_v58 = vunpack.c.l.b16 %v9378_v23  ;;  %v9335_v54 = vpack.c.bf16 %v9026_v15, %v9026_v15  ;;  %v16710_v15 = vpack.c.b16 %v15863_v33, %v15861_v6 }
0x125f   :  { %9175 = vmatmul.bf16.gmra.mxu2 %v14086_v59  ;;  %9743 = vmatmul.bf16.gmra.mxu1 %v9659_v34  ;;  %v9804_v43 = vunpack.c.l.b16 %v9335_v54 }
0x1260   :  { %v15973_v17 = vpop.f32.mrf.mxu0 }
0x1262   :  { %v9136_v46 = vpop.f32.mrf.mxu2 }
0x1263   :  { %v9379_v36 = vpack.c.bf16 %v9136_v46, %v9136_v46 }
0x1264   :  { %v9028_v2 = vpop.f32.mrf.mxu1 }
0x1265   :  { %v9336_v22 = vpack.c.bf16 %v9028_v2, %v9028_v2  ;;  %v15977_v34 = vunpack.c.l.b16 %v9379_v36 }
0x1267   :  { %v9805_v31 = vunpack.c.l.b16 %v9336_v22  ;;  %16708 = vst [vmem:[#allocation26_spill] sm:$0xff] %v15977_v34  ;;  %v14141_v22 = vld [vmem:[#allocation4 + $0x7b0] sm:$0xff] }
0x1268   :  { %v15975_v40 = vpop.f32.mrf.mxu0  ;;  %10061 = vmatpush.bf16.msrb.mxu1 %v14141_v22 }
0x1269   :  { %v9819_v42 = vpack.c.b16 %v9805_v31, %v9804_v43 }
0x126a   :  { %v9138_v29 = vpop.f32.mrf.mxu2 }
0x126b   :  { %v9380_v23 = vpack.c.bf16 %v9138_v29, %v9138_v29  ;;  %9895 = vmatmul.bf16.gmra.mxu0 %v9819_v42  ;;  %v14140_v29 = vld [vmem:[#allocation4 + $0x7a8] sm:$0xff] }
0x126c   :  { %v9031_v10 = vpop.f32.mrf.mxu1  ;;  %10062 = vmatpush.bf16.msrb.mxu1 %v14140_v29  ;;  %v14137_v29 = vld [vmem:[#allocation4 + $0x790] sm:$0xff] }
0x126d   :  { %v15979_v59 = vunpack.c.l.b16 %v9380_v23  ;;  %v9337_v2 = vpack.c.bf16 %v9031_v10, %v9031_v10 }
0x126f   :  { %16709 = vst [vmem:[#allocation19_spill] sm:$0xff] %v15979_v59  ;;  %9180 = vmatmul.bf16.gmra.mxu2 %v14087_v32  ;;  %9748 = vmatmul.bf16.gmra.mxu1 %v16710_v15  ;;  %v9806_v36 = vunpack.c.l.b16 %v9337_v2  ;;  %v14138_v2 = vld [vmem:[#allocation4 + $0x798] sm:$0xff] }
0x1270   :  { %v15986_v46 = vpop.f32.mrf.mxu0  ;;  %10063 = vmatpush.bf16.msrb.mxu1 %v14139_v25 }
0x1272   :  { %v9141_v43 = vpop.f32.mrf.mxu2 }
0x1273   :  { %v9381_v6 = vpack.c.bf16 %v9141_v43, %v9141_v43  ;;  %v16711_v43 = vpack.c.b16 %v15881_v55, %v15879_v35  ;;  %v14135_v35 = vld [vmem:[#allocation4 + $0x780] sm:$0xff] }
0x1274   :  { %v9033_v31 = vpop.f32.mrf.mxu1  ;;  %10064 = vmatpush.bf16.msrb.mxu1 %v14138_v2 }
0x1275   :  { %v9338_v42 = vpack.c.bf16 %v9033_v31, %v9033_v31  ;;  %v15990_v10 = vunpack.c.l.b16 %v9381_v6  ;;  %v14136_v6 = vld [vmem:[#allocation4 + $0x788] sm:$0xff] }
0x1277   :  { %v9807_v23 = vunpack.c.l.b16 %v9338_v42 }
0x1278   :  { %v15988_v32 = vpop.f32.mrf.mxu0  ;;  %10065 = vmatpush.bf16.msrb.mxu1 %v14137_v29 }
0x1279   :  { %v9820_v33 = vpack.c.b16 %v9807_v23, %v9806_v36 }
0x127a   :  { %v9143_v15 = vpop.f32.mrf.mxu2 }
0x127b   :  { %v9382_v54 = vpack.c.bf16 %v9143_v15, %v9143_v15  ;;  %9900 = vmatmul.bf16.gmra.mxu0 %v9820_v33 }
0x127c   :  { %v9036_v26 = vpop.f32.mrf.mxu1  ;;  %10066 = vmatpush.bf16.msrb.mxu1 %v14136_v6  ;;  %v14177_v6 = vld [vmem:[#allocation4 + $0x8d0] sm:$0xff] }
0x127d   :  { %v15992_v53 = vunpack.c.l.b16 %v9382_v54  ;;  %v9339_v36 = vpack.c.bf16 %v9036_v26, %v9036_v26  ;;  %10955 = vmatpush.bf16.msrb.mxu3 %v14177_v6 }
0x127f   :  { %9185 = vmatmul.bf16.gmra.mxu2 %v14088_v14  ;;  %9753 = vmatmul.bf16.gmra.mxu1 %v16711_v43  ;;  %v9808_v23 = vunpack.c.l.b16 %v9339_v36  ;;  %v14089_v43 = vld [vmem:[#allocation2 + $0x850] sm:$0xff]  ;;  %v16714_v36 = vpack.c.b16 %v15897_v19, %v15895_v44  ;;  %v14150_v44 = vld [vmem:[#allocation4 + $0x7f8] sm:$0xff] }
0x1280   :  { %v15999_v31 = vpop.f32.mrf.mxu0  ;;  %10067 = vmatpush.bf16.msrb.mxu1 %v14135_v35  ;;  %10238 = vmatpush.bf16.msra.mxu0 %v14150_v44  ;;  %v14147_v44 = vld [vmem:[#allocation4 + $0x7e0] sm:$0xff] }
0x1282   :  { %v9146_v42 = vpop.f32.mrf.mxu2 }
0x1283   :  { %v9383_v14 = vpack.c.bf16 %v9146_v42, %v9146_v42 }
0x1284   :  { %v9038_v25 = vpop.f32.mrf.mxu1 }
0x1285   :  { %v9340_v54 = vpack.c.bf16 %v9038_v25, %v9038_v25  ;;  %v16003_v26 = vunpack.c.l.b16 %v9383_v14 }
0x1287   :  { %v9809_v33 = vunpack.c.l.b16 %v9340_v54  ;;  %16712 = vst [vmem:[#allocation16_spill] sm:$0xff] %v16003_v26 }
0x1288   :  { %v16001_v15 = vpop.f32.mrf.mxu0 }
0x1289   :  { %v9821_v22 = vpack.c.b16 %v9809_v33, %v9808_v23 }
0x128a   :  { %v9148_v34 = vpop.f32.mrf.mxu2 }
0x128b   :  { %v9384_v55 = vpack.c.bf16 %v9148_v34, %v9148_v34  ;;  %9905 = vmatmul.bf16.gmra.mxu0 %v9821_v22 }
0x128c   :  { %v9041_v2 = vpop.f32.mrf.mxu1 }
0x128d   :  { %v16005_v59 = vunpack.c.l.b16 %v9384_v55  ;;  %v9341_v25 = vpack.c.bf16 %v9041_v2, %v9041_v2 }
0x128f   :  { %16713 = vst [vmem:[#allocation34_spill] sm:$0xff] %v16005_v59  ;;  %9190 = vmatmul.bf16.gmra.mxu2 %v14089_v43  ;;  %9758 = vmatmul.bf16.gmra.mxu1 %v16714_v36  ;;  %v9810_v23 = vunpack.c.l.b16 %v9341_v25  ;;  %v14090_v36 = vld [vmem:[#allocation2 + $0x858] sm:$0xff]  ;;  %v14149_v25 = vld [vmem:[#allocation4 + $0x7f0] sm:$0xff] }
0x1290   :  { %v16012_v29 = vpop.f32.mrf.mxu0  ;;  %10239 = vmatpush.bf16.msra.mxu0 %v14149_v25  ;;  %v14146_v59 = vld [vmem:[#allocation4 + $0x7d8] sm:$0xff] }
0x1292   :  { %v9151_v34 = vpop.f32.mrf.mxu2 }
0x1293   :  { %v9385_v35 = vpack.c.bf16 %v9151_v34, %v9151_v34 }
0x1294   :  { %v9043_v22 = vpop.f32.mrf.mxu1 }
0x1295   :  { %v9342_v54 = vpack.c.bf16 %v9043_v22, %v9043_v22  ;;  %v16016_v26 = vunpack.c.l.b16 %v9385_v35  ;;  %v16717_v22 = vpack.c.b16 %v15913_v20, %v15911_v49 }
0x1297   :  { %v9811_v33 = vunpack.c.l.b16 %v9342_v54  ;;  %16715 = vst [vmem:[#allocation24_spill] sm:$0xff] %v16016_v26  ;;  %v14091_v26 = vld [vmem:[#allocation2 + $0x860] sm:$0xff] }
0x1298   :  { %v16014_v14 = vpop.f32.mrf.mxu0 }
0x1299   :  { %v9822_v55 = vpack.c.b16 %v9811_v33, %v9810_v23  ;;  %v14148_v33 = vld [vmem:[#allocation4 + $0x7e8] sm:$0xff] }
0x129a   :  { %v9153_v43 = vpop.f32.mrf.mxu2  ;;  %10240 = vmatpush.bf16.msra.mxu0 %v14148_v33  ;;  %v16718_v33 = vpack.c.b16 %v15791_v21, %v15789_v48  ;;  %v16719_v48 = vpack.c.b16 %v15777_v4, %v15775_v41  ;;  %v14092_v21 = vld [vmem:[#allocation2 + $0x868] sm:$0xff] }
0x129b   :  { %v9386_v19 = vpack.c.bf16 %v9153_v43, %v9153_v43  ;;  %9910 = vmatmul.bf16.gmra.mxu0 %v9822_v55 }
0x129c   :  { %v9046_v42 = vpop.f32.mrf.mxu1 }
0x129d   :  { %v16018_v2 = vunpack.c.l.b16 %v9386_v19  ;;  %v9343_v54 = vpack.c.bf16 %v9046_v42, %v9046_v42 }
0x129e   :  { %10241 = vmatpush.bf16.msra.mxu0 %v14147_v44 }
0x129f   :  { %16716 = vst [vmem:[#allocation40_spill] sm:$0xff] %v16018_v2  ;;  %9195 = vmatmul.bf16.gmra.mxu2 %v14090_v36  ;;  %9763 = vmatmul.bf16.gmra.mxu1 %v16717_v22  ;;  %v9812_v35 = vunpack.c.l.b16 %v9343_v54  ;;  %v14145_v54 = vld [vmem:[#allocation4 + $0x7d0] sm:$0xff] }
0x12a0   :  { %v16025_v23 = vpop.f32.mrf.mxu0 }
0x12a2   :  { %v9156_v6 = vpop.f32.mrf.mxu2  ;;  %10242 = vmatpush.bf16.msra.mxu0 %v14146_v59  ;;  %v14143_v59 = vld [vmem:[#allocation4 + $0x7c0] sm:$0xff] }
0x12a3   :  { %v9387_v49 = vpack.c.bf16 %v9156_v6, %v9156_v6 }
0x12a4   :  { %v9048_v55 = vpop.f32.mrf.mxu1 }
0x12a5   :  { %v9344_v43 = vpack.c.bf16 %v9048_v55, %v9048_v55  ;;  %v16029_v42 = vunpack.c.l.b16 %v9387_v49 }
0x12a6   :  { %10243 = vmatpush.bf16.msra.mxu0 %v14145_v54 }
0x12a7   :  { %v9813_v19 = vunpack.c.l.b16 %v9344_v43  ;;  %v14144_v43 = vld [vmem:[#allocation4 + $0x7c8] sm:$0xff] }
0x12a8   :  { %v16027_v36 = vpop.f32.mrf.mxu0 }
0x12a9   :  { %v9823_v20 = vpack.c.b16 %v9813_v19, %v9812_v35 }
0x12aa   :  { %v9158_v22 = vpop.f32.mrf.mxu2  ;;  %10244 = vmatpush.bf16.msra.mxu0 %v14144_v43 }
0x12ab   :  { %v9388_v34 = vpack.c.bf16 %v9158_v22, %v9158_v22  ;;  %9915 = vmatmul.bf16.gmra.mxu0 %v9823_v20 }
0x12ac   :  { %v9729_v25 = vpop.f32.mrf.mxu1 }
0x12ad   :  { %v16031_v2 = vunpack.c.l.b16 %v9388_v34 }
0x12ae   :  { %10245 = vmatpush.bf16.msra.mxu0 %v14143_v59 }
0x12af   :  { %9200 = vmatmul.bf16.gmra.mxu2 %v14091_v26  ;;  %10068 = vmatmul.bf16.vlgmr.msrb.gmra.mxu1 %v16718_v33  ;;  %v16722_v33 = vpack.c.b16 %v15801_v8, %v15799_v51 }
0x12b0   :  { %v16038_v55 = vpop.f32.mrf.mxu0 }
0x12b2   :  { %v9161_v35 = vpop.f32.mrf.mxu2 }
0x12b3   :  { %v9389_v34 = vpack.c.bf16 %v9161_v35, %v9161_v35 }
0x12b4   :  { %v9731_v44 = vpop.f32.mrf.mxu1 }
0x12b5   :  { %v16045_v22 = vunpack.c.l.b16 %v9389_v34 }
0x12b7   :  { %16720 = vst [vmem:[#allocation32_spill] sm:$0xff] %v16045_v22 }
0x12b8   :  { %v16040_v19 = vpop.f32.mrf.mxu0 }
0x12ba   :  { %v9163_v26 = vpop.f32.mrf.mxu2 }
0x12bb   :  { %v9390_v49 = vpack.c.bf16 %v9163_v26, %v9163_v26  ;;  %9920 = vmatmul.bf16.gmra.mxu0 %v16719_v48 }
0x12bc   :  { %v9734_v20 = vpop.f32.mrf.mxu1 }
0x12bd   :  { %v16047_v54 = vunpack.c.l.b16 %v9390_v49  ;;  %v16723_v49 = vpack.c.b16 %v15783_v12, %v15781_v11  ;;  %v9730_v11 = vadd.f32 %v9729_v25, %v15962_v24  ;;  %v16727_v24 = vpack.c.b16 %v15833_v45, %v15831_v27  ;;  %v14095_v45 = vld [vmem:[#allocation2 + $0x880] sm:$0xff] }
0x12be   :  { %v16728_v27 = vpack.c.b16 %v15925_v3, %v15923_v39 }
0x12bf   :  { %16721 = vst [vmem:[#allocation41_spill] sm:$0xff] %v16047_v54  ;;  %9205 = vmatmul.bf16.gmra.mxu2 %v14092_v21  ;;  %10073 = vmatmul.bf16.gmra.mxu1 %v16722_v33  ;;  %v14093_v21 = vld [vmem:[#allocation2 + $0x870] sm:$0xff]  ;;  %v16725_v33 = vpack.c.b16 %v15817_v18, %v15815_v28  ;;  %v14094_v28 = vld [vmem:[#allocation2 + $0x878] sm:$0xff] }
0x12c0   :  { %v16054_v43 = vpop.f32.mrf.mxu0 }
0x12c2   :  { %v9166_v59 = vpop.f32.mrf.mxu2 }
0x12c3   :  { %v9391_v4 = vpack.c.bf16 %v9166_v59, %v9166_v59 }
0x12c4   :  { %v9736_v26 = vpop.f32.mrf.mxu1 }
0x12c5   :  { %v16061_v51 = vunpack.c.l.b16 %v9391_v4 }
0x12c7   :  { %16724 = vst [vmem:[#allocation39_spill] sm:$0xff] %v16061_v51  ;;  %v9732_v51 = vadd.f32 %v9731_v44, %v15973_v17 }
0x12c8   :  { %v16056_v41 = vpop.f32.mrf.mxu0 }
0x12ca   :  { %v9168_v48 = vpop.f32.mrf.mxu2 }
0x12cb   :  { %v9392_v34 = vpack.c.bf16 %v9168_v48, %v9168_v48  ;;  %9925 = vmatmul.bf16.gmra.mxu0 %v16723_v49 }
0x12cc   :  { %v9739_v6 = vpop.f32.mrf.mxu1 }
0x12cd   :  { %v16063_v8 = vunpack.c.l.b16 %v9392_v34 }
0x12cf   :  { %9210 = vmatmul.bf16.gmra.mxu2 %v14093_v21  ;;  %10078 = vmatmul.bf16.gmra.mxu1 %v16725_v33  ;;  %v16726_v21 = vpack.c.b16 %v15919_v7, %v15917_v56 }
0x12d0   :  { %v16070_v35 = vpop.f32.mrf.mxu0 }
0x12d2   :  { %v9171_v48 = vpop.f32.mrf.mxu2 }
0x12d3   :  { %v9393_v49 = vpack.c.bf16 %v9171_v48, %v9171_v48 }
0x12d4   :  { %v9741_v22 = vpop.f32.mrf.mxu1 }
0x12d5   :  { %v16078_v33 = vunpack.c.l.b16 %v9393_v49 }
0x12d8   :  { %v9891_v12 = vpop.f32.mrf.mxu0 }
0x12d9   :  { %v16073_v4 = vadd.f32 %v9891_v12, %v9730_v11  ;;  %v9735_v12 = vadd.f32 %v9734_v20, %v15975_v40  ;;  %v9737_v40 = vadd.f32 %v9736_v26, %v15986_v46  ;;  %v16729_v20 = vpack.c.b16 %v15853_v5, %v15851_v62 }
0x12da   :  { %v9173_v34 = vpop.f32.mrf.mxu2  ;;  %v9740_v46 = vadd.f32 %v9739_v6, %v15988_v32  ;;  %v14154_v32 = vld [vmem:[#allocation4 + $0x818] sm:$0xff]  ;;  %v9742_v6 = vadd.f32 %v9741_v22, %v15999_v31 }
0x12db   :  { %v9394_v54 = vpack.c.bf16 %v9173_v34, %v9173_v34  ;;  %10246 = vmatmul.bf16.vlgmr.msra.gmra.mxu0 %v16726_v21 }
0x12dc   :  { %v9744_v18 = vpop.f32.mrf.mxu1 }
0x12dd   :  { %v16080_v59 = vunpack.c.l.b16 %v9394_v54  ;;  %v9745_v31 = vadd.f32 %v9744_v18, %v16001_v15  ;;  %v16733_v18 = vpack.c.b16 %v15887_v30, %v15885_v47  ;;  %v16734_v30 = vpack.c.b16 %v15946_v9, %v15944_v61 }
0x12df   :  { %9215 = vmatmul.bf16.gmra.mxu2 %v14094_v28  ;;  %10083 = vmatmul.bf16.gmra.mxu1 %v16727_v24  ;;  %v10358_v25 = vpack.c.b16 %v16080_v59, %v16078_v33  ;;  %v14158_v24 = vld [vmem:[#allocation4 + $0x838] sm:$0xff] }
0x12e0   :  { %v9893_v48 = vpop.f32.mrf.mxu0  ;;  %10416 = vmatpush.bf16.msra.mxu1 %v14158_v24  ;;  %v14096_v24 = vld [vmem:[#allocation2 + $0x888] sm:$0xff] }
0x12e1   :  { %v16088_v11 = vadd.f32 %v9893_v48, %v9732_v51 }
0x12e2   :  { %v9176_v56 = vpop.f32.mrf.mxu2 }
0x12e3   :  { %v9395_v49 = vpack.c.bf16 %v9176_v56, %v9176_v56 }
0x12e4   :  { %v16090_v7 = vpop.f32.mrf.mxu1 }
0x12e5   :  { %v16100_v51 = vunpack.c.l.b16 %v9395_v49  ;;  %v14156_v49 = vld [vmem:[#allocation4 + $0x828] sm:$0xff]  ;;  %v9747_v15 = vadd.f32 %v16090_v7, %v16012_v29 }
0x12e8   :  { %v9896_v54 = vpop.f32.mrf.mxu0 }
0x12e9   :  { %v16093_v34 = vadd.f32 %v9896_v54, %v9735_v12  ;;  %v14157_v12 = vld [vmem:[#allocation4 + $0x830] sm:$0xff] }
0x12ea   :  { %v9178_v17 = vpop.f32.mrf.mxu2  ;;  %10417 = vmatpush.bf16.msra.mxu1 %v14157_v12  ;;  %v16731_v12 = vpack.c.b16 %v15871_v57, %v15869_v63  ;;  %v14151_v63 = vld [vmem:[#allocation4 + $0x800] sm:$0xff] }
0x12eb   :  { %v9396_v44 = vpack.c.bf16 %v9178_v17, %v9178_v17  ;;  %10251 = vmatmul.bf16.gmra.mxu0 %v16728_v27 }
0x12ec   :  { %v16098_v21 = vpop.f32.mrf.mxu1 }
0x12ed   :  { %v16102_v28 = vunpack.c.l.b16 %v9396_v44  ;;  %v14155_v44 = vld [vmem:[#allocation4 + $0x820] sm:$0xff] }
0x12ee   :  { %10418 = vmatpush.bf16.msra.mxu1 %v14156_v49 }
0x12ef   :  { %9220 = vmatmul.bf16.gmra.mxu2 %v14095_v45  ;;  %10088 = vmatmul.bf16.gmra.mxu1 %v16729_v20  ;;  %v10359_v48 = vpack.c.b16 %v16102_v28, %v16100_v51  ;;  %v16730_v45 = vpack.c.b16 %v15931_v38, %v15929_v16  ;;  %v14107_v51 = vld [vmem:[#allocation2 + $0x8e0] sm:$0xff] }
0x12f0   :  { %v9898_v39 = vpop.f32.mrf.mxu0 }
0x12f1   :  { %v16110_v3 = vadd.f32 %v9898_v39, %v9737_v40 }
0x12f2   :  { %v9181_v56 = vpop.f32.mrf.mxu2  ;;  %10419 = vmatpush.bf16.msra.mxu1 %v14155_v44 }
0x12f3   :  { %v9397_v17 = vpack.c.bf16 %v9181_v56, %v9181_v56 }
0x12f4   :  { %v16112_v54 = vpop.f32.mrf.mxu1 }
0x12f5   :  { %v16122_v20 = vunpack.c.l.b16 %v9397_v17  ;;  %v14152_v17 = vld [vmem:[#allocation4 + $0x808] sm:$0xff] }
0x12f6   :  { %10420 = vmatpush.bf16.msra.mxu1 %v14154_v32 }
0x12f8   :  { %v9901_v26 = vpop.f32.mrf.mxu0 }
0x12f9   :  { %v16115_v62 = vadd.f32 %v9901_v26, %v9740_v46  ;;  %v14153_v46 = vld [vmem:[#allocation4 + $0x810] sm:$0xff] }
0x12fa   :  { %v9183_v5 = vpop.f32.mrf.mxu2  ;;  %10421 = vmatpush.bf16.msra.mxu1 %v14153_v46 }
0x12fb   :  { %v9398_v27 = vpack.c.bf16 %v9183_v5, %v9183_v5  ;;  %10256 = vmatmul.bf16.gmra.mxu0 %v16730_v45  ;;  %v16732_v45 = vpack.c.b16 %v15937_v0, %v15935_v50 }
0x12fc   :  { %v16120_v40 = vpop.f32.mrf.mxu1 }
0x12fd   :  { %v16124_v39 = vunpack.c.l.b16 %v9398_v27 }
0x12fe   :  { %10422 = vmatpush.bf16.msra.mxu1 %v14152_v17  ;;  %v9750_v17 = vadd.f32 %v16098_v21, %v16014_v14  ;;  %v14165_v14 = vld [vmem:[#allocation4 + $0x870] sm:$0xff]  ;;  %v9752_v21 = vadd.f32 %v16112_v54, %v16025_v23  ;;  %v9755_v23 = vadd.f32 %v16120_v40, %v16027_v36 }
0x12ff   :  { %v10530_v56 = vpack.c.b16 %v16124_v39, %v16122_v20  ;;  %9225 = vmatmul.bf16.gmra.mxu2 %v14096_v24  ;;  %10093 = vmatmul.bf16.gmra.mxu1 %v16731_v12  ;;  %v14097_v24 = vld [vmem:[#allocation2 + $0x890] sm:$0xff] }
0x1300   :  { %v9903_v16 = vpop.f32.mrf.mxu0  ;;  %v14161_v40 = vld [vmem:[#allocation4 + $0x850] sm:$0xff] }
0x1301   :  { %v16132_v38 = vadd.f32 %v9903_v16, %v9742_v6 }
0x1302   :  { %v9186_v49 = vpop.f32.mrf.mxu2  ;;  %10423 = vmatpush.bf16.msra.mxu1 %v14151_v63 }
0x1303   :  { %v9399_v5 = vpack.c.bf16 %v9186_v49, %v9186_v49 }
0x1304   :  { %v16134_v26 = vpop.f32.mrf.mxu1 }
0x1305   :  { %v16144_v6 = vunpack.c.l.b16 %v9399_v5  ;;  %v14166_v5 = vld [vmem:[#allocation4 + $0x878] sm:$0xff] }
0x1306   :  { %10594 = vmatpush.bf16.msrb.mxu0 %v14166_v5 }
0x1308   :  { %v9906_v22 = vpop.f32.mrf.mxu0 }
0x1309   :  { %v16137_v44 = vadd.f32 %v9906_v22, %v9745_v31 }
0x130a   :  { %v9188_v27 = vpop.f32.mrf.mxu2  ;;  %10595 = vmatpush.bf16.msrb.mxu0 %v14165_v14 }
0x130b   :  { %v9400_v57 = vpack.c.bf16 %v9188_v27, %v9188_v27  ;;  %10261 = vmatmul.bf16.gmra.mxu0 %v16732_v45  ;;  %v14098_v27 = vld [vmem:[#allocation2 + $0x898] sm:$0xff] }
0x130c   :  { %v16142_v32 = vpop.f32.mrf.mxu1 }
0x130d   :  { %v16146_v12 = vunpack.c.l.b16 %v9400_v57 }
0x130f   :  { %9230 = vmatmul.bf16.gmra.mxu2 %v14097_v24  ;;  %10098 = vmatmul.bf16.gmra.mxu1 %v16733_v18  ;;  %v10531_v50 = vpack.c.b16 %v16146_v12, %v16144_v6  ;;  %v16735_v24 = vpack.c.b16 %v15903_v1, %v15901_v60 }
0x1310   :  { %v9908_v0 = vpop.f32.mrf.mxu0 }
0x1311   :  { %v16155_v16 = vadd.f32 %v9908_v0, %v9747_v15  ;;  %v14164_v0 = vld [vmem:[#allocation4 + $0x868] sm:$0xff] }
0x1312   :  { %v9191_v49 = vpop.f32.mrf.mxu2  ;;  %10596 = vmatpush.bf16.msrb.mxu0 %v14164_v0 }
0x1313   :  { %v9401_v22 = vpack.c.bf16 %v9191_v49, %v9191_v49 }
0x1314   :  { %v16157_v46 = vpop.f32.mrf.mxu1 }
0x1315   :  { %v16168_v57 = vunpack.c.l.b16 %v9401_v22 }
0x1318   :  { %v9911_v31 = vpop.f32.mrf.mxu0 }
0x1319   :  { %v16161_v29 = vadd.f32 %v9911_v31, %v9750_v17  ;;  %v14176_v17 = vld [vmem:[#allocation4 + $0x8c8] sm:$0xff]  ;;  %v14163_v31 = vld [vmem:[#allocation4 + $0x860] sm:$0xff] }
0x131a   :  { %v9193_v7 = vpop.f32.mrf.mxu2  ;;  %10956 = vmatpush.bf16.msrb.mxu3 %v14176_v17  ;;  %10597 = vmatpush.bf16.msrb.mxu0 %v14163_v31  ;;  %v14160_v17 = vld [vmem:[#allocation4 + $0x848] sm:$0xff] }
0x131b   :  { %v9402_v47 = vpack.c.bf16 %v9193_v7, %v9193_v7  ;;  %10266 = vmatmul.bf16.gmra.mxu0 %v16734_v30  ;;  %v14162_v7 = vld [vmem:[#allocation4 + $0x858] sm:$0xff]  ;;  %v14099_v30 = vld [vmem:[#allocation2 + $0x8a0] sm:$0xff] }
0x131c   :  { %v16166_v63 = vpop.f32.mrf.mxu1 }
0x131d   :  { %v16170_v45 = vunpack.c.l.b16 %v9402_v47  ;;  %v16736_v47 = vpack.c.b16 %v15955_v37, %v15953_v13 }
0x131e   :  { %10598 = vmatpush.bf16.msrb.mxu0 %v14162_v7  ;;  %v14100_v7 = vld [vmem:[#allocation2 + $0x8a8] sm:$0xff] }
0x131f   :  { %9235 = vmatmul.bf16.gmra.mxu2 %v14098_v27  ;;  %10103 = vmatmul.bf16.gmra.mxu1 %v16735_v24  ;;  %v10532_v61 = vpack.c.b16 %v16170_v45, %v16168_v57  ;;  %v9757_v24 = vadd.f32 %v16134_v26, %v16038_v55  ;;  %v9760_v55 = vadd.f32 %v16142_v32, %v16040_v19  ;;  %v16739_v32 = vld [vmem:[#allocation34_spill] sm:$0xff]  ;;  %v14168_v45 = vld [vmem:[#allocation4 + $0x888] sm:$0xff] }
0x1320   :  { %v9913_v9 = vpop.f32.mrf.mxu0  ;;  %v9762_v19 = vadd.f32 %v16157_v46, %v16054_v43 }
0x1321   :  { %v16179_v15 = vadd.f32 %v9913_v9, %v9752_v21  ;;  %v16737_v9 = vpack.c.b16 %v15992_v53, %v15990_v10 }
0x1322   :  { %v9196_v18 = vpop.f32.mrf.mxu2  ;;  %10599 = vmatpush.bf16.msrb.mxu0 %v14161_v40 }
0x1323   :  { %v9403_v1 = vpack.c.bf16 %v9196_v18, %v9196_v18 }
0x1324   :  { %v16181_v49 = vpop.f32.mrf.mxu1 }
0x1325   :  { %v16190_v14 = vunpack.c.l.b16 %v9403_v1 }
0x1326   :  { %10600 = vmatpush.bf16.msrb.mxu0 %v14160_v17 }
0x1328   :  { %v9916_v60 = vpop.f32.mrf.mxu0 }
0x1329   :  { %v16185_v54 = vadd.f32 %v9916_v60, %v9755_v23  ;;  %v14159_v23 = vld [vmem:[#allocation4 + $0x840] sm:$0xff] }
0x132a   :  { %v9198_v22 = vpop.f32.mrf.mxu2  ;;  %10601 = vmatpush.bf16.msrb.mxu0 %v14159_v23 }
0x132b   :  { %v9404_v5 = vpack.c.bf16 %v9198_v22, %v9198_v22  ;;  %10271 = vmatmul.bf16.gmra.mxu0 %v16736_v47  ;;  %v16738_v22 = vpack.c.b16 %v15966_v58, %v15964_v52 }
0x132c   :  { %v10069_v27 = vpop.f32.mrf.mxu1 }
0x132d   :  { %v16192_v21 = vunpack.c.l.b16 %v9404_v5  ;;  %v10109_v36 = vadd.f32 %v10069_v27, %v16073_v4  ;;  %v16740_v27 = vld [vmem:[#allocation16_spill] sm:$0xff] }
0x132e   :  { %v16741_v40 = vpack.c.b16 %v16739_v32, %v16740_v27 }
0x132f   :  { %9240 = vmatmul.bf16.gmra.mxu2 %v14099_v30  ;;  %10424 = vmatmul.bf16.vlgmr.msra.gmra.mxu1 %v16737_v9  ;;  %v10533_v13 = vpack.c.b16 %v16192_v21, %v16190_v14 }
0x1330   :  { %v9918_v37 = vpop.f32.mrf.mxu0 }
0x1331   :  { %v16202_v18 = vadd.f32 %v9918_v37, %v9757_v24 }
0x1332   :  { %v9201_v0 = vpop.f32.mrf.mxu2 }
0x1333   :  { %v9405_v53 = vpack.c.bf16 %v9201_v0, %v9201_v0 }
0x1334   :  { %v10071_v31 = vpop.f32.mrf.mxu1 }
0x1335   :  { %v10110_v4 = vadd.f32 %v10071_v31, %v16088_v11  ;;  %v16212_v47 = vunpack.c.l.b16 %v9405_v53 }
0x1338   :  { %v9921_v26 = vpop.f32.mrf.mxu0 }
0x1339   :  { %v16207_v10 = vadd.f32 %v9921_v26, %v9760_v55  ;;  %v16742_v55 = vld [vmem:[#allocation19_spill] sm:$0xff]  ;;  %v16743_v26 = vld [vmem:[#allocation26_spill] sm:$0xff] }
0x133a   :  { %v9203_v60 = vpop.f32.mrf.mxu2  ;;  %v16744_v53 = vpack.c.b16 %v16742_v55, %v16743_v26 }
0x133b   :  { %v9406_v1 = vpack.c.bf16 %v9203_v60, %v9203_v60  ;;  %10276 = vmatmul.bf16.gmra.mxu0 %v16738_v22  ;;  %v14101_v60 = vld [vmem:[#allocation2 + $0x8b0] sm:$0xff] }
0x133c   :  { %v10074_v5 = vpop.f32.mrf.mxu1 }
0x133d   :  { %v16214_v11 = vunpack.c.l.b16 %v9406_v1  ;;  %v10111_v30 = vadd.f32 %v10074_v5, %v16093_v34  ;;  %v9765_v34 = vadd.f32 %v16166_v63, %v16056_v41  ;;  %v9767_v41 = vadd.f32 %v16181_v49, %v16070_v35  ;;  %v16745_v63 = vld [vmem:[#allocation40_spill] sm:$0xff] }
0x133e   :  { %v16746_v5 = vld [vmem:[#allocation24_spill] sm:$0xff] }
0x133f   :  { %9245 = vmatmul.bf16.gmra.mxu2 %v14100_v7  ;;  %10429 = vmatmul.bf16.gmra.mxu1 %v16741_v40  ;;  %v10534_v52 = vpack.c.b16 %v16214_v11, %v16212_v47 }
0x1340   :  { %v9923_v58 = vpop.f32.mrf.mxu0 }
0x1341   :  { %v16224_v24 = vadd.f32 %v9923_v58, %v9762_v19  ;;  %v16747_v19 = vpack.c.b16 %v16745_v63, %v16746_v5 }
0x1342   :  { %v9206_v9 = vpop.f32.mrf.mxu2 }
0x1343   :  { %v9407_v43 = vpack.c.bf16 %v9206_v9, %v9206_v9 }
0x1344   :  { %v10076_v37 = vpop.f32.mrf.mxu1 }
0x1345   :  { %v10112_v0 = vadd.f32 %v10076_v37, %v16110_v3  ;;  %v16234_v22 = vunpack.c.l.b16 %v9407_v43  ;;  %v14102_v43 = vld [vmem:[#allocation2 + $0x8b8] sm:$0xff] }
0x1348   :  { %v9926_v17 = vpop.f32.mrf.mxu0 }
0x1349   :  { %v16229_v46 = vadd.f32 %v9926_v17, %v9765_v34 }
0x134a   :  { %v9208_v31 = vpop.f32.mrf.mxu2 }
0x134b   :  { %v9408_v23 = vpack.c.bf16 %v9208_v31, %v9208_v31  ;;  %10281 = vmatmul.bf16.gmra.mxu0 %v16744_v53 }
0x134c   :  { %v10079_v1 = vpop.f32.mrf.mxu1 }
0x134d   :  { %v16236_v7 = vunpack.c.l.b16 %v9408_v23  ;;  %v10113_v3 = vadd.f32 %v10079_v1, %v16115_v62 }
0x134f   :  { %9250 = vmatmul.bf16.gmra.mxu2 %v14101_v60  ;;  %10434 = vmatmul.bf16.gmra.mxu1 %v16747_v19  ;;  %v10535_v32 = vpack.c.b16 %v16236_v7, %v16234_v22 }
0x1350   :  { %v9928_v27 = vpop.f32.mrf.mxu0 }
0x1351   :  { %v16246_v40 = vadd.f32 %v9928_v27, %v9767_v41 }
0x1352   :  { %v9211_v58 = vpop.f32.mrf.mxu2 }
0x1353   :  { %v9409_v62 = vpack.c.bf16 %v9211_v58, %v9211_v58  ;;  %v14174_v58 = vld [vmem:[#allocation4 + $0x8b8] sm:$0xff] }
0x1354   :  { %v10081_v9 = vpop.f32.mrf.mxu1  ;;  %10772 = vmatpush.bf16.msrb.mxu1 %v14174_v58 }
0x1355   :  { %v10114_v37 = vadd.f32 %v10081_v9, %v16132_v38  ;;  %v16254_v23 = vunpack.c.l.b16 %v9409_v62  ;;  %v16748_v38 = vpack.c.b16 %v16031_v2, %v16029_v42  ;;  %v14103_v2 = vld [vmem:[#allocation2 + $0x8c0] sm:$0xff]  ;;  %v16750_v9 = vld [vmem:[#allocation32_spill] sm:$0xff] }
0x1358   :  { %v10247_v34 = vpop.f32.mrf.mxu0 }
0x1359   :  { %v16249_v17 = vadd.f32 %v10247_v34, %v10109_v36 }
0x135a   :  { %v9213_v35 = vpop.f32.mrf.mxu2 }
0x135b   :  { %v9410_v49 = vpack.c.bf16 %v9213_v35, %v9213_v35  ;;  %10602 = vmatmul.bf16.vlgmr.msrb.gmra.mxu0 %v10530_v56 }
0x135c   :  { %v10084_v31 = vpop.f32.mrf.mxu1 }
0x135d   :  { %v16256_v55 = vunpack.c.l.b16 %v9410_v49  ;;  %v10115_v26 = vadd.f32 %v10084_v31, %v16137_v44  ;;  %v14172_v49 = vld [vmem:[#allocation4 + $0x8a8] sm:$0xff] }
0x135f   :  { %9255 = vmatmul.bf16.gmra.mxu2 %v14102_v43  ;;  %10439 = vmatmul.bf16.gmra.mxu1 %v16748_v38  ;;  %v10536_v36 = vpack.c.b16 %v16256_v55, %v16254_v23 }
0x1360   :  { %v10249_v53 = vpop.f32.mrf.mxu0 }
0x1361   :  { %v16264_v60 = vadd.f32 %v10249_v53, %v10110_v4  ;;  %v14171_v53 = vld [vmem:[#allocation4 + $0x8a0] sm:$0xff] }
0x1362   :  { %v9216_v20 = vpop.f32.mrf.mxu2 }
0x1363   :  { %v9411_v41 = vpack.c.bf16 %v9216_v20, %v9216_v20 }
0x1364   :  { %v10086_v39 = vpop.f32.mrf.mxu1 }
0x1365   :  { %v10116_v56 = vadd.f32 %v10086_v39, %v16155_v16  ;;  %v16272_v19 = vunpack.c.l.b16 %v9411_v41  ;;  %v16749_v16 = vld [vmem:[#allocation41_spill] sm:$0xff] }
0x1368   :  { %v10252_v1 = vpop.f32.mrf.mxu0 }
0x1369   :  { %v16267_v63 = vadd.f32 %v10252_v1, %v10111_v30  ;;  %v16751_v30 = vpack.c.b16 %v16749_v16, %v16750_v9  ;;  %v14170_v1 = vld [vmem:[#allocation4 + $0x898] sm:$0xff]  ;;  %v14167_v16 = vld [vmem:[#allocation4 + $0x880] sm:$0xff] }
0x136a   :  { %v9218_v44 = vpop.f32.mrf.mxu2 }
0x136b   :  { %v9412_v5 = vpack.c.bf16 %v9218_v44, %v9218_v44  ;;  %10607 = vmatmul.bf16.gmra.mxu0 %v10531_v50  ;;  %v14173_v50 = vld [vmem:[#allocation4 + $0x8b0] sm:$0xff] }
0x136c   :  { %v10089_v42 = vpop.f32.mrf.mxu1  ;;  %10773 = vmatpush.bf16.msrb.mxu1 %v14173_v50 }
0x136d   :  { %v16274_v4 = vunpack.c.l.b16 %v9412_v5  ;;  %v10117_v27 = vadd.f32 %v10089_v42, %v16161_v29 }
0x136f   :  { %9260 = vmatmul.bf16.gmra.mxu2 %v14103_v2  ;;  %10444 = vmatmul.bf16.gmra.mxu1 %v16751_v30  ;;  %v10537_v34 = vpack.c.b16 %v16274_v4, %v16272_v19  ;;  %v14169_v2 = vld [vmem:[#allocation4 + $0x890] sm:$0xff]  ;;  %v14110_v19 = vld [vmem:[#allocation2 + $0x8f8] sm:$0xff] }
0x1370   :  { %v10254_v62 = vpop.f32.mrf.mxu0  ;;  %10774 = vmatpush.bf16.msrb.mxu1 %v14172_v49 }
0x1371   :  { %v16282_v6 = vadd.f32 %v10254_v62, %v10112_v0  ;;  %v14104_v0 = vld [vmem:[#allocation2 + $0x8c8] sm:$0xff] }
0x1372   :  { %v16284_v12 = vpop.f32.mrf.mxu2 }
0x1373   :  { %v9413_v47 = vpack.c.bf16 %v16284_v12, %v16284_v12 }
0x1374   :  { %v10091_v35 = vpop.f32.mrf.mxu1  ;;  %10775 = vmatpush.bf16.msrb.mxu1 %v14171_v53 }
0x1375   :  { %v16287_v29 = vadd.f32 %v10091_v35, %v16179_v15  ;;  %v16752_v15 = vld [vmem:[#allocation39_spill] sm:$0xff] }
0x1376   :  { %v16753_v41 = vpack.c.b16 %v16063_v8, %v16752_v15  ;;  %v14105_v8 = vld [vmem:[#allocation2 + $0x8d0] sm:$0xff] }
0x1378   :  { %v10257_v43 = vpop.f32.mrf.mxu0  ;;  %10776 = vmatpush.bf16.msrb.mxu1 %v14170_v1 }
0x1379   :  { %v16289_v31 = vadd.f32 %v10257_v43, %v10113_v3  ;;  %v10692_v43 = vunpack.c.l.b16 %v9413_v47 }
0x137a   :  { %v9223_v38 = vpop.f32.mrf.mxu2 }
0x137b   :  { %10612 = vmatmul.bf16.gmra.mxu0 %v10532_v61 }
0x137c   :  { %v10094_v20 = vpop.f32.mrf.mxu1  ;;  %10777 = vmatpush.bf16.msrb.mxu1 %v14169_v2 }
0x137d   :  { %v10119_v39 = vadd.f32 %v10094_v20, %v16185_v54 }
0x137f   :  { %9265 = vmatmul.bf16.gmra.mxu2 %v14104_v0  ;;  %10449 = vmatmul.bf16.gmra.mxu1 %v16753_v41  ;;  %v14108_v41 = vld [vmem:[#allocation2 + $0x8e8] sm:$0xff] }
0x1380   :  { %v10259_v44 = vpop.f32.mrf.mxu0  ;;  %10778 = vmatpush.bf16.msrb.mxu1 %v14168_v45 }
0x1381   :  { %v16298_v3 = vadd.f32 %v10259_v44, %v10114_v37 }
0x1382   :  { %v9226_v5 = vpop.f32.mrf.mxu2 }
0x1383   :  { %v9415_v1 = vpack.c.bf16 %v9226_v5, %v9226_v5 }
0x1384   :  { %v10096_v42 = vpop.f32.mrf.mxu1  ;;  %10779 = vmatpush.bf16.msrb.mxu1 %v14167_v16 }
0x1385   :  { %v16301_v57 = vadd.f32 %v10096_v42, %v16202_v18 }
0x1388   :  { %v10262_v61 = vpop.f32.mrf.mxu0 }
0x1389   :  { %v16303_v54 = vadd.f32 %v10262_v61, %v10115_v26 }
0x138a   :  { %v9228_v58 = vpop.f32.mrf.mxu2 }
0x138b   :  { %10617 = vmatmul.bf16.gmra.mxu0 %v10533_v13  ;;  %v9416_v0 = vpack.c.bf16 %v9228_v58, %v9228_v58 }
0x138c   :  { %v10099_v37 = vpop.f32.mrf.mxu1 }
0x138d   :  { %v10121_v9 = vadd.f32 %v10099_v37, %v16207_v10  ;;  %v14106_v10 = vld [vmem:[#allocation2 + $0x8d8] sm:$0xff]  ;;  %v10695_v7 = vunpack.c.l.b16 %v9416_v0 }
0x138f   :  { %9270 = vmatmul.bf16.gmra.mxu2 %v14105_v8  ;;  %10454 = vmatmul.bf16.gmra.mxu1 %v10358_v25 }
0x1390   :  { %v10264_v18 = vpop.f32.mrf.mxu0 }
0x1391   :  { %v16312_v30 = vadd.f32 %v10264_v18, %v10116_v56  ;;  %v9414_v56 = vpack.c.bf16 %v9223_v38, %v9223_v38 }
0x1392   :  { %v9231_v26 = vpop.f32.mrf.mxu2 }
0x1393   :  { %v9417_v16 = vpack.c.bf16 %v9231_v26, %v9231_v26 }
0x1394   :  { %v10101_v62 = vpop.f32.mrf.mxu1 }
0x1395   :  { %v16315_v50 = vadd.f32 %v10101_v62, %v16224_v24  ;;  %v10696_v37 = vunpack.c.l.b16 %v9417_v16 }
0x1398   :  { %v10267_v14 = vpop.f32.mrf.mxu0 }
0x1399   :  { %v16317_v21 = vadd.f32 %v10267_v14, %v10117_v27 }
0x139a   :  { %v9233_v13 = vpop.f32.mrf.mxu2 }
0x139b   :  { %10622 = vmatmul.bf16.gmra.mxu0 %v10534_v52  ;;  %v10693_v52 = vunpack.c.l.b16 %v9414_v56  ;;  %v9418_v61 = vpack.c.bf16 %v9233_v13, %v9233_v13 }
0x139c   :  { %v10104_v35 = vpop.f32.mrf.mxu1 }
0x139d   :  { %v10123_v59 = vadd.f32 %v10104_v35, %v16229_v46  ;;  %v10697_v23 = vunpack.c.l.b16 %v9418_v61 }
0x139f   :  { %9275 = vmatmul.bf16.gmra.mxu2 %v14106_v10  ;;  %10459 = vmatmul.bf16.gmra.mxu1 %v10359_v48  ;;  %v10708_v48 = vpack.c.b16 %v10693_v52, %v10692_v43  ;;  %v10710_v62 = vpack.c.b16 %v10697_v23, %v10696_v37 }
0x13a0   :  { %v16326_v33 = vpop.f32.mrf.mxu0 }
0x13a2   :  { %v9236_v25 = vpop.f32.mrf.mxu2 }
0x13a3   :  { %v9419_v10 = vpack.c.bf16 %v9236_v25, %v9236_v25 }
0x13a4   :  { %v10106_v24 = vpop.f32.mrf.mxu1 }
0x13a5   :  { %v16329_v27 = vadd.f32 %v10106_v24, %v16246_v40  ;;  %v10698_v24 = vunpack.c.l.b16 %v9419_v10 }
0x13a8   :  { %v10272_v11 = vpop.f32.mrf.mxu0 }
0x13a9   :  { %v16333_v49 = vadd.f32 %v10272_v11, %v10119_v39  ;;  %v14175_v39 = vld [vmem:[#allocation4 + $0x8c0] sm:$0xff] }
0x13aa   :  { %v9238_v46 = vpop.f32.mrf.mxu2  ;;  %10957 = vmatpush.bf16.msrb.mxu3 %v14175_v39 }
0x13ab   :  { %10627 = vmatmul.bf16.gmra.mxu0 %v10535_v32  ;;  %v9420_v14 = vpack.c.bf16 %v9238_v46, %v9238_v46 }
0x13ac   :  { %v10425_v28 = vpop.f32.mrf.mxu1 }
0x13ad   :  { %v16339_v38 = vadd.f32 %v10425_v28, %v16249_v17  ;;  %v10694_v17 = vunpack.c.l.b16 %v9415_v1  ;;  %v10699_v35 = vunpack.c.l.b16 %v9420_v14 }
0x13af   :  { %9280 = vmatmul.bf16.gmra.mxu2 %v14107_v51  ;;  %10780 = vmatmul.bf16.vlgmr.msrb.gmra.mxu1 %v10708_v48 }
0x13b0   :  { %v16341_v40 = vpop.f32.mrf.mxu0 }
0x13b2   :  { %v9241_v12 = vpop.f32.mrf.mxu2 }
0x13b4   :  { %v10427_v53 = vpop.f32.mrf.mxu1 }
0x13b5   :  { %v16344_v20 = vadd.f32 %v10427_v53, %v16264_v60  ;;  %v10709_v60 = vpack.c.b16 %v10695_v7, %v10694_v17  ;;  %v10296_v53 = vadd.f32 %v16326_v33, %v16287_v29  ;;  %v10298_v33 = vadd.f32 %v16341_v40, %v16301_v57 }
0x13b8   :  { %v10277_v22 = vpop.f32.mrf.mxu0 }
0x13b9   :  { %v16346_v32 = vadd.f32 %v10277_v22, %v10121_v9 }
0x13ba   :  { %v9243_v15 = vpop.f32.mrf.mxu2 }
0x13bb   :  { %10632 = vmatmul.bf16.gmra.mxu0 %v10536_v36  ;;  %v9422_v11 = vpack.c.bf16 %v9243_v15, %v9243_v15 }
0x13bc   :  { %v10430_v44 = vpop.f32.mrf.mxu1 }
0x13bd   :  { %v16352_v2 = vadd.f32 %v10430_v44, %v16267_v63  ;;  %v14109_v63 = vld [vmem:[#allocation2 + $0x8f0] sm:$0xff]  ;;  %v10701_v46 = vunpack.c.l.b16 %v9422_v11 }
0x13bf   :  { %9285 = vmatmul.bf16.gmra.mxu2 %v14108_v41  ;;  %10785 = vmatmul.bf16.gmra.mxu1 %v10709_v60 }
0x13c0   :  { %v16354_v5 = vpop.f32.mrf.mxu0 }
0x13c1   :  { %v10300_v40 = vadd.f32 %v16354_v5, %v16315_v50 }
0x13c2   :  { %v9246_v42 = vpop.f32.mrf.mxu2 }
0x13c4   :  { %v10432_v45 = vpop.f32.mrf.mxu1 }
0x13c5   :  { %v16357_v58 = vadd.f32 %v10432_v45, %v16282_v6 }
0x13c8   :  { %v10282_v8 = vpop.f32.mrf.mxu0 }
0x13c9   :  { %v16359_v55 = vadd.f32 %v10282_v8, %v10123_v59 }
0x13ca   :  { %v9248_v36 = vpop.f32.mrf.mxu2 }
0x13cb   :  { %10637 = vmatmul.bf16.gmra.mxu0 %v10537_v34  ;;  %v9424_v39 = vpack.c.bf16 %v9248_v36, %v9248_v36 }
0x13cc   :  { %v10435_v9 = vpop.f32.mrf.mxu1 }
0x13cd   :  { %v16365_v18 = vadd.f32 %v10435_v9, %v16289_v31  ;;  %v10711_v31 = vpack.c.b16 %v10699_v35, %v10698_v24  ;;  %v10703_v22 = vunpack.c.l.b16 %v9424_v39 }
0x13cf   :  { %9290 = vmatmul.bf16.gmra.mxu2 %v14109_v63  ;;  %10790 = vmatmul.bf16.gmra.mxu1 %v10710_v62 }
0x13d0   :  { %v10284_v50 = vpop.f32.mrf.mxu0 }
0x13d2   :  { %v9251_v6 = vpop.f32.mrf.mxu2 }
0x13d3   :  { %v9425_v23 = vpack.c.bf16 %v9251_v6, %v9251_v6 }
0x13d4   :  { %v10437_v26 = vpop.f32.mrf.mxu1 }
0x13d5   :  { %v16368_v13 = vadd.f32 %v10437_v26, %v16298_v3  ;;  %v9421_v3 = vpack.c.bf16 %v9241_v12, %v9241_v12  ;;  %v10704_v9 = vunpack.c.l.b16 %v9425_v23 }
0x13d7   :  { %v10700_v43 = vunpack.c.l.b16 %v9421_v3 }
0x13d9   :  { %v10712_v28 = vpack.c.b16 %v10701_v46, %v10700_v43 }
0x13da   :  { %v9253_v59 = vpop.f32.mrf.mxu2 }
0x13db   :  { %v9426_v16 = vpack.c.bf16 %v9253_v59, %v9253_v59 }
0x13dc   :  { %v10440_v4 = vpop.f32.mrf.mxu1 }
0x13dd   :  { %v16371_v34 = vadd.f32 %v10440_v4, %v16303_v54  ;;  %v10705_v36 = vunpack.c.l.b16 %v9426_v16 }
0x13df   :  { %9295 = vmatmul.bf16.gmra.mxu2 %v14110_v19  ;;  %10795 = vmatmul.bf16.gmra.mxu1 %v10711_v31 }
0x13e2   :  { %v9256_v56 = vpop.f32.mrf.mxu2 }
0x13e3   :  { %v9427_v4 = vpack.c.bf16 %v9256_v56, %v9256_v56 }
0x13e4   :  { %v10442_v47 = vpop.f32.mrf.mxu1 }
0x13e5   :  { %v16374_v52 = vadd.f32 %v10442_v47, %v16312_v30  ;;  %v9423_v30 = vpack.c.bf16 %v9246_v42, %v9246_v42  ;;  %v10706_v3 = vunpack.c.l.b16 %v9427_v4  ;;  %v14187_v4 = vld [vmem:[#allocation7 + $0x20] sm:$0xff] }
0x13e7   :  { %v10702_v15 = vunpack.c.l.b16 %v9423_v30 }
0x13e9   :  { %v10713_v44 = vpack.c.b16 %v10703_v22, %v10702_v15 }
0x13ea   :  { %v9258_v25 = vpop.f32.mrf.mxu2 }
0x13eb   :  { %v9428_v59 = vpack.c.bf16 %v9258_v25, %v9258_v25  ;;  %v10302_v25 = vadd.f32 %v10284_v50, %v16329_v27  ;;  %v14184_v50 = vld [vmem:[#allocation7 + $0x8] sm:$0xff] }
0x13ec   :  { %v10445_v51 = vpop.f32.mrf.mxu1 }
0x13ed   :  { %v16377_v48 = vadd.f32 %v10445_v51, %v16317_v21  ;;  %v10707_v31 = vunpack.c.l.b16 %v9428_v59 }
0x13ef   :  { %10800 = vmatmul.bf16.gmra.mxu1 %v10712_v28 }
0x13f2   :  { %v9261_v54 = vpop.f32.mrf.mxu2 }
0x13f3   :  { %v9429_v12 = vpack.c.bf16 %v9261_v54, %v9261_v54 }
0x13f4   :  { %v10447_v0 = vpop.f32.mrf.mxu1 }
0x13f5   :  { %v16381_v1 = vadd.f32 %v10447_v0, %v10296_v53  ;;  %v10870_v60 = vunpack.c.l.b16 %v9429_v12 }
0x13fa   :  { %v9263_v7 = vpop.f32.mrf.mxu2 }
0x13fb   :  { %v9430_v17 = vpack.c.bf16 %v9263_v7, %v9263_v7 }
0x13fc   :  { %v10450_v41 = vpop.f32.mrf.mxu1 }
0x13fd   :  { %v10871_v21 = vunpack.c.l.b16 %v9430_v17  ;;  %v16384_v45 = vadd.f32 %v10450_v41, %v16333_v49  ;;  %v10714_v49 = vpack.c.b16 %v10705_v36, %v10704_v9 }
0x13ff   :  { %v10886_v61 = vpack.c.b16 %v10871_v21, %v10870_v60  ;;  %10805 = vmatmul.bf16.gmra.mxu1 %v10713_v44 }
0x1401   :  { %10958 = vmatmul.bf16.vlgmr.msrb.gmra.mxu3 %v10886_v61 }
0x1402   :  { %v9266_v29 = vpop.f32.mrf.mxu2 }
0x1403   :  { %v9431_v37 = vpack.c.bf16 %v9266_v29, %v9266_v29 }
0x1404   :  { %v10452_v42 = vpop.f32.mrf.mxu1 }
0x1405   :  { %v16388_v8 = vadd.f32 %v10452_v42, %v10298_v33  ;;  %v10872_v14 = vunpack.c.l.b16 %v9431_v37 }
0x140a   :  { %v9268_v63 = vpop.f32.mrf.mxu2 }
0x140b   :  { %v9432_v62 = vpack.c.bf16 %v9268_v63, %v9268_v63  ;;  %v14190_v63 = vld [vmem:[#allocation7 + $0x38] sm:$0xff] }
0x140c   :  { %v10455_v26 = vpop.f32.mrf.mxu1  ;;  %11159 = vmatpush.bf16.msra.mxu0 %v14190_v63 }
0x140d   :  { %v10873_v10 = vunpack.c.l.b16 %v9432_v62  ;;  %v16391_v35 = vadd.f32 %v10455_v26, %v16346_v32  ;;  %v10715_v32 = vpack.c.b16 %v10707_v31, %v10706_v3  ;;  %v14186_v31 = vld [vmem:[#allocation7 + $0x18] sm:$0xff] }
0x140f   :  { %v10887_v24 = vpack.c.b16 %v10873_v10, %v10872_v14  ;;  %10810 = vmatmul.bf16.gmra.mxu1 %v10714_v49  ;;  %v14189_v49 = vld [vmem:[#allocation7 + $0x30] sm:$0xff] }
0x1410   :  { %11160 = vmatpush.bf16.msra.mxu0 %v14189_v49 }
0x1411   :  { %10963 = vmatmul.bf16.gmra.mxu3 %v10887_v24  ;;  %v14188_v24 = vld [vmem:[#allocation7 + $0x28] sm:$0xff] }
0x1412   :  { %v9271_v57 = vpop.f32.mrf.mxu2 }
0x1413   :  { %v9433_v47 = vpack.c.bf16 %v9271_v57, %v9271_v57 }
0x1414   :  { %v10457_v6 = vpop.f32.mrf.mxu1  ;;  %11161 = vmatpush.bf16.msra.mxu0 %v14188_v24 }
0x1415   :  { %v16395_v19 = vadd.f32 %v10457_v6, %v10300_v40  ;;  %v10874_v51 = vunpack.c.l.b16 %v9433_v47  ;;  %v10603_v40 = vpop.f32.mrf.mxu0 }
0x1418   :  { %11162 = vmatpush.bf16.msra.mxu0 %v14187_v4 }
0x141a   :  { %v9273_v11 = vpop.f32.mrf.mxu2 }
0x141b   :  { %v9434_v46 = vpack.c.bf16 %v9273_v11, %v9273_v11 }
0x141c   :  { %v10460_v43 = vpop.f32.mrf.mxu1  ;;  %11163 = vmatpush.bf16.msra.mxu0 %v14186_v31 }
0x141d   :  { %v10875_v28 = vunpack.c.l.b16 %v9434_v46  ;;  %v16398_v54 = vadd.f32 %v10460_v43, %v16359_v55  ;;  %v10605_v11 = vpop.f32.mrf.mxu0 }
0x141f   :  { %v10888_v53 = vpack.c.b16 %v10875_v28, %v10874_v51  ;;  %10815 = vmatmul.bf16.gmra.mxu1 %v10715_v32  ;;  %v14185_v32 = vld [vmem:[#allocation7 + $0x10] sm:$0xff] }
0x1420   :  { %11164 = vmatpush.bf16.msra.mxu0 %v14185_v32 }
0x1421   :  { %10968 = vmatmul.bf16.gmra.mxu3 %v10888_v53 }
0x1422   :  { %v9276_v5 = vpop.f32.mrf.mxu2 }
0x1423   :  { %v9435_v39 = vpack.c.bf16 %v9276_v5, %v9276_v5 }
0x1424   :  { %v10462_v56 = vpop.f32.mrf.mxu1  ;;  %11165 = vmatpush.bf16.msra.mxu0 %v14184_v50 }
0x1425   :  { %v16401_v0 = vadd.f32 %v10462_v56, %v10302_v25  ;;  %v10876_v12 = vunpack.c.l.b16 %v9435_v39  ;;  %v10608_v5 = vpop.f32.mrf.mxu0  ;;  %v14183_v25 = vld [vmem:[#allocation7] sm:$0xff] }
0x1428   :  { %11166 = vmatpush.bf16.msra.mxu0 %v14183_v25 }
0x142a   :  { %v9278_v30 = vpop.f32.mrf.mxu2 }
0x142b   :  { %v9436_v22 = vpack.c.bf16 %v9278_v30, %v9278_v30 }
0x142c   :  { %v10781_v6 = vpop.f32.mrf.mxu1 }
0x142d   :  { %v10877_v7 = vunpack.c.l.b16 %v9436_v22  ;;  %v10610_v39 = vpop.f32.mrf.mxu0  ;;  %v10643_v22 = vadd.f32 %v10603_v40, %v16339_v38 }
0x142f   :  { %v10889_v15 = vpack.c.b16 %v10877_v7, %v10876_v12  ;;  %v11016_v12 = vld [vmem:[#allocation6 + $0x18] sm:$0xff]  ;;  %v10821_v7 = vadd.f32 %v10781_v6, %v10643_v22 }
0x1431   :  { %10973 = vmatmul.bf16.gmra.mxu3 %v10889_v15 }
0x1432   :  { %v9281_v17 = vpop.f32.mrf.mxu2 }
0x1433   :  { %v9437_v55 = vpack.c.bf16 %v9281_v17, %v9281_v17 }
0x1434   :  { %v10783_v43 = vpop.f32.mrf.mxu1 }
0x1435   :  { %v10878_v60 = vunpack.c.l.b16 %v9437_v55  ;;  %v16404_v55 = vperm.slane %v11016_v12, 0 }
0x143a   :  { %v9283_v41 = vpop.f32.mrf.mxu2 }
0x143b   :  { %v9438_v44 = vpack.c.bf16 %v9283_v41, %v9283_v41  ;;  %v10613_v41 = vpop.f32.mrf.mxu0 }
0x143c   :  { %v10786_v56 = vpop.f32.mrf.mxu1 }
0x143d   :  { %v10879_v21 = vunpack.c.l.b16 %v9438_v44  ;;  %v10644_v44 = vadd.f32 %v10605_v11, %v16344_v20 }
0x143f   :  { %v10890_v61 = vpack.c.b16 %v10879_v21, %v10878_v60 }
0x1441   :  { %10978 = vmatmul.bf16.gmra.mxu3 %v10890_v61  ;;  %v10822_v61 = vadd.f32 %v10783_v43, %v10644_v44 }
0x1442   :  { %v9286_v29 = vpop.f32.mrf.mxu2 }
0x1443   :  { %v9439_v27 = vpack.c.bf16 %v9286_v29, %v9286_v29  ;;  %v10615_v63 = vpop.f32.mrf.mxu0 }
0x1444   :  { %v10788_v30 = vpop.f32.mrf.mxu1 }
0x1445   :  { %v10880_v16 = vunpack.c.l.b16 %v9439_v27 }
0x144a   :  { %v9288_v33 = vpop.f32.mrf.mxu2 }
0x144b   :  { %v9440_v42 = vpack.c.bf16 %v9288_v33, %v9288_v33  ;;  %v16408_v33 = vperm.slane %v11016_v12, 1  ;;  %v10618_v6 = vpop.f32.mrf.mxu0 }
0x144c   :  { %v10791_v21 = vpop.f32.mrf.mxu1 }
0x144d   :  { %v10881_v23 = vunpack.c.l.b16 %v9440_v42 }
0x144f   :  { %v10891_v36 = vpack.c.b16 %v10881_v23, %v10880_v16  ;;  %v10645_v16 = vadd.f32 %v10608_v5, %v16352_v2 }
0x1451   :  { %10983 = vmatmul.bf16.gmra.mxu3 %v10891_v36  ;;  %v16413_v36 = vperm.slane %v11016_v12, 2  ;;  %v10823_v20 = vadd.f32 %v10786_v56, %v10645_v16 }
0x1452   :  { %v9291_v37 = vpop.f32.mrf.mxu2 }
0x1453   :  { %v9441_v9 = vpack.c.bf16 %v9291_v37, %v9291_v37  ;;  %v10620_v5 = vpop.f32.mrf.mxu0 }
0x1455   :  { %v10882_v14 = vunpack.c.l.b16 %v9441_v9 }
0x145a   :  { %v9293_v62 = vpop.f32.mrf.mxu2 }
0x145b   :  { %v9442_v26 = vpack.c.bf16 %v9293_v62, %v9293_v62  ;;  %v10793_v62 = vpop.f32.mrf.mxu1 }
0x145d   :  { %v10883_v10 = vunpack.c.l.b16 %v9442_v26 }
0x145f   :  { %v10892_v57 = vpack.c.b16 %v10883_v10, %v10882_v14 }
0x1461   :  { %10988 = vmatmul.bf16.gmra.mxu3 %v10892_v57  ;;  %v10646_v57 = vadd.f32 %v10610_v39, %v16357_v58  ;;  %v10648_v39 = vadd.f32 %v10615_v63, %v16368_v13 }
0x1462   :  { %v9296_v59 = vpop.f32.mrf.mxu2 }
0x1463   :  { %v9443_v47 = vpack.c.bf16 %v9296_v59, %v9296_v59  ;;  %v10824_v40 = vadd.f32 %v10788_v30, %v10646_v57 }
0x1465   :  { %v10884_v51 = vunpack.c.l.b16 %v9443_v47  ;;  %v10796_v47 = vpop.f32.mrf.mxu1 }
0x146a   :  { %v9298_v3 = vpop.f32.mrf.mxu2 }
0x146b   :  { %v9444_v46 = vpack.c.bf16 %v9298_v3, %v9298_v3  ;;  %v10647_v3 = vadd.f32 %v10613_v41, %v16365_v18  ;;  %v10826_v18 = vadd.f32 %v10793_v62, %v10648_v39  ;;  %v10649_v41 = vadd.f32 %v10618_v6, %v16371_v34 }
0x146d   :  { %v10885_v28 = vunpack.c.l.b16 %v9444_v46  ;;  %v10825_v32 = vadd.f32 %v10791_v21, %v10647_v3  ;;  %v10798_v56 = vpop.f32.mrf.mxu1 }
0x146f   :  { %v10893_v53 = vpack.c.b16 %v10885_v28, %v10884_v51 }
0x1471   :  { %10993 = vmatmul.bf16.gmra.mxu3 %v10893_v53 }
0x1475   :  { %v10801_v21 = vpop.f32.mrf.mxu1 }
0x1484   :  { %v10959_v15 = vpop.f32.mrf.mxu3 }
0x1485   :  { %v10999_v17 = vadd.f32 %v10959_v15, %v10821_v7 }
0x1487   :  { %v11018_v60 = vadd.f32 %v16404_v55, %v10999_v17  ;;  %v10623_v17 = vpop.f32.mrf.mxu0 }
0x1489   :  { %v11034_v27 = vmax.f32 %v11018_v60, 0.0 }
0x148b   :  { %v11051_v23 = vmul.f32 %v16408_v33, %v11034_v27 }
0x148c   :  { %v10961_v29 = vpop.f32.mrf.mxu3 }
0x148d   :  { %v11000_v42 = vadd.f32 %v10961_v29, %v10822_v61  ;;  %v11068_v49 = vadd.f32 %v16413_v36, %v11051_v23  ;;  %v10827_v61 = vadd.f32 %v10796_v47, %v10649_v41  ;;  %v10650_v23 = vadd.f32 %v10620_v5, %v16374_v52 }
0x148f   :  { %v11019_v38 = vadd.f32 %v16404_v55, %v11000_v42  ;;  %v10625_v34 = vpop.f32.mrf.mxu0  ;;  %v10828_v63 = vadd.f32 %v10798_v56, %v10650_v23 }
0x1491   :  { %v11035_v37 = vmax.f32 %v11019_v38, 0.0 }
0x1493   :  { %v11052_v9 = vmul.f32 %v16408_v33, %v11035_v37 }
0x1494   :  { %v10964_v26 = vpop.f32.mrf.mxu3 }
0x1495   :  { %v11069_v14 = vadd.f32 %v16413_v36, %v11052_v9  ;;  %v11001_v10 = vadd.f32 %v10964_v26, %v10823_v20  ;;  %v10803_v20 = vpop.f32.mrf.mxu1 }
0x1497   :  { %v11084_v24 = vpack.c.bf16 %v11069_v14, %v11068_v49  ;;  %v11020_v2 = vadd.f32 %v16404_v55, %v11001_v10  ;;  %v10651_v14 = vadd.f32 %v10623_v17, %v16377_v48  ;;  %v10628_v52 = vpop.f32.mrf.mxu0 }
0x1499   :  { %11167 = vmatmul.bf16.vlgmr.msra.gmra.mxu0 %v11084_v24  ;;  %v11036_v4 = vmax.f32 %v11020_v2, 0.0  ;;  %v10829_v57 = vadd.f32 %v10801_v21, %v10651_v14 }
0x149b   :  { %v11053_v46 = vmul.f32 %v16408_v33, %v11036_v4 }
0x149c   :  { %v10966_v59 = vpop.f32.mrf.mxu3 }
0x149d   :  { %v11002_v31 = vadd.f32 %v10966_v59, %v10824_v40  ;;  %v11070_v53 = vadd.f32 %v16413_v36, %v11053_v46 }
0x149f   :  { %v11021_v11 = vadd.f32 %v16404_v55, %v11002_v31  ;;  %v10806_v31 = vpop.f32.mrf.mxu1 }
0x14a1   :  { %v11037_v43 = vmax.f32 %v11021_v11, 0.0  ;;  %v10652_v11 = vadd.f32 %v10625_v34, %v16381_v1 }
0x14a3   :  { %v11054_v51 = vmul.f32 %v16408_v33, %v11037_v43  ;;  %v10830_v48 = vadd.f32 %v10803_v20, %v10652_v11 }
0x14a4   :  { %v10969_v58 = vpop.f32.mrf.mxu3 }
0x14a5   :  { %v11003_v28 = vadd.f32 %v10969_v58, %v10825_v32  ;;  %v11071_v50 = vadd.f32 %v16413_v36, %v11054_v51  ;;  %v10630_v51 = vpop.f32.mrf.mxu0 }
0x14a7   :  { %v11085_v25 = vpack.c.bf16 %v11071_v50, %v11070_v53  ;;  %v11022_v30 = vadd.f32 %v16404_v55, %v11003_v28  ;;  %v10808_v28 = vpop.f32.mrf.mxu1  ;;  %v10653_v53 = vadd.f32 %v10628_v52, %v16384_v45 }
0x14a9   :  { %11172 = vmatmul.bf16.gmra.mxu0 %v11085_v25  ;;  %v11038_v12 = vmax.f32 %v11022_v30, 0.0  ;;  %v10831_v25 = vadd.f32 %v10806_v31, %v10653_v53 }
0x14ab   :  { %v11055_v44 = vmul.f32 %v16408_v33, %v11038_v12 }
0x14ac   :  { %v10971_v22 = vpop.f32.mrf.mxu3 }
0x14ad   :  { %v11004_v7 = vadd.f32 %v10971_v22, %v10826_v18  ;;  %v11072_v42 = vadd.f32 %v16413_v36, %v11055_v44  ;;  %v10633_v12 = vpop.f32.mrf.mxu0 }
0x14af   :  { %v11023_v15 = vadd.f32 %v16404_v55, %v11004_v7  ;;  %v10654_v7 = vadd.f32 %v10630_v51, %v16388_v8  ;;  %v10811_v45 = vpop.f32.mrf.mxu1 }
0x14b1   :  { %v11039_v60 = vmax.f32 %v11023_v15, 0.0  ;;  %v10832_v17 = vadd.f32 %v10808_v28, %v10654_v7 }
0x14b3   :  { %v11056_v29 = vmul.f32 %v16408_v33, %v11039_v60 }
0x14b4   :  { %v10974_v13 = vpop.f32.mrf.mxu3 }
0x14b5   :  { %v11005_v27 = vadd.f32 %v10974_v13, %v10827_v61  ;;  %v11073_v38 = vadd.f32 %v16413_v36, %v11056_v29  ;;  %v10655_v61 = vadd.f32 %v10633_v12, %v16391_v35 }
0x14b7   :  { %v11086_v16 = vpack.c.bf16 %v11073_v38, %v11072_v42  ;;  %v11024_v37 = vadd.f32 %v16404_v55, %v11005_v27  ;;  %v10635_v27 = vpop.f32.mrf.mxu0  ;;  %v10833_v42 = vadd.f32 %v10811_v45, %v10655_v61  ;;  %v10813_v8 = vpop.f32.mrf.mxu1 }
0x14b8   :  { %v10656_v20 = vadd.f32 %v10635_v27, %v16395_v19 }
0x14b9   :  { %11177 = vmatmul.bf16.gmra.mxu0 %v11086_v16  ;;  %v11040_v62 = vmax.f32 %v11024_v37, 0.0 }
0x14ba   :  { %v10834_v35 = vadd.f32 %v10813_v8, %v10656_v20 }
0x14bb   :  { %v11057_v10 = vmul.f32 %v16408_v33, %v11040_v62 }
0x14bc   :  { %v10976_v9 = vpop.f32.mrf.mxu3 }
0x14bd   :  { %v11006_v26 = vadd.f32 %v10976_v9, %v10828_v63  ;;  %v11074_v59 = vadd.f32 %v16413_v36, %v11057_v10 }
0x14bf   :  { %v11025_v49 = vadd.f32 %v16404_v55, %v11006_v26  ;;  %v10638_v62 = vpop.f32.mrf.mxu0  ;;  %v10816_v10 = vpop.f32.mrf.mxu1 }
0x14c1   :  { %v11041_v24 = vmax.f32 %v11025_v49, 0.0 }
0x14c3   :  { %v11058_v2 = vmul.f32 %v16408_v33, %v11041_v24 }
0x14c4   :  { %v10979_v40 = vpop.f32.mrf.mxu3 }
0x14c5   :  { %v11007_v6 = vadd.f32 %v10979_v40, %v10829_v57  ;;  %v11075_v4 = vadd.f32 %v16413_v36, %v11058_v2  ;;  %v10657_v57 = vadd.f32 %v10638_v62, %v16398_v54 }
0x14c7   :  { %v11087_v47 = vpack.c.bf16 %v11075_v4, %v11074_v59  ;;  %v11026_v3 = vadd.f32 %v16404_v55, %v11007_v6  ;;  %v10835_v40 = vadd.f32 %v10816_v10, %v10657_v57 }
0x14c9   :  { %11182 = vmatmul.bf16.gmra.mxu0 %v11087_v47  ;;  %v11042_v43 = vmax.f32 %v11026_v3, 0.0  ;;  %v10640_v47 = vpop.f32.mrf.mxu0  ;;  %v10818_v3 = vpop.f32.mrf.mxu1 }
0x14cb   :  { %v11059_v50 = vmul.f32 %v16408_v33, %v11042_v43 }
0x14cc   :  { %v10981_v46 = vpop.f32.mrf.mxu3 }
0x14cd   :  { %v11008_v32 = vadd.f32 %v10981_v46, %v10830_v48  ;;  %v11076_v30 = vadd.f32 %v16413_v36, %v11059_v50  ;;  %v10658_v48 = vadd.f32 %v10640_v47, %v16401_v0  ;;  %v11109_v0 = vld [vmem:[#allocation6 + $0x20] sm:$0xff] }
0x14cf   :  { %v11027_v58 = vadd.f32 %v16404_v55, %v11008_v32  ;;  %v10836_v54 = vadd.f32 %v10818_v3, %v10658_v48 }
0x14d1   :  { %v11043_v5 = vmax.f32 %v11027_v58, 0.0 }
0x14d3   :  { %v11060_v56 = vmul.f32 %v16408_v33, %v11043_v5 }
0x14d4   :  { %v10984_v1 = vpop.f32.mrf.mxu3 }
0x14d5   :  { %v11009_v39 = vadd.f32 %v10984_v1, %v10831_v25  ;;  %v11077_v18 = vadd.f32 %v16413_v36, %v11060_v56  ;;  %v11110_v1 = vperm.slane %v11109_v0, 0 }
0x14d7   :  { %v11088_v22 = vpack.c.bf16 %v11077_v18, %v11076_v30  ;;  %v11028_v15 = vadd.f32 %v16404_v55, %v11009_v39 }
0x14d9   :  { %11187 = vmatmul.bf16.gmra.mxu0 %v11088_v22  ;;  %v11044_v44 = vmax.f32 %v11028_v15, 0.0 }
0x14db   :  { %v11061_v29 = vmul.f32 %v16408_v33, %v11044_v44 }
0x14dc   :  { %v10986_v41 = vpop.f32.mrf.mxu3 }
0x14dd   :  { %v11010_v60 = vadd.f32 %v10986_v41, %v10832_v17  ;;  %v11078_v37 = vadd.f32 %v16413_v36, %v11061_v29 }
0x14df   :  { %v11029_v21 = vadd.f32 %v16404_v55, %v11010_v60 }
0x14e1   :  { %v11045_v13 = vmax.f32 %v11029_v21, 0.0 }
0x14e3   :  { %v11062_v38 = vmul.f32 %v16408_v33, %v11045_v13 }
0x14e4   :  { %v10989_v16 = vpop.f32.mrf.mxu3 }
0x14e5   :  { %v11011_v23 = vadd.f32 %v10989_v16, %v10833_v42  ;;  %v11079_v34 = vadd.f32 %v16413_v36, %v11062_v38 }
0x14e7   :  { %v11089_v63 = vpack.c.bf16 %v11079_v34, %v11078_v37  ;;  %v11030_v9 = vadd.f32 %v16404_v55, %v11011_v23 }
0x14e9   :  { %11192 = vmatmul.bf16.gmra.mxu0 %v11089_v63  ;;  %v11046_v49 = vmax.f32 %v11030_v9, 0.0 }
0x14eb   :  { %v11063_v2 = vmul.f32 %v16408_v33, %v11046_v49 }
0x14ec   :  { %v10991_v26 = vpop.f32.mrf.mxu3 }
0x14ed   :  { %v11012_v14 = vadd.f32 %v10991_v26, %v10834_v35  ;;  %v11080_v4 = vadd.f32 %v16413_v36, %v11063_v2 }
0x14ef   :  { %v11031_v24 = vadd.f32 %v16404_v55, %v11012_v14 }
0x14f1   :  { %v11047_v52 = vmax.f32 %v11031_v24, 0.0 }
0x14f3   :  { %v11064_v6 = vmul.f32 %v16408_v33, %v11047_v52 }
0x14f4   :  { %v10994_v19 = vpop.f32.mrf.mxu3 }
0x14f5   :  { %v11013_v59 = vadd.f32 %v10994_v19, %v10835_v40  ;;  %v11081_v31 = vadd.f32 %v16413_v36, %v11064_v6 }
0x14f7   :  { %v11090_v11 = vpack.c.bf16 %v11081_v31, %v11080_v4  ;;  %v11032_v46 = vadd.f32 %v16404_v55, %v11013_v59 }
0x14f9   :  { %11197 = vmatmul.bf16.gmra.mxu0 %v11090_v11  ;;  %v11048_v32 = vmax.f32 %v11032_v46, 0.0 }
0x14fb   :  { %v11065_v28 = vmul.f32 %v16408_v33, %v11048_v32 }
0x14fc   :  { %v10996_v43 = vpop.f32.mrf.mxu3 }
0x14fd   :  { %v11014_v51 = vadd.f32 %v10996_v43, %v10836_v54  ;;  %v11082_v5 = vadd.f32 %v16413_v36, %v11065_v28 }
0x14ff   :  { %v11033_v58 = vadd.f32 %v16404_v55, %v11014_v51 }
0x1501   :  { %v11049_v53 = vmax.f32 %v11033_v58, 0.0 }
0x1503   :  { %v11066_v50 = vmul.f32 %v16408_v33, %v11049_v53 }
0x1505   :  { %v11083_v25 = vadd.f32 %v16413_v36, %v11066_v50 }
0x1507   :  { %v11091_v56 = vpack.c.bf16 %v11083_v25, %v11082_v5 }
0x1509   :  { %11202 = vmatmul.bf16.gmra.mxu0 %v11091_v56 }
0x1516   :  { %v11168_v39 = vpop.f32.mrf.mxu0 }
0x1517   :  { %v11169_v30 = vadd.f32 %v11168_v39, %v11110_v1 }
0x1519   :  { %11208 = vst [vmem:[%s16526_s5] sm:$0xff] %v11169_v30 }
0x151e   :  { %v11170_v55 = vpop.f32.mrf.mxu0 }
0x151f   :  { %v11171_v18 = vadd.f32 %v11170_v55, %v11110_v1 }
0x1521   :  { %11209 = vst [vmem:[%s16526_s5 + $0x8] sm:$0xff] %v11171_v18 }
0x1526   :  { %v11173_v33 = vpop.f32.mrf.mxu0 }
0x1527   :  { %v11174_v22 = vadd.f32 %v11173_v33, %v11110_v1 }
0x1529   :  { %11210 = vst [vmem:[%s16526_s5 + $0x10] sm:$0xff] %v11174_v22 }
0x152e   :  { %v11175_v36 = vpop.f32.mrf.mxu0 }
0x152f   :  { %v11176_v12 = vadd.f32 %v11175_v36, %v11110_v1 }
0x1531   :  { %11211 = vst [vmem:[%s16526_s5 + $0x18] sm:$0xff] %v11176_v12 }
0x1536   :  { %v11178_v7 = vpop.f32.mrf.mxu0 }
0x1537   :  { %v11179_v15 = vadd.f32 %v11178_v7, %v11110_v1 }
0x1539   :  { %11212 = vst [vmem:[%s16526_s5 + $0x20] sm:$0xff] %v11179_v15 }
0x153e   :  { %v11180_v45 = vpop.f32.mrf.mxu0 }
0x153f   :  { %v11181_v17 = vadd.f32 %v11180_v45, %v11110_v1 }
0x1541   :  { %11213 = vst [vmem:[%s16526_s5 + $0x28] sm:$0xff] %v11181_v17 }
0x1546   :  { %v11183_v41 = vpop.f32.mrf.mxu0 }
0x1547   :  { %v11184_v44 = vadd.f32 %v11183_v41, %v11110_v1 }
0x1549   :  { %11214 = vst [vmem:[%s16526_s5 + $0x30] sm:$0xff] %v11184_v44 }
0x154e   :  { %v11185_v60 = vpop.f32.mrf.mxu0 }
0x154f   :  { %v11186_v21 = vadd.f32 %v11185_v60, %v11110_v1 }
0x1551   :  { %11215 = vst [vmem:[%s16526_s5 + $0x38] sm:$0xff] %v11186_v21 }
0x1556   :  { %v11188_v61 = vpop.f32.mrf.mxu0 }
0x1557   :  { %v11189_v29 = vadd.f32 %v11188_v61, %v11110_v1 }
0x1559   :  { %11216 = vst [vmem:[%s16526_s5 + $0x40] sm:$0xff] %v11189_v29 }
0x155e   :  { %v11190_v13 = vpop.f32.mrf.mxu0 }
0x155f   :  { %v11191_v27 = vadd.f32 %v11190_v13, %v11110_v1 }
0x1561   :  { %11217 = vst [vmem:[%s16526_s5 + $0x48] sm:$0xff] %v11191_v27 }
0x1566   :  { %v11193_v42 = vpop.f32.mrf.mxu0 }
0x1567   :  { %v11194_v38 = vadd.f32 %v11193_v42, %v11110_v1 }
0x1569   :  { %11218 = vst [vmem:[%s16526_s5 + $0x50] sm:$0xff] %v11194_v38 }
0x156e   :  { %v11195_v8 = vpop.f32.mrf.mxu0 }
0x156f   :  { %v11196_v16 = vadd.f32 %v11195_v8, %v11110_v1 }
0x1571   :  { %11219 = vst [vmem:[%s16526_s5 + $0x58] sm:$0xff] %v11196_v16 }
0x1576   :  { %v11198_v23 = vpop.f32.mrf.mxu0 }
0x1577   :  { %v11199_v37 = vadd.f32 %v11198_v23, %v11110_v1 }
0x1579   :  { %11220 = vst [vmem:[%s16526_s5 + $0x60] sm:$0xff] %v11199_v37 }
0x157e   :  { %v11200_v34 = vpop.f32.mrf.mxu0 }
0x157f   :  { %v11201_v63 = vadd.f32 %v11200_v34, %v11110_v1 }
0x1581   :  { %11221 = vst [vmem:[%s16526_s5 + $0x68] sm:$0xff] %v11201_v63 }
0x1586   :  { %v11203_v20 = vpop.f32.mrf.mxu0 }
0x1587   :  { %v11204_v9 = vadd.f32 %v11203_v20, %v11110_v1 }
0x1589   :  { %11222 = vst [vmem:[%s16526_s5 + $0x70] sm:$0xff] %v11204_v9 }
0x158e   :  { %v11205_v35 = vpop.f32.mrf.mxu0 }
0x158f   :  { %v11206_v62 = vadd.f32 %v11205_v35, %v11110_v1 }
0x1591   :  { %11223 = vst [vmem:[%s16526_s5 + $0x78] sm:$0xff] %v11206_v62 }
0x1592   :  { %11228 = vsyncpa [#allocation3], 1 }
0x1593   :  { %11229 = vsyncpa [#allocation5], 1 }
0x1594   :  { %11230 = vsyncpa [#allocation8], 1 }

</bundles_post_ra>
